<compile_context>
chip_gen: v7x
topology: tpu7x:2x2x1
jax: 0.10.0
libtpu: 0.0.40
codegen_flags: <defaults>
</compile_context>

<pallas_src>
import math

import numpy as np

import jax
import jax.numpy as jnp
from jax.experimental import pallas as pl

# ----------------------------- small config ---------------------------------
BATCH = 2
SEQ = 8
HIDDEN = 32
HEADS = 4
HEAD_DIM = HIDDEN // HEADS
INTER = 64
VOCAB = 100
MAXPOS = 64
NUM_LABELS = 2

IMG_H = IMG_W = 8
IMG_C = 3
KH = KW = 3
VIS_DIM = 32          # "resnet avgpool" feature dim (2048 in the real model)
NUM_VIS = 2           # before / after image -> 2 visual tokens
EPS = 1e-12

NEG_BLOCK = -1e9      # cross-batch block-diagonal mask (exp underflows to 0 in f32)

# ------------------------- parameter flattening order -----------------------
_ATTN = ("q_w", "q_b", "k_w", "k_b", "v_w", "v_b", "o_w", "o_b", "ln_g", "ln_b")
_FFN = ("i_w", "i_b", "o_w", "o_b", "ln_g", "ln_b")
_TOP = ("conv_w", "conv_b",
        "emb_ln_g", "emb_ln_b",
        "visn_fc_w", "visn_fc_b", "visn_ln_g", "visn_ln_b",
        "box_fc_w", "box_fc_b", "box_ln_g", "box_ln_b",
        "pool_w", "pool_b", "cls_w", "cls_b")
_BLOCKS = (("l_attn", _ATTN), ("l_ffn", _FFN),
           ("r_attn", _ATTN), ("r_ffn", _FFN),
           ("x_cross", _ATTN),
           ("x_lang_self", _ATTN), ("x_visn_self", _ATTN),
           ("x_lang_ffn", _FFN), ("x_visn_ffn", _FFN))


def _flatten_params(params):
    flat = [params[k] for k in _TOP]
    for name, keys in _BLOCKS:
        flat += [params[name][k] for k in keys]
    return flat


# ======================= in-kernel math helpers ==============================
def _ln(x, g, b):
    """LayerNorm over last dim.  x:(M,D), g/b:(1,D)."""
    mu = jnp.mean(x, axis=-1, keepdims=True)
    var = jnp.mean(jnp.square(x - mu), axis=-1, keepdims=True)
    return (x - mu) * jax.lax.rsqrt(var + EPS) * g + b


def _attn_block(x, y, bias, P):
    """Packed-batch multi-head attention block (whole batch at once).

    x:(Mq,H) queries / residual rows, y:(Mk,H) key/value rows,
    bias:(Mq,Mk) additive = block-diagonal batch mask + token mask.
    P: dict of parameter Refs.  Returns LayerNorm(x + Dense(MHA(x, y))).
    """
    f32 = jnp.float32
    q = jnp.dot(x, P["q_w"][...], preferred_element_type=f32) + P["q_b"][...]
    k = jnp.dot(y, P["k_w"][...], preferred_element_type=f32) + P["k_b"][...]
    v = jnp.dot(y, P["v_w"][...], preferred_element_type=f32) + P["v_b"][...]
    o_w = P["o_w"][...]
    scale = 1.0 / math.sqrt(HEAD_DIM)

    acc = x + P["o_b"][...]                       # residual + output-dense bias
    for h in range(HEADS):                        # static unroll over 4 heads
        sl = slice(h * HEAD_DIM, (h + 1) * HEAD_DIM)
        # q_h @ k_h^T via dot_general contracting last dims (no transpose)
        s = jax.lax.dot_general(q[:, sl], k[:, sl], (((1,), (1,)), ((), ())),
                                preferred_element_type=f32) * scale + bias
        s = s - jnp.max(s, axis=-1, keepdims=True)
        e = jnp.exp(s)
        p_attn = e * pl.reciprocal(jnp.sum(e, axis=-1, keepdims=True), approx=True)
        ctx = jnp.dot(p_attn, v[:, sl], preferred_element_type=f32)        # (Mq,HD)
        # per-head output-dense contribution (sublane-aligned row slice of o_w)
        acc = acc + jnp.dot(ctx, o_w[sl, :], preferred_element_type=f32)   # (Mq,H)
    return _ln(acc, P["ln_g"][...], P["ln_b"][...])


def _ffn_block(x, P):
    """Intermediate (GELU) + output dense + residual + LayerNorm."""
    f32 = jnp.float32
    h = jnp.dot(x, P["i_w"][...], preferred_element_type=f32) + P["i_b"][...]
    # TODO(synk): tanh-approx GELU instead of transformers' exact erf GELU.
    h = jax.nn.gelu(h, approximate=True)
    out = jnp.dot(h, P["o_w"][...], preferred_element_type=f32) + P["o_b"][...] + x
    return _ln(out, P["ln_g"][...], P["ln_b"][...])


# ============================ the fused kernel ===============================
def _encoder_kernel(*refs):
    (patch_ref, pool_ref, emb_ref, pos_ref,
     bll_ref, bvv_ref, blv_ref, bvl_ref, sel_ref) = refs[:9]
    rest = refs[9:]
    top = dict(zip(_TOP, rest[:len(_TOP)]))
    i = len(_TOP)
    blk = {}
    for name, keys in _BLOCKS:
        blk[name] = dict(zip(keys, rest[i:i + len(keys)]))
        i += len(keys)
    o_ref = rest[i]
    f32 = jnp.float32

    # --- frozen vision backbone stand-in: conv3x3 (im2col) + ReLU + global avg pool
    y = jnp.dot(patch_ref[...], top["conv_w"][...],
                preferred_element_type=f32) + top["conv_b"][...]          # (N*P, VIS)
    y = jnp.maximum(y, 0.0)
    feats = jnp.dot(pool_ref[...], y, preferred_element_type=f32)        # (B*NV, VIS)

    # --- input prep: embedding LN + visual feature encoder (2 fc + 2 LN + avg)
    lang = _ln(emb_ref[...], top["emb_ln_g"][...], top["emb_ln_b"][...])  # (B*S, H)
    visn = _ln(jnp.dot(feats, top["visn_fc_w"][...],
                       preferred_element_type=f32) + top["visn_fc_b"][...],
               top["visn_ln_g"][...], top["visn_ln_b"][...])
    box = _ln(jnp.dot(pos_ref[...], top["box_fc_w"][...],
                      preferred_element_type=f32) + top["box_fc_b"][...],
              top["box_ln_g"][...], top["box_ln_b"][...])
    vis = (visn + box) * 0.5                                              # (B*NV, H)

    bll, bvv = bll_ref[...], bvv_ref[...]
    blv, bvl = blv_ref[...], bvl_ref[...]

    # --- language-only layer
    lang = _attn_block(lang, lang, bll, blk["l_attn"])
    lang = _ffn_block(lang, blk["l_ffn"])

    # --- vision-only (relational) layer
    vis = _attn_block(vis, vis, bvv, blk["r_attn"])
    vis = _ffn_block(vis, blk["r_ffn"])

    # --- cross-modal layer (cross-attention weights shared across directions)
    lang_att = _attn_block(lang, vis, blv, blk["x_cross"])
    visn_att = _attn_block(vis, lang, bvl, blk["x_cross"])
    lang_att = _attn_block(lang_att, lang_att, bll, blk["x_lang_self"])
    visn_att = _attn_block(visn_att, visn_att, bvv, blk["x_visn_self"])
    lang = _ffn_block(lang_att, blk["x_lang_ffn"])
    _vis_out = _ffn_block(visn_att, blk["x_visn_ffn"])   # unused by the classifier (DCE'd)

    # --- pooler (first language token per batch, via constant selection matmul)
    pooled_in = jnp.dot(sel_ref[...], lang, preferred_element_type=f32)   # (B, H)
    pooled = jnp.tanh(jnp.dot(pooled_in, top["pool_w"][...],
                              preferred_element_type=f32) + top["pool_b"][...])
    o_ref[...] = jnp.dot(pooled, top["cls_w"][...],
                         preferred_element_type=f32) + top["cls_b"][...]


# ============================== forward pass =================================
def custom_lxmert_forward(params, input_ids, attention_mask, image_before, image_after):
    B, S = input_ids.shape
    N = 2 * B
    OH, OW = IMG_H - KH + 1, IMG_W - KW + 1
    P = OH * OW
    KKC = KH * KW * IMG_C

    # ---- im2col patch extraction (glue; gather/stride ops have no clean Pallas form)
    imgs = jnp.concatenate([image_before, image_after], axis=0)           # (2B,H,W,C)
    cols = []
    for kh in range(KH):
        for kw in range(KW):
            cols.append(imgs[:, kh:kh + OH, kw:kw + OW, :])               # (N,OH,OW,C)
    patches = jnp.stack(cols, axis=3).reshape(N * P, KKC)

    # ---- constant average-pool matrix; row (b, token t) selects image t*B + b
    pool_np = np.zeros((B * NUM_VIS, N * P), np.float32)
    for b in range(B):
        for t in range(NUM_VIS):
            img = t * B + b                                               # before imgs first
            pool_np[b * NUM_VIS + t, img * P:(img + 1) * P] = 1.0 / P
    pool_mat = jnp.asarray(pool_np)

    # ---- visual_pos: zeros, [:, :2] = token index (constant)
    vpos_np = np.zeros((B * NUM_VIS, 4), np.float32)
    vpos_np[:, 0] = np.tile(np.arange(NUM_VIS, dtype=np.float32), B)
    vpos_np[:, 1] = vpos_np[:, 0]
    vpos = jnp.asarray(vpos_np)

    # ---- language embeddings (gather stays in glue)
    emb = (jnp.take(params["word_emb"], input_ids, axis=0)
           + params["pos_emb"][None, :S, :]
           + params["type_emb"][0][None, None, :]).reshape(B * S, HIDDEN)

    # ---- packed-batch attention biases: block-diagonal batch mask + token mask
    lang_bid = np.repeat(np.arange(B), S)
    vis_bid = np.repeat(np.arange(B), NUM_VIS)

    def bd(a, b):
        return jnp.asarray(
            np.where(a[:, None] == b[None, :], 0.0, NEG_BLOCK).astype(np.float32))

    key_mask = (1.0 - attention_mask.astype(jnp.float32)).reshape(B * S) * -10000.0
    bias_ll = bd(lang_bid, lang_bid) + key_mask[None, :]                  # (B*S, B*S)
    bias_vv = bd(vis_bid, vis_bid)                                        # (B*NV,B*NV)
    bias_lv = bd(lang_bid, vis_bid)                                       # (B*S, B*NV)
    bias_vl = bd(vis_bid, lang_bid) + key_mask[None, :]                   # (B*NV,B*S)

    # ---- constant CLS-row selector (first language token of each batch element)
    sel_np = np.zeros((B, B * S), np.float32)
    sel_np[np.arange(B), np.arange(B) * S] = 1.0
    cls_sel = jnp.asarray(sel_np)

    flat_params = _flatten_params(params)

    # Single grid-less pallas_call: everything VMEM-resident, one launch.
    logits = pl.pallas_call(
        _encoder_kernel,
        out_shape=jax.ShapeDtypeStruct((B, NUM_LABELS), jnp.float32),
    )(patches, pool_mat, emb, vpos,
      bias_ll, bias_vv, bias_lv, bias_vl, cls_sel,
      *flat_params)
    return logits


# ============================ parameter init =================================
def init_params(key):
    keys = iter(jax.random.split(key, 64))

    def W(*shape):
        return jax.random.normal(next(keys), shape, jnp.float32) * 0.02

    def zeros(*shape):
        return jnp.zeros(shape, jnp.float32)

    def ones(*shape):
        return jnp.ones(shape, jnp.float32)

    # biases / LN params stored pre-reshaped to (1, D); conv weight pre-flattened.
    def attn_set():
        return dict(q_w=W(HIDDEN, HIDDEN), q_b=zeros(1, HIDDEN),
                    k_w=W(HIDDEN, HIDDEN), k_b=zeros(1, HIDDEN),
                    v_w=W(HIDDEN, HIDDEN), v_b=zeros(1, HIDDEN),
                    o_w=W(HIDDEN, HIDDEN), o_b=zeros(1, HIDDEN),
                    ln_g=ones(1, HIDDEN), ln_b=zeros(1, HIDDEN))

    def ffn_set():
        return dict(i_w=W(HIDDEN, INTER), i_b=zeros(1, INTER),
                    o_w=W(INTER, HIDDEN), o_b=zeros(1, HIDDEN),
                    ln_g=ones(1, HIDDEN), ln_b=zeros(1, HIDDEN))

    return dict(
        conv_w=W(KH * KW * IMG_C, VIS_DIM), conv_b=zeros(1, VIS_DIM),
        word_emb=W(VOCAB, HIDDEN), pos_emb=W(MAXPOS, HIDDEN), type_emb=W(2, HIDDEN),
        emb_ln_g=ones(1, HIDDEN), emb_ln_b=zeros(1, HIDDEN),
        visn_fc_w=W(VIS_DIM, HIDDEN), visn_fc_b=zeros(1, HIDDEN),
        visn_ln_g=ones(1, HIDDEN), visn_ln_b=zeros(1, HIDDEN),
        box_fc_w=W(4, HIDDEN), box_fc_b=zeros(1, HIDDEN),
        box_ln_g=ones(1, HIDDEN), box_ln_b=zeros(1, HIDDEN),
        l_attn=attn_set(), l_ffn=ffn_set(),
        r_attn=attn_set(), r_ffn=ffn_set(),
        x_cross=attn_set(),
        x_lang_self=attn_set(), x_visn_self=attn_set(),
        x_lang_ffn=ffn_set(), x_visn_ffn=ffn_set(),
        pool_w=W(HIDDEN, HIDDEN), pool_b=zeros(1, HIDDEN),
        cls_w=W(HIDDEN, NUM_LABELS), cls_b=zeros(1, NUM_LABELS),
    )


# =================================== main ====================================
if __name__ == "__main__":
    root = jax.random.PRNGKey(0)
    kp, kids, kib, kia = jax.random.split(root, 4)

    params = init_params(kp)
    input_ids = jax.random.randint(kids, (BATCH, SEQ), 0, VOCAB, dtype=jnp.int32)
    attention_mask = jnp.ones((BATCH, SEQ), jnp.int32).at[1, 6:].set(0)
    image_before = jax.random.normal(kib, (BATCH, IMG_H, IMG_W, IMG_C), jnp.float32)
    image_after = jax.random.normal(kia, (BATCH, IMG_H, IMG_W, IMG_C), jnp.float32)

    fwd = jax.jit(custom_lxmert_forward)
    logits = fwd(params, input_ids, attention_mask, image_before, image_after)
    logits = jax.block_until_ready(logits)

    assert logits.shape == (BATCH, NUM_LABELS)
    assert bool(jnp.all(jnp.isfinite(logits)))
    print("KERNEL_OK")
</pallas_src>

<mosaic_0001>
module attributes {stable_mosaic.version = 11 : i64} {
  func.func @_encoder_kernel(%arg0: memref<144x27xf32, #tpu.memory_space<vmem>>, %arg1: memref<4x144xf32, #tpu.memory_space<vmem>>, %arg2: memref<16x32xf32, #tpu.memory_space<vmem>>, %arg3: memref<4x4xf32, #tpu.memory_space<vmem>>, %arg4: memref<16x16xf32, #tpu.memory_space<vmem>>, %arg5: memref<4x4xf32, #tpu.memory_space<vmem>>, %arg6: memref<16x4xf32, #tpu.memory_space<vmem>>, %arg7: memref<4x16xf32, #tpu.memory_space<vmem>>, %arg8: memref<2x16xf32, #tpu.memory_space<vmem>>, %arg9: memref<27x32xf32, #tpu.memory_space<vmem>>, %arg10: memref<1x32xf32, #tpu.memory_space<vmem>>, %arg11: memref<1x32xf32, #tpu.memory_space<vmem>>, %arg12: memref<1x32xf32, #tpu.memory_space<vmem>>, %arg13: memref<32x32xf32, #tpu.memory_space<vmem>>, %arg14: memref<1x32xf32, #tpu.memory_space<vmem>>, %arg15: memref<1x32xf32, #tpu.memory_space<vmem>>, %arg16: memref<1x32xf32, #tpu.memory_space<vmem>>, %arg17: memref<4x32xf32, #tpu.memory_space<vmem>>, %arg18: memref<1x32xf32, #tpu.memory_space<vmem>>, %arg19: memref<1x32xf32, #tpu.memory_space<vmem>>, %arg20: memref<1x32xf32, #tpu.memory_space<vmem>>, %arg21: memref<32x32xf32, #tpu.memory_space<vmem>>, %arg22: memref<1x32xf32, #tpu.memory_space<vmem>>, %arg23: memref<32x2xf32, #tpu.memory_space<vmem>>, %arg24: memref<1x2xf32, #tpu.memory_space<vmem>>, %arg25: memref<32x32xf32, #tpu.memory_space<vmem>>, %arg26: memref<1x32xf32, #tpu.memory_space<vmem>>, %arg27: memref<32x32xf32, #tpu.memory_space<vmem>>, %arg28: memref<1x32xf32, #tpu.memory_space<vmem>>, %arg29: memref<32x32xf32, #tpu.memory_space<vmem>>, %arg30: memref<1x32xf32, #tpu.memory_space<vmem>>, %arg31: memref<32x32xf32, #tpu.memory_space<vmem>>, %arg32: memref<1x32xf32, #tpu.memory_space<vmem>>, %arg33: memref<1x32xf32, #tpu.memory_space<vmem>>, %arg34: memref<1x32xf32, #tpu.memory_space<vmem>>, %arg35: memref<32x64xf32, #tpu.memory_space<vmem>>, %arg36: memref<1x64xf32, #tpu.memory_space<vmem>>, %arg37: memref<64x32xf32, #tpu.memory_space<vmem>>, %arg38: memref<1x32xf32, #tpu.memory_space<vmem>>, %arg39: memref<1x32xf32, #tpu.memory_space<vmem>>, %arg40: memref<1x32xf32, #tpu.memory_space<vmem>>, %arg41: memref<32x32xf32, #tpu.memory_space<vmem>>, %arg42: memref<1x32xf32, #tpu.memory_space<vmem>>, %arg43: memref<32x32xf32, #tpu.memory_space<vmem>>, %arg44: memref<1x32xf32, #tpu.memory_space<vmem>>, %arg45: memref<32x32xf32, #tpu.memory_space<vmem>>, %arg46: memref<1x32xf32, #tpu.memory_space<vmem>>, %arg47: memref<32x32xf32, #tpu.memory_space<vmem>>, %arg48: memref<1x32xf32, #tpu.memory_space<vmem>>, %arg49: memref<1x32xf32, #tpu.memory_space<vmem>>, %arg50: memref<1x32xf32, #tpu.memory_space<vmem>>, %arg51: memref<32x64xf32, #tpu.memory_space<vmem>>, %arg52: memref<1x64xf32, #tpu.memory_space<vmem>>, %arg53: memref<64x32xf32, #tpu.memory_space<vmem>>, %arg54: memref<1x32xf32, #tpu.memory_space<vmem>>, %arg55: memref<1x32xf32, #tpu.memory_space<vmem>>, %arg56: memref<1x32xf32, #tpu.memory_space<vmem>>, %arg57: memref<32x32xf32, #tpu.memory_space<vmem>>, %arg58: memref<1x32xf32, #tpu.memory_space<vmem>>, %arg59: memref<32x32xf32, #tpu.memory_space<vmem>>, %arg60: memref<1x32xf32, #tpu.memory_space<vmem>>, %arg61: memref<32x32xf32, #tpu.memory_space<vmem>>, %arg62: memref<1x32xf32, #tpu.memory_space<vmem>>, %arg63: memref<32x32xf32, #tpu.memory_space<vmem>>, %arg64: memref<1x32xf32, #tpu.memory_space<vmem>>, %arg65: memref<1x32xf32, #tpu.memory_space<vmem>>, %arg66: memref<1x32xf32, #tpu.memory_space<vmem>>, %arg67: memref<32x32xf32, #tpu.memory_space<vmem>>, %arg68: memref<1x32xf32, #tpu.memory_space<vmem>>, %arg69: memref<32x32xf32, #tpu.memory_space<vmem>>, %arg70: memref<1x32xf32, #tpu.memory_space<vmem>>, %arg71: memref<32x32xf32, #tpu.memory_space<vmem>>, %arg72: memref<1x32xf32, #tpu.memory_space<vmem>>, %arg73: memref<32x32xf32, #tpu.memory_space<vmem>>, %arg74: memref<1x32xf32, #tpu.memory_space<vmem>>, %arg75: memref<1x32xf32, #tpu.memory_space<vmem>>, %arg76: memref<1x32xf32, #tpu.memory_space<vmem>>, %arg77: memref<32x32xf32, #tpu.memory_space<vmem>>, %arg78: memref<1x32xf32, #tpu.memory_space<vmem>>, %arg79: memref<32x32xf32, #tpu.memory_space<vmem>>, %arg80: memref<1x32xf32, #tpu.memory_space<vmem>>, %arg81: memref<32x32xf32, #tpu.memory_space<vmem>>, %arg82: memref<1x32xf32, #tpu.memory_space<vmem>>, %arg83: memref<32x32xf32, #tpu.memory_space<vmem>>, %arg84: memref<1x32xf32, #tpu.memory_space<vmem>>, %arg85: memref<1x32xf32, #tpu.memory_space<vmem>>, %arg86: memref<1x32xf32, #tpu.memory_space<vmem>>, %arg87: memref<32x64xf32, #tpu.memory_space<vmem>>, %arg88: memref<1x64xf32, #tpu.memory_space<vmem>>, %arg89: memref<64x32xf32, #tpu.memory_space<vmem>>, %arg90: memref<1x32xf32, #tpu.memory_space<vmem>>, %arg91: memref<1x32xf32, #tpu.memory_space<vmem>>, %arg92: memref<1x32xf32, #tpu.memory_space<vmem>>, %arg93: memref<32x64xf32, #tpu.memory_space<vmem>>, %arg94: memref<1x64xf32, #tpu.memory_space<vmem>>, %arg95: memref<64x32xf32, #tpu.memory_space<vmem>>, %arg96: memref<1x32xf32, #tpu.memory_space<vmem>>, %arg97: memref<1x32xf32, #tpu.memory_space<vmem>>, %arg98: memref<1x32xf32, #tpu.memory_space<vmem>>, %arg99: memref<2x2xf32, #tpu.memory_space<vmem>>) attributes {dimension_semantics = [], scalar_prefetch = 0 : i64, scratch_operands = 0 : i64, tpu.core_type = #tpu.core_type<tc>} {
    %c0 = arith.constant 0 : index
    %c0_0 = arith.constant 0 : index
    %0 = vector.load %arg0[%c0, %c0_0] : memref<144x27xf32, #tpu.memory_space<vmem>>, vector<144x27xf32>
    %c0_1 = arith.constant 0 : index
    %c0_2 = arith.constant 0 : index
    %1 = vector.load %arg9[%c0_1, %c0_2] : memref<27x32xf32, #tpu.memory_space<vmem>>, vector<27x32xf32>
    %cst = arith.constant dense<0.000000e+00> : vector<144x32xf32>
    %2 = tpu.matmul %0, %1, %cst {dimension_numbers = #tpu.dot_dimension_numbers<[1], [0], [0], [1], [0, 0, 1, 1], [], []>} : vector<144x27xf32>, vector<27x32xf32>, vector<144x32xf32> -> vector<144x32xf32>
    %c0_3 = arith.constant 0 : index
    %c0_4 = arith.constant 0 : index
    %3 = vector.load %arg10[%c0_3, %c0_4] : memref<1x32xf32, #tpu.memory_space<vmem>>, vector<1x32xf32>
    %4 = vector.broadcast %3 : vector<1x32xf32> to vector<144x32xf32>
    %5 = arith.addf %2, %4 : vector<144x32xf32>
    %cst_5 = arith.constant 0.000000e+00 : f32
    %6 = vector.broadcast %cst_5 : f32 to vector<144x32xf32>
    %7 = arith.maximumf %5, %6 : vector<144x32xf32>
    %c0_6 = arith.constant 0 : index
    %c0_7 = arith.constant 0 : index
    %8 = vector.load %arg1[%c0_6, %c0_7] : memref<4x144xf32, #tpu.memory_space<vmem>>, vector<4x144xf32>
    %cst_8 = arith.constant dense<0.000000e+00> : vector<4x32xf32>
    %9 = tpu.matmul %8, %7, %cst_8 {dimension_numbers = #tpu.dot_dimension_numbers<[1], [0], [0], [1], [0, 0, 1, 1], [], []>} : vector<4x144xf32>, vector<144x32xf32>, vector<4x32xf32> -> vector<4x32xf32>
    %c0_9 = arith.constant 0 : index
    %c0_10 = arith.constant 0 : index
    %10 = vector.load %arg2[%c0_9, %c0_10] : memref<16x32xf32, #tpu.memory_space<vmem>>, vector<16x32xf32>
    %c0_11 = arith.constant 0 : index
    %c0_12 = arith.constant 0 : index
    %11 = vector.load %arg11[%c0_11, %c0_12] : memref<1x32xf32, #tpu.memory_space<vmem>>, vector<1x32xf32>
    %c0_13 = arith.constant 0 : index
    %c0_14 = arith.constant 0 : index
    %12 = vector.load %arg12[%c0_13, %c0_14] : memref<1x32xf32, #tpu.memory_space<vmem>>, vector<1x32xf32>
    %cst_15 = arith.constant dense<0.000000e+00> : vector<16xf32>
    %13 = vector.multi_reduction <add>, %10, %cst_15 [1] : vector<16x32xf32> to vector<16xf32>
    %14 = vector.shape_cast %13 : vector<16xf32> to vector<16x1xf32>
    %cst_16 = arith.constant 3.200000e+01 : f32
    %15 = vector.broadcast %cst_16 : f32 to vector<16x1xf32>
    %16 = arith.divf %14, %15 : vector<16x1xf32>
    %17 = vector.broadcast %16 : vector<16x1xf32> to vector<16x32xf32>
    %18 = arith.subf %10, %17 : vector<16x32xf32>
    %19 = arith.mulf %18, %18 : vector<16x32xf32>
    %cst_17 = arith.constant dense<0.000000e+00> : vector<16xf32>
    %20 = vector.multi_reduction <add>, %19, %cst_17 [1] : vector<16x32xf32> to vector<16xf32>
    %21 = vector.shape_cast %20 : vector<16xf32> to vector<16x1xf32>
    %cst_18 = arith.constant 3.200000e+01 : f32
    %22 = vector.broadcast %cst_18 : f32 to vector<16x1xf32>
    %23 = arith.divf %21, %22 : vector<16x1xf32>
    %24 = vector.broadcast %16 : vector<16x1xf32> to vector<16x32xf32>
    %25 = arith.subf %10, %24 : vector<16x32xf32>
    %cst_19 = arith.constant 9.99999996E-13 : f32
    %26 = vector.broadcast %cst_19 : f32 to vector<16x1xf32>
    %27 = arith.addf %23, %26 : vector<16x1xf32>
    %28 = math.rsqrt %27 : vector<16x1xf32>
    %29 = vector.broadcast %28 : vector<16x1xf32> to vector<16x32xf32>
    %30 = arith.mulf %25, %29 : vector<16x32xf32>
    %31 = vector.broadcast %11 : vector<1x32xf32> to vector<16x32xf32>
    %32 = arith.mulf %30, %31 : vector<16x32xf32>
    %33 = vector.broadcast %12 : vector<1x32xf32> to vector<16x32xf32>
    %34 = arith.addf %32, %33 : vector<16x32xf32>
    %c0_20 = arith.constant 0 : index
    %c0_21 = arith.constant 0 : index
    %35 = vector.load %arg13[%c0_20, %c0_21] : memref<32x32xf32, #tpu.memory_space<vmem>>, vector<32x32xf32>
    %cst_22 = arith.constant dense<0.000000e+00> : vector<4x32xf32>
    %36 = tpu.matmul %9, %35, %cst_22 {dimension_numbers = #tpu.dot_dimension_numbers<[1], [0], [0], [1], [0, 0, 1, 1], [], []>} : vector<4x32xf32>, vector<32x32xf32>, vector<4x32xf32> -> vector<4x32xf32>
    %c0_23 = arith.constant 0 : index
    %c0_24 = arith.constant 0 : index
    %37 = vector.load %arg14[%c0_23, %c0_24] : memref<1x32xf32, #tpu.memory_space<vmem>>, vector<1x32xf32>
    %38 = vector.broadcast %37 : vector<1x32xf32> to vector<4x32xf32>
    %39 = arith.addf %36, %38 : vector<4x32xf32>
    %c0_25 = arith.constant 0 : index
    %c0_26 = arith.constant 0 : index
    %40 = vector.load %arg15[%c0_25, %c0_26] : memref<1x32xf32, #tpu.memory_space<vmem>>, vector<1x32xf32>
    %c0_27 = arith.constant 0 : index
    %c0_28 = arith.constant 0 : index
    %41 = vector.load %arg16[%c0_27, %c0_28] : memref<1x32xf32, #tpu.memory_space<vmem>>, vector<1x32xf32>
    %cst_29 = arith.constant dense<0.000000e+00> : vector<4xf32>
    %42 = vector.multi_reduction <add>, %39, %cst_29 [1] : vector<4x32xf32> to vector<4xf32>
    %43 = vector.shape_cast %42 : vector<4xf32> to vector<4x1xf32>
    %cst_30 = arith.constant 3.200000e+01 : f32
    %44 = vector.broadcast %cst_30 : f32 to vector<4x1xf32>
    %45 = arith.divf %43, %44 : vector<4x1xf32>
    %46 = vector.broadcast %45 : vector<4x1xf32> to vector<4x32xf32>
    %47 = arith.subf %39, %46 : vector<4x32xf32>
    %48 = arith.mulf %47, %47 : vector<4x32xf32>
    %cst_31 = arith.constant dense<0.000000e+00> : vector<4xf32>
    %49 = vector.multi_reduction <add>, %48, %cst_31 [1] : vector<4x32xf32> to vector<4xf32>
    %50 = vector.shape_cast %49 : vector<4xf32> to vector<4x1xf32>
    %cst_32 = arith.constant 3.200000e+01 : f32
    %51 = vector.broadcast %cst_32 : f32 to vector<4x1xf32>
    %52 = arith.divf %50, %51 : vector<4x1xf32>
    %53 = vector.broadcast %45 : vector<4x1xf32> to vector<4x32xf32>
    %54 = arith.subf %39, %53 : vector<4x32xf32>
    %cst_33 = arith.constant 9.99999996E-13 : f32
    %55 = vector.broadcast %cst_33 : f32 to vector<4x1xf32>
    %56 = arith.addf %52, %55 : vector<4x1xf32>
    %57 = math.rsqrt %56 : vector<4x1xf32>
    %58 = vector.broadcast %57 : vector<4x1xf32> to vector<4x32xf32>
    %59 = arith.mulf %54, %58 : vector<4x32xf32>
    %60 = vector.broadcast %40 : vector<1x32xf32> to vector<4x32xf32>
    %61 = arith.mulf %59, %60 : vector<4x32xf32>
    %62 = vector.broadcast %41 : vector<1x32xf32> to vector<4x32xf32>
    %63 = arith.addf %61, %62 : vector<4x32xf32>
    %c0_34 = arith.constant 0 : index
    %c0_35 = arith.constant 0 : index
    %64 = vector.load %arg3[%c0_34, %c0_35] : memref<4x4xf32, #tpu.memory_space<vmem>>, vector<4x4xf32>
    %c0_36 = arith.constant 0 : index
    %c0_37 = arith.constant 0 : index
    %65 = vector.load %arg17[%c0_36, %c0_37] : memref<4x32xf32, #tpu.memory_space<vmem>>, vector<4x32xf32>
    %cst_38 = arith.constant dense<0.000000e+00> : vector<4x32xf32>
    %66 = tpu.matmul %64, %65, %cst_38 {dimension_numbers = #tpu.dot_dimension_numbers<[1], [0], [0], [1], [0, 0, 1, 1], [], []>} : vector<4x4xf32>, vector<4x32xf32>, vector<4x32xf32> -> vector<4x32xf32>
    %c0_39 = arith.constant 0 : index
    %c0_40 = arith.constant 0 : index
    %67 = vector.load %arg18[%c0_39, %c0_40] : memref<1x32xf32, #tpu.memory_space<vmem>>, vector<1x32xf32>
    %68 = vector.broadcast %67 : vector<1x32xf32> to vector<4x32xf32>
    %69 = arith.addf %66, %68 : vector<4x32xf32>
    %c0_41 = arith.constant 0 : index
    %c0_42 = arith.constant 0 : index
    %70 = vector.load %arg19[%c0_41, %c0_42] : memref<1x32xf32, #tpu.memory_space<vmem>>, vector<1x32xf32>
    %c0_43 = arith.constant 0 : index
    %c0_44 = arith.constant 0 : index
    %71 = vector.load %arg20[%c0_43, %c0_44] : memref<1x32xf32, #tpu.memory_space<vmem>>, vector<1x32xf32>
    %cst_45 = arith.constant dense<0.000000e+00> : vector<4xf32>
    %72 = vector.multi_reduction <add>, %69, %cst_45 [1] : vector<4x32xf32> to vector<4xf32>
    %73 = vector.shape_cast %72 : vector<4xf32> to vector<4x1xf32>
    %cst_46 = arith.constant 3.200000e+01 : f32
    %74 = vector.broadcast %cst_46 : f32 to vector<4x1xf32>
    %75 = arith.divf %73, %74 : vector<4x1xf32>
    %76 = vector.broadcast %75 : vector<4x1xf32> to vector<4x32xf32>
    %77 = arith.subf %69, %76 : vector<4x32xf32>
    %78 = arith.mulf %77, %77 : vector<4x32xf32>
    %cst_47 = arith.constant dense<0.000000e+00> : vector<4xf32>
    %79 = vector.multi_reduction <add>, %78, %cst_47 [1] : vector<4x32xf32> to vector<4xf32>
    %80 = vector.shape_cast %79 : vector<4xf32> to vector<4x1xf32>
    %cst_48 = arith.constant 3.200000e+01 : f32
    %81 = vector.broadcast %cst_48 : f32 to vector<4x1xf32>
    %82 = arith.divf %80, %81 : vector<4x1xf32>
    %83 = vector.broadcast %75 : vector<4x1xf32> to vector<4x32xf32>
    %84 = arith.subf %69, %83 : vector<4x32xf32>
    %cst_49 = arith.constant 9.99999996E-13 : f32
    %85 = vector.broadcast %cst_49 : f32 to vector<4x1xf32>
    %86 = arith.addf %82, %85 : vector<4x1xf32>
    %87 = math.rsqrt %86 : vector<4x1xf32>
    %88 = vector.broadcast %87 : vector<4x1xf32> to vector<4x32xf32>
    %89 = arith.mulf %84, %88 : vector<4x32xf32>
    %90 = vector.broadcast %70 : vector<1x32xf32> to vector<4x32xf32>
    %91 = arith.mulf %89, %90 : vector<4x32xf32>
    %92 = vector.broadcast %71 : vector<1x32xf32> to vector<4x32xf32>
    %93 = arith.addf %91, %92 : vector<4x32xf32>
    %94 = arith.addf %63, %93 : vector<4x32xf32>
    %cst_50 = arith.constant 5.000000e-01 : f32
    %95 = vector.broadcast %cst_50 : f32 to vector<4x32xf32>
    %96 = arith.mulf %94, %95 : vector<4x32xf32>
    %c0_51 = arith.constant 0 : index
    %c0_52 = arith.constant 0 : index
    %97 = vector.load %arg4[%c0_51, %c0_52] : memref<16x16xf32, #tpu.memory_space<vmem>>, vector<16x16xf32>
    %c0_53 = arith.constant 0 : index
    %c0_54 = arith.constant 0 : index
    %98 = vector.load %arg5[%c0_53, %c0_54] : memref<4x4xf32, #tpu.memory_space<vmem>>, vector<4x4xf32>
    %c0_55 = arith.constant 0 : index
    %c0_56 = arith.constant 0 : index
    %99 = vector.load %arg6[%c0_55, %c0_56] : memref<16x4xf32, #tpu.memory_space<vmem>>, vector<16x4xf32>
    %c0_57 = arith.constant 0 : index
    %c0_58 = arith.constant 0 : index
    %100 = vector.load %arg25[%c0_57, %c0_58] : memref<32x32xf32, #tpu.memory_space<vmem>>, vector<32x32xf32>
    %cst_59 = arith.constant dense<0.000000e+00> : vector<16x32xf32>
    %101 = tpu.matmul %34, %100, %cst_59 {dimension_numbers = #tpu.dot_dimension_numbers<[1], [0], [0], [1], [0, 0, 1, 1], [], []>} : vector<16x32xf32>, vector<32x32xf32>, vector<16x32xf32> -> vector<16x32xf32>
    %c0_60 = arith.constant 0 : index
    %c0_61 = arith.constant 0 : index
    %102 = vector.load %arg26[%c0_60, %c0_61] : memref<1x32xf32, #tpu.memory_space<vmem>>, vector<1x32xf32>
    %103 = vector.broadcast %102 : vector<1x32xf32> to vector<16x32xf32>
    %104 = arith.addf %101, %103 : vector<16x32xf32>
    %c0_62 = arith.constant 0 : index
    %c0_63 = arith.constant 0 : index
    %105 = vector.load %arg27[%c0_62, %c0_63] : memref<32x32xf32, #tpu.memory_space<vmem>>, vector<32x32xf32>
    %cst_64 = arith.constant dense<0.000000e+00> : vector<16x32xf32>
    %106 = tpu.matmul %34, %105, %cst_64 {dimension_numbers = #tpu.dot_dimension_numbers<[1], [0], [0], [1], [0, 0, 1, 1], [], []>} : vector<16x32xf32>, vector<32x32xf32>, vector<16x32xf32> -> vector<16x32xf32>
    %c0_65 = arith.constant 0 : index
    %c0_66 = arith.constant 0 : index
    %107 = vector.load %arg28[%c0_65, %c0_66] : memref<1x32xf32, #tpu.memory_space<vmem>>, vector<1x32xf32>
    %108 = vector.broadcast %107 : vector<1x32xf32> to vector<16x32xf32>
    %109 = arith.addf %106, %108 : vector<16x32xf32>
    %c0_67 = arith.constant 0 : index
    %c0_68 = arith.constant 0 : index
    %110 = vector.load %arg29[%c0_67, %c0_68] : memref<32x32xf32, #tpu.memory_space<vmem>>, vector<32x32xf32>
    %cst_69 = arith.constant dense<0.000000e+00> : vector<16x32xf32>
    %111 = tpu.matmul %34, %110, %cst_69 {dimension_numbers = #tpu.dot_dimension_numbers<[1], [0], [0], [1], [0, 0, 1, 1], [], []>} : vector<16x32xf32>, vector<32x32xf32>, vector<16x32xf32> -> vector<16x32xf32>
    %c0_70 = arith.constant 0 : index
    %c0_71 = arith.constant 0 : index
    %112 = vector.load %arg30[%c0_70, %c0_71] : memref<1x32xf32, #tpu.memory_space<vmem>>, vector<1x32xf32>
    %113 = vector.broadcast %112 : vector<1x32xf32> to vector<16x32xf32>
    %114 = arith.addf %111, %113 : vector<16x32xf32>
    %c0_72 = arith.constant 0 : index
    %c0_73 = arith.constant 0 : index
    %115 = vector.load %arg31[%c0_72, %c0_73] : memref<32x32xf32, #tpu.memory_space<vmem>>, vector<32x32xf32>
    %c0_74 = arith.constant 0 : index
    %c0_75 = arith.constant 0 : index
    %116 = vector.load %arg32[%c0_74, %c0_75] : memref<1x32xf32, #tpu.memory_space<vmem>>, vector<1x32xf32>
    %117 = vector.broadcast %116 : vector<1x32xf32> to vector<16x32xf32>
    %118 = arith.addf %34, %117 : vector<16x32xf32>
    %119 = vector.extract_strided_slice %104 {offsets = [0, 0], sizes = [16, 8], strides = [1, 1]} : vector<16x32xf32> to vector<16x8xf32>
    %120 = vector.extract_strided_slice %109 {offsets = [0, 0], sizes = [16, 8], strides = [1, 1]} : vector<16x32xf32> to vector<16x8xf32>
    %cst_76 = arith.constant dense<0.000000e+00> : vector<16x16xf32>
    %121 = tpu.matmul %119, %120, %cst_76 {dimension_numbers = #tpu.dot_dimension_numbers<[1], [1], [0], [0], [0, 0, 1, 0], [], []>} : vector<16x8xf32>, vector<16x8xf32>, vector<16x16xf32> -> vector<16x16xf32>
    %cst_77 = arith.constant 0.353553385 : f32
    %122 = vector.broadcast %cst_77 : f32 to vector<16x16xf32>
    %123 = arith.mulf %121, %122 : vector<16x16xf32>
    %124 = arith.addf %123, %97 : vector<16x16xf32>
    %cst_78 = arith.constant dense<0xFF800000> : vector<16xf32>
    %125 = vector.multi_reduction <maximumf>, %124, %cst_78 [1] : vector<16x16xf32> to vector<16xf32>
    %126 = vector.shape_cast %125 : vector<16xf32> to vector<16x1xf32>
    %127 = vector.broadcast %126 : vector<16x1xf32> to vector<16x16xf32>
    %128 = arith.subf %124, %127 : vector<16x16xf32>
    %129 = math.exp %128 : vector<16x16xf32>
    %cst_79 = arith.constant dense<0.000000e+00> : vector<16xf32>
    %130 = vector.multi_reduction <add>, %129, %cst_79 [1] : vector<16x16xf32> to vector<16xf32>
    %131 = vector.shape_cast %130 : vector<16xf32> to vector<16x1xf32>
    %132 = tpu.reciprocal %131 {approx = true} : vector<16x1xf32> -> vector<16x1xf32>
    %133 = vector.broadcast %132 : vector<16x1xf32> to vector<16x16xf32>
    %134 = arith.mulf %129, %133 : vector<16x16xf32>
    %135 = vector.extract_strided_slice %114 {offsets = [0, 0], sizes = [16, 8], strides = [1, 1]} : vector<16x32xf32> to vector<16x8xf32>
    %cst_80 = arith.constant dense<0.000000e+00> : vector<16x8xf32>
    %136 = tpu.matmul %134, %135, %cst_80 {dimension_numbers = #tpu.dot_dimension_numbers<[1], [0], [0], [1], [0, 0, 1, 1], [], []>} : vector<16x16xf32>, vector<16x8xf32>, vector<16x8xf32> -> vector<16x8xf32>
    %137 = vector.extract_strided_slice %115 {offsets = [0, 0], sizes = [8, 32], strides = [1, 1]} : vector<32x32xf32> to vector<8x32xf32>
    %cst_81 = arith.constant dense<0.000000e+00> : vector<16x32xf32>
    %138 = tpu.matmul %136, %137, %cst_81 {dimension_numbers = #tpu.dot_dimension_numbers<[1], [0], [0], [1], [0, 0, 1, 1], [], []>} : vector<16x8xf32>, vector<8x32xf32>, vector<16x32xf32> -> vector<16x32xf32>
    %139 = arith.addf %118, %138 : vector<16x32xf32>
    %140 = vector.extract_strided_slice %104 {offsets = [0, 8], sizes = [16, 8], strides = [1, 1]} : vector<16x32xf32> to vector<16x8xf32>
    %141 = vector.extract_strided_slice %109 {offsets = [0, 8], sizes = [16, 8], strides = [1, 1]} : vector<16x32xf32> to vector<16x8xf32>
    %cst_82 = arith.constant dense<0.000000e+00> : vector<16x16xf32>
    %142 = tpu.matmul %140, %141, %cst_82 {dimension_numbers = #tpu.dot_dimension_numbers<[1], [1], [0], [0], [0, 0, 1, 0], [], []>} : vector<16x8xf32>, vector<16x8xf32>, vector<16x16xf32> -> vector<16x16xf32>
    %cst_83 = arith.constant 0.353553385 : f32
    %143 = vector.broadcast %cst_83 : f32 to vector<16x16xf32>
    %144 = arith.mulf %142, %143 : vector<16x16xf32>
    %145 = arith.addf %144, %97 : vector<16x16xf32>
    %cst_84 = arith.constant dense<0xFF800000> : vector<16xf32>
    %146 = vector.multi_reduction <maximumf>, %145, %cst_84 [1] : vector<16x16xf32> to vector<16xf32>
    %147 = vector.shape_cast %146 : vector<16xf32> to vector<16x1xf32>
    %148 = vector.broadcast %147 : vector<16x1xf32> to vector<16x16xf32>
    %149 = arith.subf %145, %148 : vector<16x16xf32>
    %150 = math.exp %149 : vector<16x16xf32>
    %cst_85 = arith.constant dense<0.000000e+00> : vector<16xf32>
    %151 = vector.multi_reduction <add>, %150, %cst_85 [1] : vector<16x16xf32> to vector<16xf32>
    %152 = vector.shape_cast %151 : vector<16xf32> to vector<16x1xf32>
    %153 = tpu.reciprocal %152 {approx = true} : vector<16x1xf32> -> vector<16x1xf32>
    %154 = vector.broadcast %153 : vector<16x1xf32> to vector<16x16xf32>
    %155 = arith.mulf %150, %154 : vector<16x16xf32>
    %156 = vector.extract_strided_slice %114 {offsets = [0, 8], sizes = [16, 8], strides = [1, 1]} : vector<16x32xf32> to vector<16x8xf32>
    %cst_86 = arith.constant dense<0.000000e+00> : vector<16x8xf32>
    %157 = tpu.matmul %155, %156, %cst_86 {dimension_numbers = #tpu.dot_dimension_numbers<[1], [0], [0], [1], [0, 0, 1, 1], [], []>} : vector<16x16xf32>, vector<16x8xf32>, vector<16x8xf32> -> vector<16x8xf32>
    %158 = vector.extract_strided_slice %115 {offsets = [8, 0], sizes = [8, 32], strides = [1, 1]} : vector<32x32xf32> to vector<8x32xf32>
    %cst_87 = arith.constant dense<0.000000e+00> : vector<16x32xf32>
    %159 = tpu.matmul %157, %158, %cst_87 {dimension_numbers = #tpu.dot_dimension_numbers<[1], [0], [0], [1], [0, 0, 1, 1], [], []>} : vector<16x8xf32>, vector<8x32xf32>, vector<16x32xf32> -> vector<16x32xf32>
    %160 = arith.addf %139, %159 : vector<16x32xf32>
    %161 = vector.extract_strided_slice %104 {offsets = [0, 16], sizes = [16, 8], strides = [1, 1]} : vector<16x32xf32> to vector<16x8xf32>
    %162 = vector.extract_strided_slice %109 {offsets = [0, 16], sizes = [16, 8], strides = [1, 1]} : vector<16x32xf32> to vector<16x8xf32>
    %cst_88 = arith.constant dense<0.000000e+00> : vector<16x16xf32>
    %163 = tpu.matmul %161, %162, %cst_88 {dimension_numbers = #tpu.dot_dimension_numbers<[1], [1], [0], [0], [0, 0, 1, 0], [], []>} : vector<16x8xf32>, vector<16x8xf32>, vector<16x16xf32> -> vector<16x16xf32>
    %cst_89 = arith.constant 0.353553385 : f32
    %164 = vector.broadcast %cst_89 : f32 to vector<16x16xf32>
    %165 = arith.mulf %163, %164 : vector<16x16xf32>
    %166 = arith.addf %165, %97 : vector<16x16xf32>
    %cst_90 = arith.constant dense<0xFF800000> : vector<16xf32>
    %167 = vector.multi_reduction <maximumf>, %166, %cst_90 [1] : vector<16x16xf32> to vector<16xf32>
    %168 = vector.shape_cast %167 : vector<16xf32> to vector<16x1xf32>
    %169 = vector.broadcast %168 : vector<16x1xf32> to vector<16x16xf32>
    %170 = arith.subf %166, %169 : vector<16x16xf32>
    %171 = math.exp %170 : vector<16x16xf32>
    %cst_91 = arith.constant dense<0.000000e+00> : vector<16xf32>
    %172 = vector.multi_reduction <add>, %171, %cst_91 [1] : vector<16x16xf32> to vector<16xf32>
    %173 = vector.shape_cast %172 : vector<16xf32> to vector<16x1xf32>
    %174 = tpu.reciprocal %173 {approx = true} : vector<16x1xf32> -> vector<16x1xf32>
    %175 = vector.broadcast %174 : vector<16x1xf32> to vector<16x16xf32>
    %176 = arith.mulf %171, %175 : vector<16x16xf32>
    %177 = vector.extract_strided_slice %114 {offsets = [0, 16], sizes = [16, 8], strides = [1, 1]} : vector<16x32xf32> to vector<16x8xf32>
    %cst_92 = arith.constant dense<0.000000e+00> : vector<16x8xf32>
    %178 = tpu.matmul %176, %177, %cst_92 {dimension_numbers = #tpu.dot_dimension_numbers<[1], [0], [0], [1], [0, 0, 1, 1], [], []>} : vector<16x16xf32>, vector<16x8xf32>, vector<16x8xf32> -> vector<16x8xf32>
    %179 = vector.extract_strided_slice %115 {offsets = [16, 0], sizes = [8, 32], strides = [1, 1]} : vector<32x32xf32> to vector<8x32xf32>
    %cst_93 = arith.constant dense<0.000000e+00> : vector<16x32xf32>
    %180 = tpu.matmul %178, %179, %cst_93 {dimension_numbers = #tpu.dot_dimension_numbers<[1], [0], [0], [1], [0, 0, 1, 1], [], []>} : vector<16x8xf32>, vector<8x32xf32>, vector<16x32xf32> -> vector<16x32xf32>
    %181 = arith.addf %160, %180 : vector<16x32xf32>
    %182 = vector.extract_strided_slice %104 {offsets = [0, 24], sizes = [16, 8], strides = [1, 1]} : vector<16x32xf32> to vector<16x8xf32>
    %183 = vector.extract_strided_slice %109 {offsets = [0, 24], sizes = [16, 8], strides = [1, 1]} : vector<16x32xf32> to vector<16x8xf32>
    %cst_94 = arith.constant dense<0.000000e+00> : vector<16x16xf32>
    %184 = tpu.matmul %182, %183, %cst_94 {dimension_numbers = #tpu.dot_dimension_numbers<[1], [1], [0], [0], [0, 0, 1, 0], [], []>} : vector<16x8xf32>, vector<16x8xf32>, vector<16x16xf32> -> vector<16x16xf32>
    %cst_95 = arith.constant 0.353553385 : f32
    %185 = vector.broadcast %cst_95 : f32 to vector<16x16xf32>
    %186 = arith.mulf %184, %185 : vector<16x16xf32>
    %187 = arith.addf %186, %97 : vector<16x16xf32>
    %cst_96 = arith.constant dense<0xFF800000> : vector<16xf32>
    %188 = vector.multi_reduction <maximumf>, %187, %cst_96 [1] : vector<16x16xf32> to vector<16xf32>
    %189 = vector.shape_cast %188 : vector<16xf32> to vector<16x1xf32>
    %190 = vector.broadcast %189 : vector<16x1xf32> to vector<16x16xf32>
    %191 = arith.subf %187, %190 : vector<16x16xf32>
    %192 = math.exp %191 : vector<16x16xf32>
    %cst_97 = arith.constant dense<0.000000e+00> : vector<16xf32>
    %193 = vector.multi_reduction <add>, %192, %cst_97 [1] : vector<16x16xf32> to vector<16xf32>
    %194 = vector.shape_cast %193 : vector<16xf32> to vector<16x1xf32>
    %195 = tpu.reciprocal %194 {approx = true} : vector<16x1xf32> -> vector<16x1xf32>
    %196 = vector.broadcast %195 : vector<16x1xf32> to vector<16x16xf32>
    %197 = arith.mulf %192, %196 : vector<16x16xf32>
    %198 = vector.extract_strided_slice %114 {offsets = [0, 24], sizes = [16, 8], strides = [1, 1]} : vector<16x32xf32> to vector<16x8xf32>
    %cst_98 = arith.constant dense<0.000000e+00> : vector<16x8xf32>
    %199 = tpu.matmul %197, %198, %cst_98 {dimension_numbers = #tpu.dot_dimension_numbers<[1], [0], [0], [1], [0, 0, 1, 1], [], []>} : vector<16x16xf32>, vector<16x8xf32>, vector<16x8xf32> -> vector<16x8xf32>
    %200 = vector.extract_strided_slice %115 {offsets = [24, 0], sizes = [8, 32], strides = [1, 1]} : vector<32x32xf32> to vector<8x32xf32>
    %cst_99 = arith.constant dense<0.000000e+00> : vector<16x32xf32>
    %201 = tpu.matmul %199, %200, %cst_99 {dimension_numbers = #tpu.dot_dimension_numbers<[1], [0], [0], [1], [0, 0, 1, 1], [], []>} : vector<16x8xf32>, vector<8x32xf32>, vector<16x32xf32> -> vector<16x32xf32>
    %202 = arith.addf %181, %201 : vector<16x32xf32>
    %c0_100 = arith.constant 0 : index
    %c0_101 = arith.constant 0 : index
    %203 = vector.load %arg33[%c0_100, %c0_101] : memref<1x32xf32, #tpu.memory_space<vmem>>, vector<1x32xf32>
    %c0_102 = arith.constant 0 : index
    %c0_103 = arith.constant 0 : index
    %204 = vector.load %arg34[%c0_102, %c0_103] : memref<1x32xf32, #tpu.memory_space<vmem>>, vector<1x32xf32>
    %cst_104 = arith.constant dense<0.000000e+00> : vector<16xf32>
    %205 = vector.multi_reduction <add>, %202, %cst_104 [1] : vector<16x32xf32> to vector<16xf32>
    %206 = vector.shape_cast %205 : vector<16xf32> to vector<16x1xf32>
    %cst_105 = arith.constant 3.200000e+01 : f32
    %207 = vector.broadcast %cst_105 : f32 to vector<16x1xf32>
    %208 = arith.divf %206, %207 : vector<16x1xf32>
    %209 = vector.broadcast %208 : vector<16x1xf32> to vector<16x32xf32>
    %210 = arith.subf %202, %209 : vector<16x32xf32>
    %211 = arith.mulf %210, %210 : vector<16x32xf32>
    %cst_106 = arith.constant dense<0.000000e+00> : vector<16xf32>
    %212 = vector.multi_reduction <add>, %211, %cst_106 [1] : vector<16x32xf32> to vector<16xf32>
    %213 = vector.shape_cast %212 : vector<16xf32> to vector<16x1xf32>
    %cst_107 = arith.constant 3.200000e+01 : f32
    %214 = vector.broadcast %cst_107 : f32 to vector<16x1xf32>
    %215 = arith.divf %213, %214 : vector<16x1xf32>
    %216 = vector.broadcast %208 : vector<16x1xf32> to vector<16x32xf32>
    %217 = arith.subf %202, %216 : vector<16x32xf32>
    %cst_108 = arith.constant 9.99999996E-13 : f32
    %218 = vector.broadcast %cst_108 : f32 to vector<16x1xf32>
    %219 = arith.addf %215, %218 : vector<16x1xf32>
    %220 = math.rsqrt %219 : vector<16x1xf32>
    %221 = vector.broadcast %220 : vector<16x1xf32> to vector<16x32xf32>
    %222 = arith.mulf %217, %221 : vector<16x32xf32>
    %223 = vector.broadcast %203 : vector<1x32xf32> to vector<16x32xf32>
    %224 = arith.mulf %222, %223 : vector<16x32xf32>
    %225 = vector.broadcast %204 : vector<1x32xf32> to vector<16x32xf32>
    %226 = arith.addf %224, %225 : vector<16x32xf32>
    %c0_109 = arith.constant 0 : index
    %c0_110 = arith.constant 0 : index
    %227 = vector.load %arg35[%c0_109, %c0_110] : memref<32x64xf32, #tpu.memory_space<vmem>>, vector<32x64xf32>
    %cst_111 = arith.constant dense<0.000000e+00> : vector<16x64xf32>
    %228 = tpu.matmul %226, %227, %cst_111 {dimension_numbers = #tpu.dot_dimension_numbers<[1], [0], [0], [1], [0, 0, 1, 1], [], []>} : vector<16x32xf32>, vector<32x64xf32>, vector<16x64xf32> -> vector<16x64xf32>
    %c0_112 = arith.constant 0 : index
    %c0_113 = arith.constant 0 : index
    %229 = vector.load %arg36[%c0_112, %c0_113] : memref<1x64xf32, #tpu.memory_space<vmem>>, vector<1x64xf32>
    %230 = vector.broadcast %229 : vector<1x64xf32> to vector<16x64xf32>
    %231 = arith.addf %228, %230 : vector<16x64xf32>
    %232 = arith.mulf %231, %231 : vector<16x64xf32>
    %233 = arith.mulf %231, %232 : vector<16x64xf32>
    %cst_114 = arith.constant 4.471500e-02 : f32
    %234 = vector.broadcast %cst_114 : f32 to vector<16x64xf32>
    %235 = arith.mulf %234, %233 : vector<16x64xf32>
    %236 = arith.addf %231, %235 : vector<16x64xf32>
    %cst_115 = arith.constant 0.797884583 : f32
    %237 = vector.broadcast %cst_115 : f32 to vector<16x64xf32>
    %238 = arith.mulf %237, %236 : vector<16x64xf32>
    %239 = math.tanh %238 : vector<16x64xf32>
    %cst_116 = arith.constant 1.000000e+00 : f32
    %240 = vector.broadcast %cst_116 : f32 to vector<16x64xf32>
    %241 = arith.addf %240, %239 : vector<16x64xf32>
    %cst_117 = arith.constant 5.000000e-01 : f32
    %242 = vector.broadcast %cst_117 : f32 to vector<16x64xf32>
    %243 = arith.mulf %242, %241 : vector<16x64xf32>
    %244 = arith.mulf %231, %243 : vector<16x64xf32>
    %c0_118 = arith.constant 0 : index
    %c0_119 = arith.constant 0 : index
    %245 = vector.load %arg37[%c0_118, %c0_119] : memref<64x32xf32, #tpu.memory_space<vmem>>, vector<64x32xf32>
    %cst_120 = arith.constant dense<0.000000e+00> : vector<16x32xf32>
    %246 = tpu.matmul %244, %245, %cst_120 {dimension_numbers = #tpu.dot_dimension_numbers<[1], [0], [0], [1], [0, 0, 1, 1], [], []>} : vector<16x64xf32>, vector<64x32xf32>, vector<16x32xf32> -> vector<16x32xf32>
    %c0_121 = arith.constant 0 : index
    %c0_122 = arith.constant 0 : index
    %247 = vector.load %arg38[%c0_121, %c0_122] : memref<1x32xf32, #tpu.memory_space<vmem>>, vector<1x32xf32>
    %248 = vector.broadcast %247 : vector<1x32xf32> to vector<16x32xf32>
    %249 = arith.addf %246, %248 : vector<16x32xf32>
    %250 = arith.addf %249, %226 : vector<16x32xf32>
    %c0_123 = arith.constant 0 : index
    %c0_124 = arith.constant 0 : index
    %251 = vector.load %arg39[%c0_123, %c0_124] : memref<1x32xf32, #tpu.memory_space<vmem>>, vector<1x32xf32>
    %c0_125 = arith.constant 0 : index
    %c0_126 = arith.constant 0 : index
    %252 = vector.load %arg40[%c0_125, %c0_126] : memref<1x32xf32, #tpu.memory_space<vmem>>, vector<1x32xf32>
    %cst_127 = arith.constant dense<0.000000e+00> : vector<16xf32>
    %253 = vector.multi_reduction <add>, %250, %cst_127 [1] : vector<16x32xf32> to vector<16xf32>
    %254 = vector.shape_cast %253 : vector<16xf32> to vector<16x1xf32>
    %cst_128 = arith.constant 3.200000e+01 : f32
    %255 = vector.broadcast %cst_128 : f32 to vector<16x1xf32>
    %256 = arith.divf %254, %255 : vector<16x1xf32>
    %257 = vector.broadcast %256 : vector<16x1xf32> to vector<16x32xf32>
    %258 = arith.subf %250, %257 : vector<16x32xf32>
    %259 = arith.mulf %258, %258 : vector<16x32xf32>
    %cst_129 = arith.constant dense<0.000000e+00> : vector<16xf32>
    %260 = vector.multi_reduction <add>, %259, %cst_129 [1] : vector<16x32xf32> to vector<16xf32>
    %261 = vector.shape_cast %260 : vector<16xf32> to vector<16x1xf32>
    %cst_130 = arith.constant 3.200000e+01 : f32
    %262 = vector.broadcast %cst_130 : f32 to vector<16x1xf32>
    %263 = arith.divf %261, %262 : vector<16x1xf32>
    %264 = vector.broadcast %256 : vector<16x1xf32> to vector<16x32xf32>
    %265 = arith.subf %250, %264 : vector<16x32xf32>
    %cst_131 = arith.constant 9.99999996E-13 : f32
    %266 = vector.broadcast %cst_131 : f32 to vector<16x1xf32>
    %267 = arith.addf %263, %266 : vector<16x1xf32>
    %268 = math.rsqrt %267 : vector<16x1xf32>
    %269 = vector.broadcast %268 : vector<16x1xf32> to vector<16x32xf32>
    %270 = arith.mulf %265, %269 : vector<16x32xf32>
    %271 = vector.broadcast %251 : vector<1x32xf32> to vector<16x32xf32>
    %272 = arith.mulf %270, %271 : vector<16x32xf32>
    %273 = vector.broadcast %252 : vector<1x32xf32> to vector<16x32xf32>
    %274 = arith.addf %272, %273 : vector<16x32xf32>
    %c0_132 = arith.constant 0 : index
    %c0_133 = arith.constant 0 : index
    %275 = vector.load %arg41[%c0_132, %c0_133] : memref<32x32xf32, #tpu.memory_space<vmem>>, vector<32x32xf32>
    %cst_134 = arith.constant dense<0.000000e+00> : vector<4x32xf32>
    %276 = tpu.matmul %96, %275, %cst_134 {dimension_numbers = #tpu.dot_dimension_numbers<[1], [0], [0], [1], [0, 0, 1, 1], [], []>} : vector<4x32xf32>, vector<32x32xf32>, vector<4x32xf32> -> vector<4x32xf32>
    %c0_135 = arith.constant 0 : index
    %c0_136 = arith.constant 0 : index
    %277 = vector.load %arg42[%c0_135, %c0_136] : memref<1x32xf32, #tpu.memory_space<vmem>>, vector<1x32xf32>
    %278 = vector.broadcast %277 : vector<1x32xf32> to vector<4x32xf32>
    %279 = arith.addf %276, %278 : vector<4x32xf32>
    %c0_137 = arith.constant 0 : index
    %c0_138 = arith.constant 0 : index
    %280 = vector.load %arg43[%c0_137, %c0_138] : memref<32x32xf32, #tpu.memory_space<vmem>>, vector<32x32xf32>
    %cst_139 = arith.constant dense<0.000000e+00> : vector<4x32xf32>
    %281 = tpu.matmul %96, %280, %cst_139 {dimension_numbers = #tpu.dot_dimension_numbers<[1], [0], [0], [1], [0, 0, 1, 1], [], []>} : vector<4x32xf32>, vector<32x32xf32>, vector<4x32xf32> -> vector<4x32xf32>
    %c0_140 = arith.constant 0 : index
    %c0_141 = arith.constant 0 : index
    %282 = vector.load %arg44[%c0_140, %c0_141] : memref<1x32xf32, #tpu.memory_space<vmem>>, vector<1x32xf32>
    %283 = vector.broadcast %282 : vector<1x32xf32> to vector<4x32xf32>
    %284 = arith.addf %281, %283 : vector<4x32xf32>
    %c0_142 = arith.constant 0 : index
    %c0_143 = arith.constant 0 : index
    %285 = vector.load %arg45[%c0_142, %c0_143] : memref<32x32xf32, #tpu.memory_space<vmem>>, vector<32x32xf32>
    %cst_144 = arith.constant dense<0.000000e+00> : vector<4x32xf32>
    %286 = tpu.matmul %96, %285, %cst_144 {dimension_numbers = #tpu.dot_dimension_numbers<[1], [0], [0], [1], [0, 0, 1, 1], [], []>} : vector<4x32xf32>, vector<32x32xf32>, vector<4x32xf32> -> vector<4x32xf32>
    %c0_145 = arith.constant 0 : index
    %c0_146 = arith.constant 0 : index
    %287 = vector.load %arg46[%c0_145, %c0_146] : memref<1x32xf32, #tpu.memory_space<vmem>>, vector<1x32xf32>
    %288 = vector.broadcast %287 : vector<1x32xf32> to vector<4x32xf32>
    %289 = arith.addf %286, %288 : vector<4x32xf32>
    %c0_147 = arith.constant 0 : index
    %c0_148 = arith.constant 0 : index
    %290 = vector.load %arg47[%c0_147, %c0_148] : memref<32x32xf32, #tpu.memory_space<vmem>>, vector<32x32xf32>
    %c0_149 = arith.constant 0 : index
    %c0_150 = arith.constant 0 : index
    %291 = vector.load %arg48[%c0_149, %c0_150] : memref<1x32xf32, #tpu.memory_space<vmem>>, vector<1x32xf32>
    %292 = vector.broadcast %291 : vector<1x32xf32> to vector<4x32xf32>
    %293 = arith.addf %96, %292 : vector<4x32xf32>
    %294 = vector.extract_strided_slice %279 {offsets = [0, 0], sizes = [4, 8], strides = [1, 1]} : vector<4x32xf32> to vector<4x8xf32>
    %295 = vector.extract_strided_slice %284 {offsets = [0, 0], sizes = [4, 8], strides = [1, 1]} : vector<4x32xf32> to vector<4x8xf32>
    %cst_151 = arith.constant dense<0.000000e+00> : vector<4x4xf32>
    %296 = tpu.matmul %294, %295, %cst_151 {dimension_numbers = #tpu.dot_dimension_numbers<[1], [1], [0], [0], [0, 0, 1, 0], [], []>} : vector<4x8xf32>, vector<4x8xf32>, vector<4x4xf32> -> vector<4x4xf32>
    %cst_152 = arith.constant 0.353553385 : f32
    %297 = vector.broadcast %cst_152 : f32 to vector<4x4xf32>
    %298 = arith.mulf %296, %297 : vector<4x4xf32>
    %299 = arith.addf %298, %98 : vector<4x4xf32>
    %cst_153 = arith.constant dense<0xFF800000> : vector<4xf32>
    %300 = vector.multi_reduction <maximumf>, %299, %cst_153 [1] : vector<4x4xf32> to vector<4xf32>
    %301 = vector.shape_cast %300 : vector<4xf32> to vector<4x1xf32>
    %302 = vector.broadcast %301 : vector<4x1xf32> to vector<4x4xf32>
    %303 = arith.subf %299, %302 : vector<4x4xf32>
    %304 = math.exp %303 : vector<4x4xf32>
    %cst_154 = arith.constant dense<0.000000e+00> : vector<4xf32>
    %305 = vector.multi_reduction <add>, %304, %cst_154 [1] : vector<4x4xf32> to vector<4xf32>
    %306 = vector.shape_cast %305 : vector<4xf32> to vector<4x1xf32>
    %307 = tpu.reciprocal %306 {approx = true} : vector<4x1xf32> -> vector<4x1xf32>
    %308 = vector.broadcast %307 : vector<4x1xf32> to vector<4x4xf32>
    %309 = arith.mulf %304, %308 : vector<4x4xf32>
    %310 = vector.extract_strided_slice %289 {offsets = [0, 0], sizes = [4, 8], strides = [1, 1]} : vector<4x32xf32> to vector<4x8xf32>
    %cst_155 = arith.constant dense<0.000000e+00> : vector<4x8xf32>
    %311 = tpu.matmul %309, %310, %cst_155 {dimension_numbers = #tpu.dot_dimension_numbers<[1], [0], [0], [1], [0, 0, 1, 1], [], []>} : vector<4x4xf32>, vector<4x8xf32>, vector<4x8xf32> -> vector<4x8xf32>
    %312 = vector.extract_strided_slice %290 {offsets = [0, 0], sizes = [8, 32], strides = [1, 1]} : vector<32x32xf32> to vector<8x32xf32>
    %cst_156 = arith.constant dense<0.000000e+00> : vector<4x32xf32>
    %313 = tpu.matmul %311, %312, %cst_156 {dimension_numbers = #tpu.dot_dimension_numbers<[1], [0], [0], [1], [0, 0, 1, 1], [], []>} : vector<4x8xf32>, vector<8x32xf32>, vector<4x32xf32> -> vector<4x32xf32>
    %314 = arith.addf %293, %313 : vector<4x32xf32>
    %315 = vector.extract_strided_slice %279 {offsets = [0, 8], sizes = [4, 8], strides = [1, 1]} : vector<4x32xf32> to vector<4x8xf32>
    %316 = vector.extract_strided_slice %284 {offsets = [0, 8], sizes = [4, 8], strides = [1, 1]} : vector<4x32xf32> to vector<4x8xf32>
    %cst_157 = arith.constant dense<0.000000e+00> : vector<4x4xf32>
    %317 = tpu.matmul %315, %316, %cst_157 {dimension_numbers = #tpu.dot_dimension_numbers<[1], [1], [0], [0], [0, 0, 1, 0], [], []>} : vector<4x8xf32>, vector<4x8xf32>, vector<4x4xf32> -> vector<4x4xf32>
    %cst_158 = arith.constant 0.353553385 : f32
    %318 = vector.broadcast %cst_158 : f32 to vector<4x4xf32>
    %319 = arith.mulf %317, %318 : vector<4x4xf32>
    %320 = arith.addf %319, %98 : vector<4x4xf32>
    %cst_159 = arith.constant dense<0xFF800000> : vector<4xf32>
    %321 = vector.multi_reduction <maximumf>, %320, %cst_159 [1] : vector<4x4xf32> to vector<4xf32>
    %322 = vector.shape_cast %321 : vector<4xf32> to vector<4x1xf32>
    %323 = vector.broadcast %322 : vector<4x1xf32> to vector<4x4xf32>
    %324 = arith.subf %320, %323 : vector<4x4xf32>
    %325 = math.exp %324 : vector<4x4xf32>
    %cst_160 = arith.constant dense<0.000000e+00> : vector<4xf32>
    %326 = vector.multi_reduction <add>, %325, %cst_160 [1] : vector<4x4xf32> to vector<4xf32>
    %327 = vector.shape_cast %326 : vector<4xf32> to vector<4x1xf32>
    %328 = tpu.reciprocal %327 {approx = true} : vector<4x1xf32> -> vector<4x1xf32>
    %329 = vector.broadcast %328 : vector<4x1xf32> to vector<4x4xf32>
    %330 = arith.mulf %325, %329 : vector<4x4xf32>
    %331 = vector.extract_strided_slice %289 {offsets = [0, 8], sizes = [4, 8], strides = [1, 1]} : vector<4x32xf32> to vector<4x8xf32>
    %cst_161 = arith.constant dense<0.000000e+00> : vector<4x8xf32>
    %332 = tpu.matmul %330, %331, %cst_161 {dimension_numbers = #tpu.dot_dimension_numbers<[1], [0], [0], [1], [0, 0, 1, 1], [], []>} : vector<4x4xf32>, vector<4x8xf32>, vector<4x8xf32> -> vector<4x8xf32>
    %333 = vector.extract_strided_slice %290 {offsets = [8, 0], sizes = [8, 32], strides = [1, 1]} : vector<32x32xf32> to vector<8x32xf32>
    %cst_162 = arith.constant dense<0.000000e+00> : vector<4x32xf32>
    %334 = tpu.matmul %332, %333, %cst_162 {dimension_numbers = #tpu.dot_dimension_numbers<[1], [0], [0], [1], [0, 0, 1, 1], [], []>} : vector<4x8xf32>, vector<8x32xf32>, vector<4x32xf32> -> vector<4x32xf32>
    %335 = arith.addf %314, %334 : vector<4x32xf32>
    %336 = vector.extract_strided_slice %279 {offsets = [0, 16], sizes = [4, 8], strides = [1, 1]} : vector<4x32xf32> to vector<4x8xf32>
    %337 = vector.extract_strided_slice %284 {offsets = [0, 16], sizes = [4, 8], strides = [1, 1]} : vector<4x32xf32> to vector<4x8xf32>
    %cst_163 = arith.constant dense<0.000000e+00> : vector<4x4xf32>
    %338 = tpu.matmul %336, %337, %cst_163 {dimension_numbers = #tpu.dot_dimension_numbers<[1], [1], [0], [0], [0, 0, 1, 0], [], []>} : vector<4x8xf32>, vector<4x8xf32>, vector<4x4xf32> -> vector<4x4xf32>
    %cst_164 = arith.constant 0.353553385 : f32
    %339 = vector.broadcast %cst_164 : f32 to vector<4x4xf32>
    %340 = arith.mulf %338, %339 : vector<4x4xf32>
    %341 = arith.addf %340, %98 : vector<4x4xf32>
    %cst_165 = arith.constant dense<0xFF800000> : vector<4xf32>
    %342 = vector.multi_reduction <maximumf>, %341, %cst_165 [1] : vector<4x4xf32> to vector<4xf32>
    %343 = vector.shape_cast %342 : vector<4xf32> to vector<4x1xf32>
    %344 = vector.broadcast %343 : vector<4x1xf32> to vector<4x4xf32>
    %345 = arith.subf %341, %344 : vector<4x4xf32>
    %346 = math.exp %345 : vector<4x4xf32>
    %cst_166 = arith.constant dense<0.000000e+00> : vector<4xf32>
    %347 = vector.multi_reduction <add>, %346, %cst_166 [1] : vector<4x4xf32> to vector<4xf32>
    %348 = vector.shape_cast %347 : vector<4xf32> to vector<4x1xf32>
    %349 = tpu.reciprocal %348 {approx = true} : vector<4x1xf32> -> vector<4x1xf32>
    %350 = vector.broadcast %349 : vector<4x1xf32> to vector<4x4xf32>
    %351 = arith.mulf %346, %350 : vector<4x4xf32>
    %352 = vector.extract_strided_slice %289 {offsets = [0, 16], sizes = [4, 8], strides = [1, 1]} : vector<4x32xf32> to vector<4x8xf32>
    %cst_167 = arith.constant dense<0.000000e+00> : vector<4x8xf32>
    %353 = tpu.matmul %351, %352, %cst_167 {dimension_numbers = #tpu.dot_dimension_numbers<[1], [0], [0], [1], [0, 0, 1, 1], [], []>} : vector<4x4xf32>, vector<4x8xf32>, vector<4x8xf32> -> vector<4x8xf32>
    %354 = vector.extract_strided_slice %290 {offsets = [16, 0], sizes = [8, 32], strides = [1, 1]} : vector<32x32xf32> to vector<8x32xf32>
    %cst_168 = arith.constant dense<0.000000e+00> : vector<4x32xf32>
    %355 = tpu.matmul %353, %354, %cst_168 {dimension_numbers = #tpu.dot_dimension_numbers<[1], [0], [0], [1], [0, 0, 1, 1], [], []>} : vector<4x8xf32>, vector<8x32xf32>, vector<4x32xf32> -> vector<4x32xf32>
    %356 = arith.addf %335, %355 : vector<4x32xf32>
    %357 = vector.extract_strided_slice %279 {offsets = [0, 24], sizes = [4, 8], strides = [1, 1]} : vector<4x32xf32> to vector<4x8xf32>
    %358 = vector.extract_strided_slice %284 {offsets = [0, 24], sizes = [4, 8], strides = [1, 1]} : vector<4x32xf32> to vector<4x8xf32>
    %cst_169 = arith.constant dense<0.000000e+00> : vector<4x4xf32>
    %359 = tpu.matmul %357, %358, %cst_169 {dimension_numbers = #tpu.dot_dimension_numbers<[1], [1], [0], [0], [0, 0, 1, 0], [], []>} : vector<4x8xf32>, vector<4x8xf32>, vector<4x4xf32> -> vector<4x4xf32>
    %cst_170 = arith.constant 0.353553385 : f32
    %360 = vector.broadcast %cst_170 : f32 to vector<4x4xf32>
    %361 = arith.mulf %359, %360 : vector<4x4xf32>
    %362 = arith.addf %361, %98 : vector<4x4xf32>
    %cst_171 = arith.constant dense<0xFF800000> : vector<4xf32>
    %363 = vector.multi_reduction <maximumf>, %362, %cst_171 [1] : vector<4x4xf32> to vector<4xf32>
    %364 = vector.shape_cast %363 : vector<4xf32> to vector<4x1xf32>
    %365 = vector.broadcast %364 : vector<4x1xf32> to vector<4x4xf32>
    %366 = arith.subf %362, %365 : vector<4x4xf32>
    %367 = math.exp %366 : vector<4x4xf32>
    %cst_172 = arith.constant dense<0.000000e+00> : vector<4xf32>
    %368 = vector.multi_reduction <add>, %367, %cst_172 [1] : vector<4x4xf32> to vector<4xf32>
    %369 = vector.shape_cast %368 : vector<4xf32> to vector<4x1xf32>
    %370 = tpu.reciprocal %369 {approx = true} : vector<4x1xf32> -> vector<4x1xf32>
    %371 = vector.broadcast %370 : vector<4x1xf32> to vector<4x4xf32>
    %372 = arith.mulf %367, %371 : vector<4x4xf32>
    %373 = vector.extract_strided_slice %289 {offsets = [0, 24], sizes = [4, 8], strides = [1, 1]} : vector<4x32xf32> to vector<4x8xf32>
    %cst_173 = arith.constant dense<0.000000e+00> : vector<4x8xf32>
    %374 = tpu.matmul %372, %373, %cst_173 {dimension_numbers = #tpu.dot_dimension_numbers<[1], [0], [0], [1], [0, 0, 1, 1], [], []>} : vector<4x4xf32>, vector<4x8xf32>, vector<4x8xf32> -> vector<4x8xf32>
    %375 = vector.extract_strided_slice %290 {offsets = [24, 0], sizes = [8, 32], strides = [1, 1]} : vector<32x32xf32> to vector<8x32xf32>
    %cst_174 = arith.constant dense<0.000000e+00> : vector<4x32xf32>
    %376 = tpu.matmul %374, %375, %cst_174 {dimension_numbers = #tpu.dot_dimension_numbers<[1], [0], [0], [1], [0, 0, 1, 1], [], []>} : vector<4x8xf32>, vector<8x32xf32>, vector<4x32xf32> -> vector<4x32xf32>
    %377 = arith.addf %356, %376 : vector<4x32xf32>
    %c0_175 = arith.constant 0 : index
    %c0_176 = arith.constant 0 : index
    %378 = vector.load %arg49[%c0_175, %c0_176] : memref<1x32xf32, #tpu.memory_space<vmem>>, vector<1x32xf32>
    %c0_177 = arith.constant 0 : index
    %c0_178 = arith.constant 0 : index
    %379 = vector.load %arg50[%c0_177, %c0_178] : memref<1x32xf32, #tpu.memory_space<vmem>>, vector<1x32xf32>
    %cst_179 = arith.constant dense<0.000000e+00> : vector<4xf32>
    %380 = vector.multi_reduction <add>, %377, %cst_179 [1] : vector<4x32xf32> to vector<4xf32>
    %381 = vector.shape_cast %380 : vector<4xf32> to vector<4x1xf32>
    %cst_180 = arith.constant 3.200000e+01 : f32
    %382 = vector.broadcast %cst_180 : f32 to vector<4x1xf32>
    %383 = arith.divf %381, %382 : vector<4x1xf32>
    %384 = vector.broadcast %383 : vector<4x1xf32> to vector<4x32xf32>
    %385 = arith.subf %377, %384 : vector<4x32xf32>
    %386 = arith.mulf %385, %385 : vector<4x32xf32>
    %cst_181 = arith.constant dense<0.000000e+00> : vector<4xf32>
    %387 = vector.multi_reduction <add>, %386, %cst_181 [1] : vector<4x32xf32> to vector<4xf32>
    %388 = vector.shape_cast %387 : vector<4xf32> to vector<4x1xf32>
    %cst_182 = arith.constant 3.200000e+01 : f32
    %389 = vector.broadcast %cst_182 : f32 to vector<4x1xf32>
    %390 = arith.divf %388, %389 : vector<4x1xf32>
    %391 = vector.broadcast %383 : vector<4x1xf32> to vector<4x32xf32>
    %392 = arith.subf %377, %391 : vector<4x32xf32>
    %cst_183 = arith.constant 9.99999996E-13 : f32
    %393 = vector.broadcast %cst_183 : f32 to vector<4x1xf32>
    %394 = arith.addf %390, %393 : vector<4x1xf32>
    %395 = math.rsqrt %394 : vector<4x1xf32>
    %396 = vector.broadcast %395 : vector<4x1xf32> to vector<4x32xf32>
    %397 = arith.mulf %392, %396 : vector<4x32xf32>
    %398 = vector.broadcast %378 : vector<1x32xf32> to vector<4x32xf32>
    %399 = arith.mulf %397, %398 : vector<4x32xf32>
    %400 = vector.broadcast %379 : vector<1x32xf32> to vector<4x32xf32>
    %401 = arith.addf %399, %400 : vector<4x32xf32>
    %c0_184 = arith.constant 0 : index
    %c0_185 = arith.constant 0 : index
    %402 = vector.load %arg51[%c0_184, %c0_185] : memref<32x64xf32, #tpu.memory_space<vmem>>, vector<32x64xf32>
    %cst_186 = arith.constant dense<0.000000e+00> : vector<4x64xf32>
    %403 = tpu.matmul %401, %402, %cst_186 {dimension_numbers = #tpu.dot_dimension_numbers<[1], [0], [0], [1], [0, 0, 1, 1], [], []>} : vector<4x32xf32>, vector<32x64xf32>, vector<4x64xf32> -> vector<4x64xf32>
    %c0_187 = arith.constant 0 : index
    %c0_188 = arith.constant 0 : index
    %404 = vector.load %arg52[%c0_187, %c0_188] : memref<1x64xf32, #tpu.memory_space<vmem>>, vector<1x64xf32>
    %405 = vector.broadcast %404 : vector<1x64xf32> to vector<4x64xf32>
    %406 = arith.addf %403, %405 : vector<4x64xf32>
    %407 = arith.mulf %406, %406 : vector<4x64xf32>
    %408 = arith.mulf %406, %407 : vector<4x64xf32>
    %cst_189 = arith.constant 4.471500e-02 : f32
    %409 = vector.broadcast %cst_189 : f32 to vector<4x64xf32>
    %410 = arith.mulf %409, %408 : vector<4x64xf32>
    %411 = arith.addf %406, %410 : vector<4x64xf32>
    %cst_190 = arith.constant 0.797884583 : f32
    %412 = vector.broadcast %cst_190 : f32 to vector<4x64xf32>
    %413 = arith.mulf %412, %411 : vector<4x64xf32>
    %414 = math.tanh %413 : vector<4x64xf32>
    %cst_191 = arith.constant 1.000000e+00 : f32
    %415 = vector.broadcast %cst_191 : f32 to vector<4x64xf32>
    %416 = arith.addf %415, %414 : vector<4x64xf32>
    %cst_192 = arith.constant 5.000000e-01 : f32
    %417 = vector.broadcast %cst_192 : f32 to vector<4x64xf32>
    %418 = arith.mulf %417, %416 : vector<4x64xf32>
    %419 = arith.mulf %406, %418 : vector<4x64xf32>
    %c0_193 = arith.constant 0 : index
    %c0_194 = arith.constant 0 : index
    %420 = vector.load %arg53[%c0_193, %c0_194] : memref<64x32xf32, #tpu.memory_space<vmem>>, vector<64x32xf32>
    %cst_195 = arith.constant dense<0.000000e+00> : vector<4x32xf32>
    %421 = tpu.matmul %419, %420, %cst_195 {dimension_numbers = #tpu.dot_dimension_numbers<[1], [0], [0], [1], [0, 0, 1, 1], [], []>} : vector<4x64xf32>, vector<64x32xf32>, vector<4x32xf32> -> vector<4x32xf32>
    %c0_196 = arith.constant 0 : index
    %c0_197 = arith.constant 0 : index
    %422 = vector.load %arg54[%c0_196, %c0_197] : memref<1x32xf32, #tpu.memory_space<vmem>>, vector<1x32xf32>
    %423 = vector.broadcast %422 : vector<1x32xf32> to vector<4x32xf32>
    %424 = arith.addf %421, %423 : vector<4x32xf32>
    %425 = arith.addf %424, %401 : vector<4x32xf32>
    %c0_198 = arith.constant 0 : index
    %c0_199 = arith.constant 0 : index
    %426 = vector.load %arg55[%c0_198, %c0_199] : memref<1x32xf32, #tpu.memory_space<vmem>>, vector<1x32xf32>
    %c0_200 = arith.constant 0 : index
    %c0_201 = arith.constant 0 : index
    %427 = vector.load %arg56[%c0_200, %c0_201] : memref<1x32xf32, #tpu.memory_space<vmem>>, vector<1x32xf32>
    %cst_202 = arith.constant dense<0.000000e+00> : vector<4xf32>
    %428 = vector.multi_reduction <add>, %425, %cst_202 [1] : vector<4x32xf32> to vector<4xf32>
    %429 = vector.shape_cast %428 : vector<4xf32> to vector<4x1xf32>
    %cst_203 = arith.constant 3.200000e+01 : f32
    %430 = vector.broadcast %cst_203 : f32 to vector<4x1xf32>
    %431 = arith.divf %429, %430 : vector<4x1xf32>
    %432 = vector.broadcast %431 : vector<4x1xf32> to vector<4x32xf32>
    %433 = arith.subf %425, %432 : vector<4x32xf32>
    %434 = arith.mulf %433, %433 : vector<4x32xf32>
    %cst_204 = arith.constant dense<0.000000e+00> : vector<4xf32>
    %435 = vector.multi_reduction <add>, %434, %cst_204 [1] : vector<4x32xf32> to vector<4xf32>
    %436 = vector.shape_cast %435 : vector<4xf32> to vector<4x1xf32>
    %cst_205 = arith.constant 3.200000e+01 : f32
    %437 = vector.broadcast %cst_205 : f32 to vector<4x1xf32>
    %438 = arith.divf %436, %437 : vector<4x1xf32>
    %439 = vector.broadcast %431 : vector<4x1xf32> to vector<4x32xf32>
    %440 = arith.subf %425, %439 : vector<4x32xf32>
    %cst_206 = arith.constant 9.99999996E-13 : f32
    %441 = vector.broadcast %cst_206 : f32 to vector<4x1xf32>
    %442 = arith.addf %438, %441 : vector<4x1xf32>
    %443 = math.rsqrt %442 : vector<4x1xf32>
    %444 = vector.broadcast %443 : vector<4x1xf32> to vector<4x32xf32>
    %445 = arith.mulf %440, %444 : vector<4x32xf32>
    %446 = vector.broadcast %426 : vector<1x32xf32> to vector<4x32xf32>
    %447 = arith.mulf %445, %446 : vector<4x32xf32>
    %448 = vector.broadcast %427 : vector<1x32xf32> to vector<4x32xf32>
    %449 = arith.addf %447, %448 : vector<4x32xf32>
    %c0_207 = arith.constant 0 : index
    %c0_208 = arith.constant 0 : index
    %450 = vector.load %arg57[%c0_207, %c0_208] : memref<32x32xf32, #tpu.memory_space<vmem>>, vector<32x32xf32>
    %cst_209 = arith.constant dense<0.000000e+00> : vector<16x32xf32>
    %451 = tpu.matmul %274, %450, %cst_209 {dimension_numbers = #tpu.dot_dimension_numbers<[1], [0], [0], [1], [0, 0, 1, 1], [], []>} : vector<16x32xf32>, vector<32x32xf32>, vector<16x32xf32> -> vector<16x32xf32>
    %c0_210 = arith.constant 0 : index
    %c0_211 = arith.constant 0 : index
    %452 = vector.load %arg58[%c0_210, %c0_211] : memref<1x32xf32, #tpu.memory_space<vmem>>, vector<1x32xf32>
    %453 = vector.broadcast %452 : vector<1x32xf32> to vector<16x32xf32>
    %454 = arith.addf %451, %453 : vector<16x32xf32>
    %c0_212 = arith.constant 0 : index
    %c0_213 = arith.constant 0 : index
    %455 = vector.load %arg59[%c0_212, %c0_213] : memref<32x32xf32, #tpu.memory_space<vmem>>, vector<32x32xf32>
    %cst_214 = arith.constant dense<0.000000e+00> : vector<4x32xf32>
    %456 = tpu.matmul %449, %455, %cst_214 {dimension_numbers = #tpu.dot_dimension_numbers<[1], [0], [0], [1], [0, 0, 1, 1], [], []>} : vector<4x32xf32>, vector<32x32xf32>, vector<4x32xf32> -> vector<4x32xf32>
    %c0_215 = arith.constant 0 : index
    %c0_216 = arith.constant 0 : index
    %457 = vector.load %arg60[%c0_215, %c0_216] : memref<1x32xf32, #tpu.memory_space<vmem>>, vector<1x32xf32>
    %458 = vector.broadcast %457 : vector<1x32xf32> to vector<4x32xf32>
    %459 = arith.addf %456, %458 : vector<4x32xf32>
    %c0_217 = arith.constant 0 : index
    %c0_218 = arith.constant 0 : index
    %460 = vector.load %arg61[%c0_217, %c0_218] : memref<32x32xf32, #tpu.memory_space<vmem>>, vector<32x32xf32>
    %cst_219 = arith.constant dense<0.000000e+00> : vector<4x32xf32>
    %461 = tpu.matmul %449, %460, %cst_219 {dimension_numbers = #tpu.dot_dimension_numbers<[1], [0], [0], [1], [0, 0, 1, 1], [], []>} : vector<4x32xf32>, vector<32x32xf32>, vector<4x32xf32> -> vector<4x32xf32>
    %c0_220 = arith.constant 0 : index
    %c0_221 = arith.constant 0 : index
    %462 = vector.load %arg62[%c0_220, %c0_221] : memref<1x32xf32, #tpu.memory_space<vmem>>, vector<1x32xf32>
    %463 = vector.broadcast %462 : vector<1x32xf32> to vector<4x32xf32>
    %464 = arith.addf %461, %463 : vector<4x32xf32>
    %c0_222 = arith.constant 0 : index
    %c0_223 = arith.constant 0 : index
    %465 = vector.load %arg63[%c0_222, %c0_223] : memref<32x32xf32, #tpu.memory_space<vmem>>, vector<32x32xf32>
    %c0_224 = arith.constant 0 : index
    %c0_225 = arith.constant 0 : index
    %466 = vector.load %arg64[%c0_224, %c0_225] : memref<1x32xf32, #tpu.memory_space<vmem>>, vector<1x32xf32>
    %467 = vector.broadcast %466 : vector<1x32xf32> to vector<16x32xf32>
    %468 = arith.addf %274, %467 : vector<16x32xf32>
    %469 = vector.extract_strided_slice %454 {offsets = [0, 0], sizes = [16, 8], strides = [1, 1]} : vector<16x32xf32> to vector<16x8xf32>
    %470 = vector.extract_strided_slice %459 {offsets = [0, 0], sizes = [4, 8], strides = [1, 1]} : vector<4x32xf32> to vector<4x8xf32>
    %cst_226 = arith.constant dense<0.000000e+00> : vector<16x4xf32>
    %471 = tpu.matmul %469, %470, %cst_226 {dimension_numbers = #tpu.dot_dimension_numbers<[1], [1], [0], [0], [0, 0, 1, 0], [], []>} : vector<16x8xf32>, vector<4x8xf32>, vector<16x4xf32> -> vector<16x4xf32>
    %cst_227 = arith.constant 0.353553385 : f32
    %472 = vector.broadcast %cst_227 : f32 to vector<16x4xf32>
    %473 = arith.mulf %471, %472 : vector<16x4xf32>
    %474 = arith.addf %473, %99 : vector<16x4xf32>
    %cst_228 = arith.constant dense<0xFF800000> : vector<16xf32>
    %475 = vector.multi_reduction <maximumf>, %474, %cst_228 [1] : vector<16x4xf32> to vector<16xf32>
    %476 = vector.shape_cast %475 : vector<16xf32> to vector<16x1xf32>
    %477 = vector.broadcast %476 : vector<16x1xf32> to vector<16x4xf32>
    %478 = arith.subf %474, %477 : vector<16x4xf32>
    %479 = math.exp %478 : vector<16x4xf32>
    %cst_229 = arith.constant dense<0.000000e+00> : vector<16xf32>
    %480 = vector.multi_reduction <add>, %479, %cst_229 [1] : vector<16x4xf32> to vector<16xf32>
    %481 = vector.shape_cast %480 : vector<16xf32> to vector<16x1xf32>
    %482 = tpu.reciprocal %481 {approx = true} : vector<16x1xf32> -> vector<16x1xf32>
    %483 = vector.broadcast %482 : vector<16x1xf32> to vector<16x4xf32>
    %484 = arith.mulf %479, %483 : vector<16x4xf32>
    %485 = vector.extract_strided_slice %464 {offsets = [0, 0], sizes = [4, 8], strides = [1, 1]} : vector<4x32xf32> to vector<4x8xf32>
    %cst_230 = arith.constant dense<0.000000e+00> : vector<16x8xf32>
    %486 = tpu.matmul %484, %485, %cst_230 {dimension_numbers = #tpu.dot_dimension_numbers<[1], [0], [0], [1], [0, 0, 1, 1], [], []>} : vector<16x4xf32>, vector<4x8xf32>, vector<16x8xf32> -> vector<16x8xf32>
    %487 = vector.extract_strided_slice %465 {offsets = [0, 0], sizes = [8, 32], strides = [1, 1]} : vector<32x32xf32> to vector<8x32xf32>
    %cst_231 = arith.constant dense<0.000000e+00> : vector<16x32xf32>
    %488 = tpu.matmul %486, %487, %cst_231 {dimension_numbers = #tpu.dot_dimension_numbers<[1], [0], [0], [1], [0, 0, 1, 1], [], []>} : vector<16x8xf32>, vector<8x32xf32>, vector<16x32xf32> -> vector<16x32xf32>
    %489 = arith.addf %468, %488 : vector<16x32xf32>
    %490 = vector.extract_strided_slice %454 {offsets = [0, 8], sizes = [16, 8], strides = [1, 1]} : vector<16x32xf32> to vector<16x8xf32>
    %491 = vector.extract_strided_slice %459 {offsets = [0, 8], sizes = [4, 8], strides = [1, 1]} : vector<4x32xf32> to vector<4x8xf32>
    %cst_232 = arith.constant dense<0.000000e+00> : vector<16x4xf32>
    %492 = tpu.matmul %490, %491, %cst_232 {dimension_numbers = #tpu.dot_dimension_numbers<[1], [1], [0], [0], [0, 0, 1, 0], [], []>} : vector<16x8xf32>, vector<4x8xf32>, vector<16x4xf32> -> vector<16x4xf32>
    %cst_233 = arith.constant 0.353553385 : f32
    %493 = vector.broadcast %cst_233 : f32 to vector<16x4xf32>
    %494 = arith.mulf %492, %493 : vector<16x4xf32>
    %495 = arith.addf %494, %99 : vector<16x4xf32>
    %cst_234 = arith.constant dense<0xFF800000> : vector<16xf32>
    %496 = vector.multi_reduction <maximumf>, %495, %cst_234 [1] : vector<16x4xf32> to vector<16xf32>
    %497 = vector.shape_cast %496 : vector<16xf32> to vector<16x1xf32>
    %498 = vector.broadcast %497 : vector<16x1xf32> to vector<16x4xf32>
    %499 = arith.subf %495, %498 : vector<16x4xf32>
    %500 = math.exp %499 : vector<16x4xf32>
    %cst_235 = arith.constant dense<0.000000e+00> : vector<16xf32>
    %501 = vector.multi_reduction <add>, %500, %cst_235 [1] : vector<16x4xf32> to vector<16xf32>
    %502 = vector.shape_cast %501 : vector<16xf32> to vector<16x1xf32>
    %503 = tpu.reciprocal %502 {approx = true} : vector<16x1xf32> -> vector<16x1xf32>
    %504 = vector.broadcast %503 : vector<16x1xf32> to vector<16x4xf32>
    %505 = arith.mulf %500, %504 : vector<16x4xf32>
    %506 = vector.extract_strided_slice %464 {offsets = [0, 8], sizes = [4, 8], strides = [1, 1]} : vector<4x32xf32> to vector<4x8xf32>
    %cst_236 = arith.constant dense<0.000000e+00> : vector<16x8xf32>
    %507 = tpu.matmul %505, %506, %cst_236 {dimension_numbers = #tpu.dot_dimension_numbers<[1], [0], [0], [1], [0, 0, 1, 1], [], []>} : vector<16x4xf32>, vector<4x8xf32>, vector<16x8xf32> -> vector<16x8xf32>
    %508 = vector.extract_strided_slice %465 {offsets = [8, 0], sizes = [8, 32], strides = [1, 1]} : vector<32x32xf32> to vector<8x32xf32>
    %cst_237 = arith.constant dense<0.000000e+00> : vector<16x32xf32>
    %509 = tpu.matmul %507, %508, %cst_237 {dimension_numbers = #tpu.dot_dimension_numbers<[1], [0], [0], [1], [0, 0, 1, 1], [], []>} : vector<16x8xf32>, vector<8x32xf32>, vector<16x32xf32> -> vector<16x32xf32>
    %510 = arith.addf %489, %509 : vector<16x32xf32>
    %511 = vector.extract_strided_slice %454 {offsets = [0, 16], sizes = [16, 8], strides = [1, 1]} : vector<16x32xf32> to vector<16x8xf32>
    %512 = vector.extract_strided_slice %459 {offsets = [0, 16], sizes = [4, 8], strides = [1, 1]} : vector<4x32xf32> to vector<4x8xf32>
    %cst_238 = arith.constant dense<0.000000e+00> : vector<16x4xf32>
    %513 = tpu.matmul %511, %512, %cst_238 {dimension_numbers = #tpu.dot_dimension_numbers<[1], [1], [0], [0], [0, 0, 1, 0], [], []>} : vector<16x8xf32>, vector<4x8xf32>, vector<16x4xf32> -> vector<16x4xf32>
    %cst_239 = arith.constant 0.353553385 : f32
    %514 = vector.broadcast %cst_239 : f32 to vector<16x4xf32>
    %515 = arith.mulf %513, %514 : vector<16x4xf32>
    %516 = arith.addf %515, %99 : vector<16x4xf32>
    %cst_240 = arith.constant dense<0xFF800000> : vector<16xf32>
    %517 = vector.multi_reduction <maximumf>, %516, %cst_240 [1] : vector<16x4xf32> to vector<16xf32>
    %518 = vector.shape_cast %517 : vector<16xf32> to vector<16x1xf32>
    %519 = vector.broadcast %518 : vector<16x1xf32> to vector<16x4xf32>
    %520 = arith.subf %516, %519 : vector<16x4xf32>
    %521 = math.exp %520 : vector<16x4xf32>
    %cst_241 = arith.constant dense<0.000000e+00> : vector<16xf32>
    %522 = vector.multi_reduction <add>, %521, %cst_241 [1] : vector<16x4xf32> to vector<16xf32>
    %523 = vector.shape_cast %522 : vector<16xf32> to vector<16x1xf32>
    %524 = tpu.reciprocal %523 {approx = true} : vector<16x1xf32> -> vector<16x1xf32>
    %525 = vector.broadcast %524 : vector<16x1xf32> to vector<16x4xf32>
    %526 = arith.mulf %521, %525 : vector<16x4xf32>
    %527 = vector.extract_strided_slice %464 {offsets = [0, 16], sizes = [4, 8], strides = [1, 1]} : vector<4x32xf32> to vector<4x8xf32>
    %cst_242 = arith.constant dense<0.000000e+00> : vector<16x8xf32>
    %528 = tpu.matmul %526, %527, %cst_242 {dimension_numbers = #tpu.dot_dimension_numbers<[1], [0], [0], [1], [0, 0, 1, 1], [], []>} : vector<16x4xf32>, vector<4x8xf32>, vector<16x8xf32> -> vector<16x8xf32>
    %529 = vector.extract_strided_slice %465 {offsets = [16, 0], sizes = [8, 32], strides = [1, 1]} : vector<32x32xf32> to vector<8x32xf32>
    %cst_243 = arith.constant dense<0.000000e+00> : vector<16x32xf32>
    %530 = tpu.matmul %528, %529, %cst_243 {dimension_numbers = #tpu.dot_dimension_numbers<[1], [0], [0], [1], [0, 0, 1, 1], [], []>} : vector<16x8xf32>, vector<8x32xf32>, vector<16x32xf32> -> vector<16x32xf32>
    %531 = arith.addf %510, %530 : vector<16x32xf32>
    %532 = vector.extract_strided_slice %454 {offsets = [0, 24], sizes = [16, 8], strides = [1, 1]} : vector<16x32xf32> to vector<16x8xf32>
    %533 = vector.extract_strided_slice %459 {offsets = [0, 24], sizes = [4, 8], strides = [1, 1]} : vector<4x32xf32> to vector<4x8xf32>
    %cst_244 = arith.constant dense<0.000000e+00> : vector<16x4xf32>
    %534 = tpu.matmul %532, %533, %cst_244 {dimension_numbers = #tpu.dot_dimension_numbers<[1], [1], [0], [0], [0, 0, 1, 0], [], []>} : vector<16x8xf32>, vector<4x8xf32>, vector<16x4xf32> -> vector<16x4xf32>
    %cst_245 = arith.constant 0.353553385 : f32
    %535 = vector.broadcast %cst_245 : f32 to vector<16x4xf32>
    %536 = arith.mulf %534, %535 : vector<16x4xf32>
    %537 = arith.addf %536, %99 : vector<16x4xf32>
    %cst_246 = arith.constant dense<0xFF800000> : vector<16xf32>
    %538 = vector.multi_reduction <maximumf>, %537, %cst_246 [1] : vector<16x4xf32> to vector<16xf32>
    %539 = vector.shape_cast %538 : vector<16xf32> to vector<16x1xf32>
    %540 = vector.broadcast %539 : vector<16x1xf32> to vector<16x4xf32>
    %541 = arith.subf %537, %540 : vector<16x4xf32>
    %542 = math.exp %541 : vector<16x4xf32>
    %cst_247 = arith.constant dense<0.000000e+00> : vector<16xf32>
    %543 = vector.multi_reduction <add>, %542, %cst_247 [1] : vector<16x4xf32> to vector<16xf32>
    %544 = vector.shape_cast %543 : vector<16xf32> to vector<16x1xf32>
    %545 = tpu.reciprocal %544 {approx = true} : vector<16x1xf32> -> vector<16x1xf32>
    %546 = vector.broadcast %545 : vector<16x1xf32> to vector<16x4xf32>
    %547 = arith.mulf %542, %546 : vector<16x4xf32>
    %548 = vector.extract_strided_slice %464 {offsets = [0, 24], sizes = [4, 8], strides = [1, 1]} : vector<4x32xf32> to vector<4x8xf32>
    %cst_248 = arith.constant dense<0.000000e+00> : vector<16x8xf32>
    %549 = tpu.matmul %547, %548, %cst_248 {dimension_numbers = #tpu.dot_dimension_numbers<[1], [0], [0], [1], [0, 0, 1, 1], [], []>} : vector<16x4xf32>, vector<4x8xf32>, vector<16x8xf32> -> vector<16x8xf32>
    %550 = vector.extract_strided_slice %465 {offsets = [24, 0], sizes = [8, 32], strides = [1, 1]} : vector<32x32xf32> to vector<8x32xf32>
    %cst_249 = arith.constant dense<0.000000e+00> : vector<16x32xf32>
    %551 = tpu.matmul %549, %550, %cst_249 {dimension_numbers = #tpu.dot_dimension_numbers<[1], [0], [0], [1], [0, 0, 1, 1], [], []>} : vector<16x8xf32>, vector<8x32xf32>, vector<16x32xf32> -> vector<16x32xf32>
    %552 = arith.addf %531, %551 : vector<16x32xf32>
    %c0_250 = arith.constant 0 : index
    %c0_251 = arith.constant 0 : index
    %553 = vector.load %arg65[%c0_250, %c0_251] : memref<1x32xf32, #tpu.memory_space<vmem>>, vector<1x32xf32>
    %c0_252 = arith.constant 0 : index
    %c0_253 = arith.constant 0 : index
    %554 = vector.load %arg66[%c0_252, %c0_253] : memref<1x32xf32, #tpu.memory_space<vmem>>, vector<1x32xf32>
    %cst_254 = arith.constant dense<0.000000e+00> : vector<16xf32>
    %555 = vector.multi_reduction <add>, %552, %cst_254 [1] : vector<16x32xf32> to vector<16xf32>
    %556 = vector.shape_cast %555 : vector<16xf32> to vector<16x1xf32>
    %cst_255 = arith.constant 3.200000e+01 : f32
    %557 = vector.broadcast %cst_255 : f32 to vector<16x1xf32>
    %558 = arith.divf %556, %557 : vector<16x1xf32>
    %559 = vector.broadcast %558 : vector<16x1xf32> to vector<16x32xf32>
    %560 = arith.subf %552, %559 : vector<16x32xf32>
    %561 = arith.mulf %560, %560 : vector<16x32xf32>
    %cst_256 = arith.constant dense<0.000000e+00> : vector<16xf32>
    %562 = vector.multi_reduction <add>, %561, %cst_256 [1] : vector<16x32xf32> to vector<16xf32>
    %563 = vector.shape_cast %562 : vector<16xf32> to vector<16x1xf32>
    %cst_257 = arith.constant 3.200000e+01 : f32
    %564 = vector.broadcast %cst_257 : f32 to vector<16x1xf32>
    %565 = arith.divf %563, %564 : vector<16x1xf32>
    %566 = vector.broadcast %558 : vector<16x1xf32> to vector<16x32xf32>
    %567 = arith.subf %552, %566 : vector<16x32xf32>
    %cst_258 = arith.constant 9.99999996E-13 : f32
    %568 = vector.broadcast %cst_258 : f32 to vector<16x1xf32>
    %569 = arith.addf %565, %568 : vector<16x1xf32>
    %570 = math.rsqrt %569 : vector<16x1xf32>
    %571 = vector.broadcast %570 : vector<16x1xf32> to vector<16x32xf32>
    %572 = arith.mulf %567, %571 : vector<16x32xf32>
    %573 = vector.broadcast %553 : vector<1x32xf32> to vector<16x32xf32>
    %574 = arith.mulf %572, %573 : vector<16x32xf32>
    %575 = vector.broadcast %554 : vector<1x32xf32> to vector<16x32xf32>
    %576 = arith.addf %574, %575 : vector<16x32xf32>
    %c0_259 = arith.constant 0 : index
    %c0_260 = arith.constant 0 : index
    %577 = vector.load %arg67[%c0_259, %c0_260] : memref<32x32xf32, #tpu.memory_space<vmem>>, vector<32x32xf32>
    %cst_261 = arith.constant dense<0.000000e+00> : vector<16x32xf32>
    %578 = tpu.matmul %576, %577, %cst_261 {dimension_numbers = #tpu.dot_dimension_numbers<[1], [0], [0], [1], [0, 0, 1, 1], [], []>} : vector<16x32xf32>, vector<32x32xf32>, vector<16x32xf32> -> vector<16x32xf32>
    %c0_262 = arith.constant 0 : index
    %c0_263 = arith.constant 0 : index
    %579 = vector.load %arg68[%c0_262, %c0_263] : memref<1x32xf32, #tpu.memory_space<vmem>>, vector<1x32xf32>
    %580 = vector.broadcast %579 : vector<1x32xf32> to vector<16x32xf32>
    %581 = arith.addf %578, %580 : vector<16x32xf32>
    %c0_264 = arith.constant 0 : index
    %c0_265 = arith.constant 0 : index
    %582 = vector.load %arg69[%c0_264, %c0_265] : memref<32x32xf32, #tpu.memory_space<vmem>>, vector<32x32xf32>
    %cst_266 = arith.constant dense<0.000000e+00> : vector<16x32xf32>
    %583 = tpu.matmul %576, %582, %cst_266 {dimension_numbers = #tpu.dot_dimension_numbers<[1], [0], [0], [1], [0, 0, 1, 1], [], []>} : vector<16x32xf32>, vector<32x32xf32>, vector<16x32xf32> -> vector<16x32xf32>
    %c0_267 = arith.constant 0 : index
    %c0_268 = arith.constant 0 : index
    %584 = vector.load %arg70[%c0_267, %c0_268] : memref<1x32xf32, #tpu.memory_space<vmem>>, vector<1x32xf32>
    %585 = vector.broadcast %584 : vector<1x32xf32> to vector<16x32xf32>
    %586 = arith.addf %583, %585 : vector<16x32xf32>
    %c0_269 = arith.constant 0 : index
    %c0_270 = arith.constant 0 : index
    %587 = vector.load %arg71[%c0_269, %c0_270] : memref<32x32xf32, #tpu.memory_space<vmem>>, vector<32x32xf32>
    %cst_271 = arith.constant dense<0.000000e+00> : vector<16x32xf32>
    %588 = tpu.matmul %576, %587, %cst_271 {dimension_numbers = #tpu.dot_dimension_numbers<[1], [0], [0], [1], [0, 0, 1, 1], [], []>} : vector<16x32xf32>, vector<32x32xf32>, vector<16x32xf32> -> vector<16x32xf32>
    %c0_272 = arith.constant 0 : index
    %c0_273 = arith.constant 0 : index
    %589 = vector.load %arg72[%c0_272, %c0_273] : memref<1x32xf32, #tpu.memory_space<vmem>>, vector<1x32xf32>
    %590 = vector.broadcast %589 : vector<1x32xf32> to vector<16x32xf32>
    %591 = arith.addf %588, %590 : vector<16x32xf32>
    %c0_274 = arith.constant 0 : index
    %c0_275 = arith.constant 0 : index
    %592 = vector.load %arg73[%c0_274, %c0_275] : memref<32x32xf32, #tpu.memory_space<vmem>>, vector<32x32xf32>
    %c0_276 = arith.constant 0 : index
    %c0_277 = arith.constant 0 : index
    %593 = vector.load %arg74[%c0_276, %c0_277] : memref<1x32xf32, #tpu.memory_space<vmem>>, vector<1x32xf32>
    %594 = vector.broadcast %593 : vector<1x32xf32> to vector<16x32xf32>
    %595 = arith.addf %576, %594 : vector<16x32xf32>
    %596 = vector.extract_strided_slice %581 {offsets = [0, 0], sizes = [16, 8], strides = [1, 1]} : vector<16x32xf32> to vector<16x8xf32>
    %597 = vector.extract_strided_slice %586 {offsets = [0, 0], sizes = [16, 8], strides = [1, 1]} : vector<16x32xf32> to vector<16x8xf32>
    %cst_278 = arith.constant dense<0.000000e+00> : vector<16x16xf32>
    %598 = tpu.matmul %596, %597, %cst_278 {dimension_numbers = #tpu.dot_dimension_numbers<[1], [1], [0], [0], [0, 0, 1, 0], [], []>} : vector<16x8xf32>, vector<16x8xf32>, vector<16x16xf32> -> vector<16x16xf32>
    %cst_279 = arith.constant 0.353553385 : f32
    %599 = vector.broadcast %cst_279 : f32 to vector<16x16xf32>
    %600 = arith.mulf %598, %599 : vector<16x16xf32>
    %601 = arith.addf %600, %97 : vector<16x16xf32>
    %cst_280 = arith.constant dense<0xFF800000> : vector<16xf32>
    %602 = vector.multi_reduction <maximumf>, %601, %cst_280 [1] : vector<16x16xf32> to vector<16xf32>
    %603 = vector.shape_cast %602 : vector<16xf32> to vector<16x1xf32>
    %604 = vector.broadcast %603 : vector<16x1xf32> to vector<16x16xf32>
    %605 = arith.subf %601, %604 : vector<16x16xf32>
    %606 = math.exp %605 : vector<16x16xf32>
    %cst_281 = arith.constant dense<0.000000e+00> : vector<16xf32>
    %607 = vector.multi_reduction <add>, %606, %cst_281 [1] : vector<16x16xf32> to vector<16xf32>
    %608 = vector.shape_cast %607 : vector<16xf32> to vector<16x1xf32>
    %609 = tpu.reciprocal %608 {approx = true} : vector<16x1xf32> -> vector<16x1xf32>
    %610 = vector.broadcast %609 : vector<16x1xf32> to vector<16x16xf32>
    %611 = arith.mulf %606, %610 : vector<16x16xf32>
    %612 = vector.extract_strided_slice %591 {offsets = [0, 0], sizes = [16, 8], strides = [1, 1]} : vector<16x32xf32> to vector<16x8xf32>
    %cst_282 = arith.constant dense<0.000000e+00> : vector<16x8xf32>
    %613 = tpu.matmul %611, %612, %cst_282 {dimension_numbers = #tpu.dot_dimension_numbers<[1], [0], [0], [1], [0, 0, 1, 1], [], []>} : vector<16x16xf32>, vector<16x8xf32>, vector<16x8xf32> -> vector<16x8xf32>
    %614 = vector.extract_strided_slice %592 {offsets = [0, 0], sizes = [8, 32], strides = [1, 1]} : vector<32x32xf32> to vector<8x32xf32>
    %cst_283 = arith.constant dense<0.000000e+00> : vector<16x32xf32>
    %615 = tpu.matmul %613, %614, %cst_283 {dimension_numbers = #tpu.dot_dimension_numbers<[1], [0], [0], [1], [0, 0, 1, 1], [], []>} : vector<16x8xf32>, vector<8x32xf32>, vector<16x32xf32> -> vector<16x32xf32>
    %616 = arith.addf %595, %615 : vector<16x32xf32>
    %617 = vector.extract_strided_slice %581 {offsets = [0, 8], sizes = [16, 8], strides = [1, 1]} : vector<16x32xf32> to vector<16x8xf32>
    %618 = vector.extract_strided_slice %586 {offsets = [0, 8], sizes = [16, 8], strides = [1, 1]} : vector<16x32xf32> to vector<16x8xf32>
    %cst_284 = arith.constant dense<0.000000e+00> : vector<16x16xf32>
    %619 = tpu.matmul %617, %618, %cst_284 {dimension_numbers = #tpu.dot_dimension_numbers<[1], [1], [0], [0], [0, 0, 1, 0], [], []>} : vector<16x8xf32>, vector<16x8xf32>, vector<16x16xf32> -> vector<16x16xf32>
    %cst_285 = arith.constant 0.353553385 : f32
    %620 = vector.broadcast %cst_285 : f32 to vector<16x16xf32>
    %621 = arith.mulf %619, %620 : vector<16x16xf32>
    %622 = arith.addf %621, %97 : vector<16x16xf32>
    %cst_286 = arith.constant dense<0xFF800000> : vector<16xf32>
    %623 = vector.multi_reduction <maximumf>, %622, %cst_286 [1] : vector<16x16xf32> to vector<16xf32>
    %624 = vector.shape_cast %623 : vector<16xf32> to vector<16x1xf32>
    %625 = vector.broadcast %624 : vector<16x1xf32> to vector<16x16xf32>
    %626 = arith.subf %622, %625 : vector<16x16xf32>
    %627 = math.exp %626 : vector<16x16xf32>
    %cst_287 = arith.constant dense<0.000000e+00> : vector<16xf32>
    %628 = vector.multi_reduction <add>, %627, %cst_287 [1] : vector<16x16xf32> to vector<16xf32>
    %629 = vector.shape_cast %628 : vector<16xf32> to vector<16x1xf32>
    %630 = tpu.reciprocal %629 {approx = true} : vector<16x1xf32> -> vector<16x1xf32>
    %631 = vector.broadcast %630 : vector<16x1xf32> to vector<16x16xf32>
    %632 = arith.mulf %627, %631 : vector<16x16xf32>
    %633 = vector.extract_strided_slice %591 {offsets = [0, 8], sizes = [16, 8], strides = [1, 1]} : vector<16x32xf32> to vector<16x8xf32>
    %cst_288 = arith.constant dense<0.000000e+00> : vector<16x8xf32>
    %634 = tpu.matmul %632, %633, %cst_288 {dimension_numbers = #tpu.dot_dimension_numbers<[1], [0], [0], [1], [0, 0, 1, 1], [], []>} : vector<16x16xf32>, vector<16x8xf32>, vector<16x8xf32> -> vector<16x8xf32>
    %635 = vector.extract_strided_slice %592 {offsets = [8, 0], sizes = [8, 32], strides = [1, 1]} : vector<32x32xf32> to vector<8x32xf32>
    %cst_289 = arith.constant dense<0.000000e+00> : vector<16x32xf32>
    %636 = tpu.matmul %634, %635, %cst_289 {dimension_numbers = #tpu.dot_dimension_numbers<[1], [0], [0], [1], [0, 0, 1, 1], [], []>} : vector<16x8xf32>, vector<8x32xf32>, vector<16x32xf32> -> vector<16x32xf32>
    %637 = arith.addf %616, %636 : vector<16x32xf32>
    %638 = vector.extract_strided_slice %581 {offsets = [0, 16], sizes = [16, 8], strides = [1, 1]} : vector<16x32xf32> to vector<16x8xf32>
    %639 = vector.extract_strided_slice %586 {offsets = [0, 16], sizes = [16, 8], strides = [1, 1]} : vector<16x32xf32> to vector<16x8xf32>
    %cst_290 = arith.constant dense<0.000000e+00> : vector<16x16xf32>
    %640 = tpu.matmul %638, %639, %cst_290 {dimension_numbers = #tpu.dot_dimension_numbers<[1], [1], [0], [0], [0, 0, 1, 0], [], []>} : vector<16x8xf32>, vector<16x8xf32>, vector<16x16xf32> -> vector<16x16xf32>
    %cst_291 = arith.constant 0.353553385 : f32
    %641 = vector.broadcast %cst_291 : f32 to vector<16x16xf32>
    %642 = arith.mulf %640, %641 : vector<16x16xf32>
    %643 = arith.addf %642, %97 : vector<16x16xf32>
    %cst_292 = arith.constant dense<0xFF800000> : vector<16xf32>
    %644 = vector.multi_reduction <maximumf>, %643, %cst_292 [1] : vector<16x16xf32> to vector<16xf32>
    %645 = vector.shape_cast %644 : vector<16xf32> to vector<16x1xf32>
    %646 = vector.broadcast %645 : vector<16x1xf32> to vector<16x16xf32>
    %647 = arith.subf %643, %646 : vector<16x16xf32>
    %648 = math.exp %647 : vector<16x16xf32>
    %cst_293 = arith.constant dense<0.000000e+00> : vector<16xf32>
    %649 = vector.multi_reduction <add>, %648, %cst_293 [1] : vector<16x16xf32> to vector<16xf32>
    %650 = vector.shape_cast %649 : vector<16xf32> to vector<16x1xf32>
    %651 = tpu.reciprocal %650 {approx = true} : vector<16x1xf32> -> vector<16x1xf32>
    %652 = vector.broadcast %651 : vector<16x1xf32> to vector<16x16xf32>
    %653 = arith.mulf %648, %652 : vector<16x16xf32>
    %654 = vector.extract_strided_slice %591 {offsets = [0, 16], sizes = [16, 8], strides = [1, 1]} : vector<16x32xf32> to vector<16x8xf32>
    %cst_294 = arith.constant dense<0.000000e+00> : vector<16x8xf32>
    %655 = tpu.matmul %653, %654, %cst_294 {dimension_numbers = #tpu.dot_dimension_numbers<[1], [0], [0], [1], [0, 0, 1, 1], [], []>} : vector<16x16xf32>, vector<16x8xf32>, vector<16x8xf32> -> vector<16x8xf32>
    %656 = vector.extract_strided_slice %592 {offsets = [16, 0], sizes = [8, 32], strides = [1, 1]} : vector<32x32xf32> to vector<8x32xf32>
    %cst_295 = arith.constant dense<0.000000e+00> : vector<16x32xf32>
    %657 = tpu.matmul %655, %656, %cst_295 {dimension_numbers = #tpu.dot_dimension_numbers<[1], [0], [0], [1], [0, 0, 1, 1], [], []>} : vector<16x8xf32>, vector<8x32xf32>, vector<16x32xf32> -> vector<16x32xf32>
    %658 = arith.addf %637, %657 : vector<16x32xf32>
    %659 = vector.extract_strided_slice %581 {offsets = [0, 24], sizes = [16, 8], strides = [1, 1]} : vector<16x32xf32> to vector<16x8xf32>
    %660 = vector.extract_strided_slice %586 {offsets = [0, 24], sizes = [16, 8], strides = [1, 1]} : vector<16x32xf32> to vector<16x8xf32>
    %cst_296 = arith.constant dense<0.000000e+00> : vector<16x16xf32>
    %661 = tpu.matmul %659, %660, %cst_296 {dimension_numbers = #tpu.dot_dimension_numbers<[1], [1], [0], [0], [0, 0, 1, 0], [], []>} : vector<16x8xf32>, vector<16x8xf32>, vector<16x16xf32> -> vector<16x16xf32>
    %cst_297 = arith.constant 0.353553385 : f32
    %662 = vector.broadcast %cst_297 : f32 to vector<16x16xf32>
    %663 = arith.mulf %661, %662 : vector<16x16xf32>
    %664 = arith.addf %663, %97 : vector<16x16xf32>
    %cst_298 = arith.constant dense<0xFF800000> : vector<16xf32>
    %665 = vector.multi_reduction <maximumf>, %664, %cst_298 [1] : vector<16x16xf32> to vector<16xf32>
    %666 = vector.shape_cast %665 : vector<16xf32> to vector<16x1xf32>
    %667 = vector.broadcast %666 : vector<16x1xf32> to vector<16x16xf32>
    %668 = arith.subf %664, %667 : vector<16x16xf32>
    %669 = math.exp %668 : vector<16x16xf32>
    %cst_299 = arith.constant dense<0.000000e+00> : vector<16xf32>
    %670 = vector.multi_reduction <add>, %669, %cst_299 [1] : vector<16x16xf32> to vector<16xf32>
    %671 = vector.shape_cast %670 : vector<16xf32> to vector<16x1xf32>
    %672 = tpu.reciprocal %671 {approx = true} : vector<16x1xf32> -> vector<16x1xf32>
    %673 = vector.broadcast %672 : vector<16x1xf32> to vector<16x16xf32>
    %674 = arith.mulf %669, %673 : vector<16x16xf32>
    %675 = vector.extract_strided_slice %591 {offsets = [0, 24], sizes = [16, 8], strides = [1, 1]} : vector<16x32xf32> to vector<16x8xf32>
    %cst_300 = arith.constant dense<0.000000e+00> : vector<16x8xf32>
    %676 = tpu.matmul %674, %675, %cst_300 {dimension_numbers = #tpu.dot_dimension_numbers<[1], [0], [0], [1], [0, 0, 1, 1], [], []>} : vector<16x16xf32>, vector<16x8xf32>, vector<16x8xf32> -> vector<16x8xf32>
    %677 = vector.extract_strided_slice %592 {offsets = [24, 0], sizes = [8, 32], strides = [1, 1]} : vector<32x32xf32> to vector<8x32xf32>
    %cst_301 = arith.constant dense<0.000000e+00> : vector<16x32xf32>
    %678 = tpu.matmul %676, %677, %cst_301 {dimension_numbers = #tpu.dot_dimension_numbers<[1], [0], [0], [1], [0, 0, 1, 1], [], []>} : vector<16x8xf32>, vector<8x32xf32>, vector<16x32xf32> -> vector<16x32xf32>
    %679 = arith.addf %658, %678 : vector<16x32xf32>
    %c0_302 = arith.constant 0 : index
    %c0_303 = arith.constant 0 : index
    %680 = vector.load %arg75[%c0_302, %c0_303] : memref<1x32xf32, #tpu.memory_space<vmem>>, vector<1x32xf32>
    %c0_304 = arith.constant 0 : index
    %c0_305 = arith.constant 0 : index
    %681 = vector.load %arg76[%c0_304, %c0_305] : memref<1x32xf32, #tpu.memory_space<vmem>>, vector<1x32xf32>
    %cst_306 = arith.constant dense<0.000000e+00> : vector<16xf32>
    %682 = vector.multi_reduction <add>, %679, %cst_306 [1] : vector<16x32xf32> to vector<16xf32>
    %683 = vector.shape_cast %682 : vector<16xf32> to vector<16x1xf32>
    %cst_307 = arith.constant 3.200000e+01 : f32
    %684 = vector.broadcast %cst_307 : f32 to vector<16x1xf32>
    %685 = arith.divf %683, %684 : vector<16x1xf32>
    %686 = vector.broadcast %685 : vector<16x1xf32> to vector<16x32xf32>
    %687 = arith.subf %679, %686 : vector<16x32xf32>
    %688 = arith.mulf %687, %687 : vector<16x32xf32>
    %cst_308 = arith.constant dense<0.000000e+00> : vector<16xf32>
    %689 = vector.multi_reduction <add>, %688, %cst_308 [1] : vector<16x32xf32> to vector<16xf32>
    %690 = vector.shape_cast %689 : vector<16xf32> to vector<16x1xf32>
    %cst_309 = arith.constant 3.200000e+01 : f32
    %691 = vector.broadcast %cst_309 : f32 to vector<16x1xf32>
    %692 = arith.divf %690, %691 : vector<16x1xf32>
    %693 = vector.broadcast %685 : vector<16x1xf32> to vector<16x32xf32>
    %694 = arith.subf %679, %693 : vector<16x32xf32>
    %cst_310 = arith.constant 9.99999996E-13 : f32
    %695 = vector.broadcast %cst_310 : f32 to vector<16x1xf32>
    %696 = arith.addf %692, %695 : vector<16x1xf32>
    %697 = math.rsqrt %696 : vector<16x1xf32>
    %698 = vector.broadcast %697 : vector<16x1xf32> to vector<16x32xf32>
    %699 = arith.mulf %694, %698 : vector<16x32xf32>
    %700 = vector.broadcast %680 : vector<1x32xf32> to vector<16x32xf32>
    %701 = arith.mulf %699, %700 : vector<16x32xf32>
    %702 = vector.broadcast %681 : vector<1x32xf32> to vector<16x32xf32>
    %703 = arith.addf %701, %702 : vector<16x32xf32>
    %c0_311 = arith.constant 0 : index
    %c0_312 = arith.constant 0 : index
    %704 = vector.load %arg87[%c0_311, %c0_312] : memref<32x64xf32, #tpu.memory_space<vmem>>, vector<32x64xf32>
    %cst_313 = arith.constant dense<0.000000e+00> : vector<16x64xf32>
    %705 = tpu.matmul %703, %704, %cst_313 {dimension_numbers = #tpu.dot_dimension_numbers<[1], [0], [0], [1], [0, 0, 1, 1], [], []>} : vector<16x32xf32>, vector<32x64xf32>, vector<16x64xf32> -> vector<16x64xf32>
    %c0_314 = arith.constant 0 : index
    %c0_315 = arith.constant 0 : index
    %706 = vector.load %arg88[%c0_314, %c0_315] : memref<1x64xf32, #tpu.memory_space<vmem>>, vector<1x64xf32>
    %707 = vector.broadcast %706 : vector<1x64xf32> to vector<16x64xf32>
    %708 = arith.addf %705, %707 : vector<16x64xf32>
    %709 = arith.mulf %708, %708 : vector<16x64xf32>
    %710 = arith.mulf %708, %709 : vector<16x64xf32>
    %cst_316 = arith.constant 4.471500e-02 : f32
    %711 = vector.broadcast %cst_316 : f32 to vector<16x64xf32>
    %712 = arith.mulf %711, %710 : vector<16x64xf32>
    %713 = arith.addf %708, %712 : vector<16x64xf32>
    %cst_317 = arith.constant 0.797884583 : f32
    %714 = vector.broadcast %cst_317 : f32 to vector<16x64xf32>
    %715 = arith.mulf %714, %713 : vector<16x64xf32>
    %716 = math.tanh %715 : vector<16x64xf32>
    %cst_318 = arith.constant 1.000000e+00 : f32
    %717 = vector.broadcast %cst_318 : f32 to vector<16x64xf32>
    %718 = arith.addf %717, %716 : vector<16x64xf32>
    %cst_319 = arith.constant 5.000000e-01 : f32
    %719 = vector.broadcast %cst_319 : f32 to vector<16x64xf32>
    %720 = arith.mulf %719, %718 : vector<16x64xf32>
    %721 = arith.mulf %708, %720 : vector<16x64xf32>
    %c0_320 = arith.constant 0 : index
    %c0_321 = arith.constant 0 : index
    %722 = vector.load %arg89[%c0_320, %c0_321] : memref<64x32xf32, #tpu.memory_space<vmem>>, vector<64x32xf32>
    %cst_322 = arith.constant dense<0.000000e+00> : vector<16x32xf32>
    %723 = tpu.matmul %721, %722, %cst_322 {dimension_numbers = #tpu.dot_dimension_numbers<[1], [0], [0], [1], [0, 0, 1, 1], [], []>} : vector<16x64xf32>, vector<64x32xf32>, vector<16x32xf32> -> vector<16x32xf32>
    %c0_323 = arith.constant 0 : index
    %c0_324 = arith.constant 0 : index
    %724 = vector.load %arg90[%c0_323, %c0_324] : memref<1x32xf32, #tpu.memory_space<vmem>>, vector<1x32xf32>
    %725 = vector.broadcast %724 : vector<1x32xf32> to vector<16x32xf32>
    %726 = arith.addf %723, %725 : vector<16x32xf32>
    %727 = arith.addf %726, %703 : vector<16x32xf32>
    %c0_325 = arith.constant 0 : index
    %c0_326 = arith.constant 0 : index
    %728 = vector.load %arg91[%c0_325, %c0_326] : memref<1x32xf32, #tpu.memory_space<vmem>>, vector<1x32xf32>
    %c0_327 = arith.constant 0 : index
    %c0_328 = arith.constant 0 : index
    %729 = vector.load %arg92[%c0_327, %c0_328] : memref<1x32xf32, #tpu.memory_space<vmem>>, vector<1x32xf32>
    %cst_329 = arith.constant dense<0.000000e+00> : vector<16xf32>
    %730 = vector.multi_reduction <add>, %727, %cst_329 [1] : vector<16x32xf32> to vector<16xf32>
    %731 = vector.shape_cast %730 : vector<16xf32> to vector<16x1xf32>
    %cst_330 = arith.constant 3.200000e+01 : f32
    %732 = vector.broadcast %cst_330 : f32 to vector<16x1xf32>
    %733 = arith.divf %731, %732 : vector<16x1xf32>
    %734 = vector.broadcast %733 : vector<16x1xf32> to vector<16x32xf32>
    %735 = arith.subf %727, %734 : vector<16x32xf32>
    %736 = arith.mulf %735, %735 : vector<16x32xf32>
    %cst_331 = arith.constant dense<0.000000e+00> : vector<16xf32>
    %737 = vector.multi_reduction <add>, %736, %cst_331 [1] : vector<16x32xf32> to vector<16xf32>
    %738 = vector.shape_cast %737 : vector<16xf32> to vector<16x1xf32>
    %cst_332 = arith.constant 3.200000e+01 : f32
    %739 = vector.broadcast %cst_332 : f32 to vector<16x1xf32>
    %740 = arith.divf %738, %739 : vector<16x1xf32>
    %741 = vector.broadcast %733 : vector<16x1xf32> to vector<16x32xf32>
    %742 = arith.subf %727, %741 : vector<16x32xf32>
    %cst_333 = arith.constant 9.99999996E-13 : f32
    %743 = vector.broadcast %cst_333 : f32 to vector<16x1xf32>
    %744 = arith.addf %740, %743 : vector<16x1xf32>
    %745 = math.rsqrt %744 : vector<16x1xf32>
    %746 = vector.broadcast %745 : vector<16x1xf32> to vector<16x32xf32>
    %747 = arith.mulf %742, %746 : vector<16x32xf32>
    %748 = vector.broadcast %728 : vector<1x32xf32> to vector<16x32xf32>
    %749 = arith.mulf %747, %748 : vector<16x32xf32>
    %750 = vector.broadcast %729 : vector<1x32xf32> to vector<16x32xf32>
    %751 = arith.addf %749, %750 : vector<16x32xf32>
    %c0_334 = arith.constant 0 : index
    %c0_335 = arith.constant 0 : index
    %752 = vector.load %arg8[%c0_334, %c0_335] : memref<2x16xf32, #tpu.memory_space<vmem>>, vector<2x16xf32>
    %cst_336 = arith.constant dense<0.000000e+00> : vector<2x32xf32>
    %753 = tpu.matmul %752, %751, %cst_336 {dimension_numbers = #tpu.dot_dimension_numbers<[1], [0], [0], [1], [0, 0, 1, 1], [], []>} : vector<2x16xf32>, vector<16x32xf32>, vector<2x32xf32> -> vector<2x32xf32>
    %c0_337 = arith.constant 0 : index
    %c0_338 = arith.constant 0 : index
    %754 = vector.load %arg21[%c0_337, %c0_338] : memref<32x32xf32, #tpu.memory_space<vmem>>, vector<32x32xf32>
    %cst_339 = arith.constant dense<0.000000e+00> : vector<2x32xf32>
    %755 = tpu.matmul %753, %754, %cst_339 {dimension_numbers = #tpu.dot_dimension_numbers<[1], [0], [0], [1], [0, 0, 1, 1], [], []>} : vector<2x32xf32>, vector<32x32xf32>, vector<2x32xf32> -> vector<2x32xf32>
    %c0_340 = arith.constant 0 : index
    %c0_341 = arith.constant 0 : index
    %756 = vector.load %arg22[%c0_340, %c0_341] : memref<1x32xf32, #tpu.memory_space<vmem>>, vector<1x32xf32>
    %757 = vector.broadcast %756 : vector<1x32xf32> to vector<2x32xf32>
    %758 = arith.addf %755, %757 : vector<2x32xf32>
    %759 = math.tanh %758 : vector<2x32xf32>
    %c0_342 = arith.constant 0 : index
    %c0_343 = arith.constant 0 : index
    %760 = vector.load %arg23[%c0_342, %c0_343] : memref<32x2xf32, #tpu.memory_space<vmem>>, vector<32x2xf32>
    %cst_344 = arith.constant dense<0.000000e+00> : vector<2x2xf32>
    %761 = tpu.matmul %759, %760, %cst_344 {dimension_numbers = #tpu.dot_dimension_numbers<[1], [0], [0], [1], [0, 0, 1, 1], [], []>} : vector<2x32xf32>, vector<32x2xf32>, vector<2x2xf32> -> vector<2x2xf32>
    %c0_345 = arith.constant 0 : index
    %c0_346 = arith.constant 0 : index
    %762 = vector.load %arg24[%c0_345, %c0_346] : memref<1x2xf32, #tpu.memory_space<vmem>>, vector<1x2xf32>
    %763 = vector.broadcast %762 : vector<1x2xf32> to vector<2x2xf32>
    %764 = arith.addf %761, %763 : vector<2x2xf32>
    %c0_347 = arith.constant 0 : index
    %c0_348 = arith.constant 0 : index
    %765 = vector.load %arg99[%c0_347, %c0_348] : memref<2x2xf32, #tpu.memory_space<vmem>>, vector<2x2xf32>
    tpu.vector_store %arg99[%c0_347, %c0_348], %764 {strides = array<i32>} : memref<2x2xf32, #tpu.memory_space<vmem>>, vector<2x2xf32>,
    return
  }
}

</mosaic_0001>

<bundles_post_ra>
// kernel: custom_lxmert_forward.1
= control target key start
LH: loop header
LB: loop body
LE: loop exit
PB: predicated region body
PF: predicated region fallthrough
CT: control target
= control target key end

     0   :  { %s11481_s6 = smov 1   ;;  %s11482_s10 = smov 2   ;;  %s13156_s0 = inlined_call_operand.smem [shape: u32[100], index: -1, kind: input, shape index: {}] }
   0x1   :  { %s11645_s5 = sld [smem:[%s13156_s0]]   ;;  %s11483_s14 = smov 3  }
   0x2   :  { %s11650_s9 = sld [smem:[%s13156_s0 + %s11481_s6]]   ;;  %s11484_s18 = smov 4  }
   0x3   :  { %s11655_s13 = sld [smem:[%s13156_s0 + %s11482_s10]]   ;;  %s11485_s22 = smov 5  }
   0x4   :  { %s11660_s17 = sld [smem:[%s13156_s0 + %s11483_s14]]   ;;  %s11486_s26 = smov 6  }
   0x5   :  { %s11665_s21 = sld [smem:[%s13156_s0 + %s11484_s18]]   ;;  %s11487_s30 = smov 8  }
   0x6   :  { %s11670_s25 = sld [smem:[%s13156_s0 + %s11485_s22]]   ;;  %s11488_s4 = smov 9  }
   0x7   :  { %13226 = sst [smem:[#allocation119_spill]] %s11645_s5  ;;  %s11489_s10 = smov 10  }
   0x8   :  { %13227 = sst [smem:[#allocation120_spill]] %s11650_s9  ;;  %s11490_s15 = smov 11  }
   0x9   :  { %13228 = sst [smem:[#allocation121_spill]] %s11655_s13  ;;  %s11491_s20 = smov 12  }
   0xa   :  { %13229 = sst [smem:[#allocation122_spill]] %s11660_s17  ;;  %s11493_s1 = smov 14  }
   0xb   :  { %13230 = sst [smem:[#allocation123_spill]] %s11665_s21  ;;  %s11494_s7 = smov 15  }
   0xc   :  { %13231 = sst [smem:[#allocation124_spill]] %s11670_s25  ;;  %s11496_s22 = smov 17  }
   0xd   :  { %s11675_s29 = sld [smem:[%s13156_s0 + %s11486_s26]]   ;;  %s11492_s26 = smov 13  }
   0xe   :  { %s11680_s3 = sld [smem:[%s13156_s0 + %s11487_s30]]   ;;  %s11497_s28 = smov 18  }
   0xf   :  { %s11685_s8 = sld [smem:[%s13156_s0 + %s11488_s4]]  }
  0x10   :  { %s11690_s14 = sld [smem:[%s13156_s0 + %s11489_s10]]  }
  0x11   :  { %s11695_s19 = sld [smem:[%s13156_s0 + %s11490_s15]]   ;;  %s11495_s15 = smov 16  }
  0x12   :  { %s11700_s24 = sld [smem:[%s13156_s0 + %s11491_s20]]  }
  0x13   :  { %13232 = sst [smem:[#allocation125_spill]] %s11675_s29 }
  0x14   :  { %13233 = sst [smem:[#allocation126_spill]] %s11680_s3 }
  0x15   :  { %13234 = sst [smem:[#allocation127_spill]] %s11685_s8 }
  0x16   :  { %13235 = sst [smem:[#allocation128_spill]] %s11690_s14 }
  0x17   :  { %13236 = sst [smem:[#allocation129_spill]] %s11695_s19 }
  0x18   :  { %s11705_s30 = sld [smem:[%s13156_s0 + %s11492_s26]]  }
  0x19   :  { %s11710_s6 = sld [smem:[%s13156_s0 + %s11493_s1]]  }
  0x1a   :  { %s11715_s12 = sld [smem:[%s13156_s0 + %s11494_s7]]   ;;  %s11498_s7 = smov 19  }
  0x1b   :  { %s11720_s20 = sld [smem:[%s13156_s0 + %s11495_s15]]   ;;  %s11499_s15 = smov 20  }
  0x1c   :  { %s11725_s27 = sld [smem:[%s13156_s0 + %s11496_s22]]   ;;  %s11500_s22 = smov 21  }
  0x1d   :  { %s11730_s4 = sld [smem:[%s13156_s0 + %s11497_s28]]   ;;  %s11501_s28 = smov 22  }
  0x1e   :  { %13237 = sst [smem:[#allocation130_spill]] %s11705_s30 }
  0x1f   :  { %13238 = sst [smem:[#allocation131_spill]] %s11710_s6 }
  0x20   :  { %s11735_s3 = sld [smem:[%s13156_s0 + %s11498_s7]]   ;;  %s11502_s7 = smov 23  }
  0x21   :  { %13239 = sst [smem:[#allocation132_spill]] %s11720_s20 }
  0x22   :  { %13240 = sst [smem:[#allocation133_spill]] %s11725_s27 }
  0x23   :  { %s11740_s29 = sld [smem:[%s13156_s0 + %s11499_s15]]   ;;  %s11503_s15 = smov 24  }
  0x24   :  { %s11745_s25 = sld [smem:[%s13156_s0 + %s11500_s22]]   ;;  %s11504_s22 = smov 25  }
  0x25   :  { %s11750_s21 = sld [smem:[%s13156_s0 + %s11501_s28]]   ;;  %s11505_s28 = smov 26  }
  0x26   :  { %13241 = sst [smem:[#allocation134_spill]] %s11735_s3 }
  0x27   :  { %s11755_s17 = sld [smem:[%s13156_s0 + %s11502_s7]]   ;;  %s11506_s7 = smov 27  }
  0x28   :  { %s11760_s27 = sld [smem:[%s13156_s0 + %s11503_s15]]   ;;  %s11507_s15 = smov 28  }
  0x29   :  { %s11770_s14 = sld [smem:[%s13156_s0 + %s11505_s28]]   ;;  %s11509_s28 = smov 30  }
  0x2a   :  { %13242 = sst [smem:[#allocation135_spill]] %s11745_s25 }
  0x2b   :  { %13243 = sst [smem:[#allocation136_spill]] %s11750_s21 }
  0x2c   :  { %s11765_s25 = sld [smem:[%s13156_s0 + %s11504_s22]]   ;;  %s11508_s22 = smov 29  }
  0x2d   :  { %13244 = sst [smem:[#allocation137_spill]] %s11755_s17 }
  0x2e   :  { %s11775_s17 = sld [smem:[%s13156_s0 + %s11506_s7]]   ;;  %s11510_s7 = smov 31  }
  0x2f   :  { %13246 = sst [smem:[#allocation139_spill]] %s11770_s14 }
  0x30   :  { %s11780_s30 = sld [smem:[%s13156_s0 + %s11507_s15]]   ;;  %s11511_s15 = smov 32  }
  0x31   :  { %s11790_s9 = sld [smem:[%s13156_s0 + %s11509_s28]]   ;;  %s11513_s28 = smov 34  }
  0x32   :  { %13245 = sst [smem:[#allocation138_spill]] %s11765_s25 }
  0x33   :  { %s11785_s25 = sld [smem:[%s13156_s0 + %s11508_s22]]   ;;  %s11512_s22 = smov 33  }
  0x34   :  { %13247 = sst [smem:[#allocation140_spill]] %s11775_s17 }
  0x35   :  { %s11795_s17 = sld [smem:[%s13156_s0 + %s11510_s7]]   ;;  %s11514_s7 = smov 35  }
  0x36   :  { %s11800_s5 = sld [smem:[%s13156_s0 + %s11511_s15]]   ;;  %s11515_s15 = smov 36  }
  0x37   :  { %13249 = sst [smem:[#allocation142_spill]] %s11790_s9 }
  0x38   :  { %s11810_s8 = sld [smem:[%s13156_s0 + %s11513_s28]]   ;;  %s11517_s28 = smov 38  }
  0x39   :  { %13248 = sst [smem:[#allocation141_spill]] %s11785_s25 }
  0x3a   :  { %s11805_s25 = sld [smem:[%s13156_s0 + %s11512_s22]]   ;;  %s11516_s22 = smov 37  }
  0x3b   :  { %13250 = sst [smem:[#allocation143_spill]] %s11795_s17 }
  0x3c   :  { %s11815_s17 = sld [smem:[%s13156_s0 + %s11514_s7]]   ;;  %s11518_s7 = smov 39  }
  0x3d   :  { %s11820_s13 = sld [smem:[%s13156_s0 + %s11515_s15]]   ;;  %s11519_s15 = smov 40  }
  0x3e   :  { %s11830_s9 = sld [smem:[%s13156_s0 + %s11517_s28]]   ;;  %s11521_s28 = smov 42  }
  0x3f   :  { %s11850_s14 = sld [smem:[%s13156_s0 + %s11521_s28]]   ;;  %s11525_s28 = smov 46  }
  0x40   :  { %13251 = sst [smem:[#allocation144_spill]] %s11805_s25 }
  0x41   :  { %s11825_s25 = sld [smem:[%s13156_s0 + %s11516_s22]]   ;;  %s11520_s22 = smov 41  }
  0x42   :  { %13252 = sst [smem:[#allocation145_spill]] %s11815_s17 }
  0x43   :  { %13253 = sst [smem:[#allocation146_spill]] %s11820_s13 }
  0x44   :  { %s11835_s17 = sld [smem:[%s13156_s0 + %s11518_s7]]   ;;  %s11522_s7 = smov 43  }
  0x45   :  { %s11840_s13 = sld [smem:[%s13156_s0 + %s11519_s15]]   ;;  %s11523_s15 = smov 44  }
  0x46   :  { %13257 = sst [smem:[#allocation150_spill]] %s11850_s14 }
  0x47   :  { %13254 = sst [smem:[#allocation147_spill]] %s11825_s25 }
  0x48   :  { %s11845_s25 = sld [smem:[%s13156_s0 + %s11520_s22]]   ;;  %s11524_s22 = smov 45  }
  0x49   :  { %s11860_s21 = sld [smem:[%s13156_s0 + %s11523_s15]]   ;;  %s11527_s15 = smov 48  }
  0x4a   :  { %13255 = sst [smem:[#allocation148_spill]] %s11835_s17 }
  0x4b   :  { %s11855_s17 = sld [smem:[%s13156_s0 + %s11522_s7]]   ;;  %s11526_s7 = smov 47  }
  0x4c   :  { %s11870_s14 = sld [smem:[%s13156_s0 + %s11525_s28]]   ;;  %s11529_s28 = smov 50  }
  0x4d   :  { %s11880_s3 = sld [smem:[%s13156_s0 + %s11527_s15]]   ;;  %s11531_s15 = smov 52  }
  0x4e   :  { %13256 = sst [smem:[#allocation149_spill]] %s11845_s25 }
  0x4f   :  { %s11865_s25 = sld [smem:[%s13156_s0 + %s11524_s22]]   ;;  %s11528_s22 = smov 49  }
  0x50   :  { %s11900_s20 = sld [smem:[%s13156_s0 + %s11531_s15]]   ;;  %s11535_s15 = smov 56  }
  0x51   :  { %13258 = sst [smem:[#allocation151_spill]] %s11855_s17 }
  0x52   :  { %13260 = sst [smem:[#allocation153_spill]] %s11870_s14 }
  0x53   :  { %s11875_s17 = sld [smem:[%s13156_s0 + %s11526_s7]]   ;;  %s11530_s7 = smov 51  }
  0x54   :  { %s11890_s14 = sld [smem:[%s13156_s0 + %s11529_s28]]   ;;  %s11533_s28 = smov 54  }
  0x55   :  { %13259 = sst [smem:[#allocation152_spill]] %s11865_s25 }
  0x56   :  { %s11885_s25 = sld [smem:[%s13156_s0 + %s11528_s22]]   ;;  %s11532_s22 = smov 53  }
  0x57   :  { %13264 = sst [smem:[#allocation157_spill]] %s11900_s20 }
  0x58   :  { %s11910_s6 = sld [smem:[%s13156_s0 + %s11533_s28]]   ;;  %s11537_s28 = smov 58  }
  0x59   :  { %13261 = sst [smem:[#allocation154_spill]] %s11875_s17 }
  0x5a   :  { %s11895_s17 = sld [smem:[%s13156_s0 + %s11530_s7]]   ;;  %s11534_s7 = smov 55  }
  0x5b   :  { %s11920_s20 = sld [smem:[%s13156_s0 + %s11535_s15]]   ;;  %s11539_s15 = smov 60  }
  0x5c   :  { %13262 = sst [smem:[#allocation155_spill]] %s11885_s25 }
  0x5d   :  { %s11905_s25 = sld [smem:[%s13156_s0 + %s11532_s22]]   ;;  %s11536_s22 = smov 57  }
  0x5e   :  { %s11930_s19 = sld [smem:[%s13156_s0 + %s11537_s28]]   ;;  %s11541_s28 = smov 62  }
  0x60   :  { %13263 = sst [smem:[#allocation156_spill]] %s11895_s17 }
  0x61   :  { %s11915_s17 = sld [smem:[%s13156_s0 + %s11534_s7]]   ;;  %s11538_s7 = smov 59  }
  0x62   :  { %13267 = sst [smem:[#allocation160_spill]] %s11920_s20 }
  0x63   :  { %13265 = sst [smem:[#allocation158_spill]] %s11905_s25 }
  0x64   :  { %s11925_s25 = sld [smem:[%s13156_s0 + %s11536_s22]]   ;;  %s11540_s22 = smov 61  }
  0x65   :  { %13269 = sst [smem:[#allocation162_spill]] %s11930_s19 }
  0x66   :  { %s11940_s20 = sld [smem:[%s13156_s0 + %s11539_s15]]   ;;  %s11543_s15 = smov 64  }
  0x67   :  { %13266 = sst [smem:[#allocation159_spill]] %s11915_s17 }
  0x68   :  { %s11935_s17 = sld [smem:[%s13156_s0 + %s11538_s7]]   ;;  %s11542_s7 = smov 63  }
  0x69   :  { %s11950_s19 = sld [smem:[%s13156_s0 + %s11541_s28]]   ;;  %s11545_s28 = smov 66  }
  0x6a   :  { %13268 = sst [smem:[#allocation161_spill]] %s11925_s25 }
  0x6b   :  { %s11945_s25 = sld [smem:[%s13156_s0 + %s11540_s22]]   ;;  %s11544_s22 = smov 65  }
  0x6c   :  { %13271 = sst [smem:[#allocation164_spill]] %s11940_s20 }
  0x6d   :  { %s11960_s20 = sld [smem:[%s13156_s0 + %s11543_s15]]   ;;  %s11547_s15 = smov 68  }
  0x6e   :  { %13270 = sst [smem:[#allocation163_spill]] %s11935_s17 }
  0x6f   :  { %13273 = sst [smem:[#allocation166_spill]] %s11950_s19 }
  0x70   :  { %s11955_s17 = sld [smem:[%s13156_s0 + %s11542_s7]]   ;;  %s11546_s7 = smov 67  }
  0x71   :  { %13272 = sst [smem:[#allocation165_spill]] %s11945_s25 }
  0x72   :  { %s11965_s25 = sld [smem:[%s13156_s0 + %s11544_s22]]   ;;  %s11548_s22 = smov 69  }
  0x73   :  { %13275 = sst [smem:[#allocation168_spill]] %s11960_s20 }
  0x74   :  { %s11970_s19 = sld [smem:[%s13156_s0 + %s11545_s28]]   ;;  %s11549_s28 = smov 70  }
  0x75   :  { %s11980_s20 = sld [smem:[%s13156_s0 + %s11547_s15]]   ;;  %s11551_s15 = smov 72  }
  0x76   :  { %13274 = sst [smem:[#allocation167_spill]] %s11955_s17 }
  0x77   :  { %s11975_s17 = sld [smem:[%s13156_s0 + %s11546_s7]]   ;;  %s11550_s7 = smov 71  }
  0x78   :  { %13276 = sst [smem:[#allocation169_spill]] %s11965_s25 }
  0x79   :  { %s11985_s25 = sld [smem:[%s13156_s0 + %s11548_s22]]   ;;  %s11552_s22 = smov 73  }
  0x7a   :  { %13277 = sst [smem:[#allocation170_spill]] %s11970_s19 }
  0x7b   :  { %13279 = sst [smem:[#allocation172_spill]] %s11980_s20 }
  0x7c   :  { %s11990_s19 = sld [smem:[%s13156_s0 + %s11549_s28]]   ;;  %s11553_s28 = smov 74  }
  0x7d   :  { %13278 = sst [smem:[#allocation171_spill]] %s11975_s17 }
  0x7e   :  { %s11995_s17 = sld [smem:[%s13156_s0 + %s11550_s7]]   ;;  %s11554_s7 = smov 75  }
  0x7f   :  { %13280 = sst [smem:[#allocation173_spill]] %s11985_s25 }
  0x80   :  { %s12000_s20 = sld [smem:[%s13156_s0 + %s11551_s15]]   ;;  %s11555_s15 = smov 76  }
  0x81   :  { %s12005_s25 = sld [smem:[%s13156_s0 + %s11552_s22]]   ;;  %s11556_s22 = smov 78  }
  0x82   :  { %13281 = sst [smem:[#allocation174_spill]] %s11990_s19 }
  0x83   :  { %s12010_s19 = sld [smem:[%s13156_s0 + %s11553_s28]]   ;;  %s11557_s28 = smov 80  }
  0x84   :  { %13282 = sst [smem:[#allocation175_spill]] %s11995_s17 }
  0x85   :  { %s12015_s17 = sld [smem:[%s13156_s0 + %s11554_s7]]   ;;  %s11558_s7 = smov 82  }
  0x86   :  { %13283 = sst [smem:[#allocation176_spill]] %s12000_s20 }
  0x87   :  { %13284 = sst [smem:[#allocation177_spill]] %s12005_s25 }
  0x88   :  { %s12020_s20 = sld [smem:[%s13156_s0 + %s11555_s15]]   ;;  %s11559_s15 = smov 84  }
  0x89   :  { %13285 = sst [smem:[#allocation178_spill]] %s12010_s19 }
  0x8a   :  { %s12025_s25 = sld [smem:[%s13156_s0 + %s11556_s22]]   ;;  %s11560_s22 = smov 85  }
  0x8b   :  { %13286 = sst [smem:[#allocation179_spill]] %s12015_s17 }
  0x8c   :  { %s12030_s19 = sld [smem:[%s13156_s0 + %s11557_s28]]   ;;  %s11561_s28 = smov 86  }
  0x8d   :  { %s12035_s17 = sld [smem:[%s13156_s0 + %s11558_s7]]   ;;  %s11562_s7 = smov 87  }
  0x8e   :  { %13287 = sst [smem:[#allocation180_spill]] %s12020_s20 }
  0x8f   :  { %s12040_s20 = sld [smem:[%s13156_s0 + %s11559_s15]]   ;;  %s11563_s15 = smov 88  }
  0x90   :  { %13288 = sst [smem:[#allocation181_spill]] %s12025_s25 }
  0x91   :  { %s12045_s25 = sld [smem:[%s13156_s0 + %s11560_s22]]   ;;  %s11564_s22 = smov 89  }
  0x92   :  { %13289 = sst [smem:[#allocation182_spill]] %s12030_s19 }
  0x93   :  { %13290 = sst [smem:[#allocation183_spill]] %s12035_s17 }
  0x94   :  { %s12050_s19 = sld [smem:[%s13156_s0 + %s11561_s28]]   ;;  %s11565_s28 = smov 90  }
  0x95   :  { %13291 = sst [smem:[#allocation184_spill]] %s12040_s20 }
  0x96   :  { %s12055_s17 = sld [smem:[%s13156_s0 + %s11562_s7]]   ;;  %s11566_s7 = smov 91  }
  0x97   :  { %13292 = sst [smem:[#allocation185_spill]] %s12045_s25 }
  0x98   :  { %s12060_s20 = sld [smem:[%s13156_s0 + %s11563_s15]]   ;;  %s11567_s15 = smov 92  }
  0x99   :  { %s12065_s25 = sld [smem:[%s13156_s0 + %s11564_s22]]   ;;  %s11568_s22 = smov 94  }
  0x9a   :  { %13293 = sst [smem:[#allocation186_spill]] %s12050_s19 }
  0x9b   :  { %s12070_s19 = sld [smem:[%s13156_s0 + %s11565_s28]]   ;;  %s11569_s28 = smov 96  }
  0x9c   :  { %13294 = sst [smem:[#allocation187_spill]] %s12055_s17 }
  0x9d   :  { %s12075_s17 = sld [smem:[%s13156_s0 + %s11566_s7]]   ;;  %s11570_s7 = smov 97  }
  0x9e   :  { %13295 = sst [smem:[#allocation188_spill]] %s12060_s20 }
  0x9f   :  { %13296 = sst [smem:[#allocation189_spill]] %s12065_s25 }
  0xa0   :  { %s12080_s20 = sld [smem:[%s13156_s0 + %s11567_s15]]   ;;  %s11571_s15 = smov 98  }
  0xa1   :  { %13297 = sst [smem:[#allocation190_spill]] %s12070_s19 }
  0xa2   :  { %s12085_s25 = sld [smem:[%s13156_s0 + %s11568_s22]]   ;;  %s11572_s22 = smov 99  }
  0xa3   :  { %13298 = sst [smem:[#allocation191_spill]] %s12075_s17 }
  0xa4   :  { %s12090_s19 = sld [smem:[%s13156_s0 + %s11569_s28]]  }
  0xa5   :  { %s12095_s17 = sld [smem:[%s13156_s0 + %s11570_s7]]  }
  0xa6   :  { %13299 = sst [smem:[#allocation192_spill]] %s12080_s20 }
  0xa7   :  { %s12100_s20 = sld [smem:[%s13156_s0 + %s11571_s15]]  }
  0xa8   :  { %13300 = sst [smem:[#allocation193_spill]] %s12085_s25 }
  0xa9   :  { %s12105_s25 = sld [smem:[%s13156_s0 + %s11572_s22]]  }
  0xaa   :  { %204 = vsyncpa [#allocation3], 0 }
  0xab   :  { %205 = vsyncpa [#allocation6], 0 }
  0xac   :  { %206 = vsyncpa [#allocation9], 0 }
  0xad   :  { %207 = vsyncpa [#allocation12], 0 }
  0xae   :  { %208 = vsyncpa [#allocation15], 0 }
  0xaf   :  { %209 = vsyncpa [#allocation18], 0 }
  0xb0   :  { %210 = vsyncpa [#allocation21], 0 }
  0xb1   :  { %211 = vsyncpa [#allocation24], 0 }
  0xb2   :  { %212 = vsyncpa [#allocation27], 0 }
  0xb3   :  { %213 = vsyncpa [#allocation30], 0 }
  0xb4   :  { %214 = vsyncpa [#allocation33], 0 }
  0xb5   :  { %215 = vsyncpa [#allocation36], 0 }
  0xb6   :  { %216 = vsyncpa [#allocation39], 0 }
  0xb7   :  { %217 = vsyncpa [#allocation42], 0 }
  0xb8   :  { %218 = vsyncpa [#allocation45], 0 }
  0xb9   :  { %219 = vsyncpa [#allocation48], 0 }
  0xba   :  { %220 = vsyncpa [#allocation51], 0 }
  0xbb   :  { %221 = vsyncpa [#allocation54], 0 }
  0xbc   :  { %222 = vsyncpa [#allocation57], 0 }
  0xbd   :  { %223 = vsyncpa [#allocation60], 0 }
  0xbe   :  { %224 = vsyncpa [#allocation63], 0 }
  0xbf   :  { %225 = vsyncpa [#allocation66], 0 }
  0xc0   :  { %226 = vsyncpa [#allocation69], 0 }
  0xc1   :  { %227 = vsyncpa [#allocation72], 0 }
  0xc2   :  { %228 = vsyncpa [#allocation75], 0 }
  0xc3   :  { %229 = vsyncpa [#allocation78], 0 }
  0xc4   :  { %230 = vsyncpa [#allocation81], 0 }
  0xc5   :  { %231 = vsyncpa [#allocation84], 0 }
  0xc6   :  { %232 = vsyncpa [#allocation87], 0 }
  0xc7   :  { %233 = vsyncpa [#allocation4], 0  ;;  %s11573_s0 = smov [#allocation5]   ;;  %s11574_s1 = smov [#allocation8]  }
  0xc8   :  { %s272_s28 = sshll.u32 %s11573_s0, 4  ;;  %s294_s2 = sshll.u32 %s11574_s1, 4  ;;  %s273_s28 = int_to_ptr.vmem [resolvable:$true] %s272_s28  ;;  %s295_s2 = int_to_ptr.vmem [resolvable:$true] %s294_s2 }
  0xc9   :  { %s10167_s7 = scalar_lea.hbm %s11700_s24, 16 }
  0xca   :  { %p10168_p0 = scmp.ne.s32.totalorder %s11700_s24, %s10167_s7  ;;  %p10171_p1 = scmp.lt.u32.totalorder %s10167_s7, %s11700_s24 }
  0xcc   :  { %p10173_p2 = pnand %p10171_p1, %p10168_p0 }
  0xce   :  { %10176 = shalt.err (!%p10173_p2)
}
  0xcf   :  { %s10177_s10 = scalar_lea.vmem %s273_s28, 16  ;;  %s10181_s11 = scalar_lea.vmem %s273_s28, 32 }
  0xd0   :  { %p10178_p3 = scmp.ne.s32.totalorder %s273_s28, %s10177_s10  ;;  %p10182_p4 = scmp.lt.s32.totalorder %s273_s28, %s273_s28 }
  0xd1   :  { %p10183_p5 = scmp.lt.s32.totalorder %s10181_s11, %s10177_s10 }
  0xd3   :  { %p10184_p6 = por %p10183_p5, %p10182_p4 }
  0xd5   :  { %p10185_p7 = pnand %p10184_p6, %p10178_p3 }
  0xd7   :  { %10188 = shalt.err (!%p10185_p7)
}
  0xd8   :  { %275 = dma.hbm_to_vmem [thread:$0]  %s11700_s24, 16, %s273_s28, [#allocation6]  }
  0xd9   :  { %s10189_s15 = scalar_lea.hbm %s11715_s12, 16 }
  0xda   :  { %p10190_p8 = scmp.ne.s32.totalorder %s11715_s12, %s10189_s15  ;;  %p10193_p9 = scmp.lt.u32.totalorder %s10189_s15, %s11715_s12 }
  0xdc   :  { %p10195_p10 = pnand %p10193_p9, %p10190_p8 }
  0xde   :  { %10198 = shalt.err (!%p10195_p10)
}
  0xdf   :  { %s10199_s16 = scalar_lea.vmem %s295_s2, 16  ;;  %s10203_s18 = scalar_lea.vmem %s295_s2, 32 }
  0xe0   :  { %p10200_p11 = scmp.ne.s32.totalorder %s295_s2, %s10199_s16  ;;  %p10204_p12 = scmp.lt.s32.totalorder %s295_s2, %s295_s2 }
  0xe1   :  { %p10205_p13 = scmp.lt.s32.totalorder %s10203_s18, %s10199_s16 }
  0xe3   :  { %p10206_p0 = por %p10205_p13, %p10204_p12 }
  0xe5   :  { %p10207_p1 = pnand %p10206_p0, %p10200_p11 }
  0xe7   :  { %10210 = shalt.err (!%p10207_p1)
}
  0xe8   :  { %297 = dma.hbm_to_vmem [thread:$0]  %s11715_s12, 16, %s295_s2, [#allocation9]  }
  0xe9   :  { %s11575_s22 = smov [#allocation11]   ;;  %s11576_s23 = smov [#allocation14]  }
  0xea   :  { %s316_s24 = sshll.u32 %s11575_s22, 4  ;;  %s336_s26 = sshll.u32 %s11576_s23, 4  ;;  %s317_s24 = int_to_ptr.vmem [resolvable:$true] %s316_s24  ;;  %s337_s26 = int_to_ptr.vmem [resolvable:$true] %s336_s26 }
  0xeb   :  { %s10211_s0 = scalar_lea.hbm %s11730_s4, 16 }
  0xec   :  { %p10212_p2 = scmp.ne.s32.totalorder %s11730_s4, %s10211_s0  ;;  %p10215_p3 = scmp.lt.u32.totalorder %s10211_s0, %s11730_s4 }
  0xee   :  { %p10217_p4 = pnand %p10215_p3, %p10212_p2 }
  0xf0   :  { %10220 = shalt.err (!%p10217_p4)
}
  0xf1   :  { %s10221_s28 = scalar_lea.vmem %s317_s24, 16  ;;  %s10225_s1 = scalar_lea.vmem %s317_s24, 32 }
  0xf2   :  { %p10222_p5 = scmp.ne.s32.totalorder %s317_s24, %s10221_s28  ;;  %p10226_p6 = scmp.lt.s32.totalorder %s317_s24, %s317_s24 }
  0xf3   :  { %p10227_p7 = scmp.lt.s32.totalorder %s10225_s1, %s10221_s28 }
  0xf5   :  { %p10228_p8 = por %p10227_p7, %p10226_p6 }
  0xf7   :  { %p10229_p9 = pnand %p10228_p8, %p10222_p5 }
  0xf9   :  { %10232 = shalt.err (!%p10229_p9)
}
  0xfa   :  { %319 = dma.hbm_to_vmem [thread:$0]  %s11730_s4, 16, %s317_s24, [#allocation12]  }
  0xfb   :  { %s10233_s12 = scalar_lea.hbm %s11740_s29, 16 }
  0xfc   :  { %p10234_p10 = scmp.ne.s32.totalorder %s11740_s29, %s10233_s12  ;;  %p10237_p11 = scmp.lt.u32.totalorder %s10233_s12, %s11740_s29 }
  0xfe   :  { %p10239_p12 = pnand %p10237_p11, %p10234_p10 }
 0x100   :  { %10242 = shalt.err (!%p10239_p12)
}
 0x101   :  { %s10243_s2 = scalar_lea.vmem %s337_s26, 16  ;;  %s10247_s7 = scalar_lea.vmem %s337_s26, 32 }
 0x102   :  { %p10244_p13 = scmp.ne.s32.totalorder %s337_s26, %s10243_s2  ;;  %p10248_p0 = scmp.lt.s32.totalorder %s337_s26, %s337_s26 }
 0x103   :  { %p10249_p1 = scmp.lt.s32.totalorder %s10247_s7, %s10243_s2 }
 0x105   :  { %p10250_p2 = por %p10249_p1, %p10248_p0 }
 0x107   :  { %p10251_p3 = pnand %p10250_p2, %p10244_p13 }
 0x109   :  { %10254 = shalt.err (!%p10251_p3)
}
 0x10a   :  { %339 = dma.hbm_to_vmem [thread:$0]  %s11740_s29, 16, %s337_s26, [#allocation15]  }
 0x10b   :  { %s11577_s10 = smov [#allocation17]   ;;  %s11578_s11 = smov [#allocation20]  }
 0x10c   :  { %s360_s4 = sshll.u32 %s11577_s10, 4  ;;  %s384_s15 = sshll.u32 %s11578_s11, 4  ;;  %s361_s4 = int_to_ptr.vmem [resolvable:$true] %s360_s4  ;;  %s385_s15 = int_to_ptr.vmem [resolvable:$true] %s384_s15 }
 0x10d   :  { %s10255_s16 = scalar_lea.hbm %s11760_s27, 16 }
 0x10e   :  { %p10256_p4 = scmp.ne.s32.totalorder %s11760_s27, %s10255_s16  ;;  %p10259_p5 = scmp.lt.u32.totalorder %s10255_s16, %s11760_s27 }
 0x110   :  { %p10261_p6 = pnand %p10259_p5, %p10256_p4 }
 0x112   :  { %10264 = shalt.err (!%p10261_p6)
}
 0x113   :  { %s10265_s18 = scalar_lea.vmem %s361_s4, 16  ;;  %s10269_s22 = scalar_lea.vmem %s361_s4, 32 }
 0x114   :  { %p10266_p7 = scmp.ne.s32.totalorder %s361_s4, %s10265_s18  ;;  %p10270_p8 = scmp.lt.s32.totalorder %s361_s4, %s361_s4 }
 0x115   :  { %p10271_p9 = scmp.lt.s32.totalorder %s10269_s22, %s10265_s18 }
 0x117   :  { %p10272_p10 = por %p10271_p9, %p10270_p8 }
 0x119   :  { %p10273_p11 = pnand %p10272_p10, %p10266_p7 }
 0x11b   :  { %10276 = shalt.err (!%p10273_p11)
}
 0x11c   :  { %363 = dma.hbm_to_vmem [thread:$0]  %s11760_s27, 16, %s361_s4, [#allocation18]  }
 0x11d   :  { %s10277_s29 = scalar_lea.hbm %s11780_s30, 16 }
 0x11e   :  { %p10278_p12 = scmp.ne.s32.totalorder %s11780_s30, %s10277_s29  ;;  %p10281_p13 = scmp.lt.u32.totalorder %s10277_s29, %s11780_s30 }
 0x120   :  { %p10283_p0 = pnand %p10281_p13, %p10278_p12 }
 0x122   :  { %10286 = shalt.err (!%p10283_p0)
}
 0x123   :  { %s10287_s24 = scalar_lea.vmem %s385_s15, 16  ;;  %s10291_s23 = scalar_lea.vmem %s385_s15, 32 }
 0x124   :  { %p10288_p1 = scmp.ne.s32.totalorder %s385_s15, %s10287_s24  ;;  %p10292_p2 = scmp.lt.s32.totalorder %s385_s15, %s385_s15 }
 0x125   :  { %p10293_p3 = scmp.lt.s32.totalorder %s10291_s23, %s10287_s24 }
 0x127   :  { %p10294_p4 = por %p10293_p3, %p10292_p2 }
 0x129   :  { %p10295_p5 = pnand %p10294_p4, %p10288_p1 }
 0x12b   :  { %10298 = shalt.err (!%p10295_p5)
}
 0x12c   :  { %387 = dma.hbm_to_vmem [thread:$0]  %s11780_s30, 16, %s385_s15, [#allocation21]  }
 0x12d   :  { %s11579_s26 = smov [#allocation23]   ;;  %s11580_s0 = smov [#allocation26]  }
 0x12e   :  { %s408_s27 = sshll.u32 %s11579_s26, 4  ;;  %s428_s28 = sshll.u32 %s11580_s0, 4  ;;  %s409_s27 = int_to_ptr.vmem [resolvable:$true] %s408_s27  ;;  %s429_s28 = int_to_ptr.vmem [resolvable:$true] %s428_s28 }
 0x12f   :  { %s10299_s1 = scalar_lea.hbm %s11800_s5, 16 }
 0x130   :  { %p10300_p6 = scmp.ne.s32.totalorder %s11800_s5, %s10299_s1  ;;  %p10303_p7 = scmp.lt.u32.totalorder %s10299_s1, %s11800_s5 }
 0x132   :  { %p10305_p8 = pnand %p10303_p7, %p10300_p6 }
 0x134   :  { %10308 = shalt.err (!%p10305_p8)
}
 0x135   :  { %s10309_s12 = scalar_lea.vmem %s409_s27, 16  ;;  %s10313_s2 = scalar_lea.vmem %s409_s27, 32 }
 0x136   :  { %p10310_p9 = scmp.ne.s32.totalorder %s409_s27, %s10309_s12  ;;  %p10314_p10 = scmp.lt.s32.totalorder %s409_s27, %s409_s27 }
 0x137   :  { %p10315_p11 = scmp.lt.s32.totalorder %s10313_s2, %s10309_s12 }
 0x139   :  { %p10316_p12 = por %p10315_p11, %p10314_p10 }
 0x13b   :  { %p10317_p13 = pnand %p10316_p12, %p10310_p9 }
 0x13d   :  { %10320 = shalt.err (!%p10317_p13)
}
 0x13e   :  { %411 = dma.hbm_to_vmem [thread:$0]  %s11800_s5, 16, %s409_s27, [#allocation24]  }
 0x13f   :  { %s10321_s30 = scalar_lea.hbm %s11810_s8, 16 }
 0x140   :  { %p10322_p0 = scmp.ne.s32.totalorder %s11810_s8, %s10321_s30  ;;  %p10325_p1 = scmp.lt.u32.totalorder %s10321_s30, %s11810_s8 }
 0x142   :  { %p10327_p2 = pnand %p10325_p1, %p10322_p0 }
 0x144   :  { %10330 = shalt.err (!%p10327_p2)
}
 0x145   :  { %s10331_s7 = scalar_lea.vmem %s429_s28, 16  ;;  %s10335_s10 = scalar_lea.vmem %s429_s28, 32 }
 0x146   :  { %p10332_p3 = scmp.ne.s32.totalorder %s429_s28, %s10331_s7  ;;  %p10336_p4 = scmp.lt.s32.totalorder %s429_s28, %s429_s28 }
 0x147   :  { %p10337_p5 = scmp.lt.s32.totalorder %s10335_s10, %s10331_s7 }
 0x149   :  { %p10338_p6 = por %p10337_p5, %p10336_p4 }
 0x14b   :  { %p10339_p7 = pnand %p10338_p6, %p10332_p3 }
 0x14d   :  { %10342 = shalt.err (!%p10339_p7)
}
 0x14e   :  { %431 = dma.hbm_to_vmem [thread:$0]  %s11810_s8, 16, %s429_s28, [#allocation27]  }
 0x14f   :  { %s11581_s4 = smov [#allocation29]   ;;  %s11582_s11 = smov [#allocation32]  }
 0x150   :  { %s452_s5 = sshll.u32 %s11581_s4, 4  ;;  %s472_s15 = sshll.u32 %s11582_s11, 4  ;;  %s453_s5 = int_to_ptr.vmem [resolvable:$true] %s452_s5  ;;  %s473_s15 = int_to_ptr.vmem [resolvable:$true] %s472_s15 }
 0x151   :  { %s10343_s16 = scalar_lea.hbm %s11830_s9, 16 }
 0x152   :  { %p10344_p8 = scmp.ne.s32.totalorder %s11830_s9, %s10343_s16  ;;  %p10347_p9 = scmp.lt.u32.totalorder %s10343_s16, %s11830_s9 }
 0x154   :  { %p10349_p10 = pnand %p10347_p9, %p10344_p8 }
 0x156   :  { %10352 = shalt.err (!%p10349_p10)
}
 0x157   :  { %s10353_s18 = scalar_lea.vmem %s453_s5, 16  ;;  %s10357_s22 = scalar_lea.vmem %s453_s5, 32 }
 0x158   :  { %p10354_p11 = scmp.ne.s32.totalorder %s453_s5, %s10353_s18  ;;  %p10358_p12 = scmp.lt.s32.totalorder %s453_s5, %s453_s5 }
 0x159   :  { %p10359_p13 = scmp.lt.s32.totalorder %s10357_s22, %s10353_s18 }
 0x15b   :  { %p10360_p0 = por %p10359_p13, %p10358_p12 }
 0x15d   :  { %p10361_p1 = pnand %p10360_p0, %p10354_p11 }
 0x15f   :  { %10364 = shalt.err (!%p10361_p1)
}
 0x160   :  { %455 = dma.hbm_to_vmem [thread:$0]  %s11830_s9, 16, %s453_s5, [#allocation30]  }
 0x161   :  { %s10365_s8 = scalar_lea.hbm %s11840_s13, 16 }
 0x162   :  { %p10366_p2 = scmp.ne.s32.totalorder %s11840_s13, %s10365_s8  ;;  %p10369_p3 = scmp.lt.u32.totalorder %s10365_s8, %s11840_s13 }
 0x164   :  { %p10371_p4 = pnand %p10369_p3, %p10366_p2 }
 0x166   :  { %10374 = shalt.err (!%p10371_p4)
}
 0x167   :  { %s10375_s29 = scalar_lea.vmem %s473_s15, 16  ;;  %s10379_s24 = scalar_lea.vmem %s473_s15, 32 }
 0x168   :  { %p10376_p5 = scmp.ne.s32.totalorder %s473_s15, %s10375_s29  ;;  %p10380_p6 = scmp.lt.s32.totalorder %s473_s15, %s473_s15 }
 0x169   :  { %p10381_p7 = scmp.lt.s32.totalorder %s10379_s24, %s10375_s29 }
 0x16b   :  { %p10382_p8 = por %p10381_p7, %p10380_p6 }
 0x16d   :  { %p10383_p9 = pnand %p10382_p8, %p10376_p5 }
 0x16f   :  { %10386 = shalt.err (!%p10383_p9)
}
 0x170   :  { %475 = dma.hbm_to_vmem [thread:$0]  %s11840_s13, 16, %s473_s15, [#allocation33]  }
 0x171   :  { %s11583_s23 = smov [#allocation35]   ;;  %s11584_s26 = smov [#allocation38]  }
 0x172   :  { %s496_s9 = sshll.u32 %s11583_s23, 4  ;;  %s520_s27 = sshll.u32 %s11584_s26, 4  ;;  %s497_s9 = int_to_ptr.vmem [resolvable:$true] %s496_s9  ;;  %s521_s27 = int_to_ptr.vmem [resolvable:$true] %s520_s27 }
 0x173   :  { %s10387_s0 = scalar_lea.hbm %s11860_s21, 16 }
 0x174   :  { %p10388_p10 = scmp.ne.s32.totalorder %s11860_s21, %s10387_s0  ;;  %p10391_p11 = scmp.lt.u32.totalorder %s10387_s0, %s11860_s21 }
 0x176   :  { %p10393_p12 = pnand %p10391_p11, %p10388_p10 }
 0x178   :  { %10396 = shalt.err (!%p10393_p12)
}
 0x179   :  { %s10397_s28 = scalar_lea.vmem %s497_s9, 16  ;;  %s10401_s1 = scalar_lea.vmem %s497_s9, 32 }
 0x17a   :  { %p10398_p13 = scmp.ne.s32.totalorder %s497_s9, %s10397_s28  ;;  %p10402_p0 = scmp.lt.s32.totalorder %s497_s9, %s497_s9 }
 0x17b   :  { %p10403_p1 = scmp.lt.s32.totalorder %s10401_s1, %s10397_s28 }
 0x17d   :  { %p10404_p2 = por %p10403_p1, %p10402_p0 }
 0x17f   :  { %p10405_p3 = pnand %p10404_p2, %p10398_p13 }
 0x181   :  { %10408 = shalt.err (!%p10405_p3)
}
 0x182   :  { %499 = dma.hbm_to_vmem [thread:$0]  %s11860_s21, 16, %s497_s9, [#allocation36]  }
 0x183   :  { %s10409_s13 = scalar_lea.hbm %s11880_s3, 16 }
 0x184   :  { %p10410_p4 = scmp.ne.s32.totalorder %s11880_s3, %s10409_s13  ;;  %p10413_p5 = scmp.lt.u32.totalorder %s10409_s13, %s11880_s3 }
 0x186   :  { %p10415_p6 = pnand %p10413_p5, %p10410_p4 }
 0x188   :  { %10418 = shalt.err (!%p10415_p6)
}
 0x189   :  { %s10419_s12 = scalar_lea.vmem %s521_s27, 16  ;;  %s10423_s2 = scalar_lea.vmem %s521_s27, 32 }
 0x18a   :  { %p10420_p7 = scmp.ne.s32.totalorder %s521_s27, %s10419_s12  ;;  %p10424_p8 = scmp.lt.s32.totalorder %s521_s27, %s521_s27 }
 0x18b   :  { %p10425_p9 = scmp.lt.s32.totalorder %s10423_s2, %s10419_s12 }
 0x18d   :  { %p10426_p10 = por %p10425_p9, %p10424_p8 }
 0x18f   :  { %p10427_p11 = pnand %p10426_p10, %p10420_p7 }
 0x191   :  { %10430 = shalt.err (!%p10427_p11)
}
 0x192   :  { %523 = dma.hbm_to_vmem [thread:$0]  %s11880_s3, 16, %s521_s27, [#allocation39]  }
 0x193   :  { %s11585_s30 = smov [#allocation41]   ;;  %s11586_s7 = smov [#allocation44]  }
 0x194   :  { %s540_s21 = sshll.u32 %s11585_s30, 4  ;;  %s564_s10 = sshll.u32 %s11586_s7, 4  ;;  %s541_s21 = int_to_ptr.vmem [resolvable:$true] %s540_s21  ;;  %s565_s10 = int_to_ptr.vmem [resolvable:$true] %s564_s10 }
 0x195   :  { %s10431_s4 = scalar_lea.hbm %s11890_s14, 16 }
 0x196   :  { %p10432_p12 = scmp.ne.s32.totalorder %s11890_s14, %s10431_s4  ;;  %p10435_p13 = scmp.lt.u32.totalorder %s10431_s4, %s11890_s14 }
 0x198   :  { %p10437_p0 = pnand %p10435_p13, %p10432_p12 }
 0x19a   :  { %10440 = shalt.err (!%p10437_p0)
}
 0x19b   :  { %s10441_s5 = scalar_lea.vmem %s541_s21, 16  ;;  %s10445_s11 = scalar_lea.vmem %s541_s21, 32 }
 0x19c   :  { %p10442_p1 = scmp.ne.s32.totalorder %s541_s21, %s10441_s5  ;;  %p10446_p2 = scmp.lt.s32.totalorder %s541_s21, %s541_s21 }
 0x19d   :  { %p10447_p3 = scmp.lt.s32.totalorder %s10445_s11, %s10441_s5 }
 0x19f   :  { %p10448_p4 = por %p10447_p3, %p10446_p2 }
 0x1a1   :  { %p10449_p5 = pnand %p10448_p4, %p10442_p1 }
 0x1a3   :  { %10452 = shalt.err (!%p10449_p5)
}
 0x1a4   :  { %543 = dma.hbm_to_vmem [thread:$0]  %s11890_s14, 16, %s541_s21, [#allocation42]  }
 0x1a5   :  { %s10453_s3 = scalar_lea.hbm %s11910_s6, 16 }
 0x1a6   :  { %p10454_p6 = scmp.ne.s32.totalorder %s11910_s6, %s10453_s3  ;;  %p10457_p7 = scmp.lt.u32.totalorder %s10453_s3, %s11910_s6 }
 0x1a8   :  { %p10459_p8 = pnand %p10457_p7, %p10454_p6 }
 0x1aa   :  { %10462 = shalt.err (!%p10459_p8)
}
 0x1ab   :  { %s10463_s15 = scalar_lea.vmem %s565_s10, 16  ;;  %s10467_s16 = scalar_lea.vmem %s565_s10, 32 }
 0x1ac   :  { %p10464_p9 = scmp.ne.s32.totalorder %s565_s10, %s10463_s15  ;;  %p10468_p10 = scmp.lt.s32.totalorder %s565_s10, %s565_s10 }
 0x1ad   :  { %p10469_p11 = scmp.lt.s32.totalorder %s10467_s16, %s10463_s15 }
 0x1af   :  { %p10470_p12 = por %p10469_p11, %p10468_p10 }
 0x1b1   :  { %p10471_p13 = pnand %p10470_p12, %p10464_p9 }
 0x1b3   :  { %10474 = shalt.err (!%p10471_p13)
}
 0x1b4   :  { %s13301_s18 = sld [smem:[#allocation160_spill]]  ;;  %s11587_s22 = smov [#allocation47]  }
 0x1b5   :  { %567 = dma.hbm_to_vmem [thread:$0]  %s11910_s6, 16, %s565_s10, [#allocation45]  }
 0x1b6   :  { %s584_s14 = sshll.u32 %s11587_s22, 4  ;;  %s11588_s8 = smov [#allocation50]   ;;  %s585_s14 = int_to_ptr.vmem [resolvable:$true] %s584_s14 }
 0x1b7   :  { %s608_s29 = sshll.u32 %s11588_s8, 4  ;;  %s609_s29 = int_to_ptr.vmem [resolvable:$true] %s608_s29 }
 0x1ba   :  { %s10475_s24 = scalar_lea.hbm %s13301_s18, 16 }
 0x1bb   :  { %p10476_p0 = scmp.ne.s32.totalorder %s13301_s18, %s10475_s24  ;;  %p10479_p1 = scmp.lt.u32.totalorder %s10475_s24, %s13301_s18 }
 0x1bd   :  { %p10481_p2 = pnand %p10479_p1, %p10476_p0 }
 0x1bf   :  { %10484 = shalt.err (!%p10481_p2)
}
 0x1c0   :  { %s10485_s23 = scalar_lea.vmem %s585_s14, 16  ;;  %s10489_s9 = scalar_lea.vmem %s585_s14, 32 }
 0x1c1   :  { %p10486_p3 = scmp.ne.s32.totalorder %s585_s14, %s10485_s23  ;;  %p10490_p4 = scmp.lt.s32.totalorder %s585_s14, %s585_s14 }
 0x1c2   :  { %p10491_p5 = scmp.lt.s32.totalorder %s10489_s9, %s10485_s23 }
 0x1c4   :  { %p10492_p6 = por %p10491_p5, %p10490_p4 }
 0x1c6   :  { %p10493_p7 = pnand %p10492_p6, %p10486_p3 }
 0x1c8   :  { %10496 = shalt.err (!%p10493_p7)
}
 0x1c9   :  { %s13302_s6 = sld [smem:[#allocation164_spill]] }
 0x1ca   :  { %587 = dma.hbm_to_vmem [thread:$0]  %s13301_s18, 16, %s585_s14, [#allocation48]  }
 0x1cf   :  { %s10497_s26 = scalar_lea.hbm %s13302_s6, 16 }
 0x1d0   :  { %p10498_p8 = scmp.ne.s32.totalorder %s13302_s6, %s10497_s26  ;;  %p10501_p9 = scmp.lt.u32.totalorder %s10497_s26, %s13302_s6 }
 0x1d2   :  { %p10503_p10 = pnand %p10501_p9, %p10498_p8 }
 0x1d4   :  { %10506 = shalt.err (!%p10503_p10)
}
 0x1d5   :  { %s10507_s27 = scalar_lea.vmem %s609_s29, 16  ;;  %s10511_s0 = scalar_lea.vmem %s609_s29, 32 }
 0x1d6   :  { %p10508_p11 = scmp.ne.s32.totalorder %s609_s29, %s10507_s27  ;;  %p10512_p12 = scmp.lt.s32.totalorder %s609_s29, %s609_s29 }
 0x1d7   :  { %p10513_p13 = scmp.lt.s32.totalorder %s10511_s0, %s10507_s27 }
 0x1d9   :  { %p10514_p0 = por %p10513_p13, %p10512_p12 }
 0x1db   :  { %p10515_p1 = pnand %p10514_p0, %p10508_p11 }
 0x1dd   :  { %10518 = shalt.err (!%p10515_p1)
}
 0x1de   :  { %s13303_s28 = sld [smem:[#allocation168_spill]]  ;;  %s11589_s1 = smov [#allocation53]  }
 0x1df   :  { %611 = dma.hbm_to_vmem [thread:$0]  %s13302_s6, 16, %s609_s29, [#allocation51]  }
 0x1e0   :  { %s632_s13 = sshll.u32 %s11589_s1, 4  ;;  %s11590_s12 = smov [#allocation56]   ;;  %s633_s13 = int_to_ptr.vmem [resolvable:$true] %s632_s13 }
 0x1e1   :  { %s652_s2 = sshll.u32 %s11590_s12, 4  ;;  %s653_s2 = int_to_ptr.vmem [resolvable:$true] %s652_s2 }
 0x1e4   :  { %s10519_s30 = scalar_lea.hbm %s13303_s28, 16 }
 0x1e5   :  { %p10520_p2 = scmp.ne.s32.totalorder %s13303_s28, %s10519_s30  ;;  %p10523_p3 = scmp.lt.u32.totalorder %s10519_s30, %s13303_s28 }
 0x1e7   :  { %p10525_p4 = pnand %p10523_p3, %p10520_p2 }
 0x1e9   :  { %10528 = shalt.err (!%p10525_p4)
}
 0x1ea   :  { %s10529_s21 = scalar_lea.vmem %s633_s13, 16  ;;  %s10533_s7 = scalar_lea.vmem %s633_s13, 32 }
 0x1eb   :  { %p10530_p5 = scmp.ne.s32.totalorder %s633_s13, %s10529_s21  ;;  %p10534_p6 = scmp.lt.s32.totalorder %s633_s13, %s633_s13 }
 0x1ec   :  { %p10535_p7 = scmp.lt.s32.totalorder %s10533_s7, %s10529_s21 }
 0x1ee   :  { %p10536_p8 = por %p10535_p7, %p10534_p6 }
 0x1f0   :  { %p10537_p9 = pnand %p10536_p8, %p10530_p5 }
 0x1f2   :  { %10540 = shalt.err (!%p10537_p9)
}
 0x1f3   :  { %s13304_s10 = sld [smem:[#allocation170_spill]] }
 0x1f4   :  { %635 = dma.hbm_to_vmem [thread:$0]  %s13303_s28, 16, %s633_s13, [#allocation54]  }
 0x1f9   :  { %s10541_s4 = scalar_lea.hbm %s13304_s10, 16 }
 0x1fa   :  { %p10542_p10 = scmp.ne.s32.totalorder %s13304_s10, %s10541_s4  ;;  %p10545_p11 = scmp.lt.u32.totalorder %s10541_s4, %s13304_s10 }
 0x1fc   :  { %p10547_p12 = pnand %p10545_p11, %p10542_p10 }
 0x1fe   :  { %10550 = shalt.err (!%p10547_p12)
}
 0x1ff   :  { %s10551_s5 = scalar_lea.vmem %s653_s2, 16  ;;  %s10555_s11 = scalar_lea.vmem %s653_s2, 32 }
 0x200   :  { %p10552_p13 = scmp.ne.s32.totalorder %s653_s2, %s10551_s5  ;;  %p10556_p0 = scmp.lt.s32.totalorder %s653_s2, %s653_s2 }
 0x201   :  { %p10557_p1 = scmp.lt.s32.totalorder %s10555_s11, %s10551_s5 }
 0x203   :  { %p10558_p2 = por %p10557_p1, %p10556_p0 }
 0x205   :  { %p10559_p3 = pnand %p10558_p2, %p10552_p13 }
 0x207   :  { %10562 = shalt.err (!%p10559_p3)
}
 0x208   :  { %s13305_s3 = sld [smem:[#allocation174_spill]]  ;;  %s11591_s15 = smov [#allocation59]  }
 0x209   :  { %655 = dma.hbm_to_vmem [thread:$0]  %s13304_s10, 16, %s653_s2, [#allocation57]  }
 0x20a   :  { %s676_s16 = sshll.u32 %s11591_s15, 4  ;;  %s11592_s18 = smov [#allocation62]   ;;  %s677_s16 = int_to_ptr.vmem [resolvable:$true] %s676_s16 }
 0x20b   :  { %s700_s22 = sshll.u32 %s11592_s18, 4  ;;  %s701_s22 = int_to_ptr.vmem [resolvable:$true] %s700_s22 }
 0x20e   :  { %s10563_s14 = scalar_lea.hbm %s13305_s3, 16 }
 0x20f   :  { %p10564_p4 = scmp.ne.s32.totalorder %s13305_s3, %s10563_s14  ;;  %p10567_p5 = scmp.lt.u32.totalorder %s10563_s14, %s13305_s3 }
 0x211   :  { %p10569_p6 = pnand %p10567_p5, %p10564_p4 }
 0x213   :  { %10572 = shalt.err (!%p10569_p6)
}
 0x214   :  { %s10573_s8 = scalar_lea.vmem %s677_s16, 16  ;;  %s10577_s29 = scalar_lea.vmem %s677_s16, 32 }
 0x215   :  { %p10574_p7 = scmp.ne.s32.totalorder %s677_s16, %s10573_s8  ;;  %p10578_p8 = scmp.lt.s32.totalorder %s677_s16, %s677_s16 }
 0x216   :  { %p10579_p9 = scmp.lt.s32.totalorder %s10577_s29, %s10573_s8 }
 0x218   :  { %p10580_p10 = por %p10579_p9, %p10578_p8 }
 0x21a   :  { %p10581_p11 = pnand %p10580_p10, %p10574_p7 }
 0x21c   :  { %10584 = shalt.err (!%p10581_p11)
}
 0x21d   :  { %s13306_s24 = sld [smem:[#allocation178_spill]] }
 0x21e   :  { %679 = dma.hbm_to_vmem [thread:$0]  %s13305_s3, 16, %s677_s16, [#allocation60]  }
 0x223   :  { %s10585_s23 = scalar_lea.hbm %s13306_s24, 16 }
 0x224   :  { %p10586_p12 = scmp.ne.s32.totalorder %s13306_s24, %s10585_s23  ;;  %p10589_p13 = scmp.lt.u32.totalorder %s10585_s23, %s13306_s24 }
 0x226   :  { %p10591_p0 = pnand %p10589_p13, %p10586_p12 }
 0x228   :  { %10594 = shalt.err (!%p10591_p0)
}
 0x229   :  { %s10595_s9 = scalar_lea.vmem %s701_s22, 16  ;;  %s10599_s6 = scalar_lea.vmem %s701_s22, 32 }
 0x22a   :  { %p10596_p1 = scmp.ne.s32.totalorder %s701_s22, %s10595_s9  ;;  %p10600_p2 = scmp.lt.s32.totalorder %s701_s22, %s701_s22 }
 0x22b   :  { %p10601_p3 = scmp.lt.s32.totalorder %s10599_s6, %s10595_s9 }
 0x22d   :  { %p10602_p4 = por %p10601_p3, %p10600_p2 }
 0x22f   :  { %p10603_p5 = pnand %p10602_p4, %p10596_p1 }
 0x231   :  { %10606 = shalt.err (!%p10603_p5)
}
 0x232   :  { %s13307_s26 = sld [smem:[#allocation180_spill]]  ;;  %s11593_s27 = smov [#allocation65]  }
 0x233   :  { %703 = dma.hbm_to_vmem [thread:$0]  %s13306_s24, 16, %s701_s22, [#allocation63]  }
 0x234   :  { %s720_s0 = sshll.u32 %s11593_s27, 4  ;;  %s11594_s28 = smov [#allocation68]   ;;  %s721_s0 = int_to_ptr.vmem [resolvable:$true] %s720_s0 }
 0x235   :  { %s744_s1 = sshll.u32 %s11594_s28, 4  ;;  %s745_s1 = int_to_ptr.vmem [resolvable:$true] %s744_s1 }
 0x238   :  { %s10607_s13 = scalar_lea.hbm %s13307_s26, 16 }
 0x239   :  { %p10608_p6 = scmp.ne.s32.totalorder %s13307_s26, %s10607_s13  ;;  %p10611_p7 = scmp.lt.u32.totalorder %s10607_s13, %s13307_s26 }
 0x23b   :  { %p10613_p8 = pnand %p10611_p7, %p10608_p6 }
 0x23d   :  { %10616 = shalt.err (!%p10613_p8)
}
 0x23e   :  { %s10617_s12 = scalar_lea.vmem %s721_s0, 16  ;;  %s10621_s2 = scalar_lea.vmem %s721_s0, 32 }
 0x23f   :  { %p10618_p9 = scmp.ne.s32.totalorder %s721_s0, %s10617_s12  ;;  %p10622_p10 = scmp.lt.s32.totalorder %s721_s0, %s721_s0 }
 0x240   :  { %p10623_p11 = scmp.lt.s32.totalorder %s10621_s2, %s10617_s12 }
 0x242   :  { %p10624_p12 = por %p10623_p11, %p10622_p10 }
 0x244   :  { %p10625_p13 = pnand %p10624_p12, %p10618_p9 }
 0x246   :  { %10628 = shalt.err (!%p10625_p13)
}
 0x247   :  { %s13308_s30 = sld [smem:[#allocation182_spill]] }
 0x248   :  { %723 = dma.hbm_to_vmem [thread:$0]  %s13307_s26, 16, %s721_s0, [#allocation66]  }
 0x24d   :  { %s10629_s21 = scalar_lea.hbm %s13308_s30, 16 }
 0x24e   :  { %p10630_p0 = scmp.ne.s32.totalorder %s13308_s30, %s10629_s21  ;;  %p10633_p1 = scmp.lt.u32.totalorder %s10629_s21, %s13308_s30 }
 0x250   :  { %p10635_p2 = pnand %p10633_p1, %p10630_p0 }
 0x252   :  { %10638 = shalt.err (!%p10635_p2)
}
 0x253   :  { %s10639_s7 = scalar_lea.vmem %s745_s1, 16  ;;  %s10643_s10 = scalar_lea.vmem %s745_s1, 32 }
 0x254   :  { %p10640_p3 = scmp.ne.s32.totalorder %s745_s1, %s10639_s7  ;;  %p10644_p4 = scmp.lt.s32.totalorder %s745_s1, %s745_s1 }
 0x255   :  { %p10645_p5 = scmp.lt.s32.totalorder %s10643_s10, %s10639_s7 }
 0x257   :  { %p10646_p6 = por %p10645_p5, %p10644_p4 }
 0x259   :  { %p10647_p7 = pnand %p10646_p6, %p10640_p3 }
 0x25b   :  { %10650 = shalt.err (!%p10647_p7)
}
 0x25c   :  { %s13309_s4 = sld [smem:[#allocation184_spill]]  ;;  %s11595_s5 = smov [#allocation71]  }
 0x25d   :  { %747 = dma.hbm_to_vmem [thread:$0]  %s13308_s30, 16, %s745_s1, [#allocation69]  }
 0x25e   :  { %s768_s11 = sshll.u32 %s11595_s5, 4  ;;  %s11596_s3 = smov [#allocation74]   ;;  %s769_s11 = int_to_ptr.vmem [resolvable:$true] %s768_s11 }
 0x25f   :  { %s788_s15 = sshll.u32 %s11596_s3, 4  ;;  %s789_s15 = int_to_ptr.vmem [resolvable:$true] %s788_s15 }
 0x262   :  { %s10651_s16 = scalar_lea.hbm %s13309_s4, 16 }
 0x263   :  { %p10652_p8 = scmp.ne.s32.totalorder %s13309_s4, %s10651_s16  ;;  %p10655_p9 = scmp.lt.u32.totalorder %s10651_s16, %s13309_s4 }
 0x265   :  { %p10657_p10 = pnand %p10655_p9, %p10652_p8 }
 0x267   :  { %10660 = shalt.err (!%p10657_p10)
}
 0x268   :  { %s10661_s18 = scalar_lea.vmem %s769_s11, 16  ;;  %s10665_s22 = scalar_lea.vmem %s769_s11, 32 }
 0x269   :  { %p10662_p11 = scmp.ne.s32.totalorder %s769_s11, %s10661_s18  ;;  %p10666_p12 = scmp.lt.s32.totalorder %s769_s11, %s769_s11 }
 0x26a   :  { %p10667_p13 = scmp.lt.s32.totalorder %s10665_s22, %s10661_s18 }
 0x26c   :  { %p10668_p0 = por %p10667_p13, %p10666_p12 }
 0x26e   :  { %p10669_p1 = pnand %p10668_p0, %p10662_p11 }
 0x270   :  { %10672 = shalt.err (!%p10669_p1)
}
 0x271   :  { %s13310_s14 = sld [smem:[#allocation186_spill]] }
 0x272   :  { %771 = dma.hbm_to_vmem [thread:$0]  %s13309_s4, 16, %s769_s11, [#allocation72]  }
 0x277   :  { %s10673_s8 = scalar_lea.hbm %s13310_s14, 16 }
 0x278   :  { %p10674_p2 = scmp.ne.s32.totalorder %s13310_s14, %s10673_s8  ;;  %p10677_p3 = scmp.lt.u32.totalorder %s10673_s8, %s13310_s14 }
 0x27a   :  { %p10679_p4 = pnand %p10677_p3, %p10674_p2 }
 0x27c   :  { %10682 = shalt.err (!%p10679_p4)
}
 0x27d   :  { %s10683_s29 = scalar_lea.vmem %s789_s15, 16  ;;  %s10687_s24 = scalar_lea.vmem %s789_s15, 32 }
 0x27e   :  { %p10684_p5 = scmp.ne.s32.totalorder %s789_s15, %s10683_s29  ;;  %p10688_p6 = scmp.lt.s32.totalorder %s789_s15, %s789_s15 }
 0x27f   :  { %p10689_p7 = scmp.lt.s32.totalorder %s10687_s24, %s10683_s29 }
 0x281   :  { %p10690_p8 = por %p10689_p7, %p10688_p6 }
 0x283   :  { %p10691_p9 = pnand %p10690_p8, %p10684_p5 }
 0x285   :  { %10694 = shalt.err (!%p10691_p9)
}
 0x286   :  { %s13311_s23 = sld [smem:[#allocation190_spill]]  ;;  %s11597_s9 = smov [#allocation77]  }
 0x287   :  { %791 = dma.hbm_to_vmem [thread:$0]  %s13310_s14, 16, %s789_s15, [#allocation75]  }
 0x288   :  { %s812_s6 = sshll.u32 %s11597_s9, 4  ;;  %s11598_s26 = smov [#allocation80]   ;;  %s813_s6 = int_to_ptr.vmem [resolvable:$true] %s812_s6 }
 0x289   :  { %s832_s27 = sshll.u32 %s11598_s26, 4  ;;  %s833_s27 = int_to_ptr.vmem [resolvable:$true] %s832_s27 }
 0x28c   :  { %s10695_s0 = scalar_lea.hbm %s13311_s23, 16 }
 0x28d   :  { %p10696_p10 = scmp.ne.s32.totalorder %s13311_s23, %s10695_s0  ;;  %p10699_p11 = scmp.lt.u32.totalorder %s10695_s0, %s13311_s23 }
 0x28f   :  { %p10701_p12 = pnand %p10699_p11, %p10696_p10 }
 0x291   :  { %10704 = shalt.err (!%p10701_p12)
}
 0x292   :  { %s10705_s28 = scalar_lea.vmem %s813_s6, 16  ;;  %s10709_s1 = scalar_lea.vmem %s813_s6, 32 }
 0x293   :  { %p10706_p13 = scmp.ne.s32.totalorder %s813_s6, %s10705_s28  ;;  %p10710_p0 = scmp.lt.s32.totalorder %s813_s6, %s813_s6 }
 0x294   :  { %p10711_p1 = scmp.lt.s32.totalorder %s10709_s1, %s10705_s28 }
 0x296   :  { %p10712_p2 = por %p10711_p1, %p10710_p0 }
 0x298   :  { %p10713_p3 = pnand %p10712_p2, %p10706_p13 }
 0x29a   :  { %10716 = shalt.err (!%p10713_p3)
}
 0x29b   :  { %s13312_s13 = sld [smem:[#allocation192_spill]] }
 0x29c   :  { %815 = dma.hbm_to_vmem [thread:$0]  %s13311_s23, 16, %s813_s6, [#allocation78]  }
 0x2a1   :  { %s10717_s12 = scalar_lea.hbm %s13312_s13, 16 }
 0x2a2   :  { %p10718_p4 = scmp.ne.s32.totalorder %s13312_s13, %s10717_s12  ;;  %p10721_p5 = scmp.lt.u32.totalorder %s10717_s12, %s13312_s13 }
 0x2a4   :  { %p10723_p6 = pnand %p10721_p5, %p10718_p4 }
 0x2a6   :  { %10726 = shalt.err (!%p10723_p6)
}
 0x2a7   :  { %s10727_s2 = scalar_lea.vmem %s833_s27, 16  ;;  %s10731_s30 = scalar_lea.vmem %s833_s27, 32 }
 0x2a8   :  { %p10728_p7 = scmp.ne.s32.totalorder %s833_s27, %s10727_s2  ;;  %p10732_p8 = scmp.lt.s32.totalorder %s833_s27, %s833_s27 }
 0x2a9   :  { %p10733_p9 = scmp.lt.s32.totalorder %s10731_s30, %s10727_s2 }
 0x2ab   :  { %p10734_p10 = por %p10733_p9, %p10732_p8 }
 0x2ad   :  { %p10735_p11 = pnand %p10734_p10, %p10728_p7 }
 0x2af   :  { %10738 = shalt.err (!%p10735_p11)
}
 0x2b0   :  { %835 = dma.hbm_to_vmem [thread:$0]  %s13312_s13, 16, %s833_s27, [#allocation81]  }
 0x2b1   :  { %s11599_s21 = smov [#allocation83]   ;;  %s11600_s10 = smov [#allocation2]  }
 0x2b2   :  { %s856_s7 = sshll.u32 %s11599_s21, 4  ;;  %s262_s4 = sshll.u32 %s11600_s10, 4  ;;  %s857_s7 = int_to_ptr.vmem [resolvable:$true] %s856_s7  ;;  %s263_s4 = int_to_ptr.vmem [resolvable:$true] %s262_s4 }
 0x2b3   :  { %s10739_s5 = scalar_lea.hbm %s12090_s19, 16 }
 0x2b4   :  { %p10740_p12 = scmp.ne.s32.totalorder %s12090_s19, %s10739_s5  ;;  %p10743_p13 = scmp.lt.u32.totalorder %s10739_s5, %s12090_s19 }
 0x2b6   :  { %p10745_p0 = pnand %p10743_p13, %p10740_p12 }
 0x2b8   :  { %10748 = shalt.err (!%p10745_p0)
}
 0x2b9   :  { %s10749_s11 = scalar_lea.vmem %s857_s7, 16  ;;  %s10753_s3 = scalar_lea.vmem %s857_s7, 32 }
 0x2ba   :  { %p10750_p1 = scmp.ne.s32.totalorder %s857_s7, %s10749_s11  ;;  %p10754_p2 = scmp.lt.s32.totalorder %s857_s7, %s857_s7 }
 0x2bb   :  { %p10755_p3 = scmp.lt.s32.totalorder %s10753_s3, %s10749_s11 }
 0x2bd   :  { %p10756_p4 = por %p10755_p3, %p10754_p2 }
 0x2bf   :  { %p10757_p5 = pnand %p10756_p4, %p10750_p1 }
 0x2c1   :  { %10760 = shalt.err (!%p10757_p5)
}
 0x2c2   :  { %s13313_s15 = sld [smem:[#allocation129_spill]] }
 0x2c3   :  { %859 = dma.hbm_to_vmem [thread:$0]  %s12090_s19, 16, %s857_s7, [#allocation84]  }
 0x2c8   :  { %s10761_s16 = scalar_lea.hbm %s13313_s15, 16 }
 0x2c9   :  { %p10762_p6 = scmp.ne.s32.totalorder %s13313_s15, %s10761_s16  ;;  %p10765_p7 = scmp.lt.u32.totalorder %s10761_s16, %s13313_s15 }
 0x2cb   :  { %p10767_p8 = pnand %p10765_p7, %p10762_p6 }
 0x2cd   :  { %10770 = shalt.err (!%p10767_p8)
}
 0x2ce   :  { %s10771_s18 = scalar_lea.vmem %s263_s4, 16  ;;  %s10775_s22 = scalar_lea.vmem %s263_s4, 32 }
 0x2cf   :  { %p10772_p9 = scmp.ne.s32.totalorder %s263_s4, %s10771_s18  ;;  %p10776_p10 = scmp.lt.s32.totalorder %s263_s4, %s263_s4 }
 0x2d0   :  { %p10777_p11 = scmp.lt.s32.totalorder %s10775_s22, %s10771_s18 }
 0x2d2   :  { %p10778_p12 = por %p10777_p11, %p10776_p10 }
 0x2d4   :  { %p10779_p13 = pnand %p10778_p12, %p10772_p9 }
 0x2d6   :  { %10782 = shalt.err (!%p10779_p13)
}
 0x2d7   :  { %s13314_s14 = sld [smem:[#allocation131_spill]]  ;;  %s11601_s8 = smov [#allocation7]  }
 0x2d8   :  { %265 = dma.hbm_to_vmem [thread:$0]  %s13313_s15, 16, %s263_s4, [#allocation3]  }
 0x2d9   :  { %s284_s19 = sshll.u32 %s11601_s8, 4  ;;  %s11602_s29 = smov [#allocation10]   ;;  %s285_s19 = int_to_ptr.vmem [resolvable:$true] %s284_s19 }
 0x2da   :  { %s304_s24 = sshll.u32 %s11602_s29, 4  ;;  %s305_s24 = int_to_ptr.vmem [resolvable:$true] %s304_s24 }
 0x2dd   :  { %s10783_s23 = scalar_lea.hbm %s13314_s14, 16 }
 0x2de   :  { %p10784_p0 = scmp.ne.s32.totalorder %s13314_s14, %s10783_s23  ;;  %p10787_p1 = scmp.lt.u32.totalorder %s10783_s23, %s13314_s14 }
 0x2e0   :  { %p10789_p2 = pnand %p10787_p1, %p10784_p0 }
 0x2e2   :  { %10792 = shalt.err (!%p10789_p2)
}
 0x2e3   :  { %s10793_s9 = scalar_lea.vmem %s285_s19, 16  ;;  %s10797_s6 = scalar_lea.vmem %s285_s19, 32 }
 0x2e4   :  { %p10794_p3 = scmp.ne.s32.totalorder %s285_s19, %s10793_s9  ;;  %p10798_p4 = scmp.lt.s32.totalorder %s285_s19, %s285_s19 }
 0x2e5   :  { %p10799_p5 = scmp.lt.s32.totalorder %s10797_s6, %s10793_s9 }
 0x2e7   :  { %p10800_p6 = por %p10799_p5, %p10798_p4 }
 0x2e9   :  { %p10801_p7 = pnand %p10800_p6, %p10794_p3 }
 0x2eb   :  { %10804 = shalt.err (!%p10801_p7)
}
 0x2ec   :  { %s13315_s26 = sld [smem:[#allocation132_spill]] }
 0x2ed   :  { %287 = dma.hbm_to_vmem [thread:$0]  %s13314_s14, 16, %s285_s19, [#allocation6]  }
 0x2f2   :  { %s10805_s27 = scalar_lea.hbm %s13315_s26, 16 }
 0x2f3   :  { %p10806_p8 = scmp.ne.s32.totalorder %s13315_s26, %s10805_s27  ;;  %p10809_p9 = scmp.lt.u32.totalorder %s10805_s27, %s13315_s26 }
 0x2f5   :  { %p10811_p10 = pnand %p10809_p9, %p10806_p8 }
 0x2f7   :  { %10814 = shalt.err (!%p10811_p10)
}
 0x2f8   :  { %s10815_s0 = scalar_lea.vmem %s305_s24, 16  ;;  %s10819_s28 = scalar_lea.vmem %s305_s24, 32 }
 0x2f9   :  { %p10816_p11 = scmp.ne.s32.totalorder %s305_s24, %s10815_s0  ;;  %p10820_p12 = scmp.lt.s32.totalorder %s305_s24, %s305_s24 }
 0x2fa   :  { %p10821_p13 = scmp.lt.s32.totalorder %s10819_s28, %s10815_s0 }
 0x2fc   :  { %p10822_p0 = por %p10821_p13, %p10820_p12 }
 0x2fe   :  { %p10823_p1 = pnand %p10822_p0, %p10816_p11 }
 0x300   :  { %10826 = shalt.err (!%p10823_p1)
}
 0x301   :  { %s13316_s1 = sld [smem:[#allocation134_spill]]  ;;  %s11603_s13 = smov [#allocation13]  }
 0x302   :  { %307 = dma.hbm_to_vmem [thread:$0]  %s13315_s26, 16, %s305_s24, [#allocation9]  }
 0x303   :  { %s326_s12 = sshll.u32 %s11603_s13, 4  ;;  %s11604_s2 = smov [#allocation16]   ;;  %s327_s12 = int_to_ptr.vmem [resolvable:$true] %s326_s12 }
 0x304   :  { %s348_s30 = sshll.u32 %s11604_s2, 4  ;;  %s349_s30 = int_to_ptr.vmem [resolvable:$true] %s348_s30 }
 0x307   :  { %s10827_s21 = scalar_lea.hbm %s13316_s1, 16 }
 0x308   :  { %p10828_p2 = scmp.ne.s32.totalorder %s13316_s1, %s10827_s21  ;;  %p10831_p3 = scmp.lt.u32.totalorder %s10827_s21, %s13316_s1 }
 0x30a   :  { %p10833_p4 = pnand %p10831_p3, %p10828_p2 }
 0x30c   :  { %10836 = shalt.err (!%p10833_p4)
}
 0x30d   :  { %s10837_s7 = scalar_lea.vmem %s327_s12, 16  ;;  %s10841_s10 = scalar_lea.vmem %s327_s12, 32 }
 0x30e   :  { %p10838_p5 = scmp.ne.s32.totalorder %s327_s12, %s10837_s7  ;;  %p10842_p6 = scmp.lt.s32.totalorder %s327_s12, %s327_s12 }
 0x30f   :  { %p10843_p7 = scmp.lt.s32.totalorder %s10841_s10, %s10837_s7 }
 0x311   :  { %p10844_p8 = por %p10843_p7, %p10842_p6 }
 0x313   :  { %p10845_p9 = pnand %p10844_p8, %p10838_p5 }
 0x315   :  { %10848 = shalt.err (!%p10845_p9)
}
 0x316   :  { %s13317_s4 = sld [smem:[#allocation136_spill]] }
 0x317   :  { %329 = dma.hbm_to_vmem [thread:$0]  %s13316_s1, 16, %s327_s12, [#allocation12]  }
 0x31c   :  { %s10849_s5 = scalar_lea.hbm %s13317_s4, 16 }
 0x31d   :  { %p10850_p10 = scmp.ne.s32.totalorder %s13317_s4, %s10849_s5  ;;  %p10853_p11 = scmp.lt.u32.totalorder %s10849_s5, %s13317_s4 }
 0x31f   :  { %p10855_p12 = pnand %p10853_p11, %p10850_p10 }
 0x321   :  { %10858 = shalt.err (!%p10855_p12)
}
 0x322   :  { %s10859_s11 = scalar_lea.vmem %s349_s30, 16  ;;  %s10863_s3 = scalar_lea.vmem %s349_s30, 32 }
 0x323   :  { %p10860_p13 = scmp.ne.s32.totalorder %s349_s30, %s10859_s11  ;;  %p10864_p0 = scmp.lt.s32.totalorder %s349_s30, %s349_s30 }
 0x324   :  { %p10865_p1 = scmp.lt.s32.totalorder %s10863_s3, %s10859_s11 }
 0x326   :  { %p10866_p2 = por %p10865_p1, %p10864_p0 }
 0x328   :  { %p10867_p3 = pnand %p10866_p2, %p10860_p13 }
 0x32a   :  { %10870 = shalt.err (!%p10867_p3)
}
 0x32b   :  { %s13318_s15 = sld [smem:[#allocation139_spill]]  ;;  %s11605_s16 = smov [#allocation19]  }
 0x32c   :  { %351 = dma.hbm_to_vmem [thread:$0]  %s13317_s4, 16, %s349_s30, [#allocation15]  }
 0x32d   :  { %s372_s18 = sshll.u32 %s11605_s16, 4  ;;  %s11606_s22 = smov [#allocation22]   ;;  %s373_s18 = int_to_ptr.vmem [resolvable:$true] %s372_s18 }
 0x32e   :  { %s396_s14 = sshll.u32 %s11606_s22, 4  ;;  %s397_s14 = int_to_ptr.vmem [resolvable:$true] %s396_s14 }
 0x331   :  { %s10871_s8 = scalar_lea.hbm %s13318_s15, 16 }
 0x332   :  { %p10872_p4 = scmp.ne.s32.totalorder %s13318_s15, %s10871_s8  ;;  %p10875_p5 = scmp.lt.u32.totalorder %s10871_s8, %s13318_s15 }
 0x334   :  { %p10877_p6 = pnand %p10875_p5, %p10872_p4 }
 0x336   :  { %10880 = shalt.err (!%p10877_p6)
}
 0x337   :  { %s10881_s19 = scalar_lea.vmem %s373_s18, 16  ;;  %s10885_s29 = scalar_lea.vmem %s373_s18, 32 }
 0x338   :  { %p10882_p7 = scmp.ne.s32.totalorder %s373_s18, %s10881_s19  ;;  %p10886_p8 = scmp.lt.s32.totalorder %s373_s18, %s373_s18 }
 0x339   :  { %p10887_p9 = scmp.lt.s32.totalorder %s10885_s29, %s10881_s19 }
 0x33b   :  { %p10888_p10 = por %p10887_p9, %p10886_p8 }
 0x33d   :  { %p10889_p11 = pnand %p10888_p10, %p10882_p7 }
 0x33f   :  { %10892 = shalt.err (!%p10889_p11)
}
 0x340   :  { %s13319_s24 = sld [smem:[#allocation142_spill]] }
 0x341   :  { %375 = dma.hbm_to_vmem [thread:$0]  %s13318_s15, 16, %s373_s18, [#allocation18]  }
 0x346   :  { %s10893_s23 = scalar_lea.hbm %s13319_s24, 16 }
 0x347   :  { %p10894_p12 = scmp.ne.s32.totalorder %s13319_s24, %s10893_s23  ;;  %p10897_p13 = scmp.lt.u32.totalorder %s10893_s23, %s13319_s24 }
 0x349   :  { %p10899_p0 = pnand %p10897_p13, %p10894_p12 }
 0x34b   :  { %10902 = shalt.err (!%p10899_p0)
}
 0x34c   :  { %s10903_s9 = scalar_lea.vmem %s397_s14, 16  ;;  %s10907_s6 = scalar_lea.vmem %s397_s14, 32 }
 0x34d   :  { %p10904_p1 = scmp.ne.s32.totalorder %s397_s14, %s10903_s9  ;;  %p10908_p2 = scmp.lt.s32.totalorder %s397_s14, %s397_s14 }
 0x34e   :  { %p10909_p3 = scmp.lt.s32.totalorder %s10907_s6, %s10903_s9 }
 0x350   :  { %p10910_p4 = por %p10909_p3, %p10908_p2 }
 0x352   :  { %p10911_p5 = pnand %p10910_p4, %p10904_p1 }
 0x354   :  { %10914 = shalt.err (!%p10911_p5)
}
 0x355   :  { %s13320_s26 = sld [smem:[#allocation144_spill]]  ;;  %s11607_s27 = smov [#allocation25]  }
 0x356   :  { %399 = dma.hbm_to_vmem [thread:$0]  %s13319_s24, 16, %s397_s14, [#allocation21]  }
 0x357   :  { %s418_s0 = sshll.u32 %s11607_s27, 4  ;;  %s11608_s28 = smov [#allocation28]   ;;  %s419_s0 = int_to_ptr.vmem [resolvable:$true] %s418_s0 }
 0x358   :  { %s440_s1 = sshll.u32 %s11608_s28, 4  ;;  %s441_s1 = int_to_ptr.vmem [resolvable:$true] %s440_s1 }
 0x35b   :  { %s10915_s13 = scalar_lea.hbm %s13320_s26, 16 }
 0x35c   :  { %p10916_p6 = scmp.ne.s32.totalorder %s13320_s26, %s10915_s13  ;;  %p10919_p7 = scmp.lt.u32.totalorder %s10915_s13, %s13320_s26 }
 0x35e   :  { %p10921_p8 = pnand %p10919_p7, %p10916_p6 }
 0x360   :  { %10924 = shalt.err (!%p10921_p8)
}
 0x361   :  { %s10925_s12 = scalar_lea.vmem %s419_s0, 16  ;;  %s10929_s2 = scalar_lea.vmem %s419_s0, 32 }
 0x362   :  { %p10926_p9 = scmp.ne.s32.totalorder %s419_s0, %s10925_s12  ;;  %p10930_p10 = scmp.lt.s32.totalorder %s419_s0, %s419_s0 }
 0x363   :  { %p10931_p11 = scmp.lt.s32.totalorder %s10929_s2, %s10925_s12 }
 0x365   :  { %p10932_p12 = por %p10931_p11, %p10930_p10 }
 0x367   :  { %p10933_p13 = pnand %p10932_p12, %p10926_p9 }
 0x369   :  { %10936 = shalt.err (!%p10933_p13)
}
 0x36a   :  { %s13321_s30 = sld [smem:[#allocation146_spill]] }
 0x36b   :  { %421 = dma.hbm_to_vmem [thread:$0]  %s13320_s26, 16, %s419_s0, [#allocation24]  }
 0x370   :  { %s10937_s21 = scalar_lea.hbm %s13321_s30, 16 }
 0x371   :  { %p10938_p0 = scmp.ne.s32.totalorder %s13321_s30, %s10937_s21  ;;  %p10941_p1 = scmp.lt.u32.totalorder %s10937_s21, %s13321_s30 }
 0x373   :  { %p10943_p2 = pnand %p10941_p1, %p10938_p0 }
 0x375   :  { %10946 = shalt.err (!%p10943_p2)
}
 0x376   :  { %s10947_s7 = scalar_lea.vmem %s441_s1, 16  ;;  %s10951_s10 = scalar_lea.vmem %s441_s1, 32 }
 0x377   :  { %p10948_p3 = scmp.ne.s32.totalorder %s441_s1, %s10947_s7  ;;  %p10952_p4 = scmp.lt.s32.totalorder %s441_s1, %s441_s1 }
 0x378   :  { %p10953_p5 = scmp.lt.s32.totalorder %s10951_s10, %s10947_s7 }
 0x37a   :  { %p10954_p6 = por %p10953_p5, %p10952_p4 }
 0x37c   :  { %p10955_p7 = pnand %p10954_p6, %p10948_p3 }
 0x37e   :  { %10958 = shalt.err (!%p10955_p7)
}
 0x37f   :  { %s13322_s4 = sld [smem:[#allocation148_spill]]  ;;  %s11609_s5 = smov [#allocation31]  }
 0x380   :  { %443 = dma.hbm_to_vmem [thread:$0]  %s13321_s30, 16, %s441_s1, [#allocation27]  }
 0x381   :  { %s462_s11 = sshll.u32 %s11609_s5, 4  ;;  %s11610_s3 = smov [#allocation34]   ;;  %s463_s11 = int_to_ptr.vmem [resolvable:$true] %s462_s11 }
 0x382   :  { %s484_s15 = sshll.u32 %s11610_s3, 4  ;;  %s485_s15 = int_to_ptr.vmem [resolvable:$true] %s484_s15 }
 0x385   :  { %s10959_s16 = scalar_lea.hbm %s13322_s4, 16 }
 0x386   :  { %p10960_p8 = scmp.ne.s32.totalorder %s13322_s4, %s10959_s16  ;;  %p10963_p9 = scmp.lt.u32.totalorder %s10959_s16, %s13322_s4 }
 0x388   :  { %p10965_p10 = pnand %p10963_p9, %p10960_p8 }
 0x38a   :  { %10968 = shalt.err (!%p10965_p10)
}
 0x38b   :  { %s10969_s18 = scalar_lea.vmem %s463_s11, 16  ;;  %s10973_s22 = scalar_lea.vmem %s463_s11, 32 }
 0x38c   :  { %p10970_p11 = scmp.ne.s32.totalorder %s463_s11, %s10969_s18  ;;  %p10974_p12 = scmp.lt.s32.totalorder %s463_s11, %s463_s11 }
 0x38d   :  { %p10975_p13 = scmp.lt.s32.totalorder %s10973_s22, %s10969_s18 }
 0x38f   :  { %p10976_p0 = por %p10975_p13, %p10974_p12 }
 0x391   :  { %p10977_p1 = pnand %p10976_p0, %p10970_p11 }
 0x393   :  { %10980 = shalt.err (!%p10977_p1)
}
 0x394   :  { %s13323_s14 = sld [smem:[#allocation150_spill]] }
 0x395   :  { %465 = dma.hbm_to_vmem [thread:$0]  %s13322_s4, 16, %s463_s11, [#allocation30]  }
 0x39a   :  { %s10981_s8 = scalar_lea.hbm %s13323_s14, 16 }
 0x39b   :  { %p10982_p2 = scmp.ne.s32.totalorder %s13323_s14, %s10981_s8  ;;  %p10985_p3 = scmp.lt.u32.totalorder %s10981_s8, %s13323_s14 }
 0x39d   :  { %p10987_p4 = pnand %p10985_p3, %p10982_p2 }
 0x39f   :  { %10990 = shalt.err (!%p10987_p4)
}
 0x3a0   :  { %s10991_s19 = scalar_lea.vmem %s485_s15, 16  ;;  %s10995_s29 = scalar_lea.vmem %s485_s15, 32 }
 0x3a1   :  { %p10992_p5 = scmp.ne.s32.totalorder %s485_s15, %s10991_s19  ;;  %p10996_p6 = scmp.lt.s32.totalorder %s485_s15, %s485_s15 }
 0x3a2   :  { %p10997_p7 = scmp.lt.s32.totalorder %s10995_s29, %s10991_s19 }
 0x3a4   :  { %p10998_p8 = por %p10997_p7, %p10996_p6 }
 0x3a6   :  { %p10999_p9 = pnand %p10998_p8, %p10992_p5 }
 0x3a8   :  { %11002 = shalt.err (!%p10999_p9)
}
 0x3a9   :  { %s13324_s24 = sld [smem:[#allocation153_spill]]  ;;  %s11611_s23 = smov [#allocation37]  }
 0x3aa   :  { %487 = dma.hbm_to_vmem [thread:$0]  %s13323_s14, 16, %s485_s15, [#allocation33]  }
 0x3ab   :  { %s508_s9 = sshll.u32 %s11611_s23, 4  ;;  %s11612_s6 = smov [#allocation40]   ;;  %s509_s9 = int_to_ptr.vmem [resolvable:$true] %s508_s9 }
 0x3ac   :  { %s530_s26 = sshll.u32 %s11612_s6, 4  ;;  %s531_s26 = int_to_ptr.vmem [resolvable:$true] %s530_s26 }
 0x3af   :  { %s11003_s27 = scalar_lea.hbm %s13324_s24, 16 }
 0x3b0   :  { %p11004_p10 = scmp.ne.s32.totalorder %s13324_s24, %s11003_s27  ;;  %p11007_p11 = scmp.lt.u32.totalorder %s11003_s27, %s13324_s24 }
 0x3b2   :  { %p11009_p12 = pnand %p11007_p11, %p11004_p10 }
 0x3b4   :  { %11012 = shalt.err (!%p11009_p12)
}
 0x3b5   :  { %s11013_s0 = scalar_lea.vmem %s509_s9, 16  ;;  %s11017_s28 = scalar_lea.vmem %s509_s9, 32 }
 0x3b6   :  { %p11014_p13 = scmp.ne.s32.totalorder %s509_s9, %s11013_s0  ;;  %p11018_p0 = scmp.lt.s32.totalorder %s509_s9, %s509_s9 }
 0x3b7   :  { %p11019_p1 = scmp.lt.s32.totalorder %s11017_s28, %s11013_s0 }
 0x3b9   :  { %p11020_p2 = por %p11019_p1, %p11018_p0 }
 0x3bb   :  { %p11021_p3 = pnand %p11020_p2, %p11014_p13 }
 0x3bd   :  { %11024 = shalt.err (!%p11021_p3)
}
 0x3be   :  { %s13325_s1 = sld [smem:[#allocation155_spill]] }
 0x3bf   :  { %511 = dma.hbm_to_vmem [thread:$0]  %s13324_s24, 16, %s509_s9, [#allocation36]  }
 0x3c4   :  { %s11025_s13 = scalar_lea.hbm %s13325_s1, 16 }
 0x3c5   :  { %p11026_p4 = scmp.ne.s32.totalorder %s13325_s1, %s11025_s13  ;;  %p11029_p5 = scmp.lt.u32.totalorder %s11025_s13, %s13325_s1 }
 0x3c7   :  { %p11031_p6 = pnand %p11029_p5, %p11026_p4 }
 0x3c9   :  { %11034 = shalt.err (!%p11031_p6)
}
 0x3ca   :  { %s11035_s12 = scalar_lea.vmem %s531_s26, 16  ;;  %s11039_s2 = scalar_lea.vmem %s531_s26, 32 }
 0x3cb   :  { %p11036_p7 = scmp.ne.s32.totalorder %s531_s26, %s11035_s12  ;;  %p11040_p8 = scmp.lt.s32.totalorder %s531_s26, %s531_s26 }
 0x3cc   :  { %p11041_p9 = scmp.lt.s32.totalorder %s11039_s2, %s11035_s12 }
 0x3ce   :  { %p11042_p10 = por %p11041_p9, %p11040_p8 }
 0x3d0   :  { %p11043_p11 = pnand %p11042_p10, %p11036_p7 }
 0x3d2   :  { %11046 = shalt.err (!%p11043_p11)
}
 0x3d3   :  { %s13326_s30 = sld [smem:[#allocation157_spill]]  ;;  %s11613_s21 = smov [#allocation43]  }
 0x3d4   :  { %533 = dma.hbm_to_vmem [thread:$0]  %s13325_s1, 16, %s531_s26, [#allocation39]  }
 0x3d5   :  { %s552_s7 = sshll.u32 %s11613_s21, 4  ;;  %s11614_s10 = smov [#allocation46]   ;;  %s553_s7 = int_to_ptr.vmem [resolvable:$true] %s552_s7 }
 0x3d6   :  { %s574_s4 = sshll.u32 %s11614_s10, 4  ;;  %s575_s4 = int_to_ptr.vmem [resolvable:$true] %s574_s4 }
 0x3d9   :  { %s11047_s5 = scalar_lea.hbm %s13326_s30, 16 }
 0x3da   :  { %p11048_p12 = scmp.ne.s32.totalorder %s13326_s30, %s11047_s5  ;;  %p11051_p13 = scmp.lt.u32.totalorder %s11047_s5, %s13326_s30 }
 0x3dc   :  { %p11053_p0 = pnand %p11051_p13, %p11048_p12 }
 0x3de   :  { %11056 = shalt.err (!%p11053_p0)
}
 0x3df   :  { %s11057_s11 = scalar_lea.vmem %s553_s7, 16  ;;  %s11061_s3 = scalar_lea.vmem %s553_s7, 32 }
 0x3e0   :  { %p11058_p1 = scmp.ne.s32.totalorder %s553_s7, %s11057_s11  ;;  %p11062_p2 = scmp.lt.s32.totalorder %s553_s7, %s553_s7 }
 0x3e1   :  { %p11063_p3 = scmp.lt.s32.totalorder %s11061_s3, %s11057_s11 }
 0x3e3   :  { %p11064_p4 = por %p11063_p3, %p11062_p2 }
 0x3e5   :  { %p11065_p5 = pnand %p11064_p4, %p11058_p1 }
 0x3e7   :  { %11068 = shalt.err (!%p11065_p5)
}
 0x3e8   :  { %s13327_s15 = sld [smem:[#allocation159_spill]] }
 0x3e9   :  { %555 = dma.hbm_to_vmem [thread:$0]  %s13326_s30, 16, %s553_s7, [#allocation42]  }
 0x3ee   :  { %s11069_s16 = scalar_lea.hbm %s13327_s15, 16 }
 0x3ef   :  { %p11070_p6 = scmp.ne.s32.totalorder %s13327_s15, %s11069_s16  ;;  %p11073_p7 = scmp.lt.u32.totalorder %s11069_s16, %s13327_s15 }
 0x3f1   :  { %p11075_p8 = pnand %p11073_p7, %p11070_p6 }
 0x3f3   :  { %11078 = shalt.err (!%p11075_p8)
}
 0x3f4   :  { %s11079_s18 = scalar_lea.vmem %s575_s4, 16  ;;  %s11083_s22 = scalar_lea.vmem %s575_s4, 32 }
 0x3f5   :  { %p11080_p9 = scmp.ne.s32.totalorder %s575_s4, %s11079_s18  ;;  %p11084_p10 = scmp.lt.s32.totalorder %s575_s4, %s575_s4 }
 0x3f6   :  { %p11085_p11 = scmp.lt.s32.totalorder %s11083_s22, %s11079_s18 }
 0x3f8   :  { %p11086_p12 = por %p11085_p11, %p11084_p10 }
 0x3fa   :  { %p11087_p13 = pnand %p11086_p12, %p11080_p9 }
 0x3fc   :  { %11090 = shalt.err (!%p11087_p13)
}
 0x3fd   :  { %s13328_s14 = sld [smem:[#allocation162_spill]]  ;;  %s11615_s8 = smov [#allocation49]  }
 0x3fe   :  { %577 = dma.hbm_to_vmem [thread:$0]  %s13327_s15, 16, %s575_s4, [#allocation45]  }
 0x3ff   :  { %s596_s19 = sshll.u32 %s11615_s8, 4  ;;  %s11616_s29 = smov [#allocation52]   ;;  %s597_s19 = int_to_ptr.vmem [resolvable:$true] %s596_s19 }
 0x400   :  { %s620_s24 = sshll.u32 %s11616_s29, 4  ;;  %s621_s24 = int_to_ptr.vmem [resolvable:$true] %s620_s24 }
 0x403   :  { %s11091_s23 = scalar_lea.hbm %s13328_s14, 16 }
 0x404   :  { %p11092_p0 = scmp.ne.s32.totalorder %s13328_s14, %s11091_s23  ;;  %p11095_p1 = scmp.lt.u32.totalorder %s11091_s23, %s13328_s14 }
 0x406   :  { %p11097_p2 = pnand %p11095_p1, %p11092_p0 }
 0x408   :  { %11100 = shalt.err (!%p11097_p2)
}
 0x409   :  { %s11101_s9 = scalar_lea.vmem %s597_s19, 16  ;;  %s11105_s6 = scalar_lea.vmem %s597_s19, 32 }
 0x40a   :  { %p11102_p3 = scmp.ne.s32.totalorder %s597_s19, %s11101_s9  ;;  %p11106_p4 = scmp.lt.s32.totalorder %s597_s19, %s597_s19 }
 0x40b   :  { %p11107_p5 = scmp.lt.s32.totalorder %s11105_s6, %s11101_s9 }
 0x40d   :  { %p11108_p6 = por %p11107_p5, %p11106_p4 }
 0x40f   :  { %p11109_p7 = pnand %p11108_p6, %p11102_p3 }
 0x411   :  { %11112 = shalt.err (!%p11109_p7)
}
 0x412   :  { %s13329_s26 = sld [smem:[#allocation166_spill]] }
 0x413   :  { %599 = dma.hbm_to_vmem [thread:$0]  %s13328_s14, 16, %s597_s19, [#allocation48]  }
 0x418   :  { %s11113_s27 = scalar_lea.hbm %s13329_s26, 16 }
 0x419   :  { %p11114_p8 = scmp.ne.s32.totalorder %s13329_s26, %s11113_s27  ;;  %p11117_p9 = scmp.lt.u32.totalorder %s11113_s27, %s13329_s26 }
 0x41b   :  { %p11119_p10 = pnand %p11117_p9, %p11114_p8 }
 0x41d   :  { %11122 = shalt.err (!%p11119_p10)
}
 0x41e   :  { %s11123_s0 = scalar_lea.vmem %s621_s24, 16  ;;  %s11127_s28 = scalar_lea.vmem %s621_s24, 32 }
 0x41f   :  { %p11124_p11 = scmp.ne.s32.totalorder %s621_s24, %s11123_s0  ;;  %p11128_p12 = scmp.lt.s32.totalorder %s621_s24, %s621_s24 }
 0x420   :  { %p11129_p13 = scmp.lt.s32.totalorder %s11127_s28, %s11123_s0 }
 0x422   :  { %p11130_p0 = por %p11129_p13, %p11128_p12 }
 0x424   :  { %p11131_p1 = pnand %p11130_p0, %p11124_p11 }
 0x426   :  { %11134 = shalt.err (!%p11131_p1)
}
 0x427   :  { %s13330_s1 = sld [smem:[#allocation169_spill]]  ;;  %s11617_s13 = smov [#allocation55]  }
 0x428   :  { %623 = dma.hbm_to_vmem [thread:$0]  %s13329_s26, 16, %s621_s24, [#allocation51]  }
 0x429   :  { %s642_s12 = sshll.u32 %s11617_s13, 4  ;;  %s11618_s2 = smov [#allocation58]   ;;  %s643_s12 = int_to_ptr.vmem [resolvable:$true] %s642_s12 }
 0x42a   :  { %s664_s30 = sshll.u32 %s11618_s2, 4  ;;  %s665_s30 = int_to_ptr.vmem [resolvable:$true] %s664_s30 }
 0x42d   :  { %s11135_s21 = scalar_lea.hbm %s13330_s1, 16 }
 0x42e   :  { %p11136_p2 = scmp.ne.s32.totalorder %s13330_s1, %s11135_s21  ;;  %p11139_p3 = scmp.lt.u32.totalorder %s11135_s21, %s13330_s1 }
 0x430   :  { %p11141_p4 = pnand %p11139_p3, %p11136_p2 }
 0x432   :  { %11144 = shalt.err (!%p11141_p4)
}
 0x433   :  { %s11145_s7 = scalar_lea.vmem %s643_s12, 16  ;;  %s11149_s10 = scalar_lea.vmem %s643_s12, 32 }
 0x434   :  { %p11146_p5 = scmp.ne.s32.totalorder %s643_s12, %s11145_s7  ;;  %p11150_p6 = scmp.lt.s32.totalorder %s643_s12, %s643_s12 }
 0x435   :  { %p11151_p7 = scmp.lt.s32.totalorder %s11149_s10, %s11145_s7 }
 0x437   :  { %p11152_p8 = por %p11151_p7, %p11150_p6 }
 0x439   :  { %p11153_p9 = pnand %p11152_p8, %p11146_p5 }
 0x43b   :  { %11156 = shalt.err (!%p11153_p9)
}
 0x43c   :  { %s13331_s4 = sld [smem:[#allocation172_spill]] }
 0x43d   :  { %645 = dma.hbm_to_vmem [thread:$0]  %s13330_s1, 16, %s643_s12, [#allocation54]  }
 0x442   :  { %s11157_s5 = scalar_lea.hbm %s13331_s4, 16 }
 0x443   :  { %p11158_p10 = scmp.ne.s32.totalorder %s13331_s4, %s11157_s5  ;;  %p11161_p11 = scmp.lt.u32.totalorder %s11157_s5, %s13331_s4 }
 0x445   :  { %p11163_p12 = pnand %p11161_p11, %p11158_p10 }
 0x447   :  { %11166 = shalt.err (!%p11163_p12)
}
 0x448   :  { %s11167_s11 = scalar_lea.vmem %s665_s30, 16  ;;  %s11171_s3 = scalar_lea.vmem %s665_s30, 32 }
 0x449   :  { %p11168_p13 = scmp.ne.s32.totalorder %s665_s30, %s11167_s11  ;;  %p11172_p0 = scmp.lt.s32.totalorder %s665_s30, %s665_s30 }
 0x44a   :  { %p11173_p1 = scmp.lt.s32.totalorder %s11171_s3, %s11167_s11 }
 0x44c   :  { %p11174_p2 = por %p11173_p1, %p11172_p0 }
 0x44e   :  { %p11175_p3 = pnand %p11174_p2, %p11168_p13 }
 0x450   :  { %11178 = shalt.err (!%p11175_p3)
}
 0x451   :  { %s13332_s15 = sld [smem:[#allocation176_spill]]  ;;  %s11619_s16 = smov [#allocation61]  }
 0x452   :  { %667 = dma.hbm_to_vmem [thread:$0]  %s13331_s4, 16, %s665_s30, [#allocation57]  }
 0x453   :  { %s688_s18 = sshll.u32 %s11619_s16, 4  ;;  %s11620_s22 = smov [#allocation64]   ;;  %s689_s18 = int_to_ptr.vmem [resolvable:$true] %s688_s18 }
 0x454   :  { %s710_s14 = sshll.u32 %s11620_s22, 4  ;;  %s711_s14 = int_to_ptr.vmem [resolvable:$true] %s710_s14 }
 0x457   :  { %s11179_s8 = scalar_lea.hbm %s13332_s15, 16 }
 0x458   :  { %p11180_p4 = scmp.ne.s32.totalorder %s13332_s15, %s11179_s8  ;;  %p11183_p5 = scmp.lt.u32.totalorder %s11179_s8, %s13332_s15 }
 0x45a   :  { %p11185_p6 = pnand %p11183_p5, %p11180_p4 }
 0x45c   :  { %11188 = shalt.err (!%p11185_p6)
}
 0x45d   :  { %s11189_s19 = scalar_lea.vmem %s689_s18, 16  ;;  %s11193_s29 = scalar_lea.vmem %s689_s18, 32 }
 0x45e   :  { %p11190_p7 = scmp.ne.s32.totalorder %s689_s18, %s11189_s19  ;;  %p11194_p8 = scmp.lt.s32.totalorder %s689_s18, %s689_s18 }
 0x45f   :  { %p11195_p9 = scmp.lt.s32.totalorder %s11193_s29, %s11189_s19 }
 0x461   :  { %p11196_p10 = por %p11195_p9, %p11194_p8 }
 0x463   :  { %p11197_p11 = pnand %p11196_p10, %p11190_p7 }
 0x465   :  { %11200 = shalt.err (!%p11197_p11)
}
 0x466   :  { %s13333_s24 = sld [smem:[#allocation179_spill]] }
 0x467   :  { %691 = dma.hbm_to_vmem [thread:$0]  %s13332_s15, 16, %s689_s18, [#allocation60]  }
 0x46c   :  { %s11201_s23 = scalar_lea.hbm %s13333_s24, 16 }
 0x46d   :  { %p11202_p12 = scmp.ne.s32.totalorder %s13333_s24, %s11201_s23  ;;  %p11205_p13 = scmp.lt.u32.totalorder %s11201_s23, %s13333_s24 }
 0x46f   :  { %p11207_p0 = pnand %p11205_p13, %p11202_p12 }
 0x471   :  { %11210 = shalt.err (!%p11207_p0)
}
 0x472   :  { %s11211_s9 = scalar_lea.vmem %s711_s14, 16  ;;  %s11215_s6 = scalar_lea.vmem %s711_s14, 32 }
 0x473   :  { %p11212_p1 = scmp.ne.s32.totalorder %s711_s14, %s11211_s9  ;;  %p11216_p2 = scmp.lt.s32.totalorder %s711_s14, %s711_s14 }
 0x474   :  { %p11217_p3 = scmp.lt.s32.totalorder %s11215_s6, %s11211_s9 }
 0x476   :  { %p11218_p4 = por %p11217_p3, %p11216_p2 }
 0x478   :  { %p11219_p5 = pnand %p11218_p4, %p11212_p1 }
 0x47a   :  { %11222 = shalt.err (!%p11219_p5)
}
 0x47b   :  { %s13334_s26 = sld [smem:[#allocation181_spill]]  ;;  %s11621_s27 = smov [#allocation67]  }
 0x47c   :  { %713 = dma.hbm_to_vmem [thread:$0]  %s13333_s24, 16, %s711_s14, [#allocation63]  }
 0x47d   :  { %s732_s0 = sshll.u32 %s11621_s27, 4  ;;  %s11622_s28 = smov [#allocation70]   ;;  %s733_s0 = int_to_ptr.vmem [resolvable:$true] %s732_s0 }
 0x47e   :  { %s756_s1 = sshll.u32 %s11622_s28, 4  ;;  %s757_s1 = int_to_ptr.vmem [resolvable:$true] %s756_s1 }
 0x481   :  { %s11223_s13 = scalar_lea.hbm %s13334_s26, 16 }
 0x482   :  { %p11224_p6 = scmp.ne.s32.totalorder %s13334_s26, %s11223_s13  ;;  %p11227_p7 = scmp.lt.u32.totalorder %s11223_s13, %s13334_s26 }
 0x484   :  { %p11229_p8 = pnand %p11227_p7, %p11224_p6 }
 0x486   :  { %11232 = shalt.err (!%p11229_p8)
}
 0x487   :  { %s11233_s12 = scalar_lea.vmem %s733_s0, 16  ;;  %s11237_s2 = scalar_lea.vmem %s733_s0, 32 }
 0x488   :  { %p11234_p9 = scmp.ne.s32.totalorder %s733_s0, %s11233_s12  ;;  %p11238_p10 = scmp.lt.s32.totalorder %s733_s0, %s733_s0 }
 0x489   :  { %p11239_p11 = scmp.lt.s32.totalorder %s11237_s2, %s11233_s12 }
 0x48b   :  { %p11240_p12 = por %p11239_p11, %p11238_p10 }
 0x48d   :  { %p11241_p13 = pnand %p11240_p12, %p11234_p9 }
 0x48f   :  { %11244 = shalt.err (!%p11241_p13)
}
 0x490   :  { %s13335_s30 = sld [smem:[#allocation183_spill]] }
 0x491   :  { %735 = dma.hbm_to_vmem [thread:$0]  %s13334_s26, 16, %s733_s0, [#allocation66]  }
 0x496   :  { %s11245_s21 = scalar_lea.hbm %s13335_s30, 16 }
 0x497   :  { %p11246_p0 = scmp.ne.s32.totalorder %s13335_s30, %s11245_s21  ;;  %p11249_p1 = scmp.lt.u32.totalorder %s11245_s21, %s13335_s30 }
 0x499   :  { %p11251_p2 = pnand %p11249_p1, %p11246_p0 }
 0x49b   :  { %11254 = shalt.err (!%p11251_p2)
}
 0x49c   :  { %s11255_s7 = scalar_lea.vmem %s757_s1, 16  ;;  %s11259_s10 = scalar_lea.vmem %s757_s1, 32 }
 0x49d   :  { %p11256_p3 = scmp.ne.s32.totalorder %s757_s1, %s11255_s7  ;;  %p11260_p4 = scmp.lt.s32.totalorder %s757_s1, %s757_s1 }
 0x49e   :  { %p11261_p5 = scmp.lt.s32.totalorder %s11259_s10, %s11255_s7 }
 0x4a0   :  { %p11262_p6 = por %p11261_p5, %p11260_p4 }
 0x4a2   :  { %p11263_p7 = pnand %p11262_p6, %p11256_p3 }
 0x4a4   :  { %11266 = shalt.err (!%p11263_p7)
}
 0x4a5   :  { %s13336_s4 = sld [smem:[#allocation185_spill]]  ;;  %s11623_s5 = smov [#allocation73]  }
 0x4a6   :  { %759 = dma.hbm_to_vmem [thread:$0]  %s13335_s30, 16, %s757_s1, [#allocation69]  }
 0x4a7   :  { %s778_s11 = sshll.u32 %s11623_s5, 4  ;;  %s11624_s3 = smov [#allocation76]   ;;  %s779_s11 = int_to_ptr.vmem [resolvable:$true] %s778_s11 }
 0x4a8   :  { %s800_s15 = sshll.u32 %s11624_s3, 4  ;;  %s801_s15 = int_to_ptr.vmem [resolvable:$true] %s800_s15 }
 0x4ab   :  { %s11267_s16 = scalar_lea.hbm %s13336_s4, 16 }
 0x4ac   :  { %p11268_p8 = scmp.ne.s32.totalorder %s13336_s4, %s11267_s16  ;;  %p11271_p9 = scmp.lt.u32.totalorder %s11267_s16, %s13336_s4 }
 0x4ae   :  { %p11273_p10 = pnand %p11271_p9, %p11268_p8 }
 0x4b0   :  { %11276 = shalt.err (!%p11273_p10)
}
 0x4b1   :  { %s11277_s18 = scalar_lea.vmem %s779_s11, 16  ;;  %s11281_s22 = scalar_lea.vmem %s779_s11, 32 }
 0x4b2   :  { %p11278_p11 = scmp.ne.s32.totalorder %s779_s11, %s11277_s18  ;;  %p11282_p12 = scmp.lt.s32.totalorder %s779_s11, %s779_s11 }
 0x4b3   :  { %p11283_p13 = scmp.lt.s32.totalorder %s11281_s22, %s11277_s18 }
 0x4b5   :  { %p11284_p0 = por %p11283_p13, %p11282_p12 }
 0x4b7   :  { %p11285_p1 = pnand %p11284_p0, %p11278_p11 }
 0x4b9   :  { %11288 = shalt.err (!%p11285_p1)
}
 0x4ba   :  { %s13337_s14 = sld [smem:[#allocation188_spill]] }
 0x4bb   :  { %781 = dma.hbm_to_vmem [thread:$0]  %s13336_s4, 16, %s779_s11, [#allocation72]  }
 0x4c0   :  { %s11289_s8 = scalar_lea.hbm %s13337_s14, 16 }
 0x4c1   :  { %p11290_p2 = scmp.ne.s32.totalorder %s13337_s14, %s11289_s8  ;;  %p11293_p3 = scmp.lt.u32.totalorder %s11289_s8, %s13337_s14 }
 0x4c3   :  { %p11295_p4 = pnand %p11293_p3, %p11290_p2 }
 0x4c5   :  { %11298 = shalt.err (!%p11295_p4)
}
 0x4c6   :  { %s11299_s19 = scalar_lea.vmem %s801_s15, 16  ;;  %s11303_s29 = scalar_lea.vmem %s801_s15, 32 }
 0x4c7   :  { %p11300_p5 = scmp.ne.s32.totalorder %s801_s15, %s11299_s19  ;;  %p11304_p6 = scmp.lt.s32.totalorder %s801_s15, %s801_s15 }
 0x4c8   :  { %p11305_p7 = scmp.lt.s32.totalorder %s11303_s29, %s11299_s19 }
 0x4ca   :  { %p11306_p8 = por %p11305_p7, %p11304_p6 }
 0x4cc   :  { %p11307_p9 = pnand %p11306_p8, %p11300_p5 }
 0x4ce   :  { %11310 = shalt.err (!%p11307_p9)
}
 0x4cf   :  { %s13338_s24 = sld [smem:[#allocation191_spill]]  ;;  %s11625_s23 = smov [#allocation79]  }
 0x4d0   :  { %803 = dma.hbm_to_vmem [thread:$0]  %s13337_s14, 16, %s801_s15, [#allocation75]  }
 0x4d1   :  { %s822_s9 = sshll.u32 %s11625_s23, 4  ;;  %s11626_s6 = smov [#allocation82]   ;;  %s823_s9 = int_to_ptr.vmem [resolvable:$true] %s822_s9 }
 0x4d2   :  { %s844_s26 = sshll.u32 %s11626_s6, 4  ;;  %s845_s26 = int_to_ptr.vmem [resolvable:$true] %s844_s26 }
 0x4d5   :  { %s11311_s27 = scalar_lea.hbm %s13338_s24, 16 }
 0x4d6   :  { %p11312_p10 = scmp.ne.s32.totalorder %s13338_s24, %s11311_s27  ;;  %p11315_p11 = scmp.lt.u32.totalorder %s11311_s27, %s13338_s24 }
 0x4d8   :  { %p11317_p12 = pnand %p11315_p11, %p11312_p10 }
 0x4da   :  { %11320 = shalt.err (!%p11317_p12)
}
 0x4db   :  { %s11321_s0 = scalar_lea.vmem %s823_s9, 16  ;;  %s11325_s28 = scalar_lea.vmem %s823_s9, 32 }
 0x4dc   :  { %p11322_p13 = scmp.ne.s32.totalorder %s823_s9, %s11321_s0  ;;  %p11326_p0 = scmp.lt.s32.totalorder %s823_s9, %s823_s9 }
 0x4dd   :  { %p11327_p1 = scmp.lt.s32.totalorder %s11325_s28, %s11321_s0 }
 0x4df   :  { %p11328_p2 = por %p11327_p1, %p11326_p0 }
 0x4e1   :  { %p11329_p3 = pnand %p11328_p2, %p11322_p13 }
 0x4e3   :  { %11332 = shalt.err (!%p11329_p3)
}
 0x4e4   :  { %s13339_s1 = sld [smem:[#allocation193_spill]] }
 0x4e5   :  { %825 = dma.hbm_to_vmem [thread:$0]  %s13338_s24, 16, %s823_s9, [#allocation78]  }
 0x4ea   :  { %s11333_s13 = scalar_lea.hbm %s13339_s1, 16 }
 0x4eb   :  { %p11334_p4 = scmp.ne.s32.totalorder %s13339_s1, %s11333_s13  ;;  %p11337_p5 = scmp.lt.u32.totalorder %s11333_s13, %s13339_s1 }
 0x4ed   :  { %p11339_p6 = pnand %p11337_p5, %p11334_p4 }
 0x4ef   :  { %11342 = shalt.err (!%p11339_p6)
}
 0x4f0   :  { %s11343_s12 = scalar_lea.vmem %s845_s26, 16  ;;  %s11347_s2 = scalar_lea.vmem %s845_s26, 32 }
 0x4f1   :  { %p11344_p7 = scmp.ne.s32.totalorder %s845_s26, %s11343_s12  ;;  %p11348_p8 = scmp.lt.s32.totalorder %s845_s26, %s845_s26 }
 0x4f2   :  { %p11349_p9 = scmp.lt.s32.totalorder %s11347_s2, %s11343_s12 }
 0x4f4   :  { %p11350_p10 = por %p11349_p9, %p11348_p8 }
 0x4f6   :  { %p11351_p11 = pnand %p11350_p10, %p11344_p7 }
 0x4f8   :  { %11354 = shalt.err (!%p11351_p11)
}
 0x4f9   :  { %847 = dma.hbm_to_vmem [thread:$0]  %s13339_s1, 16, %s845_s26, [#allocation81]  }
 0x4fa   :  { %s11627_s30 = smov [#allocation85]   ;;  %s11628_s7 = smov [#allocation86]  }
 0x4fb   :  { %s866_s21 = sshll.u32 %s11627_s30, 4  ;;  %s876_s10 = sshll.u32 %s11628_s7, 4  ;;  %s867_s21 = int_to_ptr.vmem [resolvable:$true] %s866_s21  ;;  %s877_s10 = int_to_ptr.vmem [resolvable:$true] %s876_s10 }
 0x4fc   :  { %s11355_s4 = scalar_lea.hbm %s12095_s17, 16 }
 0x4fd   :  { %p11356_p12 = scmp.ne.s32.totalorder %s12095_s17, %s11355_s4  ;;  %p11359_p13 = scmp.lt.u32.totalorder %s11355_s4, %s12095_s17 }
 0x4ff   :  { %p11361_p0 = pnand %p11359_p13, %p11356_p12 }
 0x501   :  { %11364 = shalt.err (!%p11361_p0)
}
 0x502   :  { %s11365_s5 = scalar_lea.vmem %s867_s21, 16  ;;  %s11369_s11 = scalar_lea.vmem %s867_s21, 32 }
 0x503   :  { %p11366_p1 = scmp.ne.s32.totalorder %s867_s21, %s11365_s5  ;;  %p11370_p2 = scmp.lt.s32.totalorder %s867_s21, %s867_s21 }
 0x504   :  { %p11371_p3 = scmp.lt.s32.totalorder %s11369_s11, %s11365_s5 }
 0x506   :  { %p11372_p4 = por %p11371_p3, %p11370_p2 }
 0x508   :  { %p11373_p5 = pnand %p11372_p4, %p11366_p1 }
 0x50a   :  { %11376 = shalt.err (!%p11373_p5)
}
 0x50b   :  { %869 = dma.hbm_to_vmem [thread:$0]  %s12095_s17, 16, %s867_s21, [#allocation84]  }
 0x50c   :  { %s11377_s3 = scalar_lea.hbm %s12100_s20, 16 }
 0x50d   :  { %p11378_p6 = scmp.ne.s32.totalorder %s12100_s20, %s11377_s3  ;;  %p11381_p7 = scmp.lt.u32.totalorder %s11377_s3, %s12100_s20 }
 0x50f   :  { %p11383_p8 = pnand %p11381_p7, %p11378_p6 }
 0x511   :  { %11386 = shalt.err (!%p11383_p8)
}
 0x512   :  { %s11387_s15 = scalar_lea.vmem %s877_s10, 16  ;;  %s11391_s16 = scalar_lea.vmem %s877_s10, 32 }
 0x513   :  { %p11388_p9 = scmp.ne.s32.totalorder %s877_s10, %s11387_s15  ;;  %p11392_p10 = scmp.lt.s32.totalorder %s877_s10, %s877_s10 }
 0x514   :  { %p11393_p11 = scmp.lt.s32.totalorder %s11391_s16, %s11387_s15 }
 0x516   :  { %p11394_p12 = por %p11393_p11, %p11392_p10 }
 0x518   :  { %p11395_p13 = pnand %p11394_p12, %p11388_p9 }
 0x51a   :  { %11398 = shalt.err (!%p11395_p13)
}
 0x51b   :  { %879 = dma.hbm_to_vmem [thread:$0]  %s12100_s20, 16, %s877_s10, [#allocation87]  }
 0x51c   :  { %11421 = dma.done.wait [#allocation3], 16  }
 0x51d   :  { %11422 = vsyncadd [#allocation3], 4294967280 }
 0x51e   :  { %11423 = dma.done.wait [#allocation6], 32  }
 0x51f   :  { %11424 = vsyncadd [#allocation6], 4294967264 }
 0x520   :  { %11425 = dma.done.wait [#allocation9], 32  }
 0x521   :  { %11426 = vsyncadd [#allocation9], 4294967264 }
 0x522   :  { %11427 = dma.done.wait [#allocation12], 32  }
 0x523   :  { %11428 = vsyncadd [#allocation12], 4294967264 }
 0x524   :  { %11429 = dma.done.wait [#allocation15], 32  }
 0x525   :  { %11430 = vsyncadd [#allocation15], 4294967264 }
 0x526   :  { %11431 = dma.done.wait [#allocation18], 32  }
 0x527   :  { %11432 = vsyncadd [#allocation18], 4294967264 }
 0x528   :  { %11433 = dma.done.wait [#allocation21], 32  }
 0x529   :  { %11434 = vsyncadd [#allocation21], 4294967264 }
 0x52a   :  { %11435 = dma.done.wait [#allocation24], 32  }
 0x52b   :  { %11436 = vsyncadd [#allocation24], 4294967264 }
 0x52c   :  { %11437 = dma.done.wait [#allocation27], 32  }
 0x52d   :  { %11438 = vsyncadd [#allocation27], 4294967264 }
 0x52e   :  { %11439 = dma.done.wait [#allocation30], 32  }
 0x52f   :  { %11440 = vsyncadd [#allocation30], 4294967264 }
 0x530   :  { %11441 = dma.done.wait [#allocation33], 32  }
 0x531   :  { %11442 = vsyncadd [#allocation33], 4294967264 }
 0x532   :  { %11443 = dma.done.wait [#allocation36], 32  }
 0x533   :  { %11444 = vsyncadd [#allocation36], 4294967264 }
 0x534   :  { %11445 = dma.done.wait [#allocation39], 32  }
 0x535   :  { %11446 = vsyncadd [#allocation39], 4294967264 }
 0x536   :  { %11447 = dma.done.wait [#allocation42], 32  }
 0x537   :  { %11448 = vsyncadd [#allocation42], 4294967264 }
 0x538   :  { %11449 = dma.done.wait [#allocation45], 32  }
 0x539   :  { %11450 = vsyncadd [#allocation45], 4294967264 }
 0x53a   :  { %11451 = dma.done.wait [#allocation48], 32  }
 0x53b   :  { %11452 = vsyncadd [#allocation48], 4294967264 }
 0x53c   :  { %11453 = dma.done.wait [#allocation51], 32  }
 0x53d   :  { %11454 = vsyncadd [#allocation51], 4294967264 }
 0x53e   :  { %11455 = dma.done.wait [#allocation54], 32  }
 0x53f   :  { %11456 = vsyncadd [#allocation54], 4294967264 }
 0x540   :  { %11457 = dma.done.wait [#allocation57], 32  }
 0x541   :  { %11458 = vsyncadd [#allocation57], 4294967264 }
 0x542   :  { %11459 = dma.done.wait [#allocation60], 32  }
 0x543   :  { %11460 = vsyncadd [#allocation60], 4294967264 }
 0x544   :  { %11461 = dma.done.wait [#allocation63], 32  }
 0x545   :  { %11462 = vsyncadd [#allocation63], 4294967264 }
 0x546   :  { %11463 = dma.done.wait [#allocation66], 32  }
 0x547   :  { %11464 = vsyncadd [#allocation66], 4294967264 }
 0x548   :  { %11465 = dma.done.wait [#allocation69], 32  }
 0x549   :  { %11466 = vsyncadd [#allocation69], 4294967264 }
 0x54a   :  { %11467 = dma.done.wait [#allocation72], 32  }
 0x54b   :  { %11468 = vsyncadd [#allocation72], 4294967264 }
 0x54c   :  { %11469 = dma.done.wait [#allocation75], 32  }
 0x54d   :  { %11470 = vsyncadd [#allocation75], 4294967264 }
 0x54e   :  { %11471 = dma.done.wait [#allocation78], 32  }
 0x54f   :  { %11472 = vsyncadd [#allocation78], 4294967264 }
 0x550   :  { %11473 = dma.done.wait [#allocation81], 32  }
 0x551   :  { %11474 = vsyncadd [#allocation81], 4294967264 }
 0x552   :  { %11475 = dma.done.wait [#allocation84], 32  }
 0x553   :  { %11476 = vsyncadd [#allocation84], 4294967264 }
 0x554   :  { %11477 = dma.done.wait [#allocation87], 16  }
 0x555   :  { %11478 = vsyncadd [#allocation87], 4294967280  ;;  %s13340_s17 = sld [smem:[#allocation121_spill]]  ;;  %s13341_s20 = sld [smem:[#allocation127_spill]]  ;;  %vm1389_vm0 = vcmask 261120   ;;  %vm1132_vm1 = vcmask 1042432  }
 0x556   :  { %s13342_s18 = sld [smem:[#allocation119_spill]]  ;;  %vm1077_vm2 = vcmask 220160   ;;  %vm11629_vm3 = vmmov 1   ;;  %s13343_s22 = sld [smem:[#allocation120_spill]]  ;;  %v11630_v28 = vmov 0.0|0.0   ;;  %vm1312_vm5 = vcmask 130048  }
 0x557   :  { %vm9476_vm4 = vmpackc.low %vm1132_vm1, %vm11629_vm3  ;;  %9481 = vmatprep.subr.bf16.mxu1 %v11630_v28  ;;  %s13344_s14 = sld [smem:[#allocation130_spill]]  ;;  %s13345_s8 = sld [smem:[#allocation128_spill]]  ;;  %vm11631_vm6 = vmmov 0   ;;  %v11632_v41 = vmov 0.0   ;;  %vm1560_vm7 = vcmask 1043456   ;;  %vm1556_vm8 = vcmask 31744  }
 0x558   :  { %s13346_s19 = sld [smem:[#allocation138_spill]]  ;;  %s13347_s29 = sld [smem:[#allocation133_spill]]  ;;  %vm1947_vm9 = vcmask 64512   ;;  %vm1519_vm11 = vcmask 257024   ;;  %vm3257_vm12 = vcmask 523264   ;;  %vm3721_vm13 = vcmask 27648  }
 0x559   :  { %s13348_s24 = sld [smem:[#allocation122_spill]]  ;;  %s13349_s23 = sld [smem:[#allocation141_spill]]  ;;  %vm12486_vm10 = vmpackc.low %vm1947_vm9, %vm1947_vm9  ;;  %vm8239_vm14 = vcmask 9216  }
 0x55a   :  { %s13350_s9 = sld [smem:[#allocation140_spill]]  ;;  %s13351_s6 = sld [smem:[#allocation123_spill]] }
 0x55b   :  { %v12332_v0 = vld [vmem:[%s13340_s17] sm:$0xff]  ;;  %v1067_v2 = vld [vmem:[%s13341_s20 + $0x8] sm:$0xff]  ;;  %v1068_v6 = vld [vmem:[%s13341_s20 + $0x10] sm:$0xff]  ;;  %s13354_s26 = sld [smem:[#allocation143_spill]]  ;;  %s11633_s27 = smov 120  }
 0x55c   :  { %v1066_v1 = vld [vmem:[%s13341_s20] sm:$0xff]  ;;  %v1390_v3 = vsel %vm1389_vm0, %v12332_v0, 0.0  ;;  %v1386_v5 = vld [vmem:[%s13340_s17 + $0x8] sm:$0xff]  ;;  %v1069_v7 = vld [vmem:[%s13341_s20 + $0x18] sm:$0x7]  ;;  %s11634_s0 = smov 112  }
 0x55d   :  { %v9471_v4 = vpack.c.bf16 %v1067_v2, %v1066_v1  ;;  %1391 = vadd.xlane.f32.xlu0 %v1390_v3  ;;  %v9475_v8 = vpack.c.bf16 %v1069_v7, %v1068_v6  ;;  %v1048_v9 = vld [vmem:[%s13342_s18] sm:$0xff]  ;;  %v1393_v10 = vsel %vm1389_vm0, %v1386_v5, 0.0  ;;  %v1049_v11 = vld [vmem:[%s13342_s18 + $0x8] sm:$0xff]  ;;  %v1050_v12 = vld [vmem:[%s13342_s18 + $0x10] sm:$0xff]  ;;  %s11635_s28 = smov 104   ;;  %s13355_s1 = sld [smem:[#allocation145_spill]] }
 0x55e   :  { %8905 = vmatprep.mubr.msk.f32.mxu0 %vm1077_vm2, %v1048_v9  ;;  %v1051_v13 = vld [vmem:[%s13342_s18 + $0x18] sm:$0xff]  ;;  %v1052_v14 = vld [vmem:[%s13342_s18 + $0x20] sm:$0xff]  ;;  %v1053_v15 = vld [vmem:[%s13342_s18 + $0x28] sm:$0xff]  ;;  %s13356_s13 = sld [smem:[#allocation149_spill]]  ;;  %s13357_s12 = sld [smem:[#allocation151_spill]] }
 0x55f   :  { %9472 = vmatprep.subr.bf16.mxu0 %v9471_v4  ;;  %v1054_v16 = vld [vmem:[%s13342_s18 + $0x30] sm:$0xff]  ;;  %v1055_v17 = vld [vmem:[%s13342_s18 + $0x38] sm:$0xff]  ;;  %v1056_v18 = vld [vmem:[%s13342_s18 + $0x40] sm:$0xff]  ;;  %s13358_s2 = sld [smem:[#allocation147_spill]]  ;;  %s13359_s30 = sld [smem:[#allocation152_spill]] }
 0x560   :  { %9474 = vmatpush3.bf16.msra.mxu0 %v9471_v4  ;;  %v1057_v19 = vld [vmem:[%s13342_s18 + $0x48] sm:$0xff]  ;;  %v1058_v20 = vld [vmem:[%s13342_s18 + $0x50] sm:$0xff]  ;;  %v1059_v21 = vld [vmem:[%s13342_s18 + $0x58] sm:$0xff]  ;;  %s13360_s21 = sld [smem:[#allocation124_spill]]  ;;  %s13361_s7 = sld [smem:[#allocation154_spill]] }
 0x561   :  { %9477 = vmatprep.subr.msk.bf16.mxu0 %vm9476_vm4, %v9475_v8  ;;  %1394 = vadd.xlane.f32.xlu0 %v1393_v10  ;;  %v1060_v22 = vld [vmem:[%s13342_s18 + $0x60] sm:$0xff]  ;;  %v1061_v23 = vld [vmem:[%s13342_s18 + $0x68] sm:$0xff]  ;;  %v1062_v24 = vld [vmem:[%s13342_s18 + $0x70] sm:$0xff]  ;;  %s13362_s10 = sld [smem:[#allocation156_spill]]  ;;  %s13363_s4 = sld [smem:[#allocation158_spill]] }
 0x562   :  { %v1063_v25 = vld [vmem:[%s13342_s18 + $0x78] sm:$0xff]  ;;  %v1064_v26 = vld [vmem:[%s13342_s18 + $0x80] sm:$0xff]  ;;  %v1065_v27 = vld [vmem:[%s13342_s18 + $0x88] sm:$0xff]  ;;  %s13364_s5 = sld [smem:[#allocation161_spill]]  ;;  %s13365_s11 = sld [smem:[#allocation163_spill]] }
 0x563   :  { %v12381_v29 = vld [vmem:[%s13343_s22] sm:$0xff]  ;;  %v1434_v43 = vld [vmem:[%s13344_s14 + $0x8] sm:$0xff]  ;;  %v1435_v44 = vld [vmem:[%s13344_s14 + $0x10] sm:$0xff]  ;;  %s13366_s3 = sld [smem:[#allocation165_spill]]  ;;  %s13368_s16 = sld [smem:[#allocation167_spill]] }
 0x564   :  { %9480 = vmatpush3.bf16.msk.msra.mxu0 %vm9476_vm4, %v9475_v8  ;;  %v1311_v30 = vcombine.high %v12381_v29, %v12381_v29  ;;  %v1433_v42 = vld [vmem:[%s13344_s14] sm:$0xff]  ;;  %v1436_v46 = vld [vmem:[%s13344_s14 + $0x18] sm:$0xff]  ;;  %s13367_s15 = sld [smem:[#allocation125_spill]]  ;;  %s13369_s17 = sld [smem:[#allocation171_spill]] }
 0x565   :  { %9508 = vmatprep.subr.bf16.mxu0 %v11630_v28  ;;  %v9509_v45 = vpack.c.bf16 %v1434_v43, %v1433_v42  ;;  %v9512_v47 = vpack.c.bf16 %v1436_v46, %v1435_v44  ;;  %v12405_v48 = vld [vmem:[%s13345_s8] ss:$0 sm:$0xff]  ;;  %s13370_s20 = sld [smem:[#allocation173_spill]]  ;;  %s13371_s18 = sld [smem:[#allocation175_spill]] }
 0x566   :  { %8396 = vmatprep.mubr.msk.f32.mxu1 %vm1312_vm5, %v1311_v30  ;;  %s13372_s22 = sld [smem:[#allocation177_spill]]  ;;  %s13373_s14 = sld [smem:[#allocation187_spill]] }
 0x567   :  { %8906 = vmatmul.mubr.msk.f32.vlgmr.msra.gmra.mrb[0].mxu0 %vm1077_vm2, %v1049_v11  ;;  %s13374_s8 = sld [smem:[#allocation189_spill]] }
 0x568   :  { %8908 = vmatprep.mubr.msk.f32.mxu0 %vm1077_vm2, %v1050_v12  ;;  %9510 = vmatpush3.bf16.msra.mxu0 %v9509_v45 }
 0x569   :  { %9511 = vmatprep.subr.bf16.mxu0 %v11630_v28 }
 0x56b   :  { %8909 = vmatmul.mubr.msk.f32.gmra.mrb[2].mxu0 %vm1077_vm2, %v1051_v13 }
 0x56c   :  { %8911 = vmatprep.mubr.msk.f32.mxu0 %vm1077_vm2, %v1052_v14  ;;  %9513 = vmatpush3.bf16.msra.mxu0 %v9512_v47 }
 0x56f   :  { %8912 = vmatmul.mubr.msk.f32.gmra.mrb[4].mxu0 %vm1077_vm2, %v1053_v15 }
 0x570   :  { %8914 = vmatprep.mubr.msk.f32.mxu0 %vm1077_vm2, %v1054_v16 }
 0x573   :  { %8915 = vmatmul.mubr.msk.f32.gmra.mrb[6].mxu0 %vm1077_vm2, %v1055_v17 }
 0x574   :  { %8917 = vmatprep.mubr.msk.f32.mxu0 %vm1077_vm2, %v1056_v18 }
 0x577   :  { %8918 = vmatmul.mubr.msk.f32.gmra.mrb[8].mxu0 %vm1077_vm2, %v1057_v19 }
 0x578   :  { %8920 = vmatprep.mubr.msk.f32.mxu0 %vm1077_vm2, %v1058_v20 }
 0x57b   :  { %8921 = vmatmul.mubr.msk.f32.gmra.mrb[10].mxu0 %vm1077_vm2, %v1059_v21 }
 0x57c   :  { %8923 = vmatprep.mubr.msk.f32.mxu0 %vm1077_vm2, %v1060_v22 }
 0x57f   :  { %8924 = vmatmul.mubr.msk.f32.gmra.mrb[12].mxu0 %vm1077_vm2, %v1061_v23 }
 0x580   :  { %8926 = vmatprep.mubr.msk.f32.mxu0 %vm1077_vm2, %v1062_v24 }
 0x583   :  { %8927 = vmatmul.mubr.msk.f32.gmra.mrb[14].mxu0 %vm1077_vm2, %v1063_v25 }
 0x584   :  { %8929 = vmatprep.mubr.msk.f32.mxu0 %vm1077_vm2, %v1064_v26 }
 0x587   :  { %8930 = vmatmul.mubr.msk.f32.gmra.mrb[16].mxu0 %vm1077_vm2, %v1065_v27 }
 0x588   :  { %8940 = vmatprep.mubr.msk.f32.mxu0 %vm11631_vm6, %v11632_v41 }
 0x5ea   :  { %v1392_v31 = vpop.xlane.xlu0 %1391 }
 0x5eb   :  { %v1397_v32 = vmul.f32 0.03125, %v1392_v31 }
 0x5ed   :  { %v12387_v33 = vsub.f32 %v12332_v0, %v1397_v32 }
 0x5ee   :  { %v1395_v34 = vpop.xlane.xlu0 %1394 }
 0x5ef   :  { %v1398_v35 = vmul.f32 0.03125, %v1395_v34  ;;  %v1401_v36 = vmul.f32 %v12387_v33, %v12387_v33 }
 0x5f1   :  { %v12391_v37 = vsub.f32 %v1386_v5, %v1398_v35  ;;  %v1403_v38 = vsel %vm1389_vm0, %v1401_v36, 0.0 }
 0x5f2   :  { %1404 = vadd.xlane.f32.xlu1 %v1403_v38 }
 0x5f3   :  { %v1402_v39 = vmul.f32 %v12391_v37, %v12391_v37 }
 0x5f5   :  { %v1406_v40 = vsel %vm1389_vm0, %v1402_v39, 0.0 }
 0x5f6   :  { %1407 = vadd.xlane.f32.xlu1 %v1406_v40 }
 0x63a   :  { %v8907_v49 = vpop.f32.mrb[0].mxu0 }
 0x63b   :  { %v1208_v50 = vadd.f32 %v8907_v49, %v12405_v48  ;;  %v1202_v51 = vpop.f32.mrb[1].mxu0 }
 0x63c   :  { %v1203_v52 = vadd.f32 %v12405_v48, %v1202_v51 }
 0x63d   :  { %v1292_v53 = vmax.f32 %v1208_v50, 0.0 }
 0x63e   :  { %v1291_v54 = vmax.f32 %v1203_v52, 0.0  ;;  %v8910_v55 = vpop.f32.mrb[2].mxu0 }
 0x63f   :  { %v1218_v56 = vadd.f32 %v8910_v55, %v12405_v48  ;;  %v1212_v57 = vpop.f32.mrb[3].mxu0  ;;  %v1671_v55 = vld [vmem:[%s13346_s19 + $0x8] sm:$0xff] }
 0x640   :  { %v1213_v58 = vadd.f32 %v12405_v48, %v1212_v57  ;;  %v9482_v59 = vpack.c.bf16 %v1292_v53, %v1291_v54  ;;  %v1670_v54 = vld [vmem:[%s13346_s19] sm:$0xff] }
 0x641   :  { %v1294_v60 = vmax.f32 %v1218_v56, 0.0  ;;  %v1548_v56 = vld [vmem:[%s13347_s29] sm:$0xf]  ;;  %v9514_v57 = vpack.c.bf16 %v1671_v55, %v1670_v54  ;;  %v12499_v55 = vld [vmem:[%s13351_s6 + $0x8] sm:$0xff]  ;;  %s13376_s29 = sld [smem:[#allocation126_spill]] }
 0x642   :  { %v1293_v61 = vmax.f32 %v1213_v58, 0.0  ;;  %v8913_v62 = vpop.f32.mrb[4].mxu0  ;;  %9483 = vmatpush1.bf16.msra.mxu1 %v9482_v59  ;;  %v1672_v58 = vld [vmem:[%s13346_s19 + $0x10] sm:$0xff]  ;;  %v1673_v59 = vld [vmem:[%s13346_s19 + $0x18] sm:$0xff]  ;;  %s13375_s19 = sld [smem:[#allocation135_spill]] }
 0x643   :  { %v1228_v63 = vadd.f32 %v8913_v62, %v12405_v48  ;;  %v1222_v0 = vpop.f32.mrb[5].mxu0  ;;  %9484 = vmatprep.subr.bf16.mxu1 %v11630_v28  ;;  %v1849_v62 = vld [vmem:[%s13349_s23 + $0x8] sm:$0xff] }
 0x644   :  { %v9485_v1 = vpack.c.bf16 %v1294_v60, %v1293_v61  ;;  %v1223_v2 = vadd.f32 %v12405_v48, %v1222_v0  ;;  %v9518_v60 = vpack.c.bf16 %v1673_v59, %v1672_v58  ;;  %v1848_v61 = vld [vmem:[%s13349_s23] sm:$0xff] }
 0x645   :  { %v1296_v3 = vmax.f32 %v1228_v63, 0.0  ;;  %v9530_v63 = vpack.c.bf16 %v1849_v62, %v1848_v61  ;;  %v12502_v58 = vld [vmem:[%s13351_s6] sm:$0xff] }
 0x646   :  { %v1295_v4 = vmax.f32 %v1223_v2, 0.0  ;;  %v8916_v5 = vpop.f32.mrb[6].mxu0  ;;  %9486 = vmatpush1.bf16.msra.mxu1 %v9485_v1 }
 0x647   :  { %v1238_v6 = vadd.f32 %v8916_v5, %v12405_v48  ;;  %v1232_v7 = vpop.f32.mrb[7].mxu0  ;;  %9487 = vmatprep.subr.bf16.mxu1 %v11630_v28 }
 0x648   :  { %v9488_v8 = vpack.c.bf16 %v1296_v3, %v1295_v4  ;;  %v1233_v9 = vadd.f32 %v12405_v48, %v1232_v7 }
 0x649   :  { %v1298_v10 = vmax.f32 %v1238_v6, 0.0  ;;  %v8397_v6 = vld [vmem:[#allocation2] ss:$0 sm:$0xff] }
 0x64a   :  { %v1297_v11 = vmax.f32 %v1233_v9, 0.0  ;;  %v8919_v12 = vpop.f32.mrb[8].mxu0  ;;  %9489 = vmatpush1.bf16.msra.mxu1 %v9488_v8  ;;  %v8398_v8 = vld [vmem:[#allocation5] ss:$0 sm:$0xff] }
 0x64b   :  { %v1248_v13 = vadd.f32 %v8919_v12, %v12405_v48  ;;  %v1242_v14 = vpop.f32.mrb[9].mxu0  ;;  %9490 = vmatprep.subr.bf16.mxu1 %v11630_v28 }
 0x64c   :  { %v9491_v15 = vpack.c.bf16 %v1298_v10, %v1297_v11  ;;  %v1243_v16 = vadd.f32 %v12405_v48, %v1242_v14  ;;  %v1851_v14 = vld [vmem:[%s13349_s23 + $0x18] sm:$0xff] }
 0x64d   :  { %v1300_v17 = vmax.f32 %v1248_v13, 0.0  ;;  %v1850_v13 = vld [vmem:[%s13349_s23 + $0x10] sm:$0xff]  ;;  %s11636_s23 = smov [#allocation88]  }
 0x64e   :  { %v1299_v18 = vmax.f32 %v1243_v16, 0.0  ;;  %v8922_v19 = vpop.f32.mrb[10].mxu0  ;;  %9492 = vmatpush1.bf16.msra.mxu1 %v9491_v15 }
 0x64f   :  { %v1258_v20 = vadd.f32 %v8922_v19, %v12405_v48  ;;  %v1252_v21 = vpop.f32.mrb[11].mxu0  ;;  %9493 = vmatprep.subr.bf16.mxu1 %v11630_v28  ;;  %v1764_v19 = vld [vmem:[%s13350_s9 + $0x10] sm:$0xff] }
 0x650   :  { %v9494_v22 = vpack.c.bf16 %v1300_v17, %v1299_v18  ;;  %v1253_v23 = vadd.f32 %v12405_v48, %v1252_v21  ;;  %v1763_v17 = vld [vmem:[%s13350_s9 + $0x8] sm:$0xff] }
 0x651   :  { %v1302_v24 = vmax.f32 %v1258_v20, 0.0  ;;  %v1765_v20 = vld [vmem:[%s13350_s9 + $0x18] sm:$0xff] }
 0x652   :  { %v1301_v25 = vmax.f32 %v1253_v23, 0.0  ;;  %v8925_v26 = vpop.f32.mrb[12].mxu0  ;;  %9495 = vmatpush1.bf16.msra.mxu1 %v9494_v22  ;;  %v9526_v21 = vpack.c.bf16 %v1765_v20, %v1764_v19 }
 0x653   :  { %v1268_v27 = vadd.f32 %v8925_v26, %v12405_v48  ;;  %v1262_v30 = vpop.f32.mrb[13].mxu0  ;;  %9496 = vmatprep.subr.bf16.mxu1 %v11630_v28  ;;  %v8408_v26 = vld [vmem:[#allocation19] ss:$0 sm:$0xff] }
 0x654   :  { %v9497_v31 = vpack.c.bf16 %v1302_v24, %v1301_v25  ;;  %v1263_v32 = vadd.f32 %v12405_v48, %v1262_v30 }
 0x655   :  { %v1304_v34 = vmax.f32 %v1268_v27, 0.0 }
 0x656   :  { %v1303_v35 = vmax.f32 %v1263_v32, 0.0  ;;  %v8928_v36 = vpop.f32.mrb[14].mxu0  ;;  %9498 = vmatpush1.bf16.msra.mxu1 %v9497_v31 }
 0x657   :  { %v1278_v38 = vadd.f32 %v8928_v36, %v12405_v48  ;;  %v1272_v39 = vpop.f32.mrb[15].mxu0  ;;  %9499 = vmatprep.subr.bf16.mxu1 %v11630_v28 }
 0x658   :  { %v9500_v40 = vpack.c.bf16 %v1304_v34, %v1303_v35  ;;  %v1273_v42 = vadd.f32 %v12405_v48, %v1272_v39  ;;  %v8414_v34 = vld [vmem:[#allocation22] ss:$0 sm:$0xff] }
 0x659   :  { %v1306_v43 = vmax.f32 %v1278_v38, 0.0 }
 0x65a   :  { %v1305_v44 = vmax.f32 %v1273_v42, 0.0  ;;  %v8931_v45 = vpop.f32.mrb[16].mxu0  ;;  %9501 = vmatpush1.bf16.msra.mxu1 %v9500_v40 }
 0x65b   :  { %v1288_v46 = vadd.f32 %v8931_v45, %v12405_v48  ;;  %v1282_v47 = vpop.f32.mrb[17].mxu0  ;;  %9502 = vmatprep.subr.bf16.mxu1 %v11630_v28  ;;  %v8411_v45 = vld [vmem:[#allocation20] ss:$0 sm:$0xff] }
 0x65c   :  { %v9503_v49 = vpack.c.bf16 %v1306_v43, %v1305_v44  ;;  %v1283_v50 = vadd.f32 %v12405_v48, %v1282_v47  ;;  %v1547_v48 = vld [vmem:[%s13348_s24] sm:$0xf]  ;;  %s13377_s24 = sld [smem:[#allocation137_spill]] }
 0x65d   :  { %v1308_v51 = vmax.f32 %v1288_v46, 0.0 }
 0x65e   :  { %v1307_v52 = vmax.f32 %v1283_v50, 0.0  ;;  %9504 = vmatpush1.bf16.msra.mxu1 %v9503_v49 }
 0x65f   :  { %9505 = vmatprep.subr.bf16.mxu1 %v11630_v28 }
 0x660   :  { %v9506_v53 = vpack.c.bf16 %v1308_v51, %v1307_v52 }
 0x662   :  { %9507 = vmatpush1.bf16.msra.mxu1 %v9506_v53 }
 0x663   :  { %8943 = vmatprep.subr.mxu1 %v11632_v41 }
 0x665   :  { %1380 = vmatmul.mubr.f32.vlgmr.msra.gmra.mrb[0].mxu1 %v12381_v29 }
 0x666   :  { %8944 = vmatpush3.msk.msra.mxu1 %vm1560_vm7, %v1548_v56  ;;  %8945 = vmatprep.mubr.msk.f32.mxu1 %vm11631_vm6, %v11632_v41 }
 0x667   :  { %9515 = vmatprep.subr.bf16.mxu1 %v9514_v57 }
 0x669   :  { %8946 = vmatmul.mubr.msk.f32.vlgmr.msra.gmra.mrb[2].mxu1 %vm1556_vm8, %v1547_v48 }
 0x66a   :  { %9517 = vmatpush3.bf16.msra.mxu1 %v9514_v57 }
 0x66b   :  { %9519 = vmatprep.subr.bf16.mxu1 %v9518_v60 }
 0x66e   :  { %9521 = vmatpush3.bf16.msra.mxu1 %v9518_v60 }
 0x66f   :  { %9531 = vmatprep.subr.bf16.mxu1 %v9530_v63 }
 0x67f   :  { %v1405_v0 = vpop.xlane.xlu1 %1404 }
 0x680   :  { %v1409_v29 = vmul.f32 0.03125, %v1405_v0 }
 0x682   :  { %v1411_v1 = vadd.f32 1e-12, %v1409_v29 }
 0x683   :  { %v1408_v2 = vpop.xlane.xlu1 %1407 }
 0x684   :  { %10009 = vrsqrt.f32 %v1411_v1  ;;  %v1410_v3 = vmul.f32 0.03125, %v1408_v2 }
 0x686   :  { %v1412_v4 = vadd.f32 1e-12, %v1410_v3 }
 0x688   :  { %10011 = vrsqrt.f32 %v1412_v4 }
 0x68e   :  { %v10010_v5 = vpop.eup %10009 }
 0x68f   :  { %v1415_v7 = vmul.f32 %v10010_v5, %v12387_v33  ;;  %v9534_v33 = vpack.c.bf16 %v1851_v14, %v1850_v13 }
 0x691   :  { %v1423_v9 = vmul.f32 %v8397_v6, %v1415_v7 }
 0x692   :  { %v10012_v10 = vpop.eup %10011 }
 0x693   :  { %v1416_v11 = vmul.f32 %v10012_v10, %v12391_v37  ;;  %v12449_v12 = vadd.f32 %v8398_v8, %v1423_v9  ;;  %v1762_v37 = vld [vmem:[%s13350_s9] sm:$0xff]  ;;  %s8247_s9 = sshll.u32 %s11636_s23, 4  ;;  %s8248_s9 = int_to_ptr.vmem [resolvable:$true] %s8247_s9 }
 0x694   :  { %v9522_v18 = vpack.c.bf16 %v1763_v17, %v1762_v37  ;;  %p11404_p1 = scmp.lt.s32.totalorder %s8248_s9, %s8248_s9 }
 0x695   :  { %v1424_v15 = vmul.f32 %v8397_v6, %v1416_v11  ;;  %8956 = vmatprep.mubr.msk.f32.mxu1 %vm1389_vm0, %v12449_v12 }
 0x696   :  { %9523 = vmatprep.subr.bf16.mxu0 %v9522_v18 }
 0x697   :  { %v12455_v16 = vadd.f32 %v8398_v8, %v1424_v15  ;;  %v1934_v8 = vld [vmem:[%s13354_s26] sm:$0xff] }
 0x699   :  { %8957 = vmatmul.mubr.msk.f32.vlgmr.msra.gmra.mrb[4].mxu1 %vm1389_vm0, %v12455_v16 }
 0x69a   :  { %9533 = vmatpush3.bf16.msra.mxu1 %v9530_v63  ;;  %8978 = vmatprep.mubr.msk.f32.mxu1 %vm1389_vm0, %v12449_v12 }
 0x69b   :  { %9535 = vmatprep.subr.bf16.mxu1 %v9534_v33 }
 0x69e   :  { %9537 = vmatpush3.bf16.msra.mxu1 %v9534_v33 }
 0x6a1   :  { %8979 = vmatmul.mubr.msk.f32.vlgmr.msra.gmra.mrb[6].mxu1 %vm1389_vm0, %v12455_v16 }
 0x738   :  { %v1381_v22 = vpop.f32.mrb[0].mxu1 }
 0x739   :  { %v1383_v23 = vpop.f32.mrb[1].mxu1  ;;  %8941 = vmatmul.mubr.msk.f32.vlgmr.msra.gmra.mrb[18].mxu0 %vm1389_vm0, %v1381_v22 }
 0x73a   :  { %9525 = vmatpush3.bf16.msra.mxu0 %v9522_v18  ;;  %8967 = vmatprep.mubr.msk.f32.mxu0 %vm1389_vm0, %v12449_v12 }
 0x73b   :  { %9527 = vmatprep.subr.bf16.mxu0 %v9526_v21 }
 0x73c   :  { %v12470_v24 = vpop.f32.mrb[2].mxu1 }
 0x73d   :  { %v8947_v25 = vpop.f32.mrb[3].mxu1 }
 0x73e   :  { %9529 = vmatpush3.bf16.msra.mxu0 %v9526_v21 }
 0x741   :  { %8968 = vmatmul.mubr.msk.f32.vlgmr.msra.gmra.mrb[20].mxu0 %vm1389_vm0, %v12455_v16 }
 0x76c   :  { %v8958_v27 = vpop.f32.mrb[4].mxu1 }
 0x76d   :  { %v12474_v30 = vadd.f32 %v8958_v27, %v8408_v26  ;;  %v1753_v31 = vpop.f32.mrb[5].mxu1 }
 0x76e   :  { %v12476_v32 = vadd.f32 %v8408_v26, %v1753_v31 }
 0x770   :  { %8985 = vmatprep.mubr.msk.f32.mxu0 %vm1947_vm9, %v12476_v32 }
 0x774   :  { %v8980_v35 = vpop.f32.mrb[6].mxu1 }
 0x775   :  { %v1931_v36 = vadd.f32 %v8980_v35, %v8414_v34  ;;  %v1925_v38 = vpop.f32.mrb[7].mxu1 }
 0x776   :  { %v1926_v39 = vadd.f32 %v8414_v34, %v1925_v38 }
 0x778   :  { %v9544_v40 = vpack.c.bf16 %v1931_v36, %v1926_v39  ;;  %v12480_v42 = vpack.i.bf16 %v1931_v36, %v1926_v39 }
 0x77a   :  { %9545 = vmatprep.subr.bf16.mxu1 %v9544_v40 }
 0x77b   :  { %9547 = vmatpush3.bf16.msra.mxu1 %v9544_v40 }
 0x77c   :  { %8995 = vmatprep.subr.mxu1 %v1934_v8 }
 0x80c   :  { %v12482_v43 = vpop.f32.mrb[18].mxu0 }
 0x80d   :  { %v8942_v44 = vpop.f32.mrb[19].mxu0 }
 0x814   :  { %v8969_v46 = vpop.f32.mrb[20].mxu0 }
 0x815   :  { %v1845_v47 = vadd.f32 %v8969_v46, %v8411_v45  ;;  %v1839_v49 = vpop.f32.mrb[21].mxu0 }
 0x816   :  { %v1840_v50 = vadd.f32 %v8411_v45, %v1839_v49 }
 0x818   :  { %v9538_v52 = vpack.c.bf16 %v1845_v47, %v1840_v50  ;;  %v12490_v53 = vpack.i.bf16 %v1845_v47, %v1840_v50 }
 0x81a   :  { %9540 = vmatprep.subr.msk.bf16.mxu0 %vm12486_vm10, %v9538_v52 }
 0x81b   :  { %9543 = vmatpush3.bf16.xpose.msk.msra.mxu0 %vm12486_vm10, %v9538_v52 }
 0x822   :  { %8986 = vmatmul.mubr.msk.f32.vlgmr.msra.gmra.mrb[22].mxu0 %vm1947_vm9, %v12474_v30 }
 0x8f5   :  { %v8987_v54 = vpop.f32.mrb[22].mxu0 }
 0x8f6   :  { %v2036_v56 = vmul.f32 0.35355338, %v8987_v54  ;;  %v2026_v57 = vpop.f32.mrb[23].mxu0 }
 0x8f7   :  { %v2035_v59 = vmul.f32 0.35355338, %v2026_v57 }
 0x8f8   :  { %v2038_v48 = vadd.f32 %v2036_v56, %v12499_v55 }
 0x8f9   :  { %v2037_v60 = vadd.f32 %v2035_v59, %v12502_v58 }
 0x8fa   :  { %v2042_v61 = vsel %vm1312_vm5, %v2038_v48, -inf }
 0x8fb   :  { %2043 = vmax.xlane.f32.xlu1 %v2042_v61  ;;  %v2039_v62 = vsel %vm1312_vm5, %v2037_v60, -inf }
 0x8fc   :  { %2040 = vmax.xlane.f32.xlu0 %v2039_v62 }
 0x988   :  { %v2044_v63 = vpop.xlane.xlu1 %2043 }
 0x989   :  { %v2046_v0 = vsub.f32 %v2038_v48, %v2044_v63  ;;  %v2041_v29 = vpop.xlane.xlu0 %2040 }
 0x98a   :  { %v2045_v1 = vsub.f32 %v2037_v60, %v2041_v29 }
 0x98b   :  { %v2049_v2 = vmul.f32 1.442695, %v2046_v0 }
 0x98c   :  { %v2047_v3 = vmul.f32 1.442695, %v2045_v1 }
 0x98d   :  { %10013 = vpow2.f32 %v2049_v2 }
 0x98e   :  { %10015 = vpow2.f32 %v2047_v3 }
 0x997   :  { %v10014_v4 = vpop.eup %10013 }
 0x998   :  { %v10016_v5 = vpop.eup %10015  ;;  %v2054_v6 = vsel %vm1312_vm5, %v10014_v4, 0.0 }
 0x999   :  { %2055 = vadd.xlane.f32.xlu1 %v2054_v6  ;;  %v2051_v7 = vsel %vm1312_vm5, %v10016_v5, 0.0 }
 0x99a   :  { %2052 = vadd.xlane.f32.xlu0 %v2051_v7 }
 0x9aa   :  { %2225 = vrot.lane.b32.xlu1 %v12476_v32, %s11633_s27 }
 0x9ae   :  { %2227 = vrot.lane.b32.xlu1 %v12474_v30, %s11633_s27 }
 0x9b0   :  { %9949 = vrot.lane.b32.xlu0 %v12490_v53, %s11633_s27 }
 0x9b2   :  { %9954 = vrot.lane.b32.xlu1 %v12490_v53, %s11634_s0 }
 0x9b4   :  { %2514 = vrot.lane.b32.xlu0 %v12476_v32, %s11634_s0 }
 0x9b6   :  { %2516 = vrot.lane.b32.xlu1 %v12474_v30, %s11634_s0 }
 0xa26   :  { %v2056_v9 = vpop.xlane.xlu1 %2055 }
 0xa27   :  { %10017 = vrcp.f32 %v2056_v9  ;;  %v2053_v10 = vpop.xlane.xlu0 %2052 }
 0xa28   :  { %10019 = vrcp.f32 %v2053_v10 }
 0xa2a   :  { %v2226_v19 = vpop.permute.xlu1 %2225 }
 0xa2b   :  { %v9950_v11 = vpop.permute.xlu0 %9949 }
 0xa2c   :  { %v9952_v15 = vunpack.i.h.bf16 %v9950_v11  ;;  %v9951_v33 = vunpack.i.l.bf16 %v9950_v11 }
 0xa2e   :  { %v9548_v18 = vpack.c.bf16 %v9952_v15, %v9951_v33  ;;  %v2228_v20 = vpop.permute.xlu1 %2227 }
 0xa2f   :  { %v2515_v31 = vpop.permute.xlu0 %2514 }
 0xa31   :  { %v10018_v13 = vpop.eup %10017 }
 0xa32   :  { %v10020_v14 = vpop.eup %10019  ;;  %v2060_v17 = vmul.f32 %v10018_v13, %v10014_v4  ;;  %v9955_v21 = vpop.permute.xlu1 %9954 }
 0xa33   :  { %v2059_v37 = vmul.f32 %v10020_v14, %v10016_v5  ;;  %v9957_v22 = vunpack.i.h.bf16 %v9955_v21  ;;  %v9956_v23 = vunpack.i.l.bf16 %v9955_v21 }
 0xa35   :  { %8992 = vmatprep.mubr.msk.f32.mxu1 %vm1312_vm5, %v2059_v37  ;;  %v9558_v27 = vpack.c.bf16 %v9957_v22, %v9956_v23 }
 0xa36   :  { %8993 = vmatmul.mubr.msk.f32.vlgmr.msra.gmra.mrb[8].mxu1 %vm1312_vm5, %v2060_v17  ;;  %v2517_v34 = vpop.permute.xlu1 %2516 }
 0xa37   :  { %8996 = vmatpush3.msra.mxu1 %v1934_v8 }
 0xa38   :  { %9550 = vmatprep.subr.msk.bf16.mxu1 %vm12486_vm10, %v9548_v18 }
 0xb09   :  { %v8994_v25 = vpop.f32.mrb[8].mxu1 }
 0xb0a   :  { %v2133_v26 = vpop.f32.mrb[9].mxu1 }
 0xb0b   :  { %8997 = vmatprep.mubr.msk.f32.mxu1 %vm1947_vm9, %v2133_v26 }
 0xb0c   :  { %8998 = vmatmul.mubr.msk.f32.vlgmr.msra.gmra.mrb[10].mxu1 %vm1947_vm9, %v8994_v25 }
 0xb0d   :  { %9553 = vmatpush3.bf16.xpose.msk.msra.mxu1 %vm12486_vm10, %v9548_v18  ;;  %9004 = vmatprep.mubr.msk.f32.mxu1 %vm1947_vm9, %v2226_v19 }
 0xb0e   :  { %9560 = vmatprep.subr.msk.bf16.mxu1 %vm12486_vm10, %v9558_v27 }
 0xb14   :  { %9005 = vmatmul.mubr.msk.f32.vlgmr.msra.gmra.mrb[12].mxu1 %vm1947_vm9, %v2228_v20 }
 0xb15   :  { %9563 = vmatpush3.bf16.xpose.msk.msra.mxu1 %vm12486_vm10, %v9558_v27  ;;  %9023 = vmatprep.mubr.msk.f32.mxu1 %vm1947_vm9, %v2515_v31 }
 0xb1c   :  { %9024 = vmatmul.mubr.msk.f32.vlgmr.msra.gmra.mrb[14].mxu1 %vm1947_vm9, %v2517_v34 }
 0xbdf   :  { %v12539_v35 = vpop.f32.mrb[10].mxu1 }
 0xbe0   :  { %v12541_v36 = vpop.f32.mrb[11].mxu1 }
 0xbe7   :  { %v9006_v38 = vpop.f32.mrb[12].mxu1 }
 0xbe8   :  { %v2317_v39 = vmul.f32 0.35355338, %v9006_v38  ;;  %v2307_v40 = vpop.f32.mrb[13].mxu1 }
 0xbe9   :  { %v2316_v44 = vmul.f32 0.35355338, %v2307_v40 }
 0xbea   :  { %v2319_v45 = vadd.f32 %v2317_v39, %v12499_v55 }
 0xbeb   :  { %v2318_v46 = vadd.f32 %v2316_v44, %v12502_v58 }
 0xbec   :  { %v2323_v47 = vsel %vm1312_vm5, %v2319_v45, -inf }
 0xbed   :  { %2324 = vmax.xlane.f32.xlu1 %v2323_v47  ;;  %v2320_v49 = vsel %vm1312_vm5, %v2318_v46, -inf }
 0xbee   :  { %2321 = vmax.xlane.f32.xlu0 %v2320_v49 }
 0xbef   :  { %v9025_v50 = vpop.f32.mrb[14].mxu1 }
 0xbf0   :  { %v2596_v52 = vpop.f32.mrb[15].mxu1  ;;  %v2606_v54 = vmul.f32 0.35355338, %v9025_v50  ;;  %v1935_v50 = vld [vmem:[%s13354_s26 + $0x8] sm:$0xff] }
 0xbf1   :  { %v2605_v9 = vmul.f32 0.35355338, %v2596_v52 }
 0xbf2   :  { %v2608_v56 = vadd.f32 %v2606_v54, %v12499_v55 }
 0xbf3   :  { %v2607_v10 = vadd.f32 %v2605_v9, %v12502_v58 }
 0xbf4   :  { %v2612_v57 = vsel %vm1312_vm5, %v2608_v56, -inf }
 0xbf5   :  { %v2609_v11 = vsel %vm1312_vm5, %v2607_v10, -inf }
 0xbfe   :  { %9964 = vrot.lane.b32.xlu1 %v12490_v53, %s11635_s28 }
 0xc02   :  { %2801 = vrot.lane.b32.xlu1 %v12476_v32, %s11635_s28 }
 0xc06   :  { %2803 = vrot.lane.b32.xlu1 %v12474_v30, %s11635_s28 }
 0xc2a   :  { %2613 = vmax.xlane.f32.xlu1 %v2612_v57 }
 0xc7a   :  { %v2325_v59 = vpop.xlane.xlu1 %2324 }
 0xc7b   :  { %v2327_v48 = vsub.f32 %v2319_v45, %v2325_v59  ;;  %v2322_v60 = vpop.xlane.xlu0 %2321 }
 0xc7c   :  { %v2326_v61 = vsub.f32 %v2318_v46, %v2322_v60 }
 0xc7d   :  { %v2330_v62 = vmul.f32 1.442695, %v2327_v48 }
 0xc7e   :  { %v2328_v63 = vmul.f32 1.442695, %v2326_v61  ;;  %v9965_v0 = vpop.permute.xlu1 %9964 }
 0xc7f   :  { %10021 = vpow2.f32 %v2330_v62  ;;  %v9967_v53 = vunpack.i.h.bf16 %v9965_v0  ;;  %v9966_v29 = vunpack.i.l.bf16 %v9965_v0 }
 0xc80   :  { %10023 = vpow2.f32 %v2328_v63 }
 0xc81   :  { %v9568_v32 = vpack.c.bf16 %v9967_v53, %v9966_v29 }
 0xc82   :  { %v2802_v1 = vpop.permute.xlu1 %2801 }
 0xc83   :  { %9570 = vmatprep.subr.msk.bf16.mxu1 %vm12486_vm10, %v9568_v32  ;;  %9042 = vmatprep.mubr.msk.f32.mxu1 %vm1947_vm9, %v2802_v1 }
 0xc84   :  { %9573 = vmatpush3.bf16.xpose.msk.msra.mxu1 %vm12486_vm10, %v9568_v32 }
 0xc86   :  { %v2804_v2 = vpop.permute.xlu1 %2803 }
 0xc89   :  { %v10022_v30 = vpop.eup %10021 }
 0xc8a   :  { %v2335_v3 = vsel %vm1312_vm5, %v10022_v30, 0.0  ;;  %v10024_v4 = vpop.eup %10023 }
 0xc8b   :  { %9043 = vmatmul.mubr.msk.f32.vlgmr.msra.gmra.mrb[16].mxu1 %vm1947_vm9, %v2804_v2  ;;  %2336 = vadd.xlane.f32.xlu0 %v2335_v3  ;;  %v2332_v5 = vsel %vm1312_vm5, %v10024_v4, 0.0 }
 0xc8f   :  { %2333 = vadd.xlane.f32.xlu0 %v2332_v5 }
 0xca5   :  { %9959 = vrot.lane.b32.xlu0 %v12480_v42, %s11633_s27 }
 0xcb7   :  { %v2614_v6 = vpop.xlane.xlu1 %2613 }
 0xcb8   :  { %v2616_v7 = vsub.f32 %v2608_v56, %v2614_v6  ;;  %v1936_v6 = vld [vmem:[%s13354_s26 + $0x10] sm:$0xff] }
 0xcba   :  { %v2619_v8 = vmul.f32 1.442695, %v2616_v7 }
 0xcbc   :  { %10025 = vpow2.f32 %v2619_v8 }
 0xcc4   :  { %2610 = vmax.xlane.f32.xlu0 %v2609_v11 }
 0xcc6   :  { %v12567_v13 = vpop.eup %10025 }
 0xcc7   :  { %v2624_v14 = vsel %vm1312_vm5, %v12567_v13, 0.0 }
 0xcc8   :  { %2625 = vadd.xlane.f32.xlu0 %v2624_v14 }
 0xd18   :  { %v2337_v15 = vpop.xlane.xlu0 %2336 }
 0xd19   :  { %10027 = vrcp.f32 %v2337_v15 }
 0xd1c   :  { %v2334_v33 = vpop.xlane.xlu0 %2333 }
 0xd1d   :  { %10029 = vrcp.f32 %v2334_v33 }
 0xd20   :  { %v9960_v37 = vpop.permute.xlu0 %9959 }
 0xd21   :  { %v9962_v17 = vunpack.i.h.bf16 %v9960_v37  ;;  %v9961_v18 = vunpack.i.l.bf16 %v9960_v37 }
 0xd23   :  { %v9554_v19 = vpack.c.bf16 %v9962_v17, %v9961_v18  ;;  %v10028_v20 = vpop.eup %10027  ;;  %v1937_v17 = vld [vmem:[%s13354_s26 + $0x18] sm:$0xff] }
 0xd24   :  { %v2341_v23 = vmul.f32 %v10028_v20, %v10022_v30 }
 0xd25   :  { %9555 = vmatprep.subr.bf16.mxu0 %v9554_v19 }
 0xd26   :  { %9557 = vmatpush3.bf16.msra.mxu0 %v9554_v19 }
 0xd27   :  { %v10030_v21 = vpop.eup %10029  ;;  %9014 = vmatprep.subr.mxu0 %v1935_v50 }
 0xd28   :  { %v2340_v22 = vmul.f32 %v10030_v21, %v10024_v4  ;;  %v8417_v21 = vld [vmem:[#allocation23] ss:$0 sm:$0xff] }
 0xd2a   :  { %9011 = vmatprep.mubr.msk.f32.mxu0 %vm1312_vm5, %v2340_v22  ;;  %v1946_v22 = vadd.f32 %v8417_v21, %v12455_v16 }
 0xd2b   :  { %9012 = vmatmul.mubr.msk.f32.vlgmr.msra.gmra.mrb[24].mxu0 %vm1312_vm5, %v2341_v23  ;;  %v1945_v23 = vadd.f32 %v8417_v21, %v12449_v12 }
 0xd2c   :  { %9015 = vmatpush3.msra.mxu0 %v1935_v50 }
 0xd51   :  { %v2611_v25 = vpop.xlane.xlu0 %2610 }
 0xd52   :  { %v2615_v26 = vsub.f32 %v2607_v10, %v2611_v25  ;;  %v2224_v25 = vadd.f32 %v12539_v35, %v1946_v22 }
 0xd54   :  { %v2617_v27 = vmul.f32 1.442695, %v2615_v26  ;;  %v2223_v26 = vadd.f32 %v12541_v36, %v1945_v23  ;;  %v3385_v23 = vld [vmem:[%s13356_s13] sm:$0xff] }
 0xd55   :  { %v2626_v52 = vpop.xlane.xlu0 %2625 }
 0xd56   :  { %10031 = vpow2.f32 %v2617_v27 }
 0xd5e   :  { %v9044_v31 = vpop.f32.mrb[16].mxu1 }
 0xd5f   :  { %v2883_v34 = vpop.f32.mrb[17].mxu1  ;;  %v2893_v39 = vmul.f32 0.35355338, %v9044_v31  ;;  %v8399_v31 = vld [vmem:[#allocation7] ss:$0 sm:$0xff] }
 0xd60   :  { %v10032_v38 = vpop.eup %10031  ;;  %v2892_v40 = vmul.f32 0.35355338, %v2883_v34 }
 0xd61   :  { %v2621_v44 = vsel %vm1312_vm5, %v10032_v38, 0.0  ;;  %v2895_v47 = vadd.f32 %v2893_v39, %v12499_v55 }
 0xd62   :  { %2622 = vadd.xlane.f32.xlu0 %v2621_v44  ;;  %v2894_v45 = vadd.f32 %v2892_v40, %v12502_v58  ;;  %v1514_v44 = vadd.f32 %v8399_v31, %v12482_v43  ;;  %v8406_v31 = vld [vmem:[#allocation13] ss:$0 sm:$0xff] }
 0xd63   :  { %v2899_v49 = vsel %vm1312_vm5, %v2895_v47, -inf }
 0xd64   :  { %v2896_v46 = vsel %vm1312_vm5, %v2894_v45, -inf  ;;  %v1520_v16 = vsel %vm1519_vm11, %v1514_v44, 0.0 }
 0xd65   :  { %2897 = vmax.xlane.f32.xlu1 %v2896_v46  ;;  %v8403_v46 = vld [vmem:[#allocation11] ss:$0 sm:$0xff] }
 0xd66   :  { %v1631_v12 = vadd.f32 %v8403_v46, %v12470_v24  ;;  %v3388_v46 = vld [vmem:[%s13356_s13 + $0x18] sm:$0xff] }
 0xd68   :  { %v1636_v35 = vsel %vm1519_vm11, %v1631_v12, 0.0 }
 0xd69   :  { %2900 = vmax.xlane.f32.xlu1 %v2899_v49 }
 0xd78   :  { %9969 = vrot.lane.b32.xlu0 %v12480_v42, %s11634_s0 }
 0xdef   :  { %v2623_v54 = vpop.xlane.xlu0 %2622 }
 0xdf0   :  { %10033 = vrcp.f32 %v2623_v54 }
 0xdf1   :  { %10035 = vrcp.f32 %v2626_v52 }
 0xdf2   :  { %v2898_v56 = vpop.xlane.xlu1 %2897 }
 0xdf3   :  { %v9970_v57 = vpop.permute.xlu0 %9969  ;;  %v2902_v48 = vsub.f32 %v2894_v45, %v2898_v56 }
 0xdf4   :  { %v9972_v58 = vunpack.i.h.bf16 %v9970_v57  ;;  %v9971_v59 = vunpack.i.l.bf16 %v9970_v57 }
 0xdf5   :  { %v2904_v62 = vmul.f32 1.442695, %v2902_v48 }
 0xdf6   :  { %v2901_v55 = vpop.xlane.xlu1 %2900  ;;  %v9564_v60 = vpack.c.bf16 %v9972_v58, %v9971_v59 }
 0xdf7   :  { %v2903_v61 = vsub.f32 %v2895_v47, %v2901_v55 }
 0xdf8   :  { %9565 = vmatprep.subr.bf16.mxu0 %v9564_v60 }
 0xdf9   :  { %v2906_v63 = vmul.f32 1.442695, %v2903_v61 }
 0xdfa   :  { %v10034_v0 = vpop.eup %10033 }
 0xdfb   :  { %10037 = vpow2.f32 %v2906_v63  ;;  %v10036_v32 = vpop.eup %10035  ;;  %v2629_v1 = vmul.f32 %v10034_v0, %v10032_v38 }
 0xdfc   :  { %10039 = vpow2.f32 %v2904_v62  ;;  %v2630_v30 = vmul.f32 %v10036_v32, %v12567_v13  ;;  %v3133_v32 = vld [vmem:[%s13355_s1 + $0x8] sm:$0xff] }
 0xdfe   :  { %v9013_v53 = vpop.f32.mrb[24].mxu0 }
 0xdff   :  { %v2422_v29 = vpop.f32.mrb[25].mxu0 }
 0xe00   :  { %9016 = vmatprep.mubr.msk.f32.mxu0 %vm1947_vm9, %v2422_v29  ;;  %v3132_v29 = vld [vmem:[%s13355_s1] sm:$0xff] }
 0xe01   :  { %9017 = vmatmul.mubr.msk.f32.vlgmr.msra.gmra.mrb[26].mxu0 %vm1947_vm9, %v9013_v53 }
 0xe02   :  { %9567 = vmatpush3.bf16.msra.mxu0 %v9564_v60  ;;  %9030 = vmatprep.mubr.msk.f32.mxu0 %vm1312_vm5, %v2629_v1  ;;  %v9578_v1 = vpack.c.bf16 %v3133_v32, %v3132_v29  ;;  %v3247_v29 = vld [vmem:[%s13358_s2 + $0x28] sm:$0xff] }
 0xe03   :  { %9033 = vmatprep.subr.mxu0 %v1936_v6 }
 0xe04   :  { %9579 = vmatprep.subr.bf16.mxu1 %v9578_v1 }
 0xe05   :  { %v10038_v2 = vpop.eup %10037  ;;  %9031 = vmatmul.mubr.msk.f32.vlgmr.msra.gmra.mrb[28].mxu0 %vm1312_vm5, %v2630_v30  ;;  %9581 = vmatpush3.bf16.msra.mxu1 %v9578_v1  ;;  %v3134_v30 = vld [vmem:[%s13355_s1 + $0x10] sm:$0xff] }
 0xe06   :  { %v2911_v3 = vsel %vm1312_vm5, %v10038_v2, 0.0  ;;  %v10040_v4 = vpop.eup %10039  ;;  %9034 = vmatpush3.msra.mxu0 %v1936_v6  ;;  %v3248_v1 = vld [vmem:[%s13358_s2 + $0x30] sm:$0xff] }
 0xe07   :  { %2912 = vadd.xlane.f32.xlu1 %v2911_v3  ;;  %v2908_v5 = vsel %vm1312_vm5, %v10040_v4, 0.0 }
 0xe0b   :  { %2909 = vadd.xlane.f32.xlu1 %v2908_v5 }
 0xe1c   :  { %9974 = vrot.lane.b32.xlu1 %v12480_v42, %s11635_s28 }
 0xe94   :  { %v2913_v7 = vpop.xlane.xlu1 %2912 }
 0xe98   :  { %v2910_v8 = vpop.xlane.xlu1 %2909 }
 0xe99   :  { %10041 = vrcp.f32 %v2910_v8 }
 0xe9a   :  { %10043 = vrcp.f32 %v2913_v7 }
 0xe9c   :  { %v9975_v9 = vpop.permute.xlu1 %9974 }
 0xe9d   :  { %v9977_v10 = vunpack.i.h.bf16 %v9975_v9  ;;  %v9976_v11 = vunpack.i.l.bf16 %v9975_v9 }
 0xe9f   :  { %v9574_v13 = vpack.c.bf16 %v9977_v10, %v9976_v11 }
 0xea1   :  { %9575 = vmatprep.subr.bf16.mxu0 %v9574_v13 }
 0xea3   :  { %v10042_v14 = vpop.eup %10041 }
 0xea4   :  { %v10044_v37 = vpop.eup %10043  ;;  %v2916_v42 = vmul.f32 %v10042_v14, %v10040_v4 }
 0xea5   :  { %v2917_v18 = vmul.f32 %v10044_v37, %v10038_v2  ;;  %v3135_v2 = vld [vmem:[%s13355_s1 + $0x18] sm:$0xff] }
 0xea6   :  { %v9582_v3 = vpack.c.bf16 %v3135_v2, %v3134_v30  ;;  %v3249_v30 = vld [vmem:[%s13358_s2 + $0x38] sm:$0xff] }
 0xea7   :  { %v9598_v2 = vpack.c.bf16 %v3249_v30, %v3248_v1 }
 0xea8   :  { %9583 = vmatprep.subr.bf16.mxu1 %v9582_v3 }
 0xea9   :  { %9585 = vmatpush3.bf16.msra.mxu1 %v9582_v3  ;;  %v8452_v3 = vld [vmem:[#allocation28] ss:$0 sm:$0xff] }
 0xeaa   :  { %9602 = vmatprep.subr.bf16.mxu1 %v11630_v28 }
 0xed8   :  { %v9032_v15 = vpop.f32.mrb[28].mxu0 }
 0xed9   :  { %v2709_v33 = vpop.f32.mrb[29].mxu0 }
 0xeda   :  { %9035 = vmatprep.mubr.msk.f32.mxu0 %vm1947_vm9, %v2709_v33 }
 0xedb   :  { %9036 = vmatmul.mubr.msk.f32.vlgmr.msra.gmra.mrb[26].mxu0 %vm1947_vm9, %v9032_v15 }
 0xedc   :  { %9577 = vmatpush3.bf16.msra.mxu0 %v9574_v13  ;;  %9049 = vmatprep.mubr.msk.f32.mxu0 %vm1312_vm5, %v2916_v42  ;;  %v8450_v42 = vld [vmem:[#allocation25] ss:$0 sm:$0xff] }
 0xedd   :  { %9052 = vmatprep.subr.mxu0 %v1937_v17 }
 0xedf   :  { %9050 = vmatmul.mubr.msk.f32.vlgmr.msra.gmra.mrb[30].mxu0 %vm1312_vm5, %v2917_v18  ;;  %v8451_v18 = vld [vmem:[#allocation26] ss:$0 sm:$0xff] }
 0xee0   :  { %9053 = vmatpush3.msra.mxu0 %v1937_v17 }
 0xfb2   :  { %v9051_v19 = vpop.f32.mrb[30].mxu0 }
 0xfb3   :  { %v2996_v20 = vpop.f32.mrb[31].mxu0 }
 0xfb4   :  { %9054 = vmatprep.mubr.msk.f32.mxu0 %vm1947_vm9, %v2996_v20 }
 0xfb5   :  { %9055 = vmatmul.mubr.msk.f32.vlgmr.msra.gmra.mrb[26].mxu0 %vm1947_vm9, %v9051_v19 }
0x1088   :  { %v9056_v27 = vpop.f32.mrb[26].mxu0 }
0x1089   :  { %v9762_v34 = vadd.f32 %v9056_v27, %v2224_v25  ;;  %v3077_v38 = vpop.f32.mrb[27].mxu0  ;;  %v3386_v25 = vld [vmem:[%s13356_s13 + $0x8] sm:$0xff] }
0x108a   :  { %v9764_v39 = vadd.f32 %v3077_v38, %v2223_v26 }
0x108b   :  { %v3093_v40 = vsel %vm1389_vm0, %v9762_v34, 0.0 }
0x108c   :  { %3094 = vadd.xlane.f32.xlu1 %v3093_v40  ;;  %v3090_v45 = vsel %vm1389_vm0, %v9764_v39, 0.0  ;;  %v8401_v40 = vld [vmem:[#allocation8] ss:$0 sm:$0xff] }
0x108d   :  { %3091 = vadd.xlane.f32.xlu0 %v3090_v45  ;;  %v3387_v45 = vld [vmem:[%s13356_s13 + $0x10] sm:$0xff] }
0x1091   :  { %1521 = vadd.xlane.f32.xlu0 %v1520_v16  ;;  %v8407_v16 = vld [vmem:[#allocation14] ss:$0 sm:$0xff] }
0x1095   :  { %1637 = vadd.xlane.f32.xlu0 %v1636_v35 }
0x1119   :  { %v3095_v36 = vpop.xlane.xlu1 %3094 }
0x111a   :  { %v3097_v47 = vmul.f32 0.03125, %v3095_v36  ;;  %v3092_v49 = vpop.xlane.xlu0 %3091  ;;  %v8402_v36 = vld [vmem:[#allocation10] ss:$0 sm:$0xff] }
0x111b   :  { %v3096_v50 = vmul.f32 0.03125, %v3092_v49  ;;  %v9606_v49 = vpack.c.bf16 %v3388_v46, %v3387_v45  ;;  %v3551_v45 = vld [vmem:[%s13359_s30 + $0x8] sm:$0xff] }
0x111c   :  { %v3099_v52 = vsub.f32 %v9762_v34, %v3097_v47  ;;  %v9603_v34 = vpack.c.bf16 %v3386_v25, %v3385_v23 }
0x111d   :  { %v3098_v43 = vsub.f32 %v9764_v39, %v3096_v50 }
0x111e   :  { %v1522_v54 = vpop.xlane.xlu0 %1521  ;;  %v3101_v59 = vmul.f32 %v3099_v52, %v3099_v52 }
0x111f   :  { %v1523_v56 = vmul.f32 0.03125, %v1522_v54  ;;  %v3100_v57 = vmul.f32 %v3098_v43, %v3098_v43  ;;  %v3470_v54 = vld [vmem:[%s13357_s12 + $0x8] sm:$0xff] }
0x1120   :  { %v3105_v61 = vsel %vm1389_vm0, %v3101_v59, 0.0  ;;  %v3472_v59 = vld [vmem:[%s13357_s12 + $0x18] sm:$0xff] }
0x1121   :  { %v12608_v58 = vsub.f32 %v1514_v44, %v1523_v56  ;;  %v3102_v24 = vsel %vm1389_vm0, %v3100_v57, 0.0 }
0x1122   :  { %3103 = vadd.xlane.f32.xlu0 %v3102_v24  ;;  %v1638_v48 = vpop.xlane.xlu0 %1637  ;;  %v3471_v24 = vld [vmem:[%s13357_s12 + $0x10] sm:$0xff] }
0x1123   :  { %v1639_v55 = vmul.f32 0.03125, %v1638_v48  ;;  %v1525_v62 = vmul.f32 %v12608_v58, %v12608_v58  ;;  %v9612_v48 = vpack.c.bf16 %v3472_v59, %v3471_v24 }
0x1125   :  { %v1640_v60 = vsub.f32 %v1631_v12, %v1639_v55  ;;  %v1526_v0 = vsel %vm1519_vm11, %v1525_v62, 0.0  ;;  %v3242_v55 = vld [vmem:[%s13358_s2] sm:$0xff]  ;;  %v3244_v62 = vld [vmem:[%s13358_s2 + $0x10] sm:$0xff] }
0x1126   :  { %3106 = vadd.xlane.f32.xlu0 %v3105_v61 }
0x1127   :  { %v1641_v63 = vmul.f32 %v1640_v60, %v1640_v60 }
0x1129   :  { %v1642_v53 = vsel %vm1519_vm11, %v1641_v63, 0.0  ;;  %v3245_v63 = vld [vmem:[%s13358_s2 + $0x18] sm:$0xff] }
0x112a   :  { %1527 = vadd.xlane.f32.xlu0 %v1526_v0  ;;  %1643 = vadd.xlane.f32.xlu1 %v1642_v53  ;;  %v9590_v0 = vpack.c.bf16 %v3245_v63, %v3244_v62  ;;  %v3246_v53 = vld [vmem:[%s13358_s2 + $0x20] sm:$0xff] }
0x112b   :  { %v9594_v32 = vpack.c.bf16 %v3247_v29, %v3246_v53 }
0x11af   :  { %v3104_v4 = vpop.xlane.xlu0 %3103 }
0x11b0   :  { %v3108_v5 = vmul.f32 0.03125, %v3104_v4 }
0x11b2   :  { %v3110_v6 = vadd.f32 1e-12, %v3108_v5 }
0x11b3   :  { %v3107_v7 = vpop.xlane.xlu0 %3106 }
0x11b4   :  { %10045 = vrsqrt.f32 %v3110_v6  ;;  %v3109_v8 = vmul.f32 0.03125, %v3107_v7 }
0x11b6   :  { %v3111_v9 = vadd.f32 1e-12, %v3109_v8 }
0x11b7   :  { %v1644_v10 = vpop.xlane.xlu1 %1643  ;;  %v1528_v11 = vpop.xlane.xlu0 %1527 }
0x11b8   :  { %10047 = vrsqrt.f32 %v3111_v9  ;;  %v1645_v13 = vmul.f32 0.03125, %v1644_v10  ;;  %v1529_v14 = vmul.f32 0.03125, %v1528_v11 }
0x11ba   :  { %v1646_v15 = vadd.f32 1e-12, %v1645_v13  ;;  %v1530_v33 = vadd.f32 1e-12, %v1529_v14  ;;  %v8460_v14 = vld [vmem:[#allocation34] ss:$0 sm:$0xff] }
0x11bc   :  { %10049 = vrsqrt.f32 %v1646_v15 }
0x11bd   :  { %10051 = vrsqrt.f32 %v1530_v33 }
0x11be   :  { %v10046_v37 = vpop.eup %10045 }
0x11bf   :  { %v3114_v17 = vmul.f32 %v10046_v37, %v3098_v43  ;;  %v3469_v43 = vld [vmem:[%s13357_s12] sm:$0xff] }
0x11c0   :  { %v9609_v57 = vpack.c.bf16 %v3470_v54, %v3469_v43 }
0x11c1   :  { %v3122_v19 = vmul.f32 %v8450_v42, %v3114_v17 }
0x11c2   :  { %v10048_v20 = vpop.eup %10047 }
0x11c3   :  { %v3115_v21 = vmul.f32 %v10048_v20, %v3099_v52  ;;  %v12621_v22 = vadd.f32 %v8451_v18, %v3122_v19 }
0x11c5   :  { %v3123_v26 = vmul.f32 %v8450_v42, %v3115_v21  ;;  %9065 = vmatprep.mubr.msk.f32.mxu1 %vm1389_vm0, %v12621_v22  ;;  %v8462_v21 = vld [vmem:[#allocation35] ss:$0 sm:$0xff] }
0x11c6   :  { %v10050_v27 = vpop.eup %10049 }
0x11c7   :  { %v10052_v38 = vpop.eup %10051  ;;  %v1648_v39 = vmul.f32 %v10050_v27, %v1640_v60  ;;  %v12627_v44 = vadd.f32 %v8451_v18, %v3123_v26  ;;  %v3243_v60 = vld [vmem:[%s13358_s2 + $0x8] sm:$0xff] }
0x11c8   :  { %v1532_v12 = vmul.f32 %v10052_v38, %v12608_v58  ;;  %v9586_v61 = vpack.c.bf16 %v3243_v60, %v3242_v55 }
0x11c9   :  { %v1655_v35 = vmul.f32 %v8406_v31, %v1648_v39  ;;  %9066 = vmatmul.mubr.msk.f32.vlgmr.msra.gmra.mrb[18].mxu1 %vm1389_vm0, %v12627_v44 }
0x11ca   :  { %v1539_v47 = vmul.f32 %v8401_v40, %v1532_v12  ;;  %9604 = vmatpush3.bf16.msra.mxu1 %v9603_v34  ;;  %9095 = vmatprep.mubr.msk.f32.mxu1 %vm11631_vm6, %v11632_v41  ;;  %v3550_v40 = vld [vmem:[%s13359_s30] sm:$0xff] }
0x11cb   :  { %9605 = vmatprep.subr.bf16.mxu1 %v11630_v28  ;;  %v1662_v50 = vadd.f32 %v8407_v16, %v1655_v35  ;;  %9587 = vmatprep.subr.bf16.mxu0 %v9586_v61  ;;  %v9615_v16 = vpack.c.bf16 %v3551_v45, %v3550_v40 }
0x11cc   :  { %v1546_v52 = vadd.f32 %v8402_v36, %v1539_v47  ;;  %9589 = vmatpush3.bf16.msra.mxu0 %v9586_v61  ;;  %v3552_v36 = vld [vmem:[%s13359_s30 + $0x10] sm:$0xff]  ;;  %v3553_v47 = vld [vmem:[%s13359_s30 + $0x18] sm:$0xff] }
0x11cd   :  { %9591 = vmatprep.subr.bf16.mxu0 %v9590_v0 }
0x11ce   :  { %9607 = vmatpush3.bf16.msra.mxu1 %v9606_v49  ;;  %v1663_v56 = vadd.f32 %v1662_v50, %v1546_v52  ;;  %v9618_v49 = vpack.c.bf16 %v3553_v47, %v3552_v36  ;;  %v12693_v52 = vld [vmem:[%s13360_s21] sm:$0xf] }
0x11cf   :  { %9608 = vmatprep.subr.bf16.mxu1 %v11630_v28 }
0x11d0   :  { %v12640_v58 = vmul.f32 0.5, %v1663_v56  ;;  %9593 = vmatpush3.bf16.msra.mxu0 %v9590_v0 }
0x11d1   :  { %9595 = vmatprep.subr.bf16.mxu0 %v9594_v32 }
0x11d2   :  { %9096 = vmatmul.mubr.msk.f32.vlgmr.msra.gmra.mrb[20].mxu1 %vm1389_vm0, %v12640_v58 }
0x11d3   :  { %9610 = vmatpush3.bf16.msra.mxu1 %v9609_v57  ;;  %9106 = vmatprep.mubr.msk.f32.mxu1 %vm11631_vm6, %v11632_v41 }
0x11d4   :  { %9611 = vmatprep.subr.bf16.mxu1 %v11630_v28  ;;  %9597 = vmatpush3.bf16.msra.mxu0 %v9594_v32 }
0x11d5   :  { %9599 = vmatprep.subr.bf16.mxu0 %v9598_v2 }
0x11d7   :  { %9613 = vmatpush3.bf16.msra.mxu1 %v9612_v48  ;;  %v8464_v48 = vld [vmem:[#allocation37] ss:$0 sm:$0xff] }
0x11d8   :  { %9120 = vmatprep.subr.mxu1 %v11632_v41  ;;  %9601 = vmatpush3.bf16.msra.mxu0 %v9598_v2 }
0x11d9   :  { %9614 = vmatprep.subr.bf16.mxu0 %v11630_v28 }
0x11da   :  { %9107 = vmatmul.mubr.msk.f32.vlgmr.msra.gmra.mrb[22].mxu1 %vm1389_vm0, %v12640_v58 }
0x11db   :  { %9122 = vmatprep.mubr.msk.f32.mxu1 %vm11631_vm6, %v11632_v41 }
0x129c   :  { %v9067_v4 = vpop.f32.mrb[18].mxu1 }
0x129d   :  { %v3221_v5 = vadd.f32 %v9067_v4, %v8452_v3  ;;  %v3215_v6 = vpop.f32.mrb[19].mxu1 }
0x129e   :  { %v3216_v7 = vadd.f32 %v8452_v3, %v3215_v6  ;;  %v3631_v6 = vld [vmem:[%s13361_s7] sm:$0xff] }
0x129f   :  { %v3225_v8 = vmul.f32 %v3221_v5, %v3221_v5 }
0x12a0   :  { %v3224_v9 = vmul.f32 %v3216_v7, %v3216_v7 }
0x12a1   :  { %v3227_v10 = vmul.f32 %v3225_v8, %v3221_v5 }
0x12a2   :  { %v3226_v11 = vmul.f32 %v3224_v9, %v3216_v7 }
0x12a3   :  { %v3229_v13 = vmul.f32 0.044715, %v3227_v10 }
0x12a4   :  { %v3228_v15 = vmul.f32 0.044715, %v3226_v11 }
0x12a5   :  { %v3231_v33 = vadd.f32 %v3229_v13, %v3221_v5  ;;  %v3465_v37 = vpop.f32.mrb[20].mxu1 }
0x12a6   :  { %v3230_v42 = vadd.f32 %v3228_v15, %v3216_v7  ;;  %v12663_v17 = vadd.f32 %v8460_v14, %v3465_v37  ;;  %v9097_v18 = vpop.f32.mrb[21].mxu1 }
0x12a7   :  { %v3233_v19 = vmul.f32 0.7978846, %v3231_v33 }
0x12a8   :  { %v3232_v20 = vmul.f32 0.7978846, %v3230_v42  ;;  %3883 = vrot.lane.b32.xlu1 %v12663_v17, %s11633_s27 }
0x12a9   :  { %10053 = vtanh.f32 %v3233_v19 }
0x12aa   :  { %10055 = vtanh.f32 %v3232_v20 }
0x12ad   :  { %v3546_v23 = vpop.f32.mrb[22].mxu1 }
0x12ae   :  { %v12667_v25 = vadd.f32 %v8462_v21, %v3546_v23  ;;  %v9108_v26 = vpop.f32.mrb[23].mxu1 }
0x12b0   :  { %4127 = vrot.lane.b32.xlu1 %v12667_v25, %s11634_s0  ;;  %9121 = vmatpush3.xpose.msk.msra.mxu1 %vm1947_vm9, %v12667_v25 }
0x12b1   :  { %9130 = vmatprep.subr.mxu1 %v11632_v41 }
0x12b3   :  { %v10054_v27 = vpop.eup %10053  ;;  %9123 = vmatmul.mubr.msk.f32.vlgmr.msra.gmra.mrb[24].mxu1 %vm1947_vm9, %v12663_v17 }
0x12b4   :  { %v10056_v31 = vpop.eup %10055  ;;  %v3237_v34 = vadd.f32 1.0, %v10054_v27  ;;  %9132 = vmatprep.mubr.msk.f32.mxu1 %vm11631_vm6, %v11632_v41  ;;  %9131 = vmatpush3.msra.mxu1 %v3631_v6  ;;  %v8455_v6 = vld [vmem:[#allocation29] ss:$0 sm:$0xff] }
0x12b5   :  { %v3236_v38 = vadd.f32 1.0, %v10056_v31  ;;  %9140 = vmatprep.subr.mxu1 %v11632_v41 }
0x12b6   :  { %v3239_v39 = vmul.f32 0.5, %v3237_v34 }
0x12b7   :  { %v3238_v46 = vmul.f32 0.5, %v3236_v38 }
0x12b8   :  { %v3241_v35 = vmul.f32 %v3239_v39, %v3221_v5 }
0x12b9   :  { %v3240_v12 = vmul.f32 %v3238_v46, %v3216_v7 }
0x12bb   :  { %9084 = vmatprep.mubr.msk.f32.mxu0 %vm3257_vm12, %v3240_v12 }
0x12bc   :  { %9085 = vmatmul.mubr.msk.f32.vlgmr.msra.gmra.mrb[32].mxu0 %vm3257_vm12, %v3241_v35 }
0x12bd   :  { %9616 = vmatpush3.bf16.msra.mxu0 %v9615_v16  ;;  %9117 = vmatprep.mubr.msk.f32.mxu0 %vm11631_vm6, %v11632_v41 }
0x12be   :  { %9617 = vmatprep.subr.bf16.mxu0 %v11630_v28 }
0x12c1   :  { %9619 = vmatpush3.bf16.msra.mxu0 %v9618_v49 }
0x12c2   :  { %9125 = vmatprep.subr.mxu0 %v11632_v41 }
0x12c4   :  { %9118 = vmatmul.mubr.msk.f32.vlgmr.msra.gmra.mrb[34].mxu0 %vm1389_vm0, %v12640_v58 }
0x12c5   :  { %9127 = vmatprep.mubr.msk.f32.mxu0 %vm11631_vm6, %v11632_v41 }
0x131a   :  { %v3884_v32 = vpop.permute.xlu1 %3883 }
0x1322   :  { %v4128_v1 = vpop.permute.xlu1 %4127 }
0x1386   :  { %v3715_v50 = vpop.f32.mrb[24].mxu1 }
0x1387   :  { %v3719_v43 = vmul.f32 0.35355338, %v3715_v50  ;;  %v9124_v54 = vpop.f32.mrb[25].mxu1 }
0x1389   :  { %v3720_v56 = vadd.f32 %v3719_v43, %v12693_v52 }
0x138b   :  { %v3722_v57 = vsel %vm3721_vm13, %v3720_v56, -inf }
0x138c   :  { %3723 = vmax.xlane.f32.xlu0 %v3722_v57 }
0x138f   :  { %v12697_v24 = vpop.f32.mrb[32].mxu0 }
0x1390   :  { %v12699_v59 = vpop.f32.mrb[33].mxu0 }
0x1397   :  { %v3627_v55 = vpop.f32.mrb[34].mxu0 }
0x1398   :  { %v12701_v60 = vadd.f32 %v8464_v48, %v3627_v55  ;;  %v9119_v61 = vpop.f32.mrb[35].mxu0  ;;  %v3632_v55 = vld [vmem:[%s13361_s7 + $0x8] sm:$0xff] }
0x139a   :  { %9126 = vmatpush3.msk.msra.mxu0 %vm1560_vm7, %v12701_v60 }
0x139b   :  { %9135 = vmatprep.subr.mxu0 %v11632_v41 }
0x13a2   :  { %3885 = vrot.lane.b32.xlu0 %v12667_v25, %s11633_s27 }
0x1419   :  { %v3724_v62 = vpop.xlane.xlu0 %3723 }
0x141a   :  { %v3725_v63 = vsub.f32 %v3720_v56, %v3724_v62 }
0x141c   :  { %v3726_v0 = vmul.f32 1.442695, %v3725_v63 }
0x141d   :  { %v3886_v4 = vpop.permute.xlu0 %3885 }
0x141e   :  { %10057 = vpow2.f32 %v3726_v0 }
0x1428   :  { %v10058_v53 = vpop.eup %10057 }
0x1429   :  { %v3728_v29 = vsel %vm3721_vm13, %v10058_v53, 0.0 }
0x142a   :  { %3729 = vadd.xlane.f32.xlu1 %v3728_v29  ;;  %v3633_v29 = vld [vmem:[%s13361_s7 + $0x10] sm:$0xff] }
0x143b   :  { %4125 = vrot.lane.b32.xlu1 %v12663_v17, %s11634_s0 }
0x14b7   :  { %v3730_v30 = vpop.xlane.xlu1 %3729 }
0x14b8   :  { %10059 = vrcp.f32 %v3730_v30 }
0x14bb   :  { %v4126_v5 = vpop.permute.xlu1 %4125 }
0x14c2   :  { %v10060_v2 = vpop.eup %10059 }
0x14c3   :  { %v3732_v3 = vmul.f32 %v10060_v2, %v10058_v53 }
0x14c5   :  { %9128 = vmatmul.mubr.msk.f32.vlgmr.msra.gmra.mrb[36].mxu0 %vm1556_vm8, %v3732_v3  ;;  %v3634_v3 = vld [vmem:[%s13361_s7 + $0x18] sm:$0xff] }
0x14c6   :  { %9136 = vmatpush3.xpose.msk.msra.mxu0 %vm1947_vm9, %v3886_v4  ;;  %9137 = vmatprep.mubr.msk.f32.mxu0 %vm11631_vm6, %v11632_v41 }
0x14c7   :  { %9150 = vmatprep.subr.mxu0 %v11632_v41 }
0x14c9   :  { %9138 = vmatmul.mubr.msk.f32.vlgmr.msra.gmra.mrb[38].mxu0 %vm1947_vm9, %v3884_v32 }
0x14ca   :  { %9151 = vmatpush3.xpose.msk.msra.mxu0 %vm1947_vm9, %v4128_v1  ;;  %9152 = vmatprep.mubr.msk.f32.mxu0 %vm11631_vm6, %v11632_v41 }
0x14cb   :  { %9155 = vmatprep.subr.mxu0 %v11632_v41 }
0x14cd   :  { %9153 = vmatmul.mubr.msk.f32.vlgmr.msra.gmra.mrb[40].mxu0 %vm1947_vm9, %v4126_v5 }
0x14ce   :  { %9157 = vmatprep.mubr.msk.f32.mxu0 %vm11631_vm6, %v11632_v41 }
0x1598   :  { %v3805_v7 = vpop.f32.mrb[36].mxu0 }
0x1599   :  { %v9129_v8 = vpop.f32.mrb[37].mxu0  ;;  %9133 = vmatmul.mubr.msk.f32.vlgmr.msra.gmra.mrb[26].mxu1 %vm1947_vm9, %v3805_v7  ;;  %v8466_v7 = vld [vmem:[#allocation38] ss:$0 sm:$0xff] }
0x159a   :  { %9142 = vmatprep.mubr.msk.f32.mxu1 %vm11631_vm6, %v11632_v41  ;;  %v3331_v8 = vadd.f32 %v8455_v6, %v12699_v59 }
0x159c   :  { %v3957_v9 = vpop.f32.mrb[38].mxu0 }
0x159d   :  { %v9139_v10 = vpop.f32.mrb[39].mxu0  ;;  %v3961_v23 = vmul.f32 0.35355338, %v3957_v9  ;;  %v3642_v9 = vadd.f32 %v8466_v7, %v12640_v58 }
0x159f   :  { %v3962_v26 = vadd.f32 %v3961_v23, %v12693_v52 }
0x15a0   :  { %v4199_v11 = vpop.f32.mrb[40].mxu0 }
0x15a1   :  { %v4203_v13 = vmul.f32 0.35355338, %v4199_v11  ;;  %v9154_v14 = vpop.f32.mrb[41].mxu0 }
0x15a2   :  { %v3336_v14 = vadd.f32 %v12697_v24, %v8455_v6 }
0x15a3   :  { %v4204_v15 = vadd.f32 %v4203_v13, %v12693_v52 }
0x15a5   :  { %v4205_v33 = vsel %vm3721_vm13, %v4204_v15, -inf }
0x15a6   :  { %4206 = vmax.xlane.f32.xlu0 %v4205_v33  ;;  %v12788_v33 = vadd.f32 %v3331_v8, %v12621_v22 }
0x15bc   :  { %4216 = vrot.lane.b32.xlu0 %v12701_v60, %s11634_s0 }
0x15c0   :  { %4367 = vrot.lane.b32.xlu0 %v12663_v17, %s11635_s28  ;;  %v3963_v17 = vsel %vm3721_vm13, %v3962_v26, -inf }
0x1633   :  { %v4207_v37 = vpop.xlane.xlu0 %4206 }
0x1634   :  { %v4208_v42 = vsub.f32 %v4204_v15, %v4207_v37  ;;  %v3343_v37 = vsel %vm1389_vm0, %v12788_v33, 0.0 }
0x1636   :  { %v4209_v18 = vmul.f32 1.442695, %v4208_v42  ;;  %v3340_v42 = vadd.f32 %v3336_v14, %v12627_v44 }
0x1637   :  { %v4217_v19 = vpop.permute.xlu0 %4216 }
0x1638   :  { %10061 = vpow2.f32 %v4209_v18  ;;  %9156 = vmatpush3.msk.msra.mxu0 %vm1560_vm7, %v4217_v19  ;;  %v3346_v58 = vsel %vm1389_vm0, %v3340_v42, 0.0 }
0x1639   :  { %9165 = vmatprep.subr.mxu0 %v11632_v41 }
0x1642   :  { %v10062_v20 = vpop.eup %10061 }
0x1643   :  { %v4211_v21 = vsel %vm3721_vm13, %v10062_v20, 0.0 }
0x1644   :  { %4212 = vadd.xlane.f32.xlu1 %v4211_v21 }
0x1655   :  { %4369 = vrot.lane.b32.xlu1 %v12667_v25, %s11635_s28  ;;  %v4368_v25 = vpop.permute.xlu0 %4367 }
0x1679   :  { %3964 = vmax.xlane.f32.xlu1 %v3963_v17 }
0x16d1   :  { %v4213_v27 = vpop.xlane.xlu1 %4212 }
0x16d2   :  { %10063 = vrcp.f32 %v4213_v27  ;;  %v4638_v27 = vld [vmem:[%s13362_s10] sm:$0xff] }
0x16d5   :  { %v4370_v38 = vpop.permute.xlu1 %4369 }
0x16dc   :  { %v10064_v31 = vpop.eup %10063 }
0x16dd   :  { %v4215_v34 = vmul.f32 %v10064_v31, %v10062_v20  ;;  %v4639_v31 = vld [vmem:[%s13362_s10 + $0x8] sm:$0xff] }
0x16df   :  { %9158 = vmatmul.mubr.msk.f32.vlgmr.msra.gmra.mrb[42].mxu0 %vm1556_vm8, %v4215_v34  ;;  %v9621_v34 = vpack.c.bf16 %v4639_v31, %v4638_v27 }
0x16e0   :  { %9166 = vmatpush3.xpose.msk.msra.mxu0 %vm1947_vm9, %v4370_v38  ;;  %9167 = vmatprep.mubr.msk.f32.mxu0 %vm11631_vm6, %v11632_v41  ;;  %v4640_v38 = vld [vmem:[%s13362_s10 + $0x10] sm:$0xff] }
0x16e1   :  { %9620 = vmatprep.subr.bf16.mxu0 %v11630_v28 }
0x16e3   :  { %9168 = vmatmul.mubr.msk.f32.vlgmr.msra.gmra.mrb[44].mxu0 %vm1947_vm9, %v4368_v25  ;;  %v4641_v25 = vld [vmem:[%s13362_s10 + $0x18] sm:$0xff] }
0x16e4   :  { %9188 = vmatprep.mubr.msk.f32.mxu0 %vm11631_vm6, %v11632_v41  ;;  %9622 = vmatpush3.bf16.msra.mxu0 %v9621_v34 }
0x16e5   :  { %9623 = vmatprep.subr.bf16.mxu0 %v11630_v28 }
0x1706   :  { %v3965_v39 = vpop.xlane.xlu1 %3964 }
0x1707   :  { %v3966_v40 = vsub.f32 %v3962_v26, %v3965_v39  ;;  %v9624_v39 = vpack.c.bf16 %v4641_v25, %v4640_v38 }
0x1709   :  { %v3967_v45 = vmul.f32 1.442695, %v3966_v40  ;;  %9625 = vmatpush3.bf16.msra.mxu0 %v9624_v39 }
0x170b   :  { %10065 = vpow2.f32 %v3967_v45 }
0x1715   :  { %v10066_v46 = vpop.eup %10065 }
0x1716   :  { %v3969_v12 = vsel %vm3721_vm13, %v10066_v46, 0.0 }
0x1717   :  { %3970 = vadd.xlane.f32.xlu0 %v3969_v12 }
0x172d   :  { %3974 = vrot.lane.b32.xlu0 %v12701_v60, %s11633_s27 }
0x17a4   :  { %v3971_v16 = vpop.xlane.xlu0 %3970 }
0x17a5   :  { %10067 = vrcp.f32 %v3971_v16  ;;  %v8487_v16 = vld [vmem:[#allocation40] ss:$0 sm:$0xff] }
0x17a8   :  { %v3975_v35 = vpop.permute.xlu0 %3974 }
0x17a9   :  { %9141 = vmatpush3.msk.msra.mxu1 %vm1560_vm7, %v3975_v35 }
0x17aa   :  { %9145 = vmatprep.subr.mxu1 %v11632_v41 }
0x17af   :  { %v10068_v36 = vpop.eup %10067 }
0x17b0   :  { %v3973_v47 = vmul.f32 %v10068_v36, %v10066_v46  ;;  %v8488_v36 = vld [vmem:[#allocation41] ss:$0 sm:$0xff] }
0x17b2   :  { %9143 = vmatmul.mubr.msk.f32.vlgmr.msra.gmra.mrb[28].mxu1 %vm1556_vm8, %v3973_v47  ;;  %v4289_v49 = vpop.f32.mrb[42].mxu0 }
0x17b3   :  { %v9159_v50 = vpop.f32.mrb[43].mxu0  ;;  %9147 = vmatprep.mubr.msk.f32.mxu1 %vm11631_vm6, %v11632_v41  ;;  %9146 = vmatpush3.msra.mxu1 %v3632_v55  ;;  %v4735_v55 = vld [vmem:[%s13363_s4 + $0x20] sm:$0xff] }
0x17b4   :  { %9160 = vmatprep.subr.mxu1 %v11632_v41  ;;  %v4731_v50 = vld [vmem:[%s13363_s4] sm:$0xff] }
0x17b6   :  { %v4441_v43 = vpop.f32.mrb[44].mxu0 }
0x17b7   :  { %v4445_v54 = vmul.f32 0.35355338, %v4441_v43  ;;  %v9169_v56 = vpop.f32.mrb[45].mxu0  ;;  %v4732_v43 = vld [vmem:[%s13363_s4 + $0x8] sm:$0xff] }
0x17b8   :  { %v4733_v56 = vld [vmem:[%s13363_s4 + $0x10] sm:$0xff] }
0x17b9   :  { %v4446_v57 = vadd.f32 %v4445_v54, %v12693_v52  ;;  %v9627_v54 = vpack.c.bf16 %v4732_v43, %v4731_v50 }
0x17bb   :  { %v4447_v48 = vsel %vm3721_vm13, %v4446_v57, -inf }
0x17bc   :  { %4448 = vmax.xlane.f32.xlu1 %v4447_v48 }
0x1849   :  { %v4449_v61 = vpop.xlane.xlu1 %4448 }
0x184a   :  { %v4450_v62 = vsub.f32 %v4446_v57, %v4449_v61  ;;  %v4734_v57 = vld [vmem:[%s13363_s4 + $0x18] sm:$0xff]  ;;  %v4736_v61 = vld [vmem:[%s13363_s4 + $0x28] sm:$0xff] }
0x184b   :  { %v9630_v48 = vpack.c.bf16 %v4734_v57, %v4733_v56  ;;  %v5025_v56 = vld [vmem:[%s13366_s3] sm:$0xff] }
0x184c   :  { %v4451_v63 = vmul.f32 1.442695, %v4450_v62  ;;  %v9633_v62 = vpack.c.bf16 %v4736_v61, %v4735_v55  ;;  %v4943_v61 = vld [vmem:[%s13365_s11 + $0x10] sm:$0xff] }
0x184e   :  { %10069 = vpow2.f32 %v4451_v63  ;;  %v4737_v63 = vld [vmem:[%s13363_s4 + $0x30] sm:$0xff] }
0x1858   :  { %v10070_v0 = vpop.eup %10069 }
0x1859   :  { %v4453_v53 = vsel %vm3721_vm13, %v10070_v0, 0.0 }
0x185a   :  { %4454 = vadd.xlane.f32.xlu1 %v4453_v53 }
0x186b   :  { %4458 = vrot.lane.b32.xlu1 %v12701_v60, %s11635_s28 }
0x1885   :  { %v4047_v52 = vpop.f32.mrb[28].mxu1 }
0x1886   :  { %v9144_v32 = vpop.f32.mrb[29].mxu1  ;;  %9148 = vmatmul.mubr.msk.f32.vlgmr.msra.gmra.mrb[26].mxu1 %vm1947_vm9, %v4047_v52 }
0x1887   :  { %9161 = vmatpush3.msra.mxu1 %v3633_v29  ;;  %9162 = vmatprep.mubr.msk.f32.mxu1 %vm11631_vm6, %v11632_v41  ;;  %v8489_v29 = vld [vmem:[#allocation43] ss:$0 sm:$0xff] }
0x1888   :  { %9170 = vmatprep.subr.mxu1 %v11632_v41 }
0x188e   :  { %9163 = vmatmul.mubr.msk.f32.vlgmr.msra.gmra.mrb[26].mxu1 %vm1947_vm9, %v4289_v49 }
0x188f   :  { %9172 = vmatprep.mubr.msk.f32.mxu1 %vm11631_vm6, %v11632_v41 }
0x18e7   :  { %v4455_v1 = vpop.xlane.xlu1 %4454 }
0x18e8   :  { %10071 = vrcp.f32 %v4455_v1 }
0x18eb   :  { %v4459_v60 = vpop.permute.xlu1 %4458 }
0x18ec   :  { %9171 = vmatpush3.msk.msra.mxu1 %vm1560_vm7, %v4459_v60 }
0x18ed   :  { %9175 = vmatprep.subr.mxu1 %v11632_v41 }
0x18f2   :  { %v10072_v30 = vpop.eup %10071 }
0x18f3   :  { %v4457_v2 = vmul.f32 %v10072_v30, %v10070_v0  ;;  %v4738_v0 = vld [vmem:[%s13363_s4 + $0x38] sm:$0xff] }
0x18f4   :  { %v9636_v53 = vpack.c.bf16 %v4738_v0, %v4737_v63  ;;  %v5027_v63 = vld [vmem:[%s13366_s3 + $0x10] sm:$0xff] }
0x18f5   :  { %9173 = vmatmul.mubr.msk.f32.vlgmr.msra.gmra.mrb[30].mxu1 %vm1556_vm8, %v4457_v2 }
0x18f6   :  { %9176 = vmatpush3.msra.mxu1 %v3634_v3  ;;  %9177 = vmatprep.mubr.msk.f32.mxu1 %vm11631_vm6, %v11632_v41 }
0x18f7   :  { %9626 = vmatprep.subr.bf16.mxu1 %v11630_v28 }
0x19c8   :  { %v4531_v4 = vpop.f32.mrb[30].mxu1 }
0x19c9   :  { %v9174_v5 = vpop.f32.mrb[31].mxu1  ;;  %9178 = vmatmul.mubr.msk.f32.vlgmr.msra.gmra.mrb[26].mxu1 %vm1947_vm9, %v4531_v4 }
0x19ca   :  { %9207 = vmatprep.mubr.msk.f32.mxu1 %vm11631_vm6, %v11632_v41  ;;  %9628 = vmatpush3.bf16.msra.mxu1 %v9627_v54  ;;  %v4942_v54 = vld [vmem:[%s13365_s11 + $0x8] sm:$0xff] }
0x19cb   :  { %9629 = vmatprep.subr.bf16.mxu1 %v11630_v28 }
0x19ce   :  { %9631 = vmatpush3.bf16.msra.mxu1 %v9630_v48  ;;  %v5026_v48 = vld [vmem:[%s13366_s3 + $0x8] sm:$0xff] }
0x19cf   :  { %9632 = vmatprep.subr.bf16.mxu1 %v11630_v28  ;;  %v9653_v55 = vpack.c.bf16 %v5026_v48, %v5025_v56 }
0x19d2   :  { %9634 = vmatpush3.bf16.msra.mxu1 %v9633_v62  ;;  %v4944_v62 = vld [vmem:[%s13365_s11 + $0x18] sm:$0xff] }
0x19d3   :  { %9635 = vmatprep.subr.bf16.mxu1 %v11630_v28  ;;  %v9650_v0 = vpack.c.bf16 %v4944_v62, %v4943_v61  ;;  %v5106_v62 = vld [vmem:[%s13368_s16] sm:$0xff] }
0x19d6   :  { %9637 = vmatpush3.bf16.msra.mxu1 %v9636_v53  ;;  %v5028_v53 = vld [vmem:[%s13366_s3 + $0x18] sm:$0xff] }
0x19d7   :  { %9652 = vmatprep.subr.bf16.mxu1 %v11630_v28 }
0x1a9c   :  { %v4604_v10 = vpop.f32.mrb[26].mxu1 }
0x1a9d   :  { %v9765_v11 = vadd.f32 %v4604_v10, %v3642_v9  ;;  %v9179_v13 = vpop.f32.mrb[27].mxu1  ;;  %v8491_v10 = vld [vmem:[#allocation44] ss:$0 sm:$0xff] }
0x1a9f   :  { %v4611_v15 = vsel %vm1519_vm11, %v9765_v11, 0.0 }
0x1aa0   :  { %4612 = vadd.xlane.f32.xlu0 %v4611_v15 }
0x1aa4   :  { %3344 = vadd.xlane.f32.xlu0 %v3343_v37 }
0x1aa8   :  { %3347 = vadd.xlane.f32.xlu0 %v3346_v58 }
0x1b2d   :  { %v4613_v59 = vpop.xlane.xlu0 %4612 }
0x1b2e   :  { %v4614_v18 = vmul.f32 0.03125, %v4613_v59 }
0x1b30   :  { %v4615_v24 = vsub.f32 %v9765_v11, %v4614_v18  ;;  %v4849_v18 = vld [vmem:[%s13364_s5] sm:$0xff] }
0x1b31   :  { %v12794_v19 = vpop.xlane.xlu0 %3344 }
0x1b32   :  { %v4616_v22 = vmul.f32 %v4615_v24, %v4615_v24  ;;  %v3349_v9 = vmul.f32 0.03125, %v12794_v19  ;;  %v4852_v19 = vld [vmem:[%s13364_s5 + $0x18] sm:$0xff] }
0x1b34   :  { %v4617_v20 = vsel %vm1519_vm11, %v4616_v22, 0.0  ;;  %v3351_v13 = vsub.f32 %v12788_v33, %v3349_v9  ;;  %v4851_v22 = vld [vmem:[%s13364_s5 + $0x10] sm:$0xff] }
0x1b35   :  { %4618 = vadd.xlane.f32.xlu1 %v4617_v20  ;;  %v3348_v21 = vpop.xlane.xlu0 %3347 }
0x1b36   :  { %v3350_v23 = vmul.f32 0.03125, %v3348_v21  ;;  %v3353_v58 = vmul.f32 %v3351_v13, %v3351_v13  ;;  %v9642_v21 = vpack.c.bf16 %v4852_v19, %v4851_v22  ;;  %v12880_v19 = vld [vmem:[%s13367_s15] sm:$0xff] }
0x1b38   :  { %v12797_v44 = vsub.f32 %v3340_v42, %v3350_v23  ;;  %v3355_v59 = vsel %vm1389_vm0, %v3353_v58, 0.0 }
0x1b3a   :  { %v3354_v26 = vmul.f32 %v12797_v44, %v12797_v44 }
0x1b3c   :  { %v3358_v17 = vsel %vm1389_vm0, %v3354_v26, 0.0 }
0x1b3d   :  { %3359 = vadd.xlane.f32.xlu1 %v3358_v17 }
0x1bc2   :  { %v4619_v40 = vpop.xlane.xlu1 %4618 }
0x1bc3   :  { %v4620_v45 = vmul.f32 0.03125, %v4619_v40 }
0x1bc5   :  { %v4621_v46 = vadd.f32 1e-12, %v4620_v45 }
0x1bc7   :  { %10073 = vrsqrt.f32 %v4621_v46 }
0x1bca   :  { %v3360_v33 = vpop.xlane.xlu1 %3359 }
0x1bcb   :  { %v3362_v23 = vmul.f32 0.03125, %v3360_v33 }
0x1bcd   :  { %v3364_v26 = vadd.f32 1e-12, %v3362_v23 }
0x1bd1   :  { %v10074_v12 = vpop.eup %10073 }
0x1bd2   :  { %v4623_v35 = vmul.f32 %v10074_v12, %v4615_v24  ;;  %v4850_v24 = vld [vmem:[%s13364_s5 + $0x8] sm:$0xff]  ;;  %v8458_v12 = vld [vmem:[#allocation31] ss:$0 sm:$0xff] }
0x1bd3   :  { %v9638_v20 = vpack.c.bf16 %v4850_v24, %v4849_v18  ;;  %v12877_v24 = vld [vmem:[%s13367_s15 + $0x8] sm:$0xff] }
0x1bd4   :  { %v4630_v47 = vmul.f32 %v8487_v16, %v4623_v35 }
0x1bd5   :  { %9639 = vmatprep.subr.bf16.mxu0 %v9638_v20 }
0x1bd6   :  { %v4637_v49 = vadd.f32 %v8488_v36, %v4630_v47  ;;  %v8459_v47 = vld [vmem:[#allocation32] ss:$0 sm:$0xff] }
0x1bd8   :  { %9189 = vmatmul.mubr.msk.f32.vlgmr.msra.gmra.mrb[46].mxu0 %vm1389_vm0, %v4637_v49 }
0x1bd9   :  { %9641 = vmatpush3.bf16.msra.mxu0 %v9638_v20 }
0x1bda   :  { %9643 = vmatprep.subr.bf16.mxu0 %v9642_v21 }
0x1bdd   :  { %9645 = vmatpush3.bf16.msra.mxu0 %v9642_v21 }
0x1bde   :  { %9646 = vmatprep.subr.bf16.mxu0 %v11630_v28 }
0x1cab   :  { %v4718_v52 = vpop.f32.mrb[46].mxu0 }
0x1cac   :  { %v4719_v32 = vadd.f32 %v8489_v29, %v4718_v52  ;;  %v9190_v1 = vpop.f32.mrb[47].mxu0  ;;  %v9656_v29 = vpack.c.bf16 %v5028_v53, %v5027_v63 }
0x1cae   :  { %v4722_v60 = vmul.f32 %v4719_v32, %v4719_v32 }
0x1cb0   :  { %v4723_v30 = vmul.f32 %v4722_v60, %v4719_v32 }
0x1cb2   :  { %v4724_v2 = vmul.f32 0.044715, %v4723_v30  ;;  %v8493_v30 = vld [vmem:[#allocation46] ss:$0 sm:$0xff] }
0x1cb4   :  { %v4725_v3 = vadd.f32 %v4724_v2, %v4719_v32 }
0x1cb6   :  { %v4726_v4 = vmul.f32 0.7978846, %v4725_v3  ;;  %v8494_v3 = vld [vmem:[#allocation47] ss:$0 sm:$0xff] }
0x1cb8   :  { %10075 = vtanh.f32 %v4726_v4 }
0x1cb9   :  { %10077 = vrsqrt.f32 %v3364_v26 }
0x1cc2   :  { %v10076_v5 = vpop.eup %10075 }
0x1cc3   :  { %v4728_v6 = vadd.f32 1.0, %v10076_v5  ;;  %v10078_v45 = vpop.eup %10077 }
0x1cc4   :  { %v3368_v46 = vmul.f32 %v10078_v45, %v12797_v44  ;;  %v4941_v44 = vld [vmem:[%s13365_s11] sm:$0xff] }
0x1cc5   :  { %v4729_v7 = vmul.f32 0.5, %v4728_v6  ;;  %v9647_v57 = vpack.c.bf16 %v4942_v54, %v4941_v44  ;;  %v8495_v6 = vld [vmem:[#allocation49] ss:$0 sm:$0xff] }
0x1cc6   :  { %v3376_v36 = vmul.f32 %v8458_v12, %v3368_v46 }
0x1cc7   :  { %v4730_v8 = vmul.f32 %v4729_v7, %v4719_v32 }
0x1cc8   :  { %v12836_v43 = vadd.f32 %v8459_v47, %v3376_v36 }
0x1cc9   :  { %9208 = vmatmul.mubr.msk.f32.vlgmr.msra.gmra.mrb[32].mxu1 %vm3257_vm12, %v4730_v8 }
0x1cca   :  { %9240 = vmatprep.mubr.msk.f32.mxu1 %vm11631_vm6, %v11632_v41  ;;  %9654 = vmatpush3.bf16.msra.mxu1 %v9653_v55 }
0x1ccb   :  { %9655 = vmatprep.subr.bf16.mxu1 %v11630_v28 }
0x1cce   :  { %9657 = vmatpush3.bf16.msra.mxu1 %v9656_v29 }
0x1ccf   :  { %9253 = vmatprep.subr.mxu1 %v5106_v62 }
0x1d9c   :  { %v4815_v11 = vpop.f32.mrb[32].mxu1 }
0x1d9d   :  { %v4816_v14 = vadd.f32 %v8491_v10, %v4815_v11  ;;  %v9209_v15 = vpop.f32.mrb[33].mxu1  ;;  %v8498_v11 = vld [vmem:[#allocation50] ss:$0 sm:$0xff] }
0x1d9f   :  { %v4819_v37 = vadd.f32 %v4816_v14, %v4637_v49  ;;  %v8500_v14 = vld [vmem:[#allocation52] ss:$0 sm:$0xff] }
0x1da1   :  { %v4822_v42 = vsel %vm1519_vm11, %v4819_v37, 0.0 }
0x1da2   :  { %4823 = vadd.xlane.f32.xlu0 %v4822_v42 }
0x1da6   :  { %3356 = vadd.xlane.f32.xlu0 %v3355_v59 }
0x1e2f   :  { %v4824_v17 = vpop.xlane.xlu0 %4823 }
0x1e30   :  { %v4825_v27 = vmul.f32 0.03125, %v4824_v17 }
0x1e32   :  { %v4826_v31 = vsub.f32 %v4819_v37, %v4825_v27 }
0x1e33   :  { %v3357_v34 = vpop.xlane.xlu0 %3356 }
0x1e34   :  { %v3361_v38 = vmul.f32 0.03125, %v3357_v34  ;;  %v4827_v25 = vmul.f32 %v4826_v31, %v4826_v31 }
0x1e36   :  { %v3363_v39 = vadd.f32 1e-12, %v3361_v38  ;;  %v4828_v40 = vsel %vm1519_vm11, %v4827_v25, 0.0 }
0x1e37   :  { %4829 = vadd.xlane.f32.xlu0 %v4828_v40 }
0x1e38   :  { %10079 = vrsqrt.f32 %v3363_v39 }
0x1e42   :  { %v10080_v16 = vpop.eup %10079 }
0x1e43   :  { %v3367_v35 = vmul.f32 %v10080_v16, %v3351_v13 }
0x1e45   :  { %v3375_v49 = vmul.f32 %v8458_v12, %v3367_v35 }
0x1e47   :  { %v12834_v50 = vadd.f32 %v8459_v47, %v3375_v49 }
0x1e49   :  { %9218 = vmatprep.mubr.msk.f32.mxu0 %vm1389_vm0, %v12834_v50 }
0x1e4a   :  { %9219 = vmatmul.mubr.msk.f32.vlgmr.msra.gmra.mrb[48].mxu0 %vm1389_vm0, %v12836_v43 }
0x1e4b   :  { %9229 = vmatprep.mubr.msk.f32.mxu0 %vm11631_vm6, %v11632_v41  ;;  %9648 = vmatpush3.bf16.msra.mxu0 %v9647_v57 }
0x1e4c   :  { %9649 = vmatprep.subr.bf16.mxu0 %v11630_v28 }
0x1e4f   :  { %9651 = vmatpush3.bf16.msra.mxu0 %v9650_v0 }
0x1ec4   :  { %v4830_v52 = vpop.xlane.xlu0 %4829 }
0x1ec5   :  { %v4831_v32 = vmul.f32 0.03125, %v4830_v52 }
0x1ec7   :  { %v4832_v1 = vadd.f32 1e-12, %v4831_v32 }
0x1ec9   :  { %10081 = vrsqrt.f32 %v4832_v1 }
0x1ed3   :  { %v10082_v60 = vpop.eup %10081 }
0x1ed4   :  { %v4834_v2 = vmul.f32 %v10082_v60, %v4826_v31 }
0x1ed6   :  { %v4841_v4 = vmul.f32 %v8493_v30, %v4834_v2 }
0x1ed8   :  { %v4848_v5 = vadd.f32 %v8494_v3, %v4841_v4 }
0x1eda   :  { %9230 = vmatmul.mubr.msk.f32.vlgmr.msra.gmra.mrb[50].mxu0 %vm1389_vm0, %v4848_v5  ;;  %9241 = vmatmul.mubr.msk.f32.vlgmr.msra.gmra.mrb[34].mxu1 %vm1389_vm0, %v4848_v5 }
0x1edb   :  { %9254 = vmatpush3.msra.mxu1 %v5106_v62 }
0x1f1d   :  { %v9220_v7 = vpop.f32.mrb[48].mxu0 }
0x1f1e   :  { %v12856_v8 = vadd.f32 %v9220_v7, %v8495_v6  ;;  %v4932_v9 = vpop.f32.mrb[49].mxu0 }
0x1f1f   :  { %v12858_v10 = vadd.f32 %v8495_v6, %v4932_v9 }
0x1f21   :  { %9245 = vmatprep.mubr.msk.f32.mxu0 %vm1947_vm9, %v12858_v10 }
0x1fad   :  { %v5021_v13 = vpop.f32.mrb[50].mxu0  ;;  %v5102_v15 = vpop.f32.mrb[34].mxu1 }
0x1fae   :  { %v12862_v37 = vadd.f32 %v8498_v11, %v5021_v13  ;;  %v9231_v42 = vpop.f32.mrb[51].mxu0  ;;  %v9242_v58 = vpop.f32.mrb[35].mxu1  ;;  %v12864_v59 = vadd.f32 %v8500_v14, %v5102_v15 }
0x1fb0   :  { %9243 = vmatprep.subr.msk.mxu0 %vm1947_vm9, %v12862_v37 }
0x1fb1   :  { %9244 = vmatpush3.xpose.msk.msra.mxu0 %vm1947_vm9, %v12862_v37 }
0x1fb2   :  { %9248 = vmatprep.subr.msk.mxu0 %vm1560_vm7, %v12864_v59 }
0x1fb4   :  { %9246 = vmatmul.mubr.msk.f32.vlgmr.msra.gmra.mrb[52].mxu0 %vm1947_vm9, %v12856_v8 }
0x1fb5   :  { %9249 = vmatpush3.msk.msra.mxu0 %vm1560_vm7, %v12864_v59 }
0x2087   :  { %v9247_v18 = vpop.f32.mrb[52].mxu0 }
0x2088   :  { %v5204_v22 = vmul.f32 0.35355338, %v9247_v18  ;;  %v5194_v20 = vpop.f32.mrb[53].mxu0 }
0x2089   :  { %v5203_v21 = vmul.f32 0.35355338, %v5194_v20 }
0x208a   :  { %v5206_v33 = vadd.f32 %v5204_v22, %v12877_v24 }
0x208b   :  { %v5205_v23 = vadd.f32 %v5203_v21, %v12880_v19 }
0x208c   :  { %v5210_v26 = vsel %vm1556_vm8, %v5206_v33, -inf }
0x208d   :  { %5211 = vmax.xlane.f32.xlu0 %v5210_v26  ;;  %v5207_v17 = vsel %vm1556_vm8, %v5205_v23, -inf }
0x208e   :  { %5208 = vmax.xlane.f32.xlu1 %v5207_v17 }
0x209f   :  { %5400 = vrot.lane.b32.xlu1 %v12862_v37, %s11633_s27 }
0x20a3   :  { %5398 = vrot.lane.b32.xlu1 %v12856_v8, %s11633_s27 }
0x20a7   :  { %5681 = vrot.lane.b32.xlu1 %v12862_v37, %s11634_s0 }
0x211a   :  { %v5212_v27 = vpop.xlane.xlu0 %5211 }
0x211b   :  { %v5214_v31 = vsub.f32 %v5206_v33, %v5212_v27  ;;  %v5209_v34 = vpop.xlane.xlu1 %5208 }
0x211c   :  { %v5213_v38 = vsub.f32 %v5205_v23, %v5209_v34 }
0x211d   :  { %v5217_v25 = vmul.f32 1.442695, %v5214_v31 }
0x211e   :  { %v5215_v39 = vmul.f32 1.442695, %v5213_v38 }
0x211f   :  { %10083 = vpow2.f32 %v5217_v25  ;;  %v5401_v40 = vpop.permute.xlu1 %5400 }
0x2120   :  { %10085 = vpow2.f32 %v5215_v39  ;;  %9258 = vmatprep.subr.msk.mxu0 %vm1947_vm9, %v5401_v40 }
0x2123   :  { %v5399_v35 = vpop.permute.xlu1 %5398 }
0x2127   :  { %v5682_v36 = vpop.permute.xlu1 %5681 }
0x2129   :  { %v10084_v45 = vpop.eup %10083 }
0x212a   :  { %v10086_v46 = vpop.eup %10085  ;;  %v5222_v12 = vsel %vm1556_vm8, %v10084_v45, 0.0 }
0x212b   :  { %5223 = vadd.xlane.f32.xlu0 %v5222_v12  ;;  %v5219_v16 = vsel %vm1556_vm8, %v10086_v46, 0.0 }
0x212c   :  { %5220 = vadd.xlane.f32.xlu1 %v5219_v16 }
0x213d   :  { %5677 = vrot.lane.b32.xlu1 %v12858_v10, %s11634_s0 }
0x2141   :  { %5396 = vrot.lane.b32.xlu0 %v12858_v10, %s11633_s27 }
0x2145   :  { %5679 = vrot.lane.b32.xlu0 %v12856_v8, %s11634_s0 }
0x21b8   :  { %v5224_v47 = vpop.xlane.xlu0 %5223 }
0x21b9   :  { %10087 = vrcp.f32 %v5224_v47  ;;  %v5221_v49 = vpop.xlane.xlu1 %5220 }
0x21ba   :  { %10089 = vrcp.f32 %v5221_v49 }
0x21bc   :  { %v5397_v48 = vpop.permute.xlu0 %5396 }
0x21bd   :  { %v5678_v55 = vpop.permute.xlu1 %5677 }
0x21c0   :  { %v5680_v61 = vpop.permute.xlu0 %5679 }
0x21c3   :  { %v10088_v44 = vpop.eup %10087 }
0x21c4   :  { %v10090_v54 = vpop.eup %10089  ;;  %v5228_v57 = vmul.f32 %v10088_v44, %v10084_v45 }
0x21c5   :  { %v5227_v56 = vmul.f32 %v10090_v54, %v10086_v46 }
0x21c7   :  { %9250 = vmatprep.mubr.msk.f32.mxu0 %vm1556_vm8, %v5227_v56 }
0x21c8   :  { %9251 = vmatmul.mubr.msk.f32.vlgmr.msra.gmra.mrb[54].mxu0 %vm1556_vm8, %v5228_v57 }
0x21c9   :  { %9259 = vmatpush3.xpose.msk.msra.mxu0 %vm1947_vm9, %v5401_v40  ;;  %9260 = vmatprep.mubr.msk.f32.mxu0 %vm1947_vm9, %v5397_v48 }
0x21ca   :  { %9273 = vmatprep.subr.msk.mxu0 %vm1947_vm9, %v5682_v36 }
0x21cc   :  { %9261 = vmatmul.mubr.msk.f32.vlgmr.msra.gmra.mrb[56].mxu0 %vm1947_vm9, %v5399_v35 }
0x21cd   :  { %9274 = vmatpush3.xpose.msk.msra.mxu0 %vm1947_vm9, %v5682_v36  ;;  %9275 = vmatprep.mubr.msk.f32.mxu0 %vm1947_vm9, %v5678_v55 }
0x21d0   :  { %9276 = vmatmul.mubr.msk.f32.vlgmr.msra.gmra.mrb[58].mxu0 %vm1947_vm9, %v5680_v61 }
0x229b   :  { %v9252_v63 = vpop.f32.mrb[54].mxu0 }
0x229c   :  { %v5304_v0 = vpop.f32.mrb[55].mxu0 }
0x229d   :  { %9255 = vmatprep.mubr.msk.f32.mxu1 %vm1947_vm9, %v5304_v0 }
0x229e   :  { %9256 = vmatmul.mubr.msk.f32.vlgmr.msra.gmra.mrb[36].mxu1 %vm1947_vm9, %v9252_v63 }
0x229f   :  { %v9262_v53 = vpop.f32.mrb[56].mxu0 }
0x22a0   :  { %v5474_v29 = vpop.f32.mrb[57].mxu0  ;;  %v5484_v23 = vmul.f32 0.35355338, %v9262_v53 }
0x22a1   :  { %v5483_v5 = vmul.f32 0.35355338, %v5474_v29 }
0x22a2   :  { %v5486_v27 = vadd.f32 %v5484_v23, %v12877_v24  ;;  %v8502_v23 = vld [vmem:[#allocation53] ss:$0 sm:$0xff] }
0x22a3   :  { %v9277_v52 = vpop.f32.mrb[58].mxu0  ;;  %v5485_v6 = vadd.f32 %v5483_v5, %v12880_v19 }
0x22a4   :  { %v5765_v32 = vmul.f32 0.35355338, %v9277_v52  ;;  %v5755_v1 = vpop.f32.mrb[59].mxu0  ;;  %v5490_v31 = vsel %vm1556_vm8, %v5486_v27, -inf }
0x22a5   :  { %v5764_v60 = vmul.f32 0.35355338, %v5755_v1  ;;  %v5487_v7 = vsel %vm1556_vm8, %v5485_v6, -inf }
0x22a6   :  { %v5767_v30 = vadd.f32 %v5765_v32, %v12877_v24 }
0x22a7   :  { %v5766_v2 = vadd.f32 %v5764_v60, %v12880_v19 }
0x22a8   :  { %v5771_v3 = vsel %vm1556_vm8, %v5767_v30, -inf }
0x22a9   :  { %5772 = vmax.xlane.f32.xlu0 %v5771_v3  ;;  %v5768_v4 = vsel %vm1556_vm8, %v5766_v2, -inf }
0x22aa   :  { %5769 = vmax.xlane.f32.xlu1 %v5768_v4 }
0x22bb   :  { %5790 = vrot.lane.b32.xlu1 %v12864_v59, %s11634_s0 }
0x22bf   :  { %5958 = vrot.lane.b32.xlu1 %v12858_v10, %s11635_s28 }
0x22c3   :  { %5960 = vrot.lane.b32.xlu1 %v12856_v8, %s11635_s28 }
0x22e7   :  { %5488 = vmax.xlane.f32.xlu1 %v5487_v7 }
0x22f8   :  { %5509 = vrot.lane.b32.xlu1 %v12864_v59, %s11633_s27 }
0x22fc   :  { %6071 = vrot.lane.b32.xlu1 %v12864_v59, %s11635_s28 }
0x2336   :  { %v5773_v9 = vpop.xlane.xlu0 %5772 }
0x2337   :  { %v5775_v11 = vsub.f32 %v5767_v30, %v5773_v9  ;;  %v5770_v13 = vpop.xlane.xlu1 %5769  ;;  %v5107_v30 = vld [vmem:[%s13368_s16 + $0x8] sm:$0xff] }
0x2338   :  { %v5774_v14 = vsub.f32 %v5766_v2, %v5770_v13  ;;  %v5108_v2 = vld [vmem:[%s13368_s16 + $0x10] sm:$0xff] }
0x2339   :  { %v5778_v10 = vmul.f32 1.442695, %v5775_v11 }
0x233a   :  { %v5776_v15 = vmul.f32 1.442695, %v5774_v14 }
0x233b   :  { %10091 = vpow2.f32 %v5778_v10  ;;  %v5791_v8 = vpop.permute.xlu1 %5790 }
0x233c   :  { %9278 = vmatprep.subr.msk.mxu0 %vm1560_vm7, %v5791_v8  ;;  %10093 = vpow2.f32 %v5776_v15 }
0x233d   :  { %9279 = vmatpush3.msk.msra.mxu0 %vm1560_vm7, %v5791_v8  ;;  %v5109_v8 = vld [vmem:[%s13368_s16 + $0x18] sm:$0xff] }
0x233f   :  { %v5959_v22 = vpop.permute.xlu1 %5958 }
0x2343   :  { %v5961_v20 = vpop.permute.xlu1 %5960 }
0x2345   :  { %v10092_v42 = vpop.eup %10091 }
0x2346   :  { %v5783_v58 = vsel %vm1556_vm8, %v10092_v42, 0.0  ;;  %v10094_v18 = vpop.eup %10093 }
0x2347   :  { %5784 = vadd.xlane.f32.xlu0 %v5783_v58  ;;  %v5780_v59 = vsel %vm1556_vm8, %v10094_v18, 0.0 }
0x234b   :  { %5781 = vadd.xlane.f32.xlu0 %v5780_v59 }
0x2361   :  { %5962 = vrot.lane.b32.xlu0 %v12862_v37, %s11635_s28 }
0x2374   :  { %v5489_v21 = vpop.xlane.xlu1 %5488 }
0x2375   :  { %v5493_v33 = vsub.f32 %v5485_v6, %v5489_v21 }
0x2377   :  { %v5495_v26 = vmul.f32 1.442695, %v5493_v33 }
0x2378   :  { %v5510_v17 = vpop.permute.xlu1 %5509 }
0x2379   :  { %10095 = vpow2.f32 %v5495_v26  ;;  %9263 = vmatprep.subr.msk.mxu1 %vm1560_vm7, %v5510_v17  ;;  %v5118_v26 = vadd.f32 %v8502_v23, %v12836_v43 }
0x237a   :  { %9264 = vmatpush3.msk.msra.mxu1 %vm1560_vm7, %v5510_v17 }
0x237b   :  { %9268 = vmatprep.subr.mxu1 %v5107_v30 }
0x237c   :  { %v6072_v15 = vpop.permute.xlu1 %6071 }
0x2380   :  { %5491 = vmax.xlane.f32.xlu0 %v5490_v31 }
0x2383   :  { %v10096_v34 = vpop.eup %10095 }
0x2384   :  { %v5499_v37 = vsel %vm1556_vm8, %v10096_v34, 0.0 }
0x2385   :  { %5500 = vadd.xlane.f32.xlu0 %v5499_v37 }
0x23d4   :  { %v5785_v38 = vpop.xlane.xlu0 %5784 }
0x23d5   :  { %10097 = vrcp.f32 %v5785_v38 }
0x23d8   :  { %v5782_v25 = vpop.xlane.xlu0 %5781 }
0x23d9   :  { %10099 = vrcp.f32 %v5782_v25 }
0x23dc   :  { %v5963_v39 = vpop.permute.xlu0 %5962 }
0x23dd   :  { %9288 = vmatprep.subr.msk.mxu0 %vm1947_vm9, %v5963_v39 }
0x23df   :  { %v10098_v40 = vpop.eup %10097 }
0x23e0   :  { %v5789_v12 = vmul.f32 %v10098_v40, %v10092_v42 }
0x23e3   :  { %v10100_v45 = vpop.eup %10099 }
0x23e4   :  { %v5788_v46 = vmul.f32 %v10100_v45, %v10094_v18 }
0x23e6   :  { %9280 = vmatprep.mubr.msk.f32.mxu0 %vm1556_vm8, %v5788_v46 }
0x23e7   :  { %9281 = vmatmul.mubr.msk.f32.vlgmr.msra.gmra.mrb[60].mxu0 %vm1556_vm8, %v5789_v12 }
0x23e8   :  { %9289 = vmatpush3.xpose.msk.msra.mxu0 %vm1947_vm9, %v5963_v39  ;;  %9290 = vmatprep.mubr.msk.f32.mxu0 %vm1947_vm9, %v5959_v22 }
0x23eb   :  { %9291 = vmatmul.mubr.msk.f32.vlgmr.msra.gmra.mrb[62].mxu0 %vm1947_vm9, %v5961_v20 }
0x240d   :  { %v5492_v16 = vpop.xlane.xlu0 %5491 }
0x240e   :  { %v5494_v35 = vsub.f32 %v5486_v27, %v5492_v16  ;;  %v5117_v27 = vadd.f32 %v8502_v23, %v12834_v50 }
0x2410   :  { %v5497_v36 = vmul.f32 1.442695, %v5494_v35 }
0x2412   :  { %10101 = vpow2.f32 %v5497_v36  ;;  %v5501_v47 = vpop.xlane.xlu0 %5500 }
0x2413   :  { %10103 = vrcp.f32 %v5501_v47  ;;  %v6283_v47 = vld [vmem:[%s13369_s17] sm:$0xff] }
0x241c   :  { %v10102_v49 = vpop.eup %10101 }
0x241d   :  { %v10104_v44 = vpop.eup %10103  ;;  %v5502_v54 = vsel %vm1556_vm8, %v10102_v49, 0.0 }
0x241e   :  { %5503 = vadd.xlane.f32.xlu0 %v5502_v54  ;;  %v5507_v56 = vmul.f32 %v10104_v44, %v10096_v34  ;;  %v6375_v54 = vld [vmem:[%s13370_s20] sm:$0xff] }
0x2420   :  { %9265 = vmatprep.mubr.msk.f32.mxu1 %vm1556_vm8, %v5507_v56  ;;  %v6376_v56 = vld [vmem:[%s13370_s20 + $0x8] sm:$0xff] }
0x24ab   :  { %v5504_v57 = vpop.xlane.xlu0 %5503 }
0x24ac   :  { %10105 = vrcp.f32 %v5504_v57  ;;  %v9666_v57 = vpack.c.bf16 %v6376_v56, %v6375_v54  ;;  %v13028_v56 = vld [vmem:[%s13351_s6] sm:$0xff] }
0x24b6   :  { %v10106_v48 = vpop.eup %10105 }
0x24b7   :  { %v5508_v55 = vmul.f32 %v10106_v48, %v10102_v49  ;;  %v6284_v49 = vld [vmem:[%s13369_s17 + $0x8] sm:$0xff]  ;;  %v6285_v48 = vld [vmem:[%s13369_s17 + $0x10] sm:$0xff] }
0x24b8   :  { %v9658_v44 = vpack.c.bf16 %v6284_v49, %v6283_v47 }
0x24b9   :  { %9266 = vmatmul.mubr.msk.f32.vlgmr.msra.gmra.mrb[38].mxu1 %vm1556_vm8, %v5508_v55  ;;  %v6286_v55 = vld [vmem:[%s13369_s17 + $0x18] sm:$0xff] }
0x24ba   :  { %v9282_v61 = vpop.f32.mrb[60].mxu0  ;;  %9269 = vmatpush3.msra.mxu1 %v5107_v30  ;;  %9659 = vmatprep.subr.bf16.mxu0 %v9658_v44 }
0x24bb   :  { %v5866_v62 = vpop.f32.mrb[61].mxu0  ;;  %9283 = vmatprep.subr.mxu1 %v5108_v2  ;;  %9661 = vmatpush3.bf16.msra.mxu0 %v9658_v44  ;;  %v13024_v44 = vld [vmem:[%s13351_s6 + $0x8] sm:$0xff]  ;;  %s11399_s6 = scalar_lea.vmem %s8248_s9, 32 }
0x24bc   :  { %p11400_p0 = scmp.ne.s32.totalorder %s8248_s9, %s11399_s6  ;;  %p11405_p2 = scmp.lt.s32.totalorder %s11399_s6, %s11399_s6 }
0x24be   :  { %v9292_v63 = vpop.f32.mrb[62].mxu0  ;;  %p11406_p3 = por %p11405_p2, %p11404_p1 }
0x24bf   :  { %v6036_v0 = vpop.f32.mrb[63].mxu0  ;;  %v6046_v53 = vmul.f32 0.35355338, %v9292_v63  ;;  %v6378_v63 = vld [vmem:[%s13370_s20 + $0x18] sm:$0xff] }
0x24c0   :  { %v6045_v29 = vmul.f32 0.35355338, %v6036_v0  ;;  %p11407_p4 = pnand %p11406_p3, %p11400_p0 }
0x24c1   :  { %v6048_v1 = vadd.f32 %v6046_v53, %v12877_v24  ;;  %v6461_v53 = vld [vmem:[%s13371_s18] sm:$0xff] }
0x24c2   :  { %v6047_v52 = vadd.f32 %v6045_v29, %v12880_v19  ;;  %v6462_v29 = vld [vmem:[%s13371_s18 + $0x8] sm:$0xff] }
0x24c3   :  { %v6052_v60 = vsel %vm1556_vm8, %v6048_v1, -inf }
0x24c4   :  { %v6049_v32 = vsel %vm1556_vm8, %v6047_v52, -inf }
0x24c5   :  { %6050 = vmax.xlane.f32.xlu0 %v6049_v32 }
0x24c9   :  { %6053 = vmax.xlane.f32.xlu0 %v6052_v60 }
0x2552   :  { %v6051_v3 = vpop.xlane.xlu0 %6050 }
0x2553   :  { %v6055_v4 = vsub.f32 %v6047_v52, %v6051_v3  ;;  %v9674_v52 = vpack.c.bf16 %v6462_v29, %v6461_v53 }
0x2555   :  { %v6057_v5 = vmul.f32 1.442695, %v6055_v4 }
0x2556   :  { %v6054_v6 = vpop.xlane.xlu0 %6053 }
0x2557   :  { %10107 = vpow2.f32 %v6057_v5  ;;  %v6056_v7 = vsub.f32 %v6048_v1, %v6054_v6  ;;  %v8535_v5 = vld [vmem:[#allocation55] ss:$0 sm:$0xff] }
0x2559   :  { %v6059_v19 = vmul.f32 1.442695, %v6056_v7  ;;  %v8536_v7 = vld [vmem:[#allocation56] ss:$0 sm:$0xff] }
0x255b   :  { %10109 = vpow2.f32 %v6059_v19 }
0x2561   :  { %v10108_v9 = vpop.eup %10107 }
0x2562   :  { %v6061_v24 = vsel %vm1556_vm8, %v10108_v9, 0.0 }
0x2563   :  { %6062 = vadd.xlane.f32.xlu0 %v6061_v24 }
0x2565   :  { %v10110_v11 = vpop.eup %10109 }
0x2566   :  { %v6064_v13 = vsel %vm1556_vm8, %v10110_v11, 0.0 }
0x2567   :  { %6065 = vadd.xlane.f32.xlu0 %v6064_v13  ;;  %v6463_v13 = vld [vmem:[%s13371_s18 + $0x10] sm:$0xff] }
0x258c   :  { %v9267_v14 = vpop.f32.mrb[38].mxu1 }
0x258d   :  { %v5585_v10 = vpop.f32.mrb[39].mxu1 }
0x258e   :  { %9270 = vmatprep.mubr.msk.f32.mxu1 %vm1947_vm9, %v5585_v10 }
0x258f   :  { %9271 = vmatmul.mubr.msk.f32.vlgmr.msra.gmra.mrb[36].mxu1 %vm1947_vm9, %v9267_v14  ;;  %v6464_v14 = vld [vmem:[%s13371_s18 + $0x18] sm:$0xff] }
0x2590   :  { %9284 = vmatpush3.msra.mxu1 %v5108_v2  ;;  %9285 = vmatprep.mubr.msk.f32.mxu1 %vm1947_vm9, %v5866_v62  ;;  %v6377_v62 = vld [vmem:[%s13370_s20 + $0x10] sm:$0xff] }
0x2591   :  { %9293 = vmatprep.subr.msk.mxu1 %vm1560_vm7, %v6072_v15  ;;  %v9670_v0 = vpack.c.bf16 %v6378_v63, %v6377_v62 }
0x2597   :  { %9286 = vmatmul.mubr.msk.f32.vlgmr.msra.gmra.mrb[36].mxu1 %vm1947_vm9, %v9282_v61  ;;  %v9662_v61 = vpack.c.bf16 %v6286_v55, %v6285_v48 }
0x2598   :  { %9294 = vmatpush3.msk.msra.mxu1 %vm1560_vm7, %v6072_v15 }
0x2599   :  { %9298 = vmatprep.subr.mxu1 %v5109_v8  ;;  %9663 = vmatprep.subr.bf16.mxu0 %v9662_v61 }
0x259a   :  { %9665 = vmatpush3.bf16.msra.mxu0 %v9662_v61 }
0x259b   :  { %9675 = vmatprep.subr.bf16.mxu0 %v9674_v52 }
0x25f0   :  { %v6063_v42 = vpop.xlane.xlu0 %6062 }
0x25f1   :  { %10111 = vrcp.f32 %v6063_v42  ;;  %v8537_v42 = vld [vmem:[#allocation58] ss:$0 sm:$0xff] }
0x25f4   :  { %v6066_v58 = vpop.xlane.xlu0 %6065 }
0x25f5   :  { %10113 = vrcp.f32 %v6066_v58  ;;  %v8540_v58 = vld [vmem:[#allocation59] ss:$0 sm:$0xff] }
0x25fb   :  { %v10112_v18 = vpop.eup %10111 }
0x25fc   :  { %v6069_v59 = vmul.f32 %v10112_v18, %v10108_v9 }
0x25fe   :  { %9295 = vmatprep.mubr.msk.f32.mxu1 %vm1556_vm8, %v6069_v59 }
0x25ff   :  { %v10114_v22 = vpop.eup %10113 }
0x2600   :  { %v6070_v20 = vmul.f32 %v10114_v22, %v10110_v11 }
0x2602   :  { %9296 = vmatmul.mubr.msk.f32.vlgmr.msra.gmra.mrb[40].mxu1 %vm1556_vm8, %v6070_v20 }
0x2603   :  { %9299 = vmatpush3.msra.mxu1 %v5109_v8  ;;  %v9678_v8 = vpack.c.bf16 %v6464_v14, %v6463_v13 }
0x2604   :  { %9667 = vmatprep.subr.bf16.mxu1 %v9666_v57 }
0x26d5   :  { %v9297_v21 = vpop.f32.mrb[40].mxu1 }
0x26d6   :  { %v6147_v33 = vpop.f32.mrb[41].mxu1 }
0x26d7   :  { %9300 = vmatprep.mubr.msk.f32.mxu1 %vm1947_vm9, %v6147_v33 }
0x26d8   :  { %9301 = vmatmul.mubr.msk.f32.vlgmr.msra.gmra.mrb[36].mxu1 %vm1947_vm9, %v9297_v21 }
0x26d9   :  { %9669 = vmatpush3.bf16.msra.mxu1 %v9666_v57 }
0x26da   :  { %9671 = vmatprep.subr.bf16.mxu1 %v9670_v0 }
0x26dd   :  { %9673 = vmatpush3.bf16.msra.mxu1 %v9670_v0 }
0x27ab   :  { %v9302_v17 = vpop.f32.mrb[36].mxu1 }
0x27ac   :  { %v9766_v31 = vadd.f32 %v9302_v17, %v5118_v26  ;;  %v6228_v34 = vpop.f32.mrb[37].mxu1 }
0x27ad   :  { %v9767_v37 = vadd.f32 %v6228_v34, %v5117_v27 }
0x27ae   :  { %v6244_v38 = vsel %vm1389_vm0, %v9766_v31, 0.0 }
0x27af   :  { %6245 = vadd.xlane.f32.xlu1 %v6244_v38  ;;  %v6241_v25 = vsel %vm1389_vm0, %v9767_v37, 0.0 }
0x27b0   :  { %6242 = vadd.xlane.f32.xlu0 %v6241_v25 }
0x283c   :  { %v6246_v39 = vpop.xlane.xlu1 %6245 }
0x283d   :  { %v6248_v40 = vmul.f32 0.03125, %v6246_v39  ;;  %v6243_v45 = vpop.xlane.xlu0 %6242 }
0x283e   :  { %v6247_v43 = vmul.f32 0.03125, %v6243_v45 }
0x283f   :  { %v6250_v46 = vsub.f32 %v9766_v31, %v6248_v40  ;;  %v8543_v31 = vld [vmem:[#allocation61] ss:$0 sm:$0xff] }
0x2840   :  { %v6249_v12 = vsub.f32 %v9767_v37, %v6247_v43 }
0x2841   :  { %v6252_v35 = vmul.f32 %v6250_v46, %v6250_v46 }
0x2842   :  { %v6251_v50 = vmul.f32 %v6249_v12, %v6249_v12 }
0x2843   :  { %v6256_v36 = vsel %vm1389_vm0, %v6252_v35, 0.0 }
0x2844   :  { %v6253_v16 = vsel %vm1389_vm0, %v6251_v50, 0.0 }
0x2845   :  { %6254 = vadd.xlane.f32.xlu0 %v6253_v16 }
0x2849   :  { %6257 = vadd.xlane.f32.xlu0 %v6256_v36 }
0x28d2   :  { %v6255_v32 = vpop.xlane.xlu0 %6254 }
0x28d3   :  { %v6259_v1 = vmul.f32 0.03125, %v6255_v32 }
0x28d5   :  { %v6261_v60 = vadd.f32 1e-12, %v6259_v1 }
0x28d6   :  { %v6258_v30 = vpop.xlane.xlu0 %6257 }
0x28d7   :  { %10115 = vrsqrt.f32 %v6261_v60  ;;  %v6260_v2 = vmul.f32 0.03125, %v6258_v30 }
0x28d9   :  { %v6262_v3 = vadd.f32 1e-12, %v6260_v2 }
0x28db   :  { %10117 = vrsqrt.f32 %v6262_v3 }
0x28e1   :  { %v10116_v4 = vpop.eup %10115 }
0x28e2   :  { %v6265_v6 = vmul.f32 %v10116_v4, %v6249_v12 }
0x28e4   :  { %v6273_v19 = vmul.f32 %v8535_v5, %v6265_v6 }
0x28e5   :  { %v10118_v9 = vpop.eup %10117 }
0x28e6   :  { %v6266_v24 = vmul.f32 %v10118_v9, %v6250_v46  ;;  %v12984_v11 = vadd.f32 %v8536_v7, %v6273_v19 }
0x28e8   :  { %v6274_v10 = vmul.f32 %v8535_v5, %v6266_v24  ;;  %9311 = vmatprep.mubr.msk.f32.mxu0 %vm1389_vm0, %v12984_v11  ;;  %9322 = vmatprep.mubr.msk.f32.mxu1 %vm1389_vm0, %v12984_v11 }
0x28ea   :  { %v12992_v15 = vadd.f32 %v8536_v7, %v6274_v10 }
0x28ec   :  { %9312 = vmatmul.mubr.msk.f32.vlgmr.msra.gmra.mrb[64].mxu0 %vm1389_vm0, %v12992_v15  ;;  %9323 = vmatmul.mubr.msk.f32.vlgmr.msra.gmra.mrb[42].mxu1 %vm1389_vm0, %v12992_v15 }
0x28ed   :  { %9677 = vmatpush3.bf16.msra.mxu0 %v9674_v52  ;;  %9333 = vmatprep.mubr.msk.f32.mxu0 %vm1389_vm0, %v12984_v11 }
0x28ee   :  { %9679 = vmatprep.subr.bf16.mxu0 %v9678_v8 }
0x28f1   :  { %9681 = vmatpush3.bf16.msra.mxu0 %v9678_v8 }
0x28f4   :  { %9334 = vmatmul.mubr.msk.f32.vlgmr.msra.gmra.mrb[66].mxu0 %vm1389_vm0, %v12992_v15 }
0x29bf   :  { %v9313_v18 = vpop.f32.mrb[64].mxu0  ;;  %v9324_v59 = vpop.f32.mrb[42].mxu1 }
0x29c0   :  { %v13002_v22 = vadd.f32 %v9313_v18, %v8537_v42  ;;  %v6458_v20 = vadd.f32 %v9324_v59, %v8540_v58  ;;  %v6366_v21 = vpop.f32.mrb[65].mxu0  ;;  %v6452_v33 = vpop.f32.mrb[43].mxu1 }
0x29c1   :  { %v6367_v23 = vadd.f32 %v8537_v42, %v6366_v21  ;;  %v6453_v26 = vadd.f32 %v8540_v58, %v6452_v33 }
0x29c2   :  { %6839 = vrot.lane.b32.xlu1 %v13002_v22, %s11633_s27 }
0x29c3   :  { %9340 = vmatprep.mubr.msk.f32.mxu1 %vm1947_vm9, %v6367_v23  ;;  %v9978_v17 = vpack.i.bf16 %v6458_v20, %v6453_v26  ;;  %v9682_v27 = vpack.c.bf16 %v6458_v20, %v6453_v26 }
0x29c5   :  { %9979 = vrot.lane.b32.xlu0 %v9978_v17, %s11633_s27  ;;  %9684 = vmatprep.subr.msk.bf16.mxu1 %vm12486_vm10, %v9682_v27 }
0x29c6   :  { %9687 = vmatpush3.bf16.xpose.msk.msra.mxu1 %vm12486_vm10, %v9682_v27 }
0x29c7   :  { %v9335_v34 = vpop.f32.mrb[66].mxu0 }
0x29c8   :  { %v6544_v37 = vadd.f32 %v9335_v34, %v8543_v31  ;;  %v6538_v38 = vpop.f32.mrb[67].mxu0 }
0x29c9   :  { %v6539_v25 = vadd.f32 %v8543_v31, %v6538_v38  ;;  %6837 = vrot.lane.b32.xlu0 %v6367_v23, %s11633_s27 }
0x29cb   :  { %v9688_v39 = vpack.c.bf16 %v6544_v37, %v6539_v25  ;;  %v13013_v40 = vpack.i.bf16 %v6544_v37, %v6539_v25 }
0x29cd   :  { %9689 = vmatprep.subr.bf16.mxu0 %v9688_v39  ;;  %9341 = vmatmul.mubr.msk.f32.vlgmr.msra.gmra.mrb[44].mxu1 %vm1947_vm9, %v13002_v22 }
0x29ce   :  { %9691 = vmatpush3.bf16.msra.mxu0 %v9688_v39 }
0x2a34   :  { %v6840_v16 = vpop.permute.xlu1 %6839 }
0x2a37   :  { %v9980_v45 = vpop.permute.xlu0 %9979 }
0x2a38   :  { %v9982_v43 = vunpack.i.h.bf16 %v9980_v45  ;;  %v9981_v46 = vunpack.i.l.bf16 %v9980_v45 }
0x2a3a   :  { %v9692_v12 = vpack.c.bf16 %v9982_v43, %v9981_v46 }
0x2a3b   :  { %v6838_v50 = vpop.permute.xlu0 %6837 }
0x2a3c   :  { %9694 = vmatprep.subr.msk.bf16.mxu1 %vm12486_vm10, %v9692_v12  ;;  %9359 = vmatprep.mubr.msk.f32.mxu1 %vm1947_vm9, %v6838_v50  ;;  %v6547_v50 = vld [vmem:[%s13372_s22] sm:$0xff] }
0x2a3d   :  { %9697 = vmatpush3.bf16.xpose.msk.msra.mxu1 %vm12486_vm10, %v9692_v12  ;;  %9350 = vmatprep.subr.mxu0 %v6547_v50 }
0x2a44   :  { %9360 = vmatmul.mubr.msk.f32.vlgmr.msra.gmra.mrb[46].mxu1 %vm1947_vm9, %v6840_v16 }
0x2aa0   :  { %v9342_v35 = vpop.f32.mrb[44].mxu1 }
0x2aa1   :  { %v6648_v36 = vmul.f32 0.35355338, %v9342_v35  ;;  %v6638_v47 = vpop.f32.mrb[45].mxu1 }
0x2aa2   :  { %v6647_v49 = vmul.f32 0.35355338, %v6638_v47 }
0x2aa3   :  { %v6650_v54 = vadd.f32 %v13024_v44, %v6648_v36 }
0x2aa4   :  { %v6649_v57 = vadd.f32 %v13028_v56, %v6647_v49 }
0x2aa5   :  { %v6654_v48 = vsel %vm1312_vm5, %v6650_v54, -inf }
0x2aa6   :  { %6655 = vmax.xlane.f32.xlu1 %v6654_v48  ;;  %v6651_v55 = vsel %vm1312_vm5, %v6649_v57, -inf }
0x2aa7   :  { %6652 = vmax.xlane.f32.xlu0 %v6651_v55 }
0x2ab7   :  { %7126 = vrot.lane.b32.xlu1 %v6367_v23, %s11634_s0 }
0x2b17   :  { %v9361_v61 = vpop.f32.mrb[46].mxu1 }
0x2b18   :  { %v6929_v62 = vmul.f32 0.35355338, %v9361_v61  ;;  %v6919_v63 = vpop.f32.mrb[47].mxu1 }
0x2b19   :  { %v6928_v7 = vmul.f32 0.35355338, %v6919_v63 }
0x2b1a   :  { %v6931_v0 = vadd.f32 %v13024_v44, %v6929_v62 }
0x2b1b   :  { %v6930_v19 = vadd.f32 %v13028_v56, %v6928_v7 }
0x2b1c   :  { %v6935_v53 = vsel %vm1312_vm5, %v6931_v0, -inf }
0x2b1d   :  { %6936 = vmax.xlane.f32.xlu1 %v6935_v53  ;;  %v6932_v9 = vsel %vm1312_vm5, %v6930_v19, -inf }
0x2b2e   :  { %9994 = vrot.lane.b32.xlu1 %v9978_v17, %s11635_s28 }
0x2b32   :  { %7413 = vrot.lane.b32.xlu1 %v6367_v23, %s11635_s28 }
0x2b33   :  { %v6656_v29 = vpop.xlane.xlu1 %6655 }
0x2b34   :  { %v6658_v52 = vsub.f32 %v6650_v54, %v6656_v29  ;;  %v6653_v32 = vpop.xlane.xlu0 %6652 }
0x2b35   :  { %v6657_v1 = vsub.f32 %v6649_v57, %v6653_v32 }
0x2b36   :  { %v6661_v60 = vmul.f32 1.442695, %v6658_v52 }
0x2b37   :  { %v6659_v30 = vmul.f32 1.442695, %v6657_v1  ;;  %v7127_v2 = vpop.permute.xlu1 %7126 }
0x2b38   :  { %9378 = vmatprep.mubr.msk.f32.mxu1 %vm1947_vm9, %v7127_v2 }
0x2b39   :  { %10119 = vpow2.f32 %v6659_v30  ;;  %v6548_v30 = vld [vmem:[%s13372_s22 + $0x8] sm:$0xff] }
0x2b3a   :  { %10121 = vpow2.f32 %v6661_v60 }
0x2b43   :  { %v10120_v3 = vpop.eup %10119 }
0x2b44   :  { %v6663_v4 = vsel %vm1312_vm5, %v10120_v3, 0.0  ;;  %v10122_v5 = vpop.eup %10121 }
0x2b45   :  { %6664 = vadd.xlane.f32.xlu0 %v6663_v4  ;;  %v6666_v6 = vsel %vm1312_vm5, %v10122_v5, 0.0 }
0x2b49   :  { %6667 = vadd.xlane.f32.xlu0 %v6666_v6 }
0x2b5f   :  { %9984 = vrot.lane.b32.xlu0 %v9978_v17, %s11634_s0 }
0x2b63   :  { %7128 = vrot.lane.b32.xlu0 %v13002_v22, %s11634_s0 }
0x2b82   :  { %6933 = vmax.xlane.f32.xlu0 %v6932_v9 }
0x2baa   :  { %v6937_v24 = vpop.xlane.xlu1 %6936 }
0x2bab   :  { %v6939_v13 = vsub.f32 %v6931_v0, %v6937_v24 }
0x2bad   :  { %v6942_v14 = vmul.f32 1.442695, %v6939_v13 }
0x2bae   :  { %v9995_v18 = vpop.permute.xlu1 %9994 }
0x2baf   :  { %10123 = vpow2.f32 %v6942_v14  ;;  %v9997_v20 = vunpack.i.h.bf16 %v9995_v18  ;;  %v9996_v21 = vunpack.i.l.bf16 %v9995_v18 }
0x2bb1   :  { %v9712_v31 = vpack.c.bf16 %v9997_v20, %v9996_v21 }
0x2bb2   :  { %v7414_v25 = vpop.permute.xlu1 %7413 }
0x2bb9   :  { %v13046_v10 = vpop.eup %10123 }
0x2bba   :  { %v6947_v8 = vsel %vm1312_vm5, %v13046_v10, 0.0 }
0x2bbb   :  { %6948 = vadd.xlane.f32.xlu0 %v6947_v8 }
0x2bd2   :  { %v6665_v42 = vpop.xlane.xlu0 %6664 }
0x2bd3   :  { %10125 = vrcp.f32 %v6665_v42 }
0x2bd6   :  { %v6668_v58 = vpop.xlane.xlu0 %6667 }
0x2bd7   :  { %10127 = vrcp.f32 %v6668_v58 }
0x2bda   :  { %v9985_v59 = vpop.permute.xlu0 %9984 }
0x2bdb   :  { %v9987_v33 = vunpack.i.h.bf16 %v9985_v59  ;;  %v9986_v23 = vunpack.i.l.bf16 %v9985_v59 }
0x2bdd   :  { %v10126_v26 = vpop.eup %10125  ;;  %v9702_v17 = vpack.c.bf16 %v9987_v33, %v9986_v23 }
0x2bde   :  { %v6671_v27 = vmul.f32 %v10126_v26, %v10120_v3  ;;  %v7129_v38 = vpop.permute.xlu0 %7128 }
0x2bdf   :  { %9704 = vmatprep.subr.msk.bf16.mxu1 %vm12486_vm10, %v9702_v17 }
0x2be0   :  { %9347 = vmatprep.mubr.msk.f32.mxu0 %vm1312_vm5, %v6671_v27  ;;  %9707 = vmatpush3.bf16.xpose.msk.msra.mxu1 %vm12486_vm10, %v9702_v17 }
0x2be1   :  { %v10128_v34 = vpop.eup %10127  ;;  %9714 = vmatprep.subr.msk.bf16.mxu1 %vm12486_vm10, %v9712_v31 }
0x2be2   :  { %v6672_v37 = vmul.f32 %v10128_v34, %v10122_v5 }
0x2be4   :  { %9348 = vmatmul.mubr.msk.f32.vlgmr.msra.gmra.mrb[68].mxu0 %vm1312_vm5, %v6672_v37 }
0x2be5   :  { %9351 = vmatpush3.msra.mxu0 %v6547_v50 }
0x2be7   :  { %9379 = vmatmul.mubr.msk.f32.vlgmr.msra.gmra.mrb[48].mxu1 %vm1947_vm9, %v7129_v38 }
0x2be8   :  { %9717 = vmatpush3.bf16.xpose.msk.msra.mxu1 %vm12486_vm10, %v9712_v31  ;;  %9397 = vmatprep.mubr.msk.f32.mxu1 %vm1947_vm9, %v7414_v25 }
0x2c0f   :  { %v6934_v39 = vpop.xlane.xlu0 %6933 }
0x2c10   :  { %v6938_v45 = vsub.f32 %v6930_v19, %v6934_v39 }
0x2c12   :  { %v6940_v43 = vmul.f32 1.442695, %v6938_v45 }
0x2c14   :  { %10129 = vpow2.f32 %v6940_v43 }
0x2c1e   :  { %v10130_v46 = vpop.eup %10129 }
0x2c1f   :  { %v6944_v12 = vsel %vm1312_vm5, %v10130_v46, 0.0 }
0x2c20   :  { %6945 = vadd.xlane.f32.xlu0 %v6944_v12 }
0x2c36   :  { %9989 = vrot.lane.b32.xlu0 %v13013_v40, %s11633_s27 }
0x2c3a   :  { %7415 = vrot.lane.b32.xlu0 %v13002_v22, %s11635_s28 }
0x2c48   :  { %v6949_v51 = vpop.xlane.xlu0 %6948 }
0x2cad   :  { %v6946_v16 = vpop.xlane.xlu0 %6945 }
0x2cae   :  { %10131 = vrcp.f32 %v6946_v16 }
0x2caf   :  { %10133 = vrcp.f32 %v6949_v51 }
0x2cb1   :  { %v9990_v35 = vpop.permute.xlu0 %9989 }
0x2cb2   :  { %v9992_v36 = vunpack.i.h.bf16 %v9990_v35  ;;  %v9991_v47 = vunpack.i.l.bf16 %v9990_v35 }
0x2cb4   :  { %v9698_v49 = vpack.c.bf16 %v9992_v36, %v9991_v47  ;;  %v6549_v36 = vld [vmem:[%s13372_s22 + $0x10] sm:$0xff] }
0x2cb5   :  { %v7416_v54 = vpop.permute.xlu0 %7415 }
0x2cb6   :  { %9699 = vmatprep.subr.bf16.mxu0 %v9698_v49  ;;  %9398 = vmatmul.mubr.msk.f32.vlgmr.msra.gmra.mrb[50].mxu1 %vm1947_vm9, %v7416_v54 }
0x2cb7   :  { %v9349_v57 = vpop.f32.mrb[68].mxu0 }
0x2cb8   :  { %v10132_v48 = vpop.eup %10131  ;;  %v6745_v55 = vpop.f32.mrb[69].mxu0 }
0x2cb9   :  { %v10134_v61 = vpop.eup %10133  ;;  %9352 = vmatprep.mubr.msk.f32.mxu0 %vm1947_vm9, %v6745_v55  ;;  %v6952_v62 = vmul.f32 %v10132_v48, %v10130_v46 }
0x2cba   :  { %9353 = vmatmul.mubr.msk.f32.vlgmr.msra.gmra.mrb[70].mxu0 %vm1947_vm9, %v9349_v57  ;;  %v9380_v22 = vpop.f32.mrb[48].mxu1  ;;  %v6953_v53 = vmul.f32 %v10134_v61, %v13046_v10 }
0x2cbb   :  { %9701 = vmatpush3.bf16.msra.mxu0 %v9698_v49  ;;  %v7218_v63 = vmul.f32 0.35355338, %v9380_v22  ;;  %9366 = vmatprep.mubr.msk.f32.mxu0 %vm1312_vm5, %v6952_v62  ;;  %v7208_v0 = vpop.f32.mrb[49].mxu1 }
0x2cbc   :  { %v7217_v29 = vmul.f32 0.35355338, %v7208_v0  ;;  %9369 = vmatprep.subr.mxu0 %v6548_v30 }
0x2cbd   :  { %v7220_v52 = vadd.f32 %v13024_v44, %v7218_v63 }
0x2cbe   :  { %v7219_v32 = vadd.f32 %v13028_v56, %v7217_v29  ;;  %9367 = vmatmul.mubr.msk.f32.vlgmr.msra.gmra.mrb[72].mxu0 %vm1312_vm5, %v6953_v53 }
0x2cbf   :  { %v7224_v1 = vsel %vm1312_vm5, %v7220_v52, -inf  ;;  %9370 = vmatpush3.msra.mxu0 %v6548_v30 }
0x2cc0   :  { %7225 = vmax.xlane.f32.xlu0 %v7224_v1  ;;  %v7221_v60 = vsel %vm1312_vm5, %v7219_v32, -inf }
0x2cc1   :  { %7222 = vmax.xlane.f32.xlu1 %v7221_v60 }
0x2d4d   :  { %v7226_v2 = vpop.xlane.xlu0 %7225 }
0x2d4e   :  { %v7228_v3 = vsub.f32 %v7220_v52, %v7226_v2  ;;  %v7223_v4 = vpop.xlane.xlu1 %7222 }
0x2d4f   :  { %v7227_v5 = vsub.f32 %v7219_v32, %v7223_v4  ;;  %v8546_v32 = vld [vmem:[#allocation62] ss:$0 sm:$0xff] }
0x2d50   :  { %v7231_v6 = vmul.f32 1.442695, %v7228_v3  ;;  %v6559_v1 = vadd.f32 %v8546_v32, %v12992_v15  ;;  %v6558_v30 = vadd.f32 %v8546_v32, %v12984_v11 }
0x2d51   :  { %v7229_v7 = vmul.f32 1.442695, %v7227_v5 }
0x2d52   :  { %10135 = vpow2.f32 %v7231_v6 }
0x2d53   :  { %10137 = vpow2.f32 %v7229_v7 }
0x2d5c   :  { %v10136_v19 = vpop.eup %10135 }
0x2d5d   :  { %v10138_v9 = vpop.eup %10137  ;;  %v7236_v24 = vsel %vm1312_vm5, %v10136_v19, 0.0 }
0x2d5e   :  { %7237 = vadd.xlane.f32.xlu1 %v7236_v24  ;;  %v7233_v13 = vsel %vm1312_vm5, %v10138_v9, 0.0 }
0x2d5f   :  { %7234 = vadd.xlane.f32.xlu0 %v7233_v13 }
0x2d75   :  { %9999 = vrot.lane.b32.xlu0 %v13013_v40, %s11634_s0 }
0x2d89   :  { %v9399_v14 = vpop.f32.mrb[50].mxu1 }
0x2d8a   :  { %v7495_v10 = vpop.f32.mrb[51].mxu1  ;;  %v7505_v8 = vmul.f32 0.35355338, %v9399_v14 }
0x2d8b   :  { %v7504_v42 = vmul.f32 0.35355338, %v7495_v10 }
0x2d8c   :  { %v7507_v18 = vadd.f32 %v13024_v44, %v7505_v8 }
0x2d8d   :  { %v7506_v58 = vadd.f32 %v13028_v56, %v7504_v42  ;;  %v7744_v42 = vld [vmem:[%s13373_s14] sm:$0xff] }
0x2d8e   :  { %v7511_v33 = vsel %vm1312_vm5, %v7507_v18, -inf }
0x2d8f   :  { %v7508_v59 = vsel %vm1312_vm5, %v7506_v58, -inf }
0x2d90   :  { %7509 = vmax.xlane.f32.xlu1 %v7508_v59  ;;  %v7746_v59 = vld [vmem:[%s13373_s14 + $0x10] sm:$0xff] }
0x2d91   :  { %v9368_v20 = vpop.f32.mrb[72].mxu0 }
0x2d92   :  { %v7034_v21 = vpop.f32.mrb[73].mxu0 }
0x2d93   :  { %9371 = vmatprep.mubr.msk.f32.mxu0 %vm1947_vm9, %v7034_v21 }
0x2d94   :  { %9372 = vmatmul.mubr.msk.f32.vlgmr.msra.gmra.mrb[70].mxu0 %vm1947_vm9, %v9368_v20  ;;  %7512 = vmax.xlane.f32.xlu1 %v7511_v33  ;;  %v7747_v20 = vld [vmem:[%s13373_s14 + $0x18] sm:$0xff] }
0x2d95   :  { %v9726_v21 = vpack.c.bf16 %v7747_v20, %v7746_v59 }
0x2deb   :  { %v7238_v23 = vpop.xlane.xlu1 %7237 }
0x2dec   :  { %10139 = vrcp.f32 %v7238_v23  ;;  %v7235_v26 = vpop.xlane.xlu0 %7234 }
0x2ded   :  { %10141 = vrcp.f32 %v7235_v26 }
0x2df0   :  { %v10000_v17 = vpop.permute.xlu0 %9999 }
0x2df1   :  { %v10002_v56 = vunpack.i.h.bf16 %v10000_v17  ;;  %v10001_v27 = vunpack.i.l.bf16 %v10000_v17 }
0x2df3   :  { %v9708_v44 = vpack.c.bf16 %v10002_v56, %v10001_v27 }
0x2df5   :  { %9709 = vmatprep.subr.bf16.mxu0 %v9708_v44 }
0x2df6   :  { %v10140_v31 = vpop.eup %10139  ;;  %9711 = vmatpush3.bf16.msra.mxu0 %v9708_v44 }
0x2df7   :  { %v10142_v34 = vpop.eup %10141  ;;  %v7242_v38 = vmul.f32 %v10140_v31, %v10136_v19  ;;  %9388 = vmatprep.subr.mxu0 %v6549_v36  ;;  %v8579_v31 = vld [vmem:[#allocation64] ss:$0 sm:$0xff] }
0x2df8   :  { %v7241_v37 = vmul.f32 %v10142_v34, %v10138_v9 }
0x2dfa   :  { %9385 = vmatprep.mubr.msk.f32.mxu0 %vm1312_vm5, %v7241_v37  ;;  %v8580_v37 = vld [vmem:[#allocation65] ss:$0 sm:$0xff] }
0x2dfb   :  { %9386 = vmatmul.mubr.msk.f32.vlgmr.msra.gmra.mrb[74].mxu0 %vm1312_vm5, %v7242_v38 }
0x2dfc   :  { %9389 = vmatpush3.msra.mxu0 %v6549_v36 }
0x2e1d   :  { %v7510_v25 = vpop.xlane.xlu1 %7509 }
0x2e1e   :  { %v7514_v39 = vsub.f32 %v7506_v58, %v7510_v25  ;;  %v7745_v58 = vld [vmem:[%s13373_s14 + $0x8] sm:$0xff] }
0x2e20   :  { %v7516_v46 = vmul.f32 1.442695, %v7514_v39 }
0x2e21   :  { %v7513_v45 = vpop.xlane.xlu1 %7512 }
0x2e22   :  { %v7515_v43 = vsub.f32 %v7507_v18, %v7513_v45  ;;  %v9722_v18 = vpack.c.bf16 %v7745_v58, %v7744_v42 }
0x2e24   :  { %v7518_v12 = vmul.f32 1.442695, %v7515_v43  ;;  %9723 = vmatprep.subr.bf16.mxu1 %v9722_v18 }
0x2e25   :  { %9725 = vmatpush3.bf16.msra.mxu1 %v9722_v18 }
0x2e26   :  { %10143 = vpow2.f32 %v7518_v12  ;;  %9727 = vmatprep.subr.bf16.mxu1 %v9726_v21  ;;  %v7854_v12 = vld [vmem:[%s13374_s8] sm:$0xff] }
0x2e27   :  { %10145 = vpow2.f32 %v7516_v46 }
0x2e29   :  { %9729 = vmatpush3.bf16.msra.mxu1 %v9726_v21 }
0x2e2a   :  { %9746 = vmatprep.subr.bf16.mxu1 %v11630_v28 }
0x2e30   :  { %v10144_v50 = vpop.eup %10143 }
0x2e31   :  { %v7523_v51 = vsel %vm1312_vm5, %v10144_v50, 0.0  ;;  %v10146_v16 = vpop.eup %10145 }
0x2e32   :  { %7524 = vadd.xlane.f32.xlu1 %v7523_v51  ;;  %v7520_v35 = vsel %vm1312_vm5, %v10146_v16, 0.0 }
0x2e36   :  { %7521 = vadd.xlane.f32.xlu1 %v7520_v35  ;;  %v7857_v35 = vld [vmem:[%s13374_s8 + $0x18] sm:$0xff] }
0x2e47   :  { %10004 = vrot.lane.b32.xlu1 %v13013_v40, %s11635_s28  ;;  %v6550_v40 = vld [vmem:[%s13372_s22 + $0x18] sm:$0xff] }
0x2ebf   :  { %v7525_v47 = vpop.xlane.xlu1 %7524 }
0x2ec3   :  { %v7522_v49 = vpop.xlane.xlu1 %7521 }
0x2ec4   :  { %10147 = vrcp.f32 %v7522_v49  ;;  %v7859_v49 = vld [vmem:[%s13374_s8 + $0x28] sm:$0xff] }
0x2ec5   :  { %10149 = vrcp.f32 %v7525_v47  ;;  %v7858_v47 = vld [vmem:[%s13374_s8 + $0x20] sm:$0xff] }
0x2ec7   :  { %v10005_v54 = vpop.permute.xlu1 %10004 }
0x2ec8   :  { %v10007_v57 = vunpack.i.h.bf16 %v10005_v54  ;;  %v10006_v48 = vunpack.i.l.bf16 %v10005_v54  ;;  %v9738_v54 = vpack.c.bf16 %v7859_v49, %v7858_v47 }
0x2eca   :  { %v9718_v55 = vpack.c.bf16 %v10007_v57, %v10006_v48  ;;  %v7860_v57 = vld [vmem:[%s13374_s8 + $0x30] sm:$0xff]  ;;  %v7861_v48 = vld [vmem:[%s13374_s8 + $0x38] sm:$0xff] }
0x2ecc   :  { %9719 = vmatprep.subr.bf16.mxu0 %v9718_v55 }
0x2ece   :  { %v10148_v61 = vpop.eup %10147  ;;  %v9387_v62 = vpop.f32.mrb[74].mxu0 }
0x2ecf   :  { %v7321_v22 = vpop.f32.mrb[75].mxu0  ;;  %v7528_v63 = vmul.f32 %v10148_v61, %v10146_v16  ;;  %v10150_v0 = vpop.eup %10149  ;;  %v7856_v16 = vld [vmem:[%s13374_s8 + $0x10] sm:$0xff]  ;;  %v8581_v61 = vld [vmem:[#allocation76] ss:$0 sm:$0xff] }
0x2ed0   :  { %9390 = vmatprep.mubr.msk.f32.mxu0 %vm1947_vm9, %v7321_v22  ;;  %v7529_v53 = vmul.f32 %v10150_v0, %v10144_v50  ;;  %v7855_v50 = vld [vmem:[%s13374_s8 + $0x8] sm:$0xff]  ;;  %v9734_v36 = vpack.c.bf16 %v7857_v35, %v7856_v16  ;;  %v8588_v35 = vld [vmem:[#allocation80] ss:$0 sm:$0xff] }
0x2ed1   :  { %9391 = vmatmul.mubr.msk.f32.vlgmr.msra.gmra.mrb[70].mxu0 %vm1947_vm9, %v9387_v62  ;;  %v9730_v51 = vpack.c.bf16 %v7855_v50, %v7854_v12  ;;  %v8587_v12 = vld [vmem:[#allocation79] ss:$0 sm:$0xff] }
0x2ed2   :  { %9721 = vmatpush3.bf16.msra.mxu0 %v9718_v55  ;;  %9404 = vmatprep.mubr.msk.f32.mxu0 %vm1312_vm5, %v7528_v63  ;;  %v9742_v55 = vpack.c.bf16 %v7861_v48, %v7860_v57  ;;  %v8071_v57 = vld [vmem:[%s13375_s19 + $0x8] sm:$0xff] }
0x2ed3   :  { %9407 = vmatprep.subr.mxu0 %v6550_v40 }
0x2ed5   :  { %9405 = vmatmul.mubr.msk.f32.vlgmr.msra.gmra.mrb[76].mxu0 %vm1312_vm5, %v7529_v53 }
0x2ed6   :  { %9408 = vmatpush3.msra.mxu0 %v6550_v40 }
0x2ed7   :  { %9731 = vmatprep.subr.bf16.mxu0 %v9730_v51 }
0x2fa8   :  { %v9406_v29 = vpop.f32.mrb[76].mxu0 }
0x2fa9   :  { %v7608_v52 = vpop.f32.mrb[77].mxu0 }
0x2faa   :  { %9409 = vmatprep.mubr.msk.f32.mxu0 %vm1947_vm9, %v7608_v52 }
0x2fab   :  { %9410 = vmatmul.mubr.msk.f32.vlgmr.msra.gmra.mrb[70].mxu0 %vm1947_vm9, %v9406_v29 }
0x2fac   :  { %9733 = vmatpush3.bf16.msra.mxu0 %v9730_v51 }
0x2fad   :  { %9735 = vmatprep.subr.bf16.mxu0 %v9734_v36 }
0x2fb0   :  { %9737 = vmatpush3.bf16.msra.mxu0 %v9734_v36 }
0x2fb1   :  { %9739 = vmatprep.subr.bf16.mxu0 %v9738_v54 }
0x2fb4   :  { %9741 = vmatpush3.bf16.msra.mxu0 %v9738_v54  ;;  %v8070_v54 = vld [vmem:[%s13375_s19] sm:$0xff] }
0x2fb5   :  { %9743 = vmatprep.subr.bf16.mxu0 %v9742_v55 }
0x2fb8   :  { %9745 = vmatpush3.bf16.msra.mxu0 %v9742_v55  ;;  %v7996_v55 = vld [vmem:[%s13376_s29] sm:$0x3] }
0x2fb9   :  { %9755 = vmatprep.subr.bf16.mxu0 %v11630_v28 }
0x307e   :  { %v9411_v60 = vpop.f32.mrb[70].mxu0 }
0x307f   :  { %v9768_v2 = vadd.f32 %v9411_v60, %v6559_v1  ;;  %v7689_v3 = vpop.f32.mrb[71].mxu0 }
0x3080   :  { %v9769_v4 = vadd.f32 %v7689_v3, %v6558_v30 }
0x3081   :  { %v7705_v5 = vsel %vm1389_vm0, %v9768_v2, 0.0 }
0x3082   :  { %7706 = vadd.xlane.f32.xlu1 %v7705_v5  ;;  %v7702_v6 = vsel %vm1389_vm0, %v9769_v4, 0.0 }
0x3083   :  { %7703 = vadd.xlane.f32.xlu0 %v7702_v6 }
0x310f   :  { %v7707_v7 = vpop.xlane.xlu1 %7706 }
0x3110   :  { %v7709_v19 = vmul.f32 0.03125, %v7707_v7  ;;  %v7704_v9 = vpop.xlane.xlu0 %7703 }
0x3111   :  { %v7708_v15 = vmul.f32 0.03125, %v7704_v9 }
0x3112   :  { %v7711_v24 = vsub.f32 %v9768_v2, %v7709_v19 }
0x3113   :  { %v7710_v13 = vsub.f32 %v9769_v4, %v7708_v15 }
0x3114   :  { %v7713_v10 = vmul.f32 %v7711_v24, %v7711_v24 }
0x3115   :  { %v7712_v11 = vmul.f32 %v7710_v13, %v7710_v13 }
0x3116   :  { %v7717_v8 = vsel %vm1389_vm0, %v7713_v10, 0.0 }
0x3117   :  { %v7714_v14 = vsel %vm1389_vm0, %v7712_v11, 0.0 }
0x3118   :  { %7715 = vadd.xlane.f32.xlu0 %v7714_v14 }
0x311c   :  { %7718 = vadd.xlane.f32.xlu0 %v7717_v8 }
0x31a5   :  { %v7716_v33 = vpop.xlane.xlu0 %7715 }
0x31a6   :  { %v7720_v23 = vmul.f32 0.03125, %v7716_v33 }
0x31a8   :  { %v7722_v26 = vadd.f32 1e-12, %v7720_v23 }
0x31a9   :  { %v7719_v17 = vpop.xlane.xlu0 %7718 }
0x31aa   :  { %10151 = vrsqrt.f32 %v7722_v26  ;;  %v7721_v56 = vmul.f32 0.03125, %v7719_v17 }
0x31ac   :  { %v7723_v27 = vadd.f32 1e-12, %v7721_v56 }
0x31ae   :  { %10153 = vrsqrt.f32 %v7723_v27 }
0x31b4   :  { %v10152_v44 = vpop.eup %10151 }
0x31b5   :  { %v7726_v34 = vmul.f32 %v10152_v44, %v7710_v13  ;;  %v8584_v13 = vld [vmem:[#allocation77] ss:$0 sm:$0xff] }
0x31b7   :  { %v7734_v38 = vmul.f32 %v8579_v31, %v7726_v34 }
0x31b8   :  { %v10154_v25 = vpop.eup %10153 }
0x31b9   :  { %v7727_v39 = vmul.f32 %v10154_v25, %v7711_v24  ;;  %v7742_v45 = vadd.f32 %v8580_v37, %v7734_v38 }
0x31bb   :  { %v7735_v43 = vmul.f32 %v8579_v31, %v7727_v39  ;;  %9420 = vmatprep.mubr.msk.f32.mxu1 %vm1389_vm0, %v7742_v45 }
0x31bd   :  { %v7743_v46 = vadd.f32 %v8580_v37, %v7735_v43 }
0x31bf   :  { %9421 = vmatmul.mubr.msk.f32.vlgmr.msra.gmra.mrb[52].mxu1 %vm1389_vm0, %v7743_v46 }
0x31c0   :  { %9446 = vmatprep.mubr.msk.f32.mxu1 %vm11631_vm6, %v11632_v41 }
0x3292   :  { %v9422_v62 = vpop.f32.mrb[52].mxu1 }
0x3293   :  { %v7833_v22 = vadd.f32 %v9422_v62, %v8581_v61  ;;  %v7827_v63 = vpop.f32.mrb[53].mxu1  ;;  %v8072_v62 = vld [vmem:[%s13375_s19 + $0x10] sm:$0xff] }
0x3294   :  { %v7828_v0 = vadd.f32 %v8581_v61, %v7827_v63  ;;  %v9750_v61 = vpack.c.bf16 %v8071_v57, %v8070_v54 }
0x3295   :  { %v7837_v40 = vmul.f32 %v7833_v22, %v7833_v22 }
0x3296   :  { %v7836_v53 = vmul.f32 %v7828_v0, %v7828_v0 }
0x3297   :  { %v7839_v29 = vmul.f32 %v7837_v40, %v7833_v22 }
0x3298   :  { %v7838_v52 = vmul.f32 %v7836_v53, %v7828_v0  ;;  %v8155_v53 = vld [vmem:[%s13377_s24] sm:$0xff] }
0x3299   :  { %v7841_v32 = vmul.f32 0.044715, %v7839_v29  ;;  %v8156_v29 = vld [vmem:[%s13377_s24 + $0x8] sm:$0xff] }
0x329a   :  { %v7840_v1 = vmul.f32 0.044715, %v7838_v52  ;;  %v8157_v52 = vld [vmem:[%s13377_s24 + $0x10] sm:$0xff] }
0x329b   :  { %v7843_v60 = vadd.f32 %v7841_v32, %v7833_v22  ;;  %v9756_v32 = vpack.c.bf16 %v8156_v29, %v8155_v53 }
0x329c   :  { %v7842_v30 = vadd.f32 %v7840_v1, %v7828_v0  ;;  %v8158_v1 = vld [vmem:[%s13377_s24 + $0x18] sm:$0xff] }
0x329d   :  { %v7845_v2 = vmul.f32 0.7978846, %v7843_v60  ;;  %v9759_v60 = vpack.c.bf16 %v8158_v1, %v8157_v52 }
0x329e   :  { %v7844_v3 = vmul.f32 0.7978846, %v7842_v30  ;;  %v8590_v30 = vld [vmem:[#allocation16] ss:$0 sm:$0xff] }
0x329f   :  { %10155 = vtanh.f32 %v7845_v2 }
0x32a0   :  { %10157 = vtanh.f32 %v7844_v3 }
0x32a9   :  { %v10156_v4 = vpop.eup %10155 }
0x32aa   :  { %v10158_v5 = vpop.eup %10157  ;;  %v7849_v6 = vadd.f32 1.0, %v10156_v4 }
0x32ab   :  { %v7848_v7 = vadd.f32 1.0, %v10158_v5  ;;  %v8592_v5 = vld [vmem:[#allocation17] ss:$0 sm:$0xff] }
0x32ac   :  { %v7851_v19 = vmul.f32 0.5, %v7849_v6 }
0x32ad   :  { %v7850_v9 = vmul.f32 0.5, %v7848_v7 }
0x32ae   :  { %v7853_v24 = vmul.f32 %v7851_v19, %v7833_v22  ;;  %v8073_v22 = vld [vmem:[%s13375_s19 + $0x18] sm:$0xff] }
0x32af   :  { %v7852_v15 = vmul.f32 %v7850_v9, %v7828_v0  ;;  %v9753_v63 = vpack.c.bf16 %v8073_v22, %v8072_v62 }
0x32b1   :  { %9439 = vmatprep.mubr.msk.f32.mxu0 %vm3257_vm12, %v7852_v15 }
0x32b2   :  { %9440 = vmatmul.mubr.msk.f32.vlgmr.msra.gmra.mrb[78].mxu0 %vm3257_vm12, %v7853_v24 }
0x32b3   :  { %9468 = vmatprep.mubr.msk.f32.mxu0 %vm11631_vm6, %v11632_v41  ;;  %9757 = vmatpush3.bf16.msra.mxu0 %v9756_v32 }
0x32b4   :  { %9758 = vmatprep.subr.bf16.mxu0 %v11630_v28 }
0x32b7   :  { %9760 = vmatpush3.bf16.msra.mxu0 %v9759_v60 }
0x3385   :  { %v9441_v11 = vpop.f32.mrb[78].mxu0 }
0x3386   :  { %v7941_v14 = vpop.f32.mrb[79].mxu0  ;;  %v7947_v10 = vadd.f32 %v9441_v11, %v8584_v13 }
0x3387   :  { %v7942_v8 = vadd.f32 %v8584_v13, %v7941_v14 }
0x3388   :  { %v7951_v58 = vadd.f32 %v7947_v10, %v7743_v46 }
0x3389   :  { %v7950_v42 = vadd.f32 %v7942_v8, %v7742_v45 }
0x338a   :  { %v7957_v59 = vsel %vm1389_vm0, %v7951_v58, 0.0 }
0x338b   :  { %v7954_v18 = vsel %vm1389_vm0, %v7950_v42, 0.0 }
0x338c   :  { %7955 = vadd.xlane.f32.xlu0 %v7954_v18 }
0x3390   :  { %7958 = vadd.xlane.f32.xlu0 %v7957_v59 }
0x3419   :  { %v7956_v20 = vpop.xlane.xlu0 %7955 }
0x341a   :  { %v7960_v21 = vmul.f32 0.03125, %v7956_v20 }
0x341c   :  { %v7962_v33 = vsub.f32 %v7950_v42, %v7960_v21 }
0x341d   :  { %v7959_v23 = vpop.xlane.xlu0 %7958 }
0x341e   :  { %v7961_v26 = vmul.f32 0.03125, %v7959_v23  ;;  %v7964_v17 = vmul.f32 %v7962_v33, %v7962_v33 }
0x3420   :  { %v7963_v56 = vsub.f32 %v7951_v58, %v7961_v26  ;;  %v7966_v27 = vsel %vm1389_vm0, %v7964_v17, 0.0 }
0x3421   :  { %7967 = vadd.xlane.f32.xlu0 %v7966_v27 }
0x3422   :  { %v7965_v44 = vmul.f32 %v7963_v56, %v7963_v56 }
0x3424   :  { %v7969_v31 = vsel %vm1389_vm0, %v7965_v44, 0.0 }
0x3425   :  { %7970 = vadd.xlane.f32.xlu1 %v7969_v31 }
0x34ae   :  { %v7968_v34 = vpop.xlane.xlu0 %7967 }
0x34af   :  { %v7972_v37 = vmul.f32 0.03125, %v7968_v34 }
0x34b1   :  { %v7974_v38 = vadd.f32 1e-12, %v7972_v37 }
0x34b2   :  { %v7971_v25 = vpop.xlane.xlu1 %7970 }
0x34b3   :  { %10159 = vrsqrt.f32 %v7974_v38  ;;  %v7973_v39 = vmul.f32 0.03125, %v7971_v25 }
0x34b5   :  { %v7975_v45 = vadd.f32 1e-12, %v7973_v39 }
0x34b7   :  { %10161 = vrsqrt.f32 %v7975_v45 }
0x34bd   :  { %v10160_v43 = vpop.eup %10159 }
0x34be   :  { %v7978_v46 = vmul.f32 %v10160_v43, %v7962_v33 }
0x34c0   :  { %v7986_v16 = vmul.f32 %v8587_v12, %v7978_v46 }
0x34c1   :  { %v10162_v50 = vpop.eup %10161 }
0x34c2   :  { %v7979_v51 = vmul.f32 %v10162_v50, %v7963_v56  ;;  %v7994_v47 = vadd.f32 %v8588_v35, %v7986_v16 }
0x34c4   :  { %v7987_v36 = vmul.f32 %v8587_v12, %v7979_v51 }
0x34c6   :  { %v7995_v49 = vadd.f32 %v8588_v35, %v7987_v36 }
0x34c8   :  { %v9747_v48 = vpack.c.bf16 %v7995_v49, %v7994_v47 }
0x34ca   :  { %9748 = vmatpush3.bf16.msra.mxu1 %v9747_v48 }
0x34cb   :  { %9749 = vmatprep.subr.bf16.mxu1 %v11630_v28 }
0x34cd   :  { %9447 = vmatmul.mubr.msk.f32.vlgmr.msra.gmra.mrb[54].mxu1 %vm1312_vm5, %v7996_v55 }
0x34ce   :  { %9751 = vmatpush3.bf16.msra.mxu1 %v9750_v61  ;;  %9457 = vmatprep.mubr.msk.f32.mxu1 %vm11631_vm6, %v11632_v41 }
0x34cf   :  { %9752 = vmatprep.subr.bf16.mxu1 %v11630_v28 }
0x34d2   :  { %9754 = vmatpush3.bf16.msra.mxu1 %v9753_v63 }
0x35a0   :  { %v8066_v0 = vpop.f32.mrb[54].mxu1 }
0x35a1   :  { %v9448_v40 = vpop.f32.mrb[55].mxu1  ;;  %9458 = vmatmul.mubr.msk.f32.vlgmr.msra.gmra.mrb[56].mxu1 %vm1389_vm0, %v8066_v0 }
0x3674   :  { %v8150_v2 = vpop.f32.mrb[56].mxu1 }
0x3675   :  { %v8151_v41 = vadd.f32 %v8590_v30, %v8150_v2  ;;  %v9459_v3 = vpop.f32.mrb[57].mxu1 }
0x3677   :  { %10163 = vtanh.f32 %v8151_v41 }
0x3681   :  { %v10164_v4 = vpop.eup %10163 }
0x3682   :  { %9469 = vmatmul.mubr.msk.f32.vlgmr.msra.gmra.mrb[80].mxu0 %vm1389_vm0, %v10164_v4 }
0x3755   :  { %v8235_v6 = vpop.f32.mrb[80].mxu0 }
0x3756   :  { %v8236_v7 = vadd.f32 %v8592_v5, %v8235_v6  ;;  %v9470_v19 = vpop.f32.mrb[81].mxu0 }
0x3758   :  { %8240 = vst.msk [vmem:[#allocation88] sm:$0x3] %vm8239_vm14, %v8236_v7 }
0x3759   :  { %11410 = shalt.err (!%p11407_p4)
}
0x375a   :  { %s11411_s26 = scalar_lea.hbm %s12105_s25, 32 }
0x375b   :  { %p11412_p5 = scmp.ne.s32.totalorder %s12105_s25, %s11411_s26  ;;  %p11415_p6 = scmp.lt.u32.totalorder %s11411_s26, %s12105_s25 }
0x375d   :  { %p11417_p7 = pnand %p11415_p6, %p11412_p5 }
0x375f   :  { %11420 = shalt.err (!%p11417_p7)
}
0x3760   :  { %8250 = dma.vmem_to_hbm [thread:$0]  %s8248_s9, 32, %s12105_s25, [#allocation4]  }
0x3761   :  { %11479 = dma.done.wait [#allocation4], 32  }
0x3762   :  { %11480 = vsyncadd [#allocation4], 4294967264 }
0x3763   :  { %8254 = vsyncpa [#allocation3], 1 }
0x3764   :  { %8255 = vsyncpa [#allocation6], 1 }
0x3765   :  { %8256 = vsyncpa [#allocation9], 1 }
0x3766   :  { %8257 = vsyncpa [#allocation12], 1 }
0x3767   :  { %8258 = vsyncpa [#allocation15], 1 }
0x3768   :  { %8259 = vsyncpa [#allocation18], 1 }
0x3769   :  { %8260 = vsyncpa [#allocation21], 1 }
0x376a   :  { %8261 = vsyncpa [#allocation24], 1 }
0x376b   :  { %8262 = vsyncpa [#allocation27], 1 }
0x376c   :  { %8263 = vsyncpa [#allocation30], 1 }
0x376d   :  { %8264 = vsyncpa [#allocation33], 1 }
0x376e   :  { %8265 = vsyncpa [#allocation36], 1 }
0x376f   :  { %8266 = vsyncpa [#allocation39], 1 }
0x3770   :  { %8267 = vsyncpa [#allocation42], 1 }
0x3771   :  { %8268 = vsyncpa [#allocation45], 1 }
0x3772   :  { %8269 = vsyncpa [#allocation48], 1 }
0x3773   :  { %8270 = vsyncpa [#allocation51], 1 }
0x3774   :  { %8271 = vsyncpa [#allocation54], 1 }
0x3775   :  { %8272 = vsyncpa [#allocation57], 1 }
0x3776   :  { %8273 = vsyncpa [#allocation60], 1 }
0x3777   :  { %8274 = vsyncpa [#allocation63], 1 }
0x3778   :  { %8275 = vsyncpa [#allocation66], 1 }
0x3779   :  { %8276 = vsyncpa [#allocation69], 1 }
0x377a   :  { %8277 = vsyncpa [#allocation72], 1 }
0x377b   :  { %8278 = vsyncpa [#allocation75], 1 }
0x377c   :  { %8279 = vsyncpa [#allocation78], 1 }
0x377d   :  { %8280 = vsyncpa [#allocation81], 1 }
0x377e   :  { %8281 = vsyncpa [#allocation84], 1 }
0x377f   :  { %8282 = vsyncpa [#allocation87], 1 }
0x3780   :  { %8283 = vsyncpa [#allocation4], 1 }

</bundles_post_ra>
